<compile_context>
chip_gen: v5e
topology: v5e:2x2
jax: 0.10.0
libtpu: 0.0.40
codegen_flags: <defaults>
</compile_context>

<pallas_src>
import jax
import jax.numpy as jnp
from jax import lax
from jax.experimental import pallas as pl
from jax.experimental.pallas import tpu as pltpu

N_EMBD = 384
N_HEAD = 6
HEAD_SIZE = N_EMBD // N_HEAD     # 64
HIDDEN = 4 * N_EMBD              # 1536
BLOCK_SIZE = 8                   # causal window / sequence length
DROPOUT = 0.2                    # eval mode -> identity
LN_EPS = 1e-5


def _layernorm(v, gamma, beta):
    # v: (..., C) f32 ; gamma/beta: (1, C) f32
    mu = jnp.mean(v, axis=-1, keepdims=True)
    var = jnp.mean(jnp.square(v - mu), axis=-1, keepdims=True)
    inv = lax.rsqrt(var + LN_EPS)
    return (v - mu) * inv * gamma + beta


def _block_math(x, params, *, approx_recip=False):
    """Shared math for the kernel body and the pure-JAX reference.

    x: (bb, T, C). params: prepared tuple (bf16 matmul weights, f32 vectors).
    Returns f32 (bb, T, C).
    """
    (ln1_g, ln1_b, wqkv, wo, bo, ln2_g, ln2_b, w1, b1, w2, b2) = params
    bb, T, C = x.shape
    rows = bb * T
    hs = HEAD_SIZE
    sm_scale = float(hs) ** -0.5
    x = x.astype(jnp.float32)

    # TODO(synk): train-mode nn.Dropout(0.2) (attention weights, proj out, ffn out) is
    # omitted -> eval-mode forward only.

    # ---- self-attention branch: x + proj( concat_h softmax(mask(q k^T / sqrt(hs))) v ) ----
    ln1 = _layernorm(x, ln1_g, ln1_b)
    ln1_2d = ln1.reshape(rows, C).astype(jnp.bfloat16)

    # One fused QKV matmul: (rows, C) x (C, 3C) -> (rows, 3C), f32 accumulation on MXU.
    qkv = jnp.dot(ln1_2d, wqkv, preferred_element_type=jnp.float32)

    causal = (lax.broadcasted_iota(jnp.int32, (T, T), 0)
              >= lax.broadcasted_iota(jnp.int32, (T, T), 1))          # (T, T)
    mask_bias = jnp.where(causal, 0.0, -1e30).astype(jnp.float32)     # additive bias

    # Tiny per-head attention (T=8): static-sliced from the fused QKV result.
    head_outs = []
    for h in range(N_HEAD):                                           # static unroll (6)
        q_h = qkv[:, h * hs:(h + 1) * hs].reshape(bb, T, hs).astype(jnp.bfloat16)
        k_h = qkv[:, C + h * hs:C + (h + 1) * hs].reshape(bb, T, hs).astype(jnp.bfloat16)
        v_h = qkv[:, 2 * C + h * hs:2 * C + (h + 1) * hs].reshape(bb, T, hs).astype(jnp.bfloat16)
        s = jnp.einsum('bqd,bkd->bqk', q_h, k_h,
                       preferred_element_type=jnp.float32) * sm_scale + mask_bias
        p = jnp.exp(s - jnp.max(s, axis=-1, keepdims=True))
        l = jnp.sum(p, axis=-1, keepdims=True)
        inv_l = pl.reciprocal(l, approx=True) if approx_recip else 1.0 / l
        p = p * inv_l
        head_outs.append(jnp.einsum('bqk,bkd->bqd', p.astype(jnp.bfloat16), v_h,
                                    preferred_element_type=jnp.float32))
    # Lane-dense concat of heads -> ONE (rows, C) x (C, C) output-projection matmul.
    o = jnp.concatenate(head_outs, axis=-1).reshape(rows, C).astype(jnp.bfloat16)
    sa = jnp.dot(o, wo, preferred_element_type=jnp.float32) + bo
    x1 = x + sa.reshape(bb, T, C)

    # ---- feed-forward branch: x + W2 relu(W1 LN2(x) + b1) + b2 ----
    ln2 = _layernorm(x1, ln2_g, ln2_b)
    ln2_2d = ln2.reshape(rows, C).astype(jnp.bfloat16)
    hdn = jnp.dot(ln2_2d, w1, preferred_element_type=jnp.float32) + b1
    hdn = jnp.maximum(hdn, 0.0)
    y = jnp.dot(hdn.astype(jnp.bfloat16), w2, preferred_element_type=jnp.float32) + b2
    return x1 + y.reshape(bb, T, C)


def block_kernel(x_ref, *rest):
    *p_refs, o_ref = rest
    params = tuple(r[...] for r in p_refs)
    o_ref[...] = _block_math(x_ref[...], params, approx_recip=True).astype(o_ref.dtype)


def prepare_params(raw):
    """Cast/fuse raw (in_features, out_features) params into kernel layout.

    Call once and reuse the result across forward calls (hoisted out of the
    per-call path per perf review).
    """
    (ln1_g, ln1_b, wq, wk, wv, wo, bo, ln2_g, ln2_b, w1, b1, w2, b2) = raw
    C = N_EMBD
    f32, bf16 = jnp.float32, jnp.bfloat16
    wqkv = jnp.concatenate([wq, wk, wv], axis=1).astype(bf16)      # (C, 3C) lane-dense
    return (
        ln1_g.reshape(1, C).astype(f32), ln1_b.reshape(1, C).astype(f32),
        wqkv,
        wo.astype(bf16),                                           # (C, C) unsplit
        bo.reshape(1, C).astype(f32),
        ln2_g.reshape(1, C).astype(f32), ln2_b.reshape(1, C).astype(f32),
        w1.astype(bf16), b1.reshape(1, HIDDEN).astype(f32),
        w2.astype(bf16), b2.reshape(1, C).astype(f32),
    )


def _vmem_limit_bytes(batch_tile, T):
    """Size the VMEM limit from actual footprint (weights + I/O tiles + intermediates)."""
    rows = batch_tile * T
    C, Hd = N_EMBD, HIDDEN
    weight_b = (C * 3 * C + C * C + C * Hd + Hd * C) * 2           # bf16 resident weights
    vec_b = (6 * C + Hd) * 4                                       # f32 bias/LN vectors
    io_b = rows * C * 4 * 2                                        # x + out tiles (f32)
    inter_b = rows * (3 * C + Hd + 5 * C) * 4                      # qkv/ln/hdn/sa temporaries
    attn_b = batch_tile * N_HEAD * T * T * 4 * 3                   # per-head score/softmax
    total = 2 * (weight_b + vec_b + io_b) + inter_b + attn_b       # 2x: double buffering
    total = int(total * 1.5)                                       # compiler headroom
    return min(max(total, 16 * 1024 * 1024), 64 * 1024 * 1024)


def block_forward(x, prepped_params, *, batch_tile=None, vmem_limit_bytes=None):
    """x: (B, T, n_embd) -> (B, T, n_embd), eval-mode Block forward.

    `prepped_params` must come from prepare_params() (prepared once, reused).
    """
    B, T, C = x.shape
    assert C == N_EMBD

    if batch_tile is None:
        # Target ~512 rows (MXU M) per grid step. Never split a small batch into
        # multiple tiny-M steps: the grid is a serial loop on v5e/v6e, and on v7x a
        # megacore split below a full MXU tile per core loses more than it gains.
        batch_tile = min(B, max(1, pl.cdiv(512, T)))
    n_steps = pl.cdiv(B, batch_tile)
    Bp = n_steps * batch_tile
    if Bp != B:                                          # ragged batch: pad, slice after
        x = jnp.pad(x, ((0, Bp - B), (0, 0), (0, 0)))
    if vmem_limit_bytes is None:
        vmem_limit_bytes = _vmem_limit_bytes(batch_tile, T)

    vec_c = pl.BlockSpec((1, C), lambda i: (0, 0))
    in_specs = [
        pl.BlockSpec((batch_tile, T, C), lambda i: (i, 0, 0)),     # x tile
        vec_c, vec_c,                                              # ln1 gamma/beta
        pl.BlockSpec((C, 3 * C), lambda i: (0, 0)),                # fused Wqkv (resident)
        pl.BlockSpec((C, C), lambda i: (0, 0)),                    # Wo (resident)
        vec_c,                                                     # bo
        vec_c, vec_c,                                              # ln2 gamma/beta
        pl.BlockSpec((C, HIDDEN), lambda i: (0, 0)),               # W1 (resident)
        pl.BlockSpec((1, HIDDEN), lambda i: (0, 0)),               # b1
        pl.BlockSpec((HIDDEN, C), lambda i: (0, 0)),               # W2 (resident)
        vec_c,                                                     # b2
    ]

    out = pl.pallas_call(
        block_kernel,
        out_shape=jax.ShapeDtypeStruct((Bp, T, C), x.dtype),
        grid_spec=pltpu.PrefetchScalarGridSpec(
            num_scalar_prefetch=0,
            grid=(n_steps,),
            in_specs=in_specs,
            out_specs=pl.BlockSpec((batch_tile, T, C), lambda i: (i, 0, 0)),
        ),
        compiler_params=pltpu.CompilerParams(
            dimension_semantics=("parallel",),
            vmem_limit_bytes=vmem_limit_bytes,
        ),
    )(x, *prepped_params)
    return out[:B]


def _init_linear(key, fan_in, fan_out, bias=True):
    # PyTorch nn.Linear default init: U(-1/sqrt(fan_in), 1/sqrt(fan_in)); (in, out) layout.
    kw, kb = jax.random.split(key)
    bound = 1.0 / (fan_in ** 0.5)
    w = jax.random.uniform(kw, (fan_in, fan_out), jnp.float32, -bound, bound)
    b = jax.random.uniform(kb, (fan_out,), jnp.float32, -bound, bound) if bias else None
    return w, b


if __name__ == "__main__":
    key = jax.random.PRNGKey(0)
    ks = jax.random.split(key, 7)
    B, T, C = 2, BLOCK_SIZE, N_EMBD

    x = jax.random.normal(ks[0], (B, T, C), dtype=jnp.float32)

    wq, _ = _init_linear(ks[1], C, C, bias=False)     # 6 heads' query projections, concat
    wk, _ = _init_linear(ks[2], C, C, bias=False)
    wv, _ = _init_linear(ks[3], C, C, bias=False)
    wo, bo = _init_linear(ks[4], C, C)                # MultiheadAttention.proj
    w1, b1 = _init_linear(ks[5], C, HIDDEN)           # FeedForward Linear(384, 1536)
    w2, b2 = _init_linear(ks[6], HIDDEN, C)           # FeedForward Linear(1536, 384)
    ln1_g = jnp.ones((C,), jnp.float32)
    ln1_b = jnp.zeros((C,), jnp.float32)
    ln2_g = jnp.ones((C,), jnp.float32)
    ln2_b = jnp.zeros((C,), jnp.float32)

    raw = (ln1_g, ln1_b, wq, wk, wv, wo, bo, ln2_g, ln2_b, w1, b1, w2, b2)
    prepped = prepare_params(raw)                     # hoisted: prepare once, reuse

    y = jax.block_until_ready(block_forward(x, prepped))

    # Pure-JAX mirror of the kernel math (same bf16 cast points, exact softmax
    # reciprocal) as the reference.
    y_ref = _block_math(x, prepped, approx_recip=False)

    assert y.shape == (B, T, C)
    err = float(jnp.max(jnp.abs(y - y_ref)))
    assert jnp.allclose(y, y_ref, atol=1e-2, rtol=1e-2), err

    print("KERNEL_OK")
</pallas_src>

<mosaic_0001>
module attributes {stable_mosaic.version = 11 : i64} {
  func.func @block_kernel(%arg0: i32, %arg1: memref<2x8x384xf32, #tpu.memory_space<vmem>>, %arg2: memref<1x384xf32, #tpu.memory_space<vmem>>, %arg3: memref<1x384xf32, #tpu.memory_space<vmem>>, %arg4: memref<384x1152xbf16, #tpu.memory_space<vmem>>, %arg5: memref<384x384xbf16, #tpu.memory_space<vmem>>, %arg6: memref<1x384xf32, #tpu.memory_space<vmem>>, %arg7: memref<1x384xf32, #tpu.memory_space<vmem>>, %arg8: memref<1x384xf32, #tpu.memory_space<vmem>>, %arg9: memref<384x1536xbf16, #tpu.memory_space<vmem>>, %arg10: memref<1x1536xf32, #tpu.memory_space<vmem>>, %arg11: memref<1536x384xbf16, #tpu.memory_space<vmem>>, %arg12: memref<1x384xf32, #tpu.memory_space<vmem>>, %arg13: memref<2x8x384xf32, #tpu.memory_space<vmem>>) attributes {dimension_semantics = [#tpu.dimension_semantics<parallel>], iteration_bounds = array<i64: 1>, scalar_prefetch = 0 : i64, scratch_operands = 0 : i64, tpu.core_type = #tpu.core_type<tc>, window_params = [{transform_indices = @transform_0, window_bounds = array<i64: 2, 8, 384>}, {pipeline_mode = #tpu.pipeline_mode<synchronous>, transform_indices = @transform_1, window_bounds = array<i64: 1, 384>}, {pipeline_mode = #tpu.pipeline_mode<synchronous>, transform_indices = @transform_2, window_bounds = array<i64: 1, 384>}, {pipeline_mode = #tpu.pipeline_mode<synchronous>, transform_indices = @transform_3, window_bounds = array<i64: 384, 1152>}, {pipeline_mode = #tpu.pipeline_mode<synchronous>, transform_indices = @transform_4, window_bounds = array<i64: 384, 384>}, {pipeline_mode = #tpu.pipeline_mode<synchronous>, transform_indices = @transform_5, window_bounds = array<i64: 1, 384>}, {pipeline_mode = #tpu.pipeline_mode<synchronous>, transform_indices = @transform_6, window_bounds = array<i64: 1, 384>}, {pipeline_mode = #tpu.pipeline_mode<synchronous>, transform_indices = @transform_7, window_bounds = array<i64: 1, 384>}, {pipeline_mode = #tpu.pipeline_mode<synchronous>, transform_indices = @transform_8, window_bounds = array<i64: 384, 1536>}, {pipeline_mode = #tpu.pipeline_mode<synchronous>, transform_indices = @transform_9, window_bounds = array<i64: 1, 1536>}, {pipeline_mode = #tpu.pipeline_mode<synchronous>, transform_indices = @transform_10, window_bounds = array<i64: 1536, 384>}, {pipeline_mode = #tpu.pipeline_mode<synchronous>, transform_indices = @transform_11, window_bounds = array<i64: 1, 384>}, {transform_indices = @transform_12, window_bounds = array<i64: 2, 8, 384>}]} {
    %c0 = arith.constant 0 : index
    %c0_0 = arith.constant 0 : index
    %0 = vector.load %arg2[%c0, %c0_0] : memref<1x384xf32, #tpu.memory_space<vmem>>, vector<1x384xf32>
    %c0_1 = arith.constant 0 : index
    %c0_2 = arith.constant 0 : index
    %1 = vector.load %arg3[%c0_1, %c0_2] : memref<1x384xf32, #tpu.memory_space<vmem>>, vector<1x384xf32>
    %c0_3 = arith.constant 0 : index
    %c0_4 = arith.constant 0 : index
    %2 = vector.load %arg4[%c0_3, %c0_4] : memref<384x1152xbf16, #tpu.memory_space<vmem>>, vector<384x1152xbf16>
    %c0_5 = arith.constant 0 : index
    %c0_6 = arith.constant 0 : index
    %3 = vector.load %arg5[%c0_5, %c0_6] : memref<384x384xbf16, #tpu.memory_space<vmem>>, vector<384x384xbf16>
    %c0_7 = arith.constant 0 : index
    %c0_8 = arith.constant 0 : index
    %4 = vector.load %arg6[%c0_7, %c0_8] : memref<1x384xf32, #tpu.memory_space<vmem>>, vector<1x384xf32>
    %c0_9 = arith.constant 0 : index
    %c0_10 = arith.constant 0 : index
    %5 = vector.load %arg7[%c0_9, %c0_10] : memref<1x384xf32, #tpu.memory_space<vmem>>, vector<1x384xf32>
    %c0_11 = arith.constant 0 : index
    %c0_12 = arith.constant 0 : index
    %6 = vector.load %arg8[%c0_11, %c0_12] : memref<1x384xf32, #tpu.memory_space<vmem>>, vector<1x384xf32>
    %c0_13 = arith.constant 0 : index
    %c0_14 = arith.constant 0 : index
    %7 = vector.load %arg9[%c0_13, %c0_14] : memref<384x1536xbf16, #tpu.memory_space<vmem>>, vector<384x1536xbf16>
    %c0_15 = arith.constant 0 : index
    %c0_16 = arith.constant 0 : index
    %8 = vector.load %arg10[%c0_15, %c0_16] : memref<1x1536xf32, #tpu.memory_space<vmem>>, vector<1x1536xf32>
    %c0_17 = arith.constant 0 : index
    %c0_18 = arith.constant 0 : index
    %9 = vector.load %arg11[%c0_17, %c0_18] : memref<1536x384xbf16, #tpu.memory_space<vmem>>, vector<1536x384xbf16>
    %c0_19 = arith.constant 0 : index
    %c0_20 = arith.constant 0 : index
    %10 = vector.load %arg12[%c0_19, %c0_20] : memref<1x384xf32, #tpu.memory_space<vmem>>, vector<1x384xf32>
    %c0_21 = arith.constant 0 : index
    %c0_22 = arith.constant 0 : index
    %c0_23 = arith.constant 0 : index
    %11 = vector.load %arg1[%c0_21, %c0_22, %c0_23] : memref<2x8x384xf32, #tpu.memory_space<vmem>>, vector<2x8x384xf32>
    %cst = arith.constant dense<0.000000e+00> : vector<2x8xf32>
    %12 = vector.multi_reduction <add>, %11, %cst [2] : vector<2x8x384xf32> to vector<2x8xf32>
    %13 = vector.shape_cast %12 : vector<2x8xf32> to vector<2x8x1xf32>
    %cst_24 = arith.constant 3.840000e+02 : f32
    %14 = vector.broadcast %cst_24 : f32 to vector<2x8x1xf32>
    %15 = arith.divf %13, %14 : vector<2x8x1xf32>
    %16 = vector.broadcast %15 : vector<2x8x1xf32> to vector<2x8x384xf32>
    %17 = arith.subf %11, %16 : vector<2x8x384xf32>
    %18 = arith.mulf %17, %17 : vector<2x8x384xf32>
    %cst_25 = arith.constant dense<0.000000e+00> : vector<2x8xf32>
    %19 = vector.multi_reduction <add>, %18, %cst_25 [2] : vector<2x8x384xf32> to vector<2x8xf32>
    %20 = vector.shape_cast %19 : vector<2x8xf32> to vector<2x8x1xf32>
    %cst_26 = arith.constant 3.840000e+02 : f32
    %21 = vector.broadcast %cst_26 : f32 to vector<2x8x1xf32>
    %22 = arith.divf %20, %21 : vector<2x8x1xf32>
    %cst_27 = arith.constant 9.99999974E-6 : f32
    %23 = vector.broadcast %cst_27 : f32 to vector<2x8x1xf32>
    %24 = arith.addf %22, %23 : vector<2x8x1xf32>
    %25 = math.rsqrt %24 : vector<2x8x1xf32>
    %26 = vector.broadcast %15 : vector<2x8x1xf32> to vector<2x8x384xf32>
    %27 = arith.subf %11, %26 : vector<2x8x384xf32>
    %28 = vector.broadcast %25 : vector<2x8x1xf32> to vector<2x8x384xf32>
    %29 = arith.mulf %27, %28 : vector<2x8x384xf32>
    %30 = vector.shape_cast %0 : vector<1x384xf32> to vector<1x1x384xf32>
    %31 = vector.broadcast %30 : vector<1x1x384xf32> to vector<2x8x384xf32>
    %32 = arith.mulf %29, %31 : vector<2x8x384xf32>
    %33 = vector.shape_cast %1 : vector<1x384xf32> to vector<1x1x384xf32>
    %34 = vector.broadcast %33 : vector<1x1x384xf32> to vector<2x8x384xf32>
    %35 = arith.addf %32, %34 : vector<2x8x384xf32>
    %36 = vector.shape_cast %35 : vector<2x8x384xf32> to vector<16x384xf32>
    %37 = arith.truncf %36 : vector<16x384xf32> to vector<16x384xbf16>
    %cst_28 = arith.constant dense<0.000000e+00> : vector<16x1152xf32>
    %38 = tpu.matmul %37, %2, %cst_28 {dimension_numbers = #tpu.dot_dimension_numbers<[1], [0], [0], [1], [0, 0, 1, 1], [], []>} : vector<16x384xbf16>, vector<384x1152xbf16>, vector<16x1152xf32> -> vector<16x1152xf32>
    %39 = tpu.iota {dimensions = array<i32: 0>} : vector<8x8xi32>
    %40 = tpu.iota {dimensions = array<i32: 1>} : vector<8x8xi32>
    %41 = arith.cmpi sge, %39, %40 : vector<8x8xi32>
    %cst_29 = arith.constant 0.000000e+00 : f32
    %cst_30 = arith.constant -1.000000e+30 : f32
    %42 = vector.broadcast %cst_29 : f32 to vector<8x8xf32>
    %43 = vector.broadcast %cst_30 : f32 to vector<8x8xf32>
    %44 = arith.select %41, %42, %43 : vector<8x8xi1>, vector<8x8xf32>
    %45 = vector.extract_strided_slice %38 {offsets = [0, 0], sizes = [16, 64], strides = [1, 1]} : vector<16x1152xf32> to vector<16x64xf32>
    %46 = vector.shape_cast %45 : vector<16x64xf32> to vector<2x8x64xf32>
    %47 = arith.truncf %46 : vector<2x8x64xf32> to vector<2x8x64xbf16>
    %48 = vector.extract_strided_slice %38 {offsets = [0, 384], sizes = [16, 64], strides = [1, 1]} : vector<16x1152xf32> to vector<16x64xf32>
    %49 = vector.shape_cast %48 : vector<16x64xf32> to vector<2x8x64xf32>
    %50 = arith.truncf %49 : vector<2x8x64xf32> to vector<2x8x64xbf16>
    %51 = vector.extract_strided_slice %38 {offsets = [0, 768], sizes = [16, 64], strides = [1, 1]} : vector<16x1152xf32> to vector<16x64xf32>
    %52 = vector.shape_cast %51 : vector<16x64xf32> to vector<2x8x64xf32>
    %53 = arith.truncf %52 : vector<2x8x64xf32> to vector<2x8x64xbf16>
    "tpu.trace_start"() <{level = 10 : i32, message = "bqd,bkd->bqk"}> : () -> ()
    %cst_31 = arith.constant dense<0.000000e+00> : vector<2x8x8xf32>
    %54 = tpu.matmul %47, %50, %cst_31 {dimension_numbers = #tpu.dot_dimension_numbers<[2], [2], [1], [1], [0, 0, 0, 1, 1, 1], [0], [0]>} : vector<2x8x64xbf16>, vector<2x8x64xbf16>, vector<2x8x8xf32> -> vector<2x8x8xf32>
    "tpu.trace_stop"() : () -> ()
    %cst_32 = arith.constant 1.250000e-01 : f32
    %55 = vector.broadcast %cst_32 : f32 to vector<2x8x8xf32>
    %56 = arith.mulf %54, %55 : vector<2x8x8xf32>
    %57 = vector.shape_cast %44 : vector<8x8xf32> to vector<1x8x8xf32>
    %58 = vector.broadcast %57 : vector<1x8x8xf32> to vector<2x8x8xf32>
    %59 = arith.addf %56, %58 : vector<2x8x8xf32>
    %cst_33 = arith.constant dense<0xFF800000> : vector<2x8xf32>
    %60 = vector.multi_reduction <maximumf>, %59, %cst_33 [2] : vector<2x8x8xf32> to vector<2x8xf32>
    %61 = vector.shape_cast %60 : vector<2x8xf32> to vector<2x8x1xf32>
    %62 = vector.broadcast %61 : vector<2x8x1xf32> to vector<2x8x8xf32>
    %63 = arith.subf %59, %62 : vector<2x8x8xf32>
    %64 = math.exp %63 : vector<2x8x8xf32>
    %cst_34 = arith.constant dense<0.000000e+00> : vector<2x8xf32>
    %65 = vector.multi_reduction <add>, %64, %cst_34 [2] : vector<2x8x8xf32> to vector<2x8xf32>
    %66 = vector.shape_cast %65 : vector<2x8xf32> to vector<2x8x1xf32>
    %67 = tpu.reciprocal %66 {approx = true} : vector<2x8x1xf32> -> vector<2x8x1xf32>
    %68 = vector.broadcast %67 : vector<2x8x1xf32> to vector<2x8x8xf32>
    %69 = arith.mulf %64, %68 : vector<2x8x8xf32>
    %70 = arith.truncf %69 : vector<2x8x8xf32> to vector<2x8x8xbf16>
    "tpu.trace_start"() <{level = 10 : i32, message = "bqk,bkd->bqd"}> : () -> ()
    %cst_35 = arith.constant dense<0.000000e+00> : vector<2x8x64xf32>
    %71 = tpu.matmul %70, %53, %cst_35 {dimension_numbers = #tpu.dot_dimension_numbers<[2], [1], [1], [2], [0, 0, 0, 1, 1, 2], [0], [0]>} : vector<2x8x8xbf16>, vector<2x8x64xbf16>, vector<2x8x64xf32> -> vector<2x8x64xf32>
    "tpu.trace_stop"() : () -> ()
    %72 = vector.extract_strided_slice %38 {offsets = [0, 64], sizes = [16, 64], strides = [1, 1]} : vector<16x1152xf32> to vector<16x64xf32>
    %73 = vector.shape_cast %72 : vector<16x64xf32> to vector<2x8x64xf32>
    %74 = arith.truncf %73 : vector<2x8x64xf32> to vector<2x8x64xbf16>
    %75 = vector.extract_strided_slice %38 {offsets = [0, 448], sizes = [16, 64], strides = [1, 1]} : vector<16x1152xf32> to vector<16x64xf32>
    %76 = vector.shape_cast %75 : vector<16x64xf32> to vector<2x8x64xf32>
    %77 = arith.truncf %76 : vector<2x8x64xf32> to vector<2x8x64xbf16>
    %78 = vector.extract_strided_slice %38 {offsets = [0, 832], sizes = [16, 64], strides = [1, 1]} : vector<16x1152xf32> to vector<16x64xf32>
    %79 = vector.shape_cast %78 : vector<16x64xf32> to vector<2x8x64xf32>
    %80 = arith.truncf %79 : vector<2x8x64xf32> to vector<2x8x64xbf16>
    "tpu.trace_start"() <{level = 10 : i32, message = "bqd,bkd->bqk"}> : () -> ()
    %cst_36 = arith.constant dense<0.000000e+00> : vector<2x8x8xf32>
    %81 = tpu.matmul %74, %77, %cst_36 {dimension_numbers = #tpu.dot_dimension_numbers<[2], [2], [1], [1], [0, 0, 0, 1, 1, 1], [0], [0]>} : vector<2x8x64xbf16>, vector<2x8x64xbf16>, vector<2x8x8xf32> -> vector<2x8x8xf32>
    "tpu.trace_stop"() : () -> ()
    %cst_37 = arith.constant 1.250000e-01 : f32
    %82 = vector.broadcast %cst_37 : f32 to vector<2x8x8xf32>
    %83 = arith.mulf %81, %82 : vector<2x8x8xf32>
    %84 = vector.shape_cast %44 : vector<8x8xf32> to vector<1x8x8xf32>
    %85 = vector.broadcast %84 : vector<1x8x8xf32> to vector<2x8x8xf32>
    %86 = arith.addf %83, %85 : vector<2x8x8xf32>
    %cst_38 = arith.constant dense<0xFF800000> : vector<2x8xf32>
    %87 = vector.multi_reduction <maximumf>, %86, %cst_38 [2] : vector<2x8x8xf32> to vector<2x8xf32>
    %88 = vector.shape_cast %87 : vector<2x8xf32> to vector<2x8x1xf32>
    %89 = vector.broadcast %88 : vector<2x8x1xf32> to vector<2x8x8xf32>
    %90 = arith.subf %86, %89 : vector<2x8x8xf32>
    %91 = math.exp %90 : vector<2x8x8xf32>
    %cst_39 = arith.constant dense<0.000000e+00> : vector<2x8xf32>
    %92 = vector.multi_reduction <add>, %91, %cst_39 [2] : vector<2x8x8xf32> to vector<2x8xf32>
    %93 = vector.shape_cast %92 : vector<2x8xf32> to vector<2x8x1xf32>
    %94 = tpu.reciprocal %93 {approx = true} : vector<2x8x1xf32> -> vector<2x8x1xf32>
    %95 = vector.broadcast %94 : vector<2x8x1xf32> to vector<2x8x8xf32>
    %96 = arith.mulf %91, %95 : vector<2x8x8xf32>
    %97 = arith.truncf %96 : vector<2x8x8xf32> to vector<2x8x8xbf16>
    "tpu.trace_start"() <{level = 10 : i32, message = "bqk,bkd->bqd"}> : () -> ()
    %cst_40 = arith.constant dense<0.000000e+00> : vector<2x8x64xf32>
    %98 = tpu.matmul %97, %80, %cst_40 {dimension_numbers = #tpu.dot_dimension_numbers<[2], [1], [1], [2], [0, 0, 0, 1, 1, 2], [0], [0]>} : vector<2x8x8xbf16>, vector<2x8x64xbf16>, vector<2x8x64xf32> -> vector<2x8x64xf32>
    "tpu.trace_stop"() : () -> ()
    %99 = vector.extract_strided_slice %38 {offsets = [0, 128], sizes = [16, 64], strides = [1, 1]} : vector<16x1152xf32> to vector<16x64xf32>
    %100 = vector.shape_cast %99 : vector<16x64xf32> to vector<2x8x64xf32>
    %101 = arith.truncf %100 : vector<2x8x64xf32> to vector<2x8x64xbf16>
    %102 = vector.extract_strided_slice %38 {offsets = [0, 512], sizes = [16, 64], strides = [1, 1]} : vector<16x1152xf32> to vector<16x64xf32>
    %103 = vector.shape_cast %102 : vector<16x64xf32> to vector<2x8x64xf32>
    %104 = arith.truncf %103 : vector<2x8x64xf32> to vector<2x8x64xbf16>
    %105 = vector.extract_strided_slice %38 {offsets = [0, 896], sizes = [16, 64], strides = [1, 1]} : vector<16x1152xf32> to vector<16x64xf32>
    %106 = vector.shape_cast %105 : vector<16x64xf32> to vector<2x8x64xf32>
    %107 = arith.truncf %106 : vector<2x8x64xf32> to vector<2x8x64xbf16>
    "tpu.trace_start"() <{level = 10 : i32, message = "bqd,bkd->bqk"}> : () -> ()
    %cst_41 = arith.constant dense<0.000000e+00> : vector<2x8x8xf32>
    %108 = tpu.matmul %101, %104, %cst_41 {dimension_numbers = #tpu.dot_dimension_numbers<[2], [2], [1], [1], [0, 0, 0, 1, 1, 1], [0], [0]>} : vector<2x8x64xbf16>, vector<2x8x64xbf16>, vector<2x8x8xf32> -> vector<2x8x8xf32>
    "tpu.trace_stop"() : () -> ()
    %cst_42 = arith.constant 1.250000e-01 : f32
    %109 = vector.broadcast %cst_42 : f32 to vector<2x8x8xf32>
    %110 = arith.mulf %108, %109 : vector<2x8x8xf32>
    %111 = vector.shape_cast %44 : vector<8x8xf32> to vector<1x8x8xf32>
    %112 = vector.broadcast %111 : vector<1x8x8xf32> to vector<2x8x8xf32>
    %113 = arith.addf %110, %112 : vector<2x8x8xf32>
    %cst_43 = arith.constant dense<0xFF800000> : vector<2x8xf32>
    %114 = vector.multi_reduction <maximumf>, %113, %cst_43 [2] : vector<2x8x8xf32> to vector<2x8xf32>
    %115 = vector.shape_cast %114 : vector<2x8xf32> to vector<2x8x1xf32>
    %116 = vector.broadcast %115 : vector<2x8x1xf32> to vector<2x8x8xf32>
    %117 = arith.subf %113, %116 : vector<2x8x8xf32>
    %118 = math.exp %117 : vector<2x8x8xf32>
    %cst_44 = arith.constant dense<0.000000e+00> : vector<2x8xf32>
    %119 = vector.multi_reduction <add>, %118, %cst_44 [2] : vector<2x8x8xf32> to vector<2x8xf32>
    %120 = vector.shape_cast %119 : vector<2x8xf32> to vector<2x8x1xf32>
    %121 = tpu.reciprocal %120 {approx = true} : vector<2x8x1xf32> -> vector<2x8x1xf32>
    %122 = vector.broadcast %121 : vector<2x8x1xf32> to vector<2x8x8xf32>
    %123 = arith.mulf %118, %122 : vector<2x8x8xf32>
    %124 = arith.truncf %123 : vector<2x8x8xf32> to vector<2x8x8xbf16>
    "tpu.trace_start"() <{level = 10 : i32, message = "bqk,bkd->bqd"}> : () -> ()
    %cst_45 = arith.constant dense<0.000000e+00> : vector<2x8x64xf32>
    %125 = tpu.matmul %124, %107, %cst_45 {dimension_numbers = #tpu.dot_dimension_numbers<[2], [1], [1], [2], [0, 0, 0, 1, 1, 2], [0], [0]>} : vector<2x8x8xbf16>, vector<2x8x64xbf16>, vector<2x8x64xf32> -> vector<2x8x64xf32>
    "tpu.trace_stop"() : () -> ()
    %126 = vector.extract_strided_slice %38 {offsets = [0, 192], sizes = [16, 64], strides = [1, 1]} : vector<16x1152xf32> to vector<16x64xf32>
    %127 = vector.shape_cast %126 : vector<16x64xf32> to vector<2x8x64xf32>
    %128 = arith.truncf %127 : vector<2x8x64xf32> to vector<2x8x64xbf16>
    %129 = vector.extract_strided_slice %38 {offsets = [0, 576], sizes = [16, 64], strides = [1, 1]} : vector<16x1152xf32> to vector<16x64xf32>
    %130 = vector.shape_cast %129 : vector<16x64xf32> to vector<2x8x64xf32>
    %131 = arith.truncf %130 : vector<2x8x64xf32> to vector<2x8x64xbf16>
    %132 = vector.extract_strided_slice %38 {offsets = [0, 960], sizes = [16, 64], strides = [1, 1]} : vector<16x1152xf32> to vector<16x64xf32>
    %133 = vector.shape_cast %132 : vector<16x64xf32> to vector<2x8x64xf32>
    %134 = arith.truncf %133 : vector<2x8x64xf32> to vector<2x8x64xbf16>
    "tpu.trace_start"() <{level = 10 : i32, message = "bqd,bkd->bqk"}> : () -> ()
    %cst_46 = arith.constant dense<0.000000e+00> : vector<2x8x8xf32>
    %135 = tpu.matmul %128, %131, %cst_46 {dimension_numbers = #tpu.dot_dimension_numbers<[2], [2], [1], [1], [0, 0, 0, 1, 1, 1], [0], [0]>} : vector<2x8x64xbf16>, vector<2x8x64xbf16>, vector<2x8x8xf32> -> vector<2x8x8xf32>
    "tpu.trace_stop"() : () -> ()
    %cst_47 = arith.constant 1.250000e-01 : f32
    %136 = vector.broadcast %cst_47 : f32 to vector<2x8x8xf32>
    %137 = arith.mulf %135, %136 : vector<2x8x8xf32>
    %138 = vector.shape_cast %44 : vector<8x8xf32> to vector<1x8x8xf32>
    %139 = vector.broadcast %138 : vector<1x8x8xf32> to vector<2x8x8xf32>
    %140 = arith.addf %137, %139 : vector<2x8x8xf32>
    %cst_48 = arith.constant dense<0xFF800000> : vector<2x8xf32>
    %141 = vector.multi_reduction <maximumf>, %140, %cst_48 [2] : vector<2x8x8xf32> to vector<2x8xf32>
    %142 = vector.shape_cast %141 : vector<2x8xf32> to vector<2x8x1xf32>
    %143 = vector.broadcast %142 : vector<2x8x1xf32> to vector<2x8x8xf32>
    %144 = arith.subf %140, %143 : vector<2x8x8xf32>
    %145 = math.exp %144 : vector<2x8x8xf32>
    %cst_49 = arith.constant dense<0.000000e+00> : vector<2x8xf32>
    %146 = vector.multi_reduction <add>, %145, %cst_49 [2] : vector<2x8x8xf32> to vector<2x8xf32>
    %147 = vector.shape_cast %146 : vector<2x8xf32> to vector<2x8x1xf32>
    %148 = tpu.reciprocal %147 {approx = true} : vector<2x8x1xf32> -> vector<2x8x1xf32>
    %149 = vector.broadcast %148 : vector<2x8x1xf32> to vector<2x8x8xf32>
    %150 = arith.mulf %145, %149 : vector<2x8x8xf32>
    %151 = arith.truncf %150 : vector<2x8x8xf32> to vector<2x8x8xbf16>
    "tpu.trace_start"() <{level = 10 : i32, message = "bqk,bkd->bqd"}> : () -> ()
    %cst_50 = arith.constant dense<0.000000e+00> : vector<2x8x64xf32>
    %152 = tpu.matmul %151, %134, %cst_50 {dimension_numbers = #tpu.dot_dimension_numbers<[2], [1], [1], [2], [0, 0, 0, 1, 1, 2], [0], [0]>} : vector<2x8x8xbf16>, vector<2x8x64xbf16>, vector<2x8x64xf32> -> vector<2x8x64xf32>
    "tpu.trace_stop"() : () -> ()
    %153 = vector.extract_strided_slice %38 {offsets = [0, 256], sizes = [16, 64], strides = [1, 1]} : vector<16x1152xf32> to vector<16x64xf32>
    %154 = vector.shape_cast %153 : vector<16x64xf32> to vector<2x8x64xf32>
    %155 = arith.truncf %154 : vector<2x8x64xf32> to vector<2x8x64xbf16>
    %156 = vector.extract_strided_slice %38 {offsets = [0, 640], sizes = [16, 64], strides = [1, 1]} : vector<16x1152xf32> to vector<16x64xf32>
    %157 = vector.shape_cast %156 : vector<16x64xf32> to vector<2x8x64xf32>
    %158 = arith.truncf %157 : vector<2x8x64xf32> to vector<2x8x64xbf16>
    %159 = vector.extract_strided_slice %38 {offsets = [0, 1024], sizes = [16, 64], strides = [1, 1]} : vector<16x1152xf32> to vector<16x64xf32>
    %160 = vector.shape_cast %159 : vector<16x64xf32> to vector<2x8x64xf32>
    %161 = arith.truncf %160 : vector<2x8x64xf32> to vector<2x8x64xbf16>
    "tpu.trace_start"() <{level = 10 : i32, message = "bqd,bkd->bqk"}> : () -> ()
    %cst_51 = arith.constant dense<0.000000e+00> : vector<2x8x8xf32>
    %162 = tpu.matmul %155, %158, %cst_51 {dimension_numbers = #tpu.dot_dimension_numbers<[2], [2], [1], [1], [0, 0, 0, 1, 1, 1], [0], [0]>} : vector<2x8x64xbf16>, vector<2x8x64xbf16>, vector<2x8x8xf32> -> vector<2x8x8xf32>
    "tpu.trace_stop"() : () -> ()
    %cst_52 = arith.constant 1.250000e-01 : f32
    %163 = vector.broadcast %cst_52 : f32 to vector<2x8x8xf32>
    %164 = arith.mulf %162, %163 : vector<2x8x8xf32>
    %165 = vector.shape_cast %44 : vector<8x8xf32> to vector<1x8x8xf32>
    %166 = vector.broadcast %165 : vector<1x8x8xf32> to vector<2x8x8xf32>
    %167 = arith.addf %164, %166 : vector<2x8x8xf32>
    %cst_53 = arith.constant dense<0xFF800000> : vector<2x8xf32>
    %168 = vector.multi_reduction <maximumf>, %167, %cst_53 [2] : vector<2x8x8xf32> to vector<2x8xf32>
    %169 = vector.shape_cast %168 : vector<2x8xf32> to vector<2x8x1xf32>
    %170 = vector.broadcast %169 : vector<2x8x1xf32> to vector<2x8x8xf32>
    %171 = arith.subf %167, %170 : vector<2x8x8xf32>
    %172 = math.exp %171 : vector<2x8x8xf32>
    %cst_54 = arith.constant dense<0.000000e+00> : vector<2x8xf32>
    %173 = vector.multi_reduction <add>, %172, %cst_54 [2] : vector<2x8x8xf32> to vector<2x8xf32>
    %174 = vector.shape_cast %173 : vector<2x8xf32> to vector<2x8x1xf32>
    %175 = tpu.reciprocal %174 {approx = true} : vector<2x8x1xf32> -> vector<2x8x1xf32>
    %176 = vector.broadcast %175 : vector<2x8x1xf32> to vector<2x8x8xf32>
    %177 = arith.mulf %172, %176 : vector<2x8x8xf32>
    %178 = arith.truncf %177 : vector<2x8x8xf32> to vector<2x8x8xbf16>
    "tpu.trace_start"() <{level = 10 : i32, message = "bqk,bkd->bqd"}> : () -> ()
    %cst_55 = arith.constant dense<0.000000e+00> : vector<2x8x64xf32>
    %179 = tpu.matmul %178, %161, %cst_55 {dimension_numbers = #tpu.dot_dimension_numbers<[2], [1], [1], [2], [0, 0, 0, 1, 1, 2], [0], [0]>} : vector<2x8x8xbf16>, vector<2x8x64xbf16>, vector<2x8x64xf32> -> vector<2x8x64xf32>
    "tpu.trace_stop"() : () -> ()
    %180 = vector.extract_strided_slice %38 {offsets = [0, 320], sizes = [16, 64], strides = [1, 1]} : vector<16x1152xf32> to vector<16x64xf32>
    %181 = vector.shape_cast %180 : vector<16x64xf32> to vector<2x8x64xf32>
    %182 = arith.truncf %181 : vector<2x8x64xf32> to vector<2x8x64xbf16>
    %183 = vector.extract_strided_slice %38 {offsets = [0, 704], sizes = [16, 64], strides = [1, 1]} : vector<16x1152xf32> to vector<16x64xf32>
    %184 = vector.shape_cast %183 : vector<16x64xf32> to vector<2x8x64xf32>
    %185 = arith.truncf %184 : vector<2x8x64xf32> to vector<2x8x64xbf16>
    %186 = vector.extract_strided_slice %38 {offsets = [0, 1088], sizes = [16, 64], strides = [1, 1]} : vector<16x1152xf32> to vector<16x64xf32>
    %187 = vector.shape_cast %186 : vector<16x64xf32> to vector<2x8x64xf32>
    %188 = arith.truncf %187 : vector<2x8x64xf32> to vector<2x8x64xbf16>
    "tpu.trace_start"() <{level = 10 : i32, message = "bqd,bkd->bqk"}> : () -> ()
    %cst_56 = arith.constant dense<0.000000e+00> : vector<2x8x8xf32>
    %189 = tpu.matmul %182, %185, %cst_56 {dimension_numbers = #tpu.dot_dimension_numbers<[2], [2], [1], [1], [0, 0, 0, 1, 1, 1], [0], [0]>} : vector<2x8x64xbf16>, vector<2x8x64xbf16>, vector<2x8x8xf32> -> vector<2x8x8xf32>
    "tpu.trace_stop"() : () -> ()
    %cst_57 = arith.constant 1.250000e-01 : f32
    %190 = vector.broadcast %cst_57 : f32 to vector<2x8x8xf32>
    %191 = arith.mulf %189, %190 : vector<2x8x8xf32>
    %192 = vector.shape_cast %44 : vector<8x8xf32> to vector<1x8x8xf32>
    %193 = vector.broadcast %192 : vector<1x8x8xf32> to vector<2x8x8xf32>
    %194 = arith.addf %191, %193 : vector<2x8x8xf32>
    %cst_58 = arith.constant dense<0xFF800000> : vector<2x8xf32>
    %195 = vector.multi_reduction <maximumf>, %194, %cst_58 [2] : vector<2x8x8xf32> to vector<2x8xf32>
    %196 = vector.shape_cast %195 : vector<2x8xf32> to vector<2x8x1xf32>
    %197 = vector.broadcast %196 : vector<2x8x1xf32> to vector<2x8x8xf32>
    %198 = arith.subf %194, %197 : vector<2x8x8xf32>
    %199 = math.exp %198 : vector<2x8x8xf32>
    %cst_59 = arith.constant dense<0.000000e+00> : vector<2x8xf32>
    %200 = vector.multi_reduction <add>, %199, %cst_59 [2] : vector<2x8x8xf32> to vector<2x8xf32>
    %201 = vector.shape_cast %200 : vector<2x8xf32> to vector<2x8x1xf32>
    %202 = tpu.reciprocal %201 {approx = true} : vector<2x8x1xf32> -> vector<2x8x1xf32>
    %203 = vector.broadcast %202 : vector<2x8x1xf32> to vector<2x8x8xf32>
    %204 = arith.mulf %199, %203 : vector<2x8x8xf32>
    %205 = arith.truncf %204 : vector<2x8x8xf32> to vector<2x8x8xbf16>
    "tpu.trace_start"() <{level = 10 : i32, message = "bqk,bkd->bqd"}> : () -> ()
    %cst_60 = arith.constant dense<0.000000e+00> : vector<2x8x64xf32>
    %206 = tpu.matmul %205, %188, %cst_60 {dimension_numbers = #tpu.dot_dimension_numbers<[2], [1], [1], [2], [0, 0, 0, 1, 1, 2], [0], [0]>} : vector<2x8x8xbf16>, vector<2x8x64xbf16>, vector<2x8x64xf32> -> vector<2x8x64xf32>
    "tpu.trace_stop"() : () -> ()
    %207 = tpu.concatenate %71, %98, %125, %152, %179, %206 in 2 : vector<2x8x64xf32>, vector<2x8x64xf32>, vector<2x8x64xf32>, vector<2x8x64xf32>, vector<2x8x64xf32>, vector<2x8x64xf32> -> vector<2x8x384xf32>
    %208 = vector.shape_cast %207 : vector<2x8x384xf32> to vector<16x384xf32>
    %209 = arith.truncf %208 : vector<16x384xf32> to vector<16x384xbf16>
    %cst_61 = arith.constant dense<0.000000e+00> : vector<16x384xf32>
    %210 = tpu.matmul %209, %3, %cst_61 {dimension_numbers = #tpu.dot_dimension_numbers<[1], [0], [0], [1], [0, 0, 1, 1], [], []>} : vector<16x384xbf16>, vector<384x384xbf16>, vector<16x384xf32> -> vector<16x384xf32>
    %211 = vector.broadcast %4 : vector<1x384xf32> to vector<16x384xf32>
    %212 = arith.addf %210, %211 : vector<16x384xf32>
    %213 = vector.shape_cast %212 : vector<16x384xf32> to vector<2x8x384xf32>
    %214 = arith.addf %11, %213 : vector<2x8x384xf32>
    %cst_62 = arith.constant dense<0.000000e+00> : vector<2x8xf32>
    %215 = vector.multi_reduction <add>, %214, %cst_62 [2] : vector<2x8x384xf32> to vector<2x8xf32>
    %216 = vector.shape_cast %215 : vector<2x8xf32> to vector<2x8x1xf32>
    %cst_63 = arith.constant 3.840000e+02 : f32
    %217 = vector.broadcast %cst_63 : f32 to vector<2x8x1xf32>
    %218 = arith.divf %216, %217 : vector<2x8x1xf32>
    %219 = vector.broadcast %218 : vector<2x8x1xf32> to vector<2x8x384xf32>
    %220 = arith.subf %214, %219 : vector<2x8x384xf32>
    %221 = arith.mulf %220, %220 : vector<2x8x384xf32>
    %cst_64 = arith.constant dense<0.000000e+00> : vector<2x8xf32>
    %222 = vector.multi_reduction <add>, %221, %cst_64 [2] : vector<2x8x384xf32> to vector<2x8xf32>
    %223 = vector.shape_cast %222 : vector<2x8xf32> to vector<2x8x1xf32>
    %cst_65 = arith.constant 3.840000e+02 : f32
    %224 = vector.broadcast %cst_65 : f32 to vector<2x8x1xf32>
    %225 = arith.divf %223, %224 : vector<2x8x1xf32>
    %cst_66 = arith.constant 9.99999974E-6 : f32
    %226 = vector.broadcast %cst_66 : f32 to vector<2x8x1xf32>
    %227 = arith.addf %225, %226 : vector<2x8x1xf32>
    %228 = math.rsqrt %227 : vector<2x8x1xf32>
    %229 = vector.broadcast %218 : vector<2x8x1xf32> to vector<2x8x384xf32>
    %230 = arith.subf %214, %229 : vector<2x8x384xf32>
    %231 = vector.broadcast %228 : vector<2x8x1xf32> to vector<2x8x384xf32>
    %232 = arith.mulf %230, %231 : vector<2x8x384xf32>
    %233 = vector.shape_cast %5 : vector<1x384xf32> to vector<1x1x384xf32>
    %234 = vector.broadcast %233 : vector<1x1x384xf32> to vector<2x8x384xf32>
    %235 = arith.mulf %232, %234 : vector<2x8x384xf32>
    %236 = vector.shape_cast %6 : vector<1x384xf32> to vector<1x1x384xf32>
    %237 = vector.broadcast %236 : vector<1x1x384xf32> to vector<2x8x384xf32>
    %238 = arith.addf %235, %237 : vector<2x8x384xf32>
    %239 = vector.shape_cast %238 : vector<2x8x384xf32> to vector<16x384xf32>
    %240 = arith.truncf %239 : vector<16x384xf32> to vector<16x384xbf16>
    %cst_67 = arith.constant dense<0.000000e+00> : vector<16x1536xf32>
    %241 = tpu.matmul %240, %7, %cst_67 {dimension_numbers = #tpu.dot_dimension_numbers<[1], [0], [0], [1], [0, 0, 1, 1], [], []>} : vector<16x384xbf16>, vector<384x1536xbf16>, vector<16x1536xf32> -> vector<16x1536xf32>
    %242 = vector.broadcast %8 : vector<1x1536xf32> to vector<16x1536xf32>
    %243 = arith.addf %241, %242 : vector<16x1536xf32>
    %cst_68 = arith.constant 0.000000e+00 : f32
    %244 = vector.broadcast %cst_68 : f32 to vector<16x1536xf32>
    %245 = arith.maximumf %243, %244 : vector<16x1536xf32>
    %246 = arith.truncf %245 : vector<16x1536xf32> to vector<16x1536xbf16>
    %cst_69 = arith.constant dense<0.000000e+00> : vector<16x384xf32>
    %247 = tpu.matmul %246, %9, %cst_69 {dimension_numbers = #tpu.dot_dimension_numbers<[1], [0], [0], [1], [0, 0, 1, 1], [], []>} : vector<16x1536xbf16>, vector<1536x384xbf16>, vector<16x384xf32> -> vector<16x384xf32>
    %248 = vector.broadcast %10 : vector<1x384xf32> to vector<16x384xf32>
    %249 = arith.addf %247, %248 : vector<16x384xf32>
    %250 = vector.shape_cast %249 : vector<16x384xf32> to vector<2x8x384xf32>
    %251 = arith.addf %214, %250 : vector<2x8x384xf32>
    %c0_70 = arith.constant 0 : index
    %c0_71 = arith.constant 0 : index
    %c0_72 = arith.constant 0 : index
    %252 = vector.load %arg13[%c0_70, %c0_71, %c0_72] : memref<2x8x384xf32, #tpu.memory_space<vmem>>, vector<2x8x384xf32>
    tpu.vector_store %arg13[%c0_70, %c0_71, %c0_72], %251 {strides = array<i32>} : memref<2x8x384xf32, #tpu.memory_space<vmem>>, vector<2x8x384xf32>,
    return
  }
  func.func @transform_0(%arg0: i32) -> (i32, i32, i32) {
    %c0_i32 = arith.constant 0 : i32
    %c0_i32_0 = arith.constant 0 : i32
    %c0_i32_1 = arith.constant 0 : i32
    return %arg0, %c0_i32, %c0_i32_0 : i32, i32, i32
  }
  func.func @transform_1(%arg0: i32) -> (i32, i32) {
    %c0_i32 = arith.constant 0 : i32
    %c0_i32_0 = arith.constant 0 : i32
    %c0_i32_1 = arith.constant 0 : i32
    return %c0_i32, %c0_i32_0 : i32, i32
  }
  func.func @transform_2(%arg0: i32) -> (i32, i32) {
    %c0_i32 = arith.constant 0 : i32
    %c0_i32_0 = arith.constant 0 : i32
    %c0_i32_1 = arith.constant 0 : i32
    return %c0_i32, %c0_i32_0 : i32, i32
  }
  func.func @transform_3(%arg0: i32) -> (i32, i32) {
    %c0_i32 = arith.constant 0 : i32
    %c0_i32_0 = arith.constant 0 : i32
    %c0_i32_1 = arith.constant 0 : i32
    return %c0_i32, %c0_i32_0 : i32, i32
  }
  func.func @transform_4(%arg0: i32) -> (i32, i32) {
    %c0_i32 = arith.constant 0 : i32
    %c0_i32_0 = arith.constant 0 : i32
    %c0_i32_1 = arith.constant 0 : i32
    return %c0_i32, %c0_i32_0 : i32, i32
  }
  func.func @transform_5(%arg0: i32) -> (i32, i32) {
    %c0_i32 = arith.constant 0 : i32
    %c0_i32_0 = arith.constant 0 : i32
    %c0_i32_1 = arith.constant 0 : i32
    return %c0_i32, %c0_i32_0 : i32, i32
  }
  func.func @transform_6(%arg0: i32) -> (i32, i32) {
    %c0_i32 = arith.constant 0 : i32
    %c0_i32_0 = arith.constant 0 : i32
    %c0_i32_1 = arith.constant 0 : i32
    return %c0_i32, %c0_i32_0 : i32, i32
  }
  func.func @transform_7(%arg0: i32) -> (i32, i32) {
    %c0_i32 = arith.constant 0 : i32
    %c0_i32_0 = arith.constant 0 : i32
    %c0_i32_1 = arith.constant 0 : i32
    return %c0_i32, %c0_i32_0 : i32, i32
  }
  func.func @transform_8(%arg0: i32) -> (i32, i32) {
    %c0_i32 = arith.constant 0 : i32
    %c0_i32_0 = arith.constant 0 : i32
    %c0_i32_1 = arith.constant 0 : i32
    return %c0_i32, %c0_i32_0 : i32, i32
  }
  func.func @transform_9(%arg0: i32) -> (i32, i32) {
    %c0_i32 = arith.constant 0 : i32
    %c0_i32_0 = arith.constant 0 : i32
    %c0_i32_1 = arith.constant 0 : i32
    return %c0_i32, %c0_i32_0 : i32, i32
  }
  func.func @transform_10(%arg0: i32) -> (i32, i32) {
    %c0_i32 = arith.constant 0 : i32
    %c0_i32_0 = arith.constant 0 : i32
    %c0_i32_1 = arith.constant 0 : i32
    return %c0_i32, %c0_i32_0 : i32, i32
  }
  func.func @transform_11(%arg0: i32) -> (i32, i32) {
    %c0_i32 = arith.constant 0 : i32
    %c0_i32_0 = arith.constant 0 : i32
    %c0_i32_1 = arith.constant 0 : i32
    return %c0_i32, %c0_i32_0 : i32, i32
  }
  func.func @transform_12(%arg0: i32) -> (i32, i32, i32) {
    %c0_i32 = arith.constant 0 : i32
    %c0_i32_0 = arith.constant 0 : i32
    %c0_i32_1 = arith.constant 0 : i32
    return %arg0, %c0_i32, %c0_i32_0 : i32, i32, i32
  }
}

</mosaic_0001>

<bundles_post_ra>
// kernel: tpu_custom_call.1
= control target key start
LH: loop header
LB: loop body
LE: loop exit
PB: predicated region body
PF: predicated region fallthrough
CT: control target
= control target key end

     0   :  { %17 = vsyncpa [#allocation3], 0  ;;  %s13957_s0 = inlined_call_operand.hbm [shape: f32[2,8,384], index: 0, kind: input, shape index: {}]   ;;  %s13958_s1 = inlined_call_operand.hbm [shape: f32[1,384], index: 1, kind: input, shape index: {}]   ;;  %s13959_s2 = inlined_call_operand.hbm [shape: f32[1,384], index: 2, kind: input, shape index: {}]   ;;  %s13960_s3 = inlined_call_operand.hbm [shape: bf16[384,1152], index: 3, kind: input, shape index: {}]   ;;  %s13961_s4 = inlined_call_operand.hbm [shape: bf16[384,384], index: 4, kind: input, shape index: {}]   ;;  %s13962_s5 = inlined_call_operand.hbm [shape: f32[1,384], index: 5, kind: input, shape index: {}]   ;;  %s13963_s6 = inlined_call_operand.hbm [shape: f32[1,384], index: 6, kind: input, shape index: {}]   ;;  %s13964_s7 = inlined_call_operand.hbm [shape: f32[1,384], index: 7, kind: input, shape index: {}]   ;;  %s13965_s8 = inlined_call_operand.hbm [shape: bf16[384,1536], index: 8, kind: input, shape index: {}]   ;;  %s13966_s9 = inlined_call_operand.hbm [shape: f32[1,1536], index: 9, kind: input, shape index: {}]   ;;  %s13967_s10 = inlined_call_operand.hbm [shape: bf16[1536,384], index: 10, kind: input, shape index: {}]   ;;  %s13968_s11 = inlined_call_operand.hbm [shape: f32[1,384], index: 11, kind: input, shape index: {}]   ;;  %s13969_s12 = inlined_call_operand.hbm [shape: f32[2,8,384], index: 12, kind: output, shape index: {}]  }
   0x1   :  { %18 = vsyncpa [#allocation6], 0 }
   0x2   :  { %19 = vsyncpa [#allocation9], 0 }
   0x3   :  { %20 = vsyncpa [#allocation12], 0 }
   0x4   :  { %21 = vsyncpa [#allocation15], 0 }
   0x5   :  { %22 = vsyncpa [#allocation18], 0 }
   0x6   :  { %23 = vsyncpa [#allocation21], 0  ;;  %s43_s23 = sshll.u32 %s13958_s1, 4  ;;  %s44_s23 = int_to_ptr.hbm [resolvable:$true] %s43_s23 }
   0x7   :  { %24 = vsyncpa [#allocation4], 0  ;;  %s13067_s24 = smov [#allocation5]   ;;  %s64_s28 = sshll.u32 %s13960_s3, 4  ;;  %s65_s28 = int_to_ptr.hbm [resolvable:$true] %s64_s28 }
   0x8   :  { %s45_s25 = sshll.u32 %s13067_s24, 4  ;;  %s13068_s29 = smov [#allocation8]   ;;  %s46_s25 = int_to_ptr.vmem [resolvable:$true] %s45_s25 }
   0x9   :  { %48 = dma.hbm_to_vmem [thread:$0]  %s44_s23, 48, %s46_s25, [#allocation6]  }
   0xa   :  { %s66_s30 = sshll.u32 %s13068_s29, 4  ;;  %s13069_s13 = smov 576   ;;  %s67_s30 = int_to_ptr.vmem [resolvable:$true] %s66_s30 }
   0xb   :  { %s13070_s14 = smov 36   ;;  %s91_s1 = sshll.u32 %s13962_s5, 4  ;;  %s92_s1 = int_to_ptr.hbm [resolvable:$true] %s91_s1 }
   0xc   :  { %72 = dma.hbm_to_vmem [thread:$0]  %s65_s28, 27648, %s67_s30, [#allocation9], %s13069_s13, %s13069_s13, %s13070_s14  }
   0xd   :  { %s13071_s17 = smov [#allocation11]   ;;  %s113_s3 = sshll.u32 %s13964_s7, 4  ;;  %s114_s3 = int_to_ptr.hbm [resolvable:$true] %s113_s3 }
   0xe   :  { %s93_s18 = sshll.u32 %s13071_s17, 4  ;;  %s13072_s21 = smov [#allocation14]   ;;  %s94_s18 = int_to_ptr.vmem [resolvable:$true] %s93_s18 }
   0xf   :  { %96 = dma.hbm_to_vmem [thread:$0]  %s92_s1, 48, %s94_s18, [#allocation12]  }
  0x10   :  { %s115_s22 = sshll.u32 %s13072_s21, 4  ;;  %s137_s25 = sshll.u32 %s13966_s9, 4  ;;  %s116_s22 = int_to_ptr.vmem [resolvable:$true] %s115_s22  ;;  %s138_s25 = int_to_ptr.hbm [resolvable:$true] %s137_s25 }
  0x11   :  { %118 = dma.hbm_to_vmem [thread:$0]  %s114_s3, 48, %s116_s22, [#allocation15]  }
  0x12   :  { %s29_s27 = sshll.u32 %s13957_s0, 4  ;;  %s13073_s28 = smov [#allocation17]   ;;  %s30_s27 = int_to_ptr.hbm [resolvable:$true] %s29_s27 }
  0x13   :  { %s139_s29 = sshll.u32 %s13073_s28, 4  ;;  %s13074_s7 = smov [#allocation2]   ;;  %s140_s29 = int_to_ptr.vmem [resolvable:$true] %s139_s29 }
  0x14   :  { %142 = dma.hbm_to_vmem [thread:$0]  %s138_s25, 192, %s140_s29, [#allocation18]  }
  0x15   :  { %s31_s30 = sshll.u32 %s13074_s7, 4  ;;  %s13075_s13 = smov 384   ;;  %s32_s30 = int_to_ptr.vmem [resolvable:$true] %s31_s30 }
  0x16   :  { %s13076_s14 = smov 24   ;;  %s54_s16 = sshll.u32 %s13959_s2, 4  ;;  %s55_s16 = int_to_ptr.hbm [resolvable:$true] %s54_s16 }
  0x17   :  { %37 = dma.hbm_to_vmem [thread:$0]  %s30_s27, 768, %s32_s30, [#allocation3], %s13075_s13, %s13075_s13, %s13076_s14  }
  0x18   :  { %s13077_s0 = smov [#allocation7]   ;;  %s77_s19 = sshll.u32 %s13961_s4, 4  ;;  %s78_s19 = int_to_ptr.hbm [resolvable:$true] %s77_s19 }
  0x19   :  { %s56_s1 = sshll.u32 %s13077_s0, 4  ;;  %s13078_s20 = smov [#allocation10]   ;;  %s57_s1 = int_to_ptr.vmem [resolvable:$true] %s56_s1 }
  0x1a   :  { %59 = dma.hbm_to_vmem [thread:$0]  %s55_s16, 48, %s57_s1, [#allocation6]  }
  0x1b   :  { %s79_s3 = sshll.u32 %s13078_s20, 4  ;;  %s13079_s21 = smov 192   ;;  %s80_s3 = int_to_ptr.vmem [resolvable:$true] %s79_s3 }
  0x1c   :  { %s13080_s22 = smov 12   ;;  %s102_s2 = sshll.u32 %s13963_s6, 4  ;;  %s103_s2 = int_to_ptr.hbm [resolvable:$true] %s102_s2 }
  0x1d   :  { %85 = dma.hbm_to_vmem [thread:$0]  %s78_s19, 9216, %s80_s3, [#allocation9], %s13079_s21, %s13079_s21, %s13080_s22  }
  0x1e   :  { %s13081_s25 = smov [#allocation13]   ;;  %s123_s4 = sshll.u32 %s13965_s8, 4  ;;  %s124_s4 = int_to_ptr.hbm [resolvable:$true] %s123_s4 }
  0x1f   :  { %s104_s5 = sshll.u32 %s13081_s25, 4  ;;  %s13082_s28 = smov [#allocation16]   ;;  %s105_s5 = int_to_ptr.vmem [resolvable:$true] %s104_s5 }
  0x20   :  { %107 = dma.hbm_to_vmem [thread:$0]  %s103_s2, 48, %s105_s5, [#allocation12]  }
  0x21   :  { %s125_s29 = sshll.u32 %s13082_s28, 4  ;;  %s13083_s7 = smov 768   ;;  %s126_s29 = int_to_ptr.vmem [resolvable:$true] %s125_s29 }
  0x22   :  { %s13084_s30 = smov 48   ;;  %s147_s6 = sshll.u32 %s13967_s10, 4  ;;  %s148_s6 = int_to_ptr.hbm [resolvable:$true] %s147_s6 }
  0x23   :  { %131 = dma.hbm_to_vmem [thread:$0]  %s124_s4, 36864, %s126_s29, [#allocation15], %s13083_s7, %s13083_s7, %s13084_s30  }
  0x24   :  { %s13085_s16 = smov [#allocation19]   ;;  %s161_s8 = sshll.u32 %s13968_s11, 4  ;;  %s162_s8 = int_to_ptr.hbm [resolvable:$true] %s161_s8 }
  0x25   :  { %s149_s0 = sshll.u32 %s13085_s16, 4  ;;  %s13086_s18 = smov [#allocation20]   ;;  %s150_s0 = int_to_ptr.vmem [resolvable:$true] %s149_s0 }
  0x26   :  { %155 = dma.hbm_to_vmem [thread:$0]  %s148_s6, 36864, %s150_s0, [#allocation18], %s13079_s21, %s13079_s21, %s13080_s22  }
  0x27   :  { %s163_s19 = sshll.u32 %s13086_s18, 4  ;;  %s164_s19 = int_to_ptr.vmem [resolvable:$true] %s163_s19 }
  0x28   :  { %166 = dma.hbm_to_vmem [thread:$0]  %s162_s8, 48, %s164_s19, [#allocation21]  }
  0x29   :  { %13051 = dma.done.wait [#allocation3], 768  }
  0x2a   :  { %13052 = vsyncadd [#allocation3], 4294966528 }
  0x2b   :  { %13053 = dma.done.wait [#allocation6], 96  }
  0x2c   :  { %13054 = vsyncadd [#allocation6], 4294967200 }
  0x2d   :  { %13055 = dma.done.wait [#allocation9], 36864  }
  0x2e   :  { %13056 = vsyncadd [#allocation9], 4294930432 }
  0x2f   :  { %13057 = dma.done.wait [#allocation12], 96  }
  0x30   :  { %13058 = vsyncadd [#allocation12], 4294967200 }
  0x31   :  { %13059 = dma.done.wait [#allocation15], 36912  }
  0x32   :  { %13060 = vsyncadd [#allocation15], 4294930384 }
  0x33   :  { %13061 = dma.done.wait [#allocation18], 37056  }
  0x34   :  { %13062 = vsyncadd [#allocation18], 4294930240 }
  0x35   :  { %13063 = dma.done.wait [#allocation21], 48  }
  0x36   :  { %13064 = vsyncadd [#allocation21], 4294967248  ;;  %v13195_v0 = vld [vmem:[#allocation2] sm:$0xff]  ;;  %v13197_v1 = vld [vmem:[#allocation2 + $0x8] sm:$0xff]  ;;  %v13087_v10 = vmov 384.0   ;;  %s13088_s10 = smov 64  }
  0x37   :  { %v13199_v2 = vld [vmem:[#allocation2 + $0x10] sm:$0xff]  ;;  %v1238_v3 = vadd.f32 %v13197_v1, %v13195_v0  ;;  %v13203_v4 = vld [vmem:[#allocation2 + $0x18] sm:$0xff]  ;;  %v13205_v5 = vld [vmem:[#allocation2 + $0x20] sm:$0xff]  ;;  %12675 = vrcp.f32 %v13087_v10  ;;  %vm2828_vm7 = vcmask 523264   ;;  %vm2899_vm8 = vcmask 1043456   ;;  %s13090_s11 = smov [#allocation22]  }
  0x38   :  { %v1242_v7 = vadd.f32 %v13205_v5, %v13203_v4  ;;  %v13210_v8 = vld [vmem:[#allocation2 + $0x28] sm:$0xff]  ;;  %v8546_v14 = vld [vmem:[#allocation8 + $0x1f8] sm:$0xf]  ;;  %v11839_v15 = vld [vmem:[#allocation8 + $0x218] sm:$0xf0]  ;;  %vm2871_vm10 = vcmask 64512  }
  0x39   :  { %v1239_v6 = vadd.f32 %v1238_v3, %v13199_v2  ;;  %v8834_v16 = vld [vmem:[#allocation8 + $0x438] sm:$0xf]  ;;  %v8547_v17 = vor.u32 %v11839_v15, %v8546_v14  ;;  %v11911_v18 = vld [vmem:[#allocation8 + $0x458] sm:$0xf0]  ;;  %v8548_v24 = vld [vmem:[#allocation8 + $0x21c] sm:$0xf0] }
  0x3a   :  { %v1243_v9 = vadd.f32 %v1242_v7, %v13210_v8  ;;  %v9122_v19 = vld [vmem:[#allocation8 + $0x678] sm:$0xf]  ;;  %v11983_v20 = vld [vmem:[#allocation8 + $0x698] sm:$0xf0]  ;;  %v8835_v21 = vor.u32 %v11911_v18, %v8834_v16  ;;  %v8510_v25 = vld [vmem:[#allocation8 + $0x1b0] sm:$0xf] }
  0x3b   :  { %1240 = vadd.xlane.f32.xlu0 %v1239_v6  ;;  %v9123_v22 = vor.u32 %v11983_v20, %v9122_v19  ;;  %v11835_v23 = vld [vmem:[#allocation8 + $0x1fc] sm:$0xf]  ;;  %2438 = vmatpush.bf16.msra.mxu0 %v8547_v17  ;;  %v11830_v28 = vld [vmem:[#allocation8 + $0x1d0] sm:$0xf0]  ;;  %v8798_v29 = vld [vmem:[#allocation8 + $0x3f0] sm:$0xf] }
  0x3c   :  { %v8551_v27 = vor.u32 %v11835_v23, %v8548_v24  ;;  %v11902_v30 = vld [vmem:[#allocation8 + $0x410] sm:$0xf0]  ;;  %2452 = vmatpush.bf16.msra.mxu1 %v8835_v21  ;;  %v8511_v31 = vor.u32 %v11830_v28, %v8510_v25  ;;  %v9086_v33 = vld [vmem:[#allocation8 + $0x630] sm:$0xf]  ;;  %v8512_v37 = vld [vmem:[#allocation8 + $0x1d4] sm:$0xf0] }
  0x3d   :  { %v12676_v11 = vpop.eup %12675  ;;  %2466 = vmatpush.bf16.msra.mxu2 %v9123_v22  ;;  %v8799_v32 = vor.u32 %v11902_v30, %v8798_v29  ;;  %v11974_v34 = vld [vmem:[#allocation8 + $0x650] sm:$0xf0]  ;;  %v8474_v38 = vld [vmem:[#allocation8 + $0x168] sm:$0xf]  ;;  %v11821_v39 = vld [vmem:[#allocation8 + $0x188] sm:$0xf0] }
  0x3e   :  { %v1247_v12 = vmul.f32 384.0, %v12676_v11  ;;  %v11826_v35 = vld [vmem:[#allocation8 + $0x1b4] sm:$0xf]  ;;  %2480 = vmatpush.bf16.msra.mxu3 %v8551_v27  ;;  %v9087_v36 = vor.u32 %v11974_v34, %v9086_v33  ;;  %v8762_v41 = vld [vmem:[#allocation8 + $0x3a8] sm:$0xf]  ;;  %v8475_v45 = vor.u32 %v11821_v39, %v8474_v38  ;;  %vm1251_vm0 = vweird.f32 %v12676_v11  ;;  %s8271_s20 = sshll.u32 %s13090_s11, 4  ;;  %s8272_s20 = int_to_ptr.vmem [resolvable:$true] %s8271_s20 }
  0x3f   :  { %v8515_v40 = vor.u32 %v11826_v35, %v8512_v37  ;;  %v11893_v42 = vld [vmem:[#allocation8 + $0x3c8] sm:$0xf0]  ;;  %v9050_v43 = vld [vmem:[#allocation8 + $0x5e8] sm:$0xf]  ;;  %2439 = vmatpush.bf16.msra.mxu0 %v8511_v31  ;;  %v8476_v48 = vld [vmem:[#allocation8 + $0x18c] sm:$0xf0] }
  0x40   :  { %v1248_v13 = vsub.f32 1.0, %v1247_v12  ;;  %v11965_v46 = vld [vmem:[#allocation8 + $0x608] sm:$0xf0]  ;;  %2453 = vmatpush.bf16.msra.mxu1 %v8799_v32  ;;  %v8763_v49 = vor.u32 %v11893_v42, %v8762_v41  ;;  %v8438_v51 = vld [vmem:[#allocation8 + $0x120] sm:$0xf]  ;;  %s8273_s22 = sshll.u32 %s13969_s12, 4  ;;  %s8274_s22 = int_to_ptr.hbm [resolvable:$true] %s8273_s22 }
  0x41   :  { %v11817_v47 = vld [vmem:[#allocation8 + $0x16c] sm:$0xf]  ;;  %2467 = vmatpush.bf16.msra.mxu2 %v9087_v36  ;;  %v9051_v50 = vor.u32 %v11965_v46, %v9050_v43  ;;  %v11812_v52 = vld [vmem:[#allocation8 + $0x140] sm:$0xf0]  ;;  %v8726_v53 = vld [vmem:[#allocation8 + $0x360] sm:$0xf] }
  0x42   :  { %v1249_v26 = vmul.f32 %v12676_v11, %v1248_v13  ;;  %2481 = vmatpush.bf16.msra.mxu3 %v8515_v40  ;;  %v8479_v54 = vor.u32 %v11817_v47, %v8476_v48  ;;  %v11884_v55 = vld [vmem:[#allocation8 + $0x380] sm:$0xf0]  ;;  %v9014_v56 = vld [vmem:[#allocation8 + $0x5a0] sm:$0xf]  ;;  %v8440_v59 = vld [vmem:[#allocation8 + $0x144] sm:$0xf0]  ;;  %v8439_v61 = vor.u32 %v11812_v52, %v8438_v51 }
  0x43   :  { %1244 = vadd.xlane.f32.xlu0 %v1243_v9  ;;  %v11956_v57 = vld [vmem:[#allocation8 + $0x5c0] sm:$0xf0]  ;;  %2440 = vmatpush.bf16.msra.mxu0 %v8475_v45  ;;  %v8402_v62 = vld [vmem:[#allocation8 + $0xd8] sm:$0xf]  ;;  %v11803_v63 = vld [vmem:[#allocation8 + $0xf8] sm:$0xf0]  ;;  %v8727_v6 = vor.u32 %v11884_v55, %v8726_v53 }
  0x44   :  { %v1250_v44 = vadd.f32 %v12676_v11, %v1249_v26  ;;  %v11808_v58 = vld [vmem:[#allocation8 + $0x124] sm:$0xf]  ;;  %v8690_v3 = vld [vmem:[#allocation8 + $0x318] sm:$0xf]  ;;  %2454 = vmatpush.bf16.msra.mxu1 %v8763_v49  ;;  %v9015_v7 = vor.u32 %v11956_v57, %v9014_v56  ;;  %v11875_v9 = vld [vmem:[#allocation8 + $0x338] sm:$0xf0]  ;;  %v8403_v17 = vor.u32 %v11803_v63, %v8402_v62 }
  0x45   :  { %2468 = vmatpush.bf16.msra.mxu2 %v9051_v50  ;;  %v8978_v10 = vld [vmem:[#allocation8 + $0x558] sm:$0xf]  ;;  %v11947_v12 = vld [vmem:[#allocation8 + $0x578] sm:$0xf0]  ;;  %v8443_v14 = vor.u32 %v11808_v58, %v8440_v59  ;;  %v8691_v18 = vor.u32 %v11875_v9, %v8690_v3  ;;  %v11794_v36 = vld [vmem:[#allocation8 + $0xb0] sm:$0xf0] }
  0x46   :  { %v13213_v60 = vsel %vm1251_vm0, %v12676_v11, %v1250_v44  ;;  %2482 = vmatpush.bf16.msra.mxu3 %v8479_v54  ;;  %v11799_v16 = vld [vmem:[#allocation8 + $0xdc] sm:$0xf]  ;;  %v8404_v11 = vld [vmem:[#allocation8 + $0xfc] sm:$0xf0]  ;;  %v8979_v19 = vor.u32 %v11947_v12, %v8978_v10  ;;  %v11866_v38 = vld [vmem:[#allocation8 + $0x2f0] sm:$0xf0] }
  0x47   :  { %2441 = vmatpush.bf16.msra.mxu0 %v8439_v61  ;;  %v8407_v23 = vor.u32 %v11799_v16, %v8404_v11  ;;  %v11938_v39 = vld [vmem:[#allocation8 + $0x530] sm:$0xf0]  ;;  %v8368_v43 = vld [vmem:[#allocation8 + $0xb4] sm:$0xf0]  ;;  %v8330_v45 = vld [vmem:[#allocation8 + $0x48] sm:$0xf] }
  0x48   :  { %2455 = vmatpush.bf16.msra.mxu1 %v8727_v6  ;;  %v11790_v42 = vld [vmem:[#allocation8 + $0x94] sm:$0xf]  ;;  %v11785_v46 = vld [vmem:[#allocation8 + $0x68] sm:$0xf0]  ;;  %v8618_v47 = vld [vmem:[#allocation8 + $0x288] sm:$0xf] }
  0x49   :  { %2469 = vmatpush.bf16.msra.mxu2 %v9015_v7  ;;  %v8371_v44 = vor.u32 %v11790_v42, %v8368_v43  ;;  %v8331_v48 = vor.u32 %v11785_v46, %v8330_v45  ;;  %v11857_v49 = vld [vmem:[#allocation8 + $0x2a8] sm:$0xf0]  ;;  %v8906_v50 = vld [vmem:[#allocation8 + $0x4c8] sm:$0xf]  ;;  %v8332_v55 = vld [vmem:[#allocation8 + $0x6c] sm:$0xf0] }
  0x4a   :  { %2483 = vmatpush.bf16.msra.mxu3 %v8443_v14  ;;  %v11929_v51 = vld [vmem:[#allocation8 + $0x4e8] sm:$0xf0]  ;;  %v8619_v52 = vor.u32 %v11857_v49, %v8618_v47  ;;  %v8294_v57 = vld [vmem:[#allocation8] sm:$0xf]  ;;  %v11776_v58 = vld [vmem:[#allocation8 + $0x20] sm:$0xf0] }
  0x4b   :  { %2442 = vmatpush.bf16.msra.mxu0 %v8403_v17  ;;  %v8907_v53 = vor.u32 %v11929_v51, %v8906_v50  ;;  %v11781_v54 = vld [vmem:[#allocation8 + $0x4c] sm:$0xf]  ;;  %v8582_v59 = vld [vmem:[#allocation8 + $0x240] sm:$0xf]  ;;  %v8295_v61 = vor.u32 %v11776_v58, %v8294_v57  ;;  %v11848_v62 = vld [vmem:[#allocation8 + $0x260] sm:$0xf0] }
  0x4c   :  { %2456 = vmatpush.bf16.msra.mxu1 %v8691_v18  ;;  %v8335_v56 = vor.u32 %v11781_v54, %v8332_v55  ;;  %v8870_v63 = vld [vmem:[#allocation8 + $0x480] sm:$0xf]  ;;  %v11920_v3 = vld [vmem:[#allocation8 + $0x4a0] sm:$0xf0]  ;;  %v8583_v6 = vor.u32 %v11848_v62, %v8582_v59  ;;  %v8296_v10 = vld [vmem:[#allocation8 + $0x24] sm:$0xf0] }
  0x4d   :  { %2470 = vmatpush.bf16.msra.mxu2 %v8979_v19  ;;  %v8871_v7 = vor.u32 %v11920_v3, %v8870_v63  ;;  %v11772_v9 = vld [vmem:[#allocation8 + $0x4] sm:$0xf]  ;;  %v11907_v12 = vld [vmem:[#allocation8 + $0x43c] sm:$0xf]  ;;  %v8836_v14 = vld [vmem:[#allocation8 + $0x45c] sm:$0xf0] }
  0x4e   :  { %2484 = vmatpush.bf16.msra.mxu3 %v8407_v23  ;;  %v9124_v16 = vld [vmem:[#allocation8 + $0x69c] sm:$0xf0]  ;;  %v8839_v11 = vor.u32 %v11907_v12, %v8836_v14  ;;  %v11840_v19 = vld [vmem:[#allocation8 + $0x220] sm:$0xf0]  ;;  %v11822_v42 = vld [vmem:[#allocation8 + $0x190] sm:$0xf0] }
  0x4f   :  { %v8554_v18 = vld [vmem:[#allocation8 + $0x200] sm:$0xf]  ;;  %v8770_v45 = vld [vmem:[#allocation8 + $0x3b0] sm:$0xf]  ;;  %v11894_v46 = vld [vmem:[#allocation8 + $0x3d0] sm:$0xf0] }
  0x50   :  { %v8842_v23 = vld [vmem:[#allocation8 + $0x440] sm:$0xf]  ;;  %v8771_v47 = vor.u32 %v11894_v46, %v8770_v45  ;;  %v8728_v49 = vld [vmem:[#allocation8 + $0x384] sm:$0xf0]  ;;  %v11952_v50 = vld [vmem:[#allocation8 + $0x5a4] sm:$0xf] }
  0x51   :  { %v11813_v54 = vld [vmem:[#allocation8 + $0x148] sm:$0xf0]  ;;  %v8734_v57 = vld [vmem:[#allocation8 + $0x368] sm:$0xf]  ;;  %v8692_v62 = vld [vmem:[#allocation8 + $0x33c] sm:$0xf0] }
  0x52   :  { %2485 = vmatpush.bf16.msra.mxu3 %v8371_v44  ;;  %v11885_v58 = vld [vmem:[#allocation8 + $0x388] sm:$0xf0]  ;;  %v11943_v63 = vld [vmem:[#allocation8 + $0x55c] sm:$0xf]  ;;  %v8980_v3 = vld [vmem:[#allocation8 + $0x57c] sm:$0xf0] }
  0x53   :  { %v8735_v59 = vor.u32 %v11885_v58, %v8734_v57  ;;  %v8698_v12 = vld [vmem:[#allocation8 + $0x320] sm:$0xf]  ;;  %v11916_v45 = vld [vmem:[#allocation8 + $0x484] sm:$0xf]  ;;  %v8872_v46 = vld [vmem:[#allocation8 + $0x4a4] sm:$0xf0] }
  0x56   :  { %2486 = vmatpush.bf16.msra.mxu3 %v8335_v56 }
  0xae   :  { %v1241_v13 = vpop.xlane.xlu0 %1240 }
  0xaf   :  { %v1253_v15 = vmul.f32 %v13213_v60, %v1241_v13  ;;  %v8299_v13 = vor.u32 %v11772_v9, %v8296_v10  ;;  %v8983_v9 = vor.u32 %v11943_v63, %v8980_v3  ;;  %v11804_v10 = vld [vmem:[#allocation8 + $0x100] sm:$0xf0] }
  0xb1   :  { %v13217_v20 = vsub.f32 %v13195_v0, %v1253_v15  ;;  %v13220_v21 = vsub.f32 %v13197_v1, %v1253_v15  ;;  %v13223_v22 = vsub.f32 %v13199_v2, %v1253_v15  ;;  %v11979_v15 = vld [vmem:[#allocation8 + $0x67c] sm:$0xf]  ;;  %2487 = vmatpush.bf16.msra.mxu3 %v8299_v13  ;;  %v11876_v13 = vld [vmem:[#allocation8 + $0x340] sm:$0xf0] }
  0xb2   :  { %v9127_v17 = vor.u32 %v11979_v15, %v9124_v16  ;;  %v8699_v15 = vor.u32 %v11876_v13, %v8698_v12  ;;  %v11862_v16 = vld [vmem:[#allocation8 + $0x2d4] sm:$0xf] }
  0xb3   :  { %v1261_v24 = vmul.f32 %v13217_v20, %v13217_v20  ;;  %v1262_v25 = vmul.f32 %v13220_v21, %v13220_v21  ;;  %v1263_v0 = vmul.f32 %v13223_v22, %v13223_v22 }
  0xb5   :  { %v1267_v26 = vadd.f32 %v1262_v25, %v1261_v24  ;;  %v8555_v24 = vor.u32 %v11840_v19, %v8554_v18  ;;  %v11912_v25 = vld [vmem:[#allocation8 + $0x460] sm:$0xf0]  ;;  %v8944_v19 = vld [vmem:[#allocation8 + $0x534] sm:$0xf0] }
  0xb6   :  { %v1245_v1 = vpop.xlane.xlu0 %1244 }
  0xb7   :  { %v1254_v2 = vmul.f32 %v13213_v60, %v1245_v1  ;;  %v1268_v27 = vadd.f32 %v1267_v26, %v1263_v0  ;;  %v11898_v0 = vld [vmem:[#allocation8 + $0x3f4] sm:$0xf]  ;;  %v8800_v26 = vld [vmem:[#allocation8 + $0x414] sm:$0xf0]  ;;  %v8843_v1 = vor.u32 %v11912_v25, %v8842_v23 }
  0xb8   :  { %v8374_v23 = vld [vmem:[#allocation8 + $0x98] sm:$0xf] }
  0xb9   :  { %v13233_v28 = vsub.f32 %v13203_v4, %v1254_v2  ;;  %v13236_v29 = vsub.f32 %v13205_v5, %v1254_v2  ;;  %v13239_v30 = vsub.f32 %v13210_v8, %v1254_v2  ;;  %1269 = vadd.xlane.f32.xlu1 %v1268_v27  ;;  %v8366_v4 = vld [vmem:[#allocation8 + $0x90] sm:$0xf]  ;;  %v8803_v2 = vor.u32 %v11898_v0, %v8800_v26  ;;  %v11970_v27 = vld [vmem:[#allocation8 + $0x634] sm:$0xf]  ;;  %v8662_v26 = vld [vmem:[#allocation8 + $0x2d8] sm:$0xf] }
  0xba   :  { %v8654_v5 = vld [vmem:[#allocation8 + $0x2d0] sm:$0xf]  ;;  %v8367_v37 = vor.u32 %v11794_v36, %v8366_v4  ;;  %v11903_v4 = vld [vmem:[#allocation8 + $0x418] sm:$0xf0]  ;;  %2536 = vmatpush.bf16.msrb.mxu3 %v8843_v1 }
  0xbb   :  { %v1264_v31 = vmul.f32 %v13233_v28, %v13233_v28  ;;  %v1265_v32 = vmul.f32 %v13236_v29, %v13236_v29  ;;  %v1266_v33 = vmul.f32 %v13239_v30, %v13239_v30  ;;  %v8942_v8 = vld [vmem:[#allocation8 + $0x510] sm:$0xf]  ;;  %v8655_v40 = vor.u32 %v11866_v38, %v8654_v5  ;;  %v11867_v1 = vld [vmem:[#allocation8 + $0x2f8] sm:$0xf0] }
  0xbc   :  { %v8943_v41 = vor.u32 %v11938_v39, %v8942_v8  ;;  %2443 = vmatpush.bf16.msra.mxu0 %v8367_v37  ;;  %v11889_v37 = vld [vmem:[#allocation8 + $0x3ac] sm:$0xf]  ;;  %v8764_v38 = vld [vmem:[#allocation8 + $0x3cc] sm:$0xf0] }
  0xbd   :  { %v1271_v34 = vadd.f32 %v1265_v32, %v1264_v31  ;;  %2457 = vmatpush.bf16.msra.mxu1 %v8655_v40  ;;  %v9088_v31 = vld [vmem:[#allocation8 + $0x654] sm:$0xf0]  ;;  %v11961_v8 = vld [vmem:[#allocation8 + $0x5ec] sm:$0xf]  ;;  %v8767_v39 = vor.u32 %v11889_v37, %v8764_v38  ;;  %v9052_v40 = vld [vmem:[#allocation8 + $0x60c] sm:$0xf0] }
  0xbe   :  { %2471 = vmatpush.bf16.msra.mxu2 %v8943_v41  ;;  %v8518_v32 = vld [vmem:[#allocation8 + $0x1b8] sm:$0xf]  ;;  %v8482_v41 = vld [vmem:[#allocation8 + $0x170] sm:$0xf]  ;;  %v9055_v43 = vor.u32 %v11961_v8, %v9052_v40 }
  0xbf   :  { %v1272_v35 = vadd.f32 %v1271_v34, %v1266_v33  ;;  %v9091_v33 = vor.u32 %v11970_v27, %v9088_v31  ;;  %v11831_v34 = vld [vmem:[#allocation8 + $0x1d8] sm:$0xf0]  ;;  %v8483_v44 = vor.u32 %v11822_v42, %v8482_v41  ;;  %v11853_v27 = vld [vmem:[#allocation8 + $0x28c] sm:$0xf]  ;;  %v8620_v31 = vld [vmem:[#allocation8 + $0x2ac] sm:$0xf0] }
  0xc0   :  { %2444 = vmatpush.bf16.msra.mxu0 %v8331_v48  ;;  %v8519_v36 = vor.u32 %v11831_v34, %v8518_v32  ;;  %v11880_v48 = vld [vmem:[#allocation8 + $0x364] sm:$0xf]  ;;  %v11925_v32 = vld [vmem:[#allocation8 + $0x4cc] sm:$0xf]  ;;  %v8623_v34 = vor.u32 %v11853_v27, %v8620_v31  ;;  %v8626_v8 = vld [vmem:[#allocation8 + $0x290] sm:$0xf] }
  0xc1   :  { %1273 = vadd.xlane.f32.xlu1 %v1272_v35  ;;  %2458 = vmatpush.bf16.msra.mxu1 %v8619_v52  ;;  %v8806_v35 = vld [vmem:[#allocation8 + $0x3f8] sm:$0xf]  ;;  %v8731_v51 = vor.u32 %v11880_v48, %v8728_v49  ;;  %v9016_v52 = vld [vmem:[#allocation8 + $0x5c4] sm:$0xf0]  ;;  %v11844_v42 = vld [vmem:[#allocation8 + $0x244] sm:$0xf]  ;;  %v8875_v48 = vor.u32 %v11916_v45, %v8872_v46 }
  0xc2   :  { %2472 = vmatpush.bf16.msra.mxu2 %v8907_v53  ;;  %v8807_v5 = vor.u32 %v11903_v4, %v8806_v35  ;;  %v8446_v53 = vld [vmem:[#allocation8 + $0x128] sm:$0xf]  ;;  %v9019_v55 = vor.u32 %v11952_v50, %v9016_v52  ;;  %v8908_v35 = vld [vmem:[#allocation8 + $0x4ec] sm:$0xf0]  ;;  %v11777_v49 = vld [vmem:[#allocation8 + $0x28] sm:$0xf0] }
  0xc3   :  { %v8447_v56 = vor.u32 %v11813_v54, %v8446_v53  ;;  %v8338_v4 = vld [vmem:[#allocation8 + $0x50] sm:$0xf]  ;;  %v8911_v37 = vor.u32 %v11925_v32, %v8908_v35  ;;  %v8590_v50 = vld [vmem:[#allocation8 + $0x248] sm:$0xf]  ;;  %v11984_v35 = vld [vmem:[#allocation8 + $0x6a0] sm:$0xf0] }
  0xc4   :  { %2445 = vmatpush.bf16.msra.mxu0 %v8295_v61  ;;  %2537 = vmatpush.bf16.msrb.mxu3 %v8807_v5  ;;  %v11871_v61 = vld [vmem:[#allocation8 + $0x31c] sm:$0xf] }
  0xc5   :  { %2459 = vmatpush.bf16.msra.mxu1 %v8583_v6  ;;  %v8695_v6 = vor.u32 %v11871_v61, %v8692_v62 }
  0xc6   :  { %2473 = vmatpush.bf16.msra.mxu2 %v8871_v7  ;;  %v8410_v7 = vld [vmem:[#allocation8 + $0xe0] sm:$0xf] }
  0xc7   :  { %v8411_v14 = vor.u32 %v11804_v10, %v8410_v7  ;;  %v216_v7 = vld [vmem:[#allocation5] sm:$0x7] }
  0xc8   :  { %2494 = vmatpush.bf16.msrb.mxu0 %v8839_v11  ;;  %2538 = vmatpush.bf16.msrb.mxu3 %v8771_v47  ;;  %v8656_v11 = vld [vmem:[#allocation8 + $0x2f4] sm:$0xf0]  ;;  %v8302_v47 = vld [vmem:[#allocation8 + $0x8] sm:$0xf]  ;;  %v1306_v13 = vperm.slane %v216_v7, 0 }
  0xc9   :  { %2508 = vmatpush.bf16.msrb.mxu1 %v9127_v17  ;;  %v11934_v17 = vld [vmem:[#allocation8 + $0x514] sm:$0xf]  ;;  %v8659_v18 = vor.u32 %v11862_v16, %v8656_v11  ;;  %v8303_v52 = vor.u32 %v11777_v49, %v8302_v47  ;;  %v9094_v47 = vld [vmem:[#allocation8 + $0x638] sm:$0xf] }
  0xca   :  { %2522 = vmatpush.bf16.msrb.mxu2 %v8555_v24  ;;  %v11795_v24 = vld [vmem:[#allocation8 + $0xb8] sm:$0xf0]  ;;  %v8947_v25 = vor.u32 %v11934_v17, %v8944_v19  ;;  %v1308_v19 = vperm.slane %v216_v7, 2 }
  0xcb   :  { %v8375_v0 = vor.u32 %v11795_v24, %v8374_v23 }
  0xcc   :  { %2495 = vmatpush.bf16.msrb.mxu0 %v8803_v2  ;;  %2539 = vmatpush.bf16.msrb.mxu3 %v8735_v59  ;;  %v8663_v2 = vor.u32 %v11867_v1, %v8662_v26 }
  0xcd   :  { %2509 = vmatpush.bf16.msrb.mxu1 %v9091_v33 }
  0xce   :  { %2523 = vmatpush.bf16.msrb.mxu2 %v8519_v36  ;;  %v11786_v36 = vld [vmem:[#allocation8 + $0x70] sm:$0xf0] }
  0xcf   :  { %v8339_v38 = vor.u32 %v11786_v36, %v8338_v4 }
  0xd0   :  { %2496 = vmatpush.bf16.msrb.mxu0 %v8767_v39  ;;  %2540 = vmatpush.bf16.msrb.mxu3 %v8699_v15  ;;  %v11858_v39 = vld [vmem:[#allocation8 + $0x2b0] sm:$0xf0]  ;;  %v217_v15 = vld [vmem:[#allocation7] sm:$0x7] }
  0xd1   :  { %2510 = vmatpush.bf16.msrb.mxu1 %v9055_v43  ;;  %v8627_v40 = vor.u32 %v11858_v39, %v8626_v8  ;;  %v8584_v43 = vld [vmem:[#allocation8 + $0x264] sm:$0xf0]  ;;  %v1319_v24 = vperm.slane %v217_v15, 0  ;;  %v1321_v1 = vperm.slane %v217_v15, 2 }
  0xd2   :  { %2524 = vmatpush.bf16.msrb.mxu2 %v8483_v44  ;;  %v8587_v44 = vor.u32 %v11844_v42, %v8584_v43  ;;  %v8844_v42 = vld [vmem:[#allocation8 + $0x464] sm:$0xf0] }
  0xd3   :  { %v9132_v43 = vld [vmem:[#allocation8 + $0x6a4] sm:$0xf0] }
  0xd4   :  { %2497 = vmatpush.bf16.msrb.mxu0 %v8731_v51  ;;  %2541 = vmatpush.bf16.msrb.mxu3 %v8663_v2  ;;  %v11849_v51 = vld [vmem:[#allocation8 + $0x268] sm:$0xf0] }
  0xd5   :  { %2511 = vmatpush.bf16.msrb.mxu1 %v9019_v55  ;;  %v8591_v53 = vor.u32 %v11849_v51, %v8590_v50  ;;  %v11827_v51 = vld [vmem:[#allocation8 + $0x1bc] sm:$0xf] }
  0xd6   :  { %2525 = vmatpush.bf16.msrb.mxu2 %v8447_v56 }
  0xd8   :  { %2498 = vmatpush.bf16.msrb.mxu0 %v8695_v6  ;;  %2542 = vmatpush.bf16.msrb.mxu3 %v8627_v40 }
  0xd9   :  { %2512 = vmatpush.bf16.msrb.mxu1 %v8983_v9 }
  0xda   :  { %2526 = vmatpush.bf16.msrb.mxu2 %v8411_v14  ;;  %v1307_v14 = vperm.slane %v216_v7, 1  ;;  %v11890_v7 = vld [vmem:[#allocation8 + $0x3b4] sm:$0xf] }
  0xdc   :  { %2499 = vmatpush.bf16.msrb.mxu0 %v8659_v18  ;;  %2543 = vmatpush.bf16.msrb.mxu3 %v8591_v53  ;;  %v11899_v53 = vld [vmem:[#allocation8 + $0x3fc] sm:$0xf] }
  0xdd   :  { %2513 = vmatpush.bf16.msrb.mxu1 %v8947_v25  ;;  %v1320_v25 = vperm.slane %v217_v15, 1  ;;  %v9022_v15 = vld [vmem:[#allocation8 + $0x5a8] sm:$0xf] }
  0xde   :  { %2527 = vmatpush.bf16.msrb.mxu2 %v8375_v0 }
  0xe0   :  { %2500 = vmatpush.bf16.msrb.mxu0 %v8623_v34  ;;  %v9130_v34 = vld [vmem:[#allocation8 + $0x680] sm:$0xf] }
  0xe1   :  { %2514 = vmatpush.bf16.msrb.mxu1 %v8911_v37  ;;  %v8556_v37 = vld [vmem:[#allocation8 + $0x224] sm:$0xf0] }
  0xe2   :  { %2528 = vmatpush.bf16.msrb.mxu2 %v8339_v38  ;;  %v11908_v38 = vld [vmem:[#allocation8 + $0x444] sm:$0xf] }
  0xe3   :  { %v8847_v49 = vor.u32 %v11908_v38, %v8844_v42  ;;  %v8664_v42 = vld [vmem:[#allocation8 + $0x2fc] sm:$0xf0] }
  0xe4   :  { %2501 = vmatpush.bf16.msrb.mxu0 %v8587_v44 }
  0xe5   :  { %2515 = vmatpush.bf16.msrb.mxu1 %v8875_v48  ;;  %v11975_v48 = vld [vmem:[#allocation8 + $0x658] sm:$0xf0] }
  0xe6   :  { %2529 = vmatpush.bf16.msrb.mxu2 %v8303_v52  ;;  %v8520_v52 = vld [vmem:[#allocation8 + $0x1dc] sm:$0xf0] }
 0x12c   :  { %v1270_v33 = vpop.xlane.xlu1 %1269 }
 0x12d   :  { %v1275_v5 = vmul.f32 %v1270_v33, %v13213_v60 }
 0x12f   :  { %v1277_v41 = vadd.f32 1e-05, %v1275_v5  ;;  %v11836_v5 = vld [vmem:[#allocation8 + $0x204] sm:$0xf] }
 0x130   :  { %v8559_v46 = vor.u32 %v11836_v5, %v8556_v37  ;;  %v8950_v5 = vld [vmem:[#allocation8 + $0x518] sm:$0xf]  ;;  %v11939_v37 = vld [vmem:[#allocation8 + $0x538] sm:$0xf0] }
 0x131   :  { %12677 = vrsqrt.f32 %v1277_v41  ;;  %vm1285_vm2 = vweird.f32 %v1277_v41 }
 0x134   :  { %v1274_v54 = vpop.xlane.xlu1 %1273 }
 0x135   :  { %v1276_v55 = vmul.f32 %v1274_v54, %v13213_v60  ;;  %v8808_v54 = vld [vmem:[#allocation8 + $0x41c] sm:$0xf0] }
 0x137   :  { %v12678_v56 = vpop.eup %12677  ;;  %v1278_v57 = vadd.f32 1e-05, %v1276_v55  ;;  %v11971_v55 = vld [vmem:[#allocation8 + $0x63c] sm:$0xf] }
 0x138   :  { %v1280_v58 = vmul.f32 %v12678_v56, %v1277_v41  ;;  %vm1286_vm1 = vweird.f32 %v12678_v56 }
 0x139   :  { %12679 = vrsqrt.f32 %v1278_v57  ;;  %vm1287_vm3 = vmor %vm1285_vm2, %vm1286_vm1  ;;  %vm1295_vm5 = vweird.f32 %v1278_v57 }
 0x13a   :  { %v1281_v59 = vmul.f32 %v12678_v56, %v1280_v58  ;;  %v8523_v58 = vor.u32 %v11827_v51, %v8520_v52  ;;  %v11782_v51 = vld [vmem:[#allocation8 + $0x54] sm:$0xf]  ;;  %v8340_v52 = vld [vmem:[#allocation8 + $0x74] sm:$0xf0] }
 0x13c   :  { %v1282_v61 = vmul.f32 0.5, %v1281_v59  ;;  %v9058_v59 = vld [vmem:[#allocation8 + $0x5f0] sm:$0xf] }
 0x13e   :  { %v1283_v62 = vsub.f32 1.5, %v1282_v61  ;;  %v11966_v61 = vld [vmem:[#allocation8 + $0x610] sm:$0xf0] }
 0x13f   :  { %v12680_v63 = vpop.eup %12679 }
 0x140   :  { %v1284_v3 = vmul.f32 %v12678_v56, %v1283_v62  ;;  %v1290_v6 = vmul.f32 %v12680_v63, %v1278_v57  ;;  %vm1296_vm4 = vweird.f32 %v12680_v63  ;;  %v9095_v57 = vor.u32 %v11975_v48, %v9094_v47  ;;  %v8914_v47 = vld [vmem:[#allocation8 + $0x4d0] sm:$0xf]  ;;  %v11930_v48 = vld [vmem:[#allocation8 + $0x4f0] sm:$0xf0] }
 0x141   :  { %vm1297_vm6 = vmor %vm1295_vm5, %vm1296_vm4  ;;  %v8811_v62 = vor.u32 %v11899_v53, %v8808_v54  ;;  %v11854_v53 = vld [vmem:[#allocation8 + $0x294] sm:$0xf]  ;;  %v8628_v54 = vld [vmem:[#allocation8 + $0x2b4] sm:$0xf0] }
 0x142   :  { %v1291_v9 = vmul.f32 %v12680_v63, %v1290_v6  ;;  %v1288_v10 = vsel %vm1287_vm3, %v12678_v56, %v1284_v3  ;;  %v9096_v56 = vld [vmem:[#allocation8 + $0x65c] sm:$0xf0]  ;;  %v11818_v3 = vld [vmem:[#allocation8 + $0x174] sm:$0xf]  ;;  %v8484_v6 = vld [vmem:[#allocation8 + $0x194] sm:$0xf0] }
 0x143   :  { %v1299_v16 = vmul.f32 %v1288_v10, %v13217_v20  ;;  %v1300_v11 = vmul.f32 %v1288_v10, %v13220_v21  ;;  %v1301_v18 = vmul.f32 %v1288_v10, %v13223_v22  ;;  %v11962_v10 = vld [vmem:[#allocation8 + $0x5f4] sm:$0xf] }
 0x144   :  { %v1292_v12 = vmul.f32 0.5, %v1291_v9  ;;  %v8772_v9 = vld [vmem:[#allocation8 + $0x3d4] sm:$0xf0] }
 0x145   :  { %v1312_v0 = vmul.f32 %v1306_v13, %v1299_v16  ;;  %v1313_v26 = vmul.f32 %v1307_v14, %v1300_v11  ;;  %v1314_v27 = vmul.f32 %v1308_v19, %v1301_v18  ;;  %v11957_v16 = vld [vmem:[#allocation8 + $0x5c8] sm:$0xf0]  ;;  %v8775_v11 = vor.u32 %v11890_v7, %v8772_v9  ;;  %v8592_v9 = vld [vmem:[#allocation8 + $0x26c] sm:$0xf0] }
 0x146   :  { %v1293_v17 = vsub.f32 1.5, %v1292_v12  ;;  %v9060_v12 = vld [vmem:[#allocation8 + $0x614] sm:$0xf0]  ;;  %v11809_v18 = vld [vmem:[#allocation8 + $0x12c] sm:$0xf] }
 0x147   :  { %v1325_v4 = vadd.f32 %v1319_v24, %v1312_v0  ;;  %v1326_v36 = vadd.f32 %v1320_v25, %v1313_v26  ;;  %v1327_v8 = vadd.f32 %v1321_v1, %v1314_v27  ;;  %v9024_v0 = vld [vmem:[#allocation8 + $0x5cc] sm:$0xf0]  ;;  %v9023_v26 = vor.u32 %v11957_v16, %v9022_v15  ;;  %v11948_v27 = vld [vmem:[#allocation8 + $0x580] sm:$0xf0]  ;;  %v11845_v7 = vld [vmem:[#allocation8 + $0x24c] sm:$0xf] }
 0x148   :  { %v1294_v23 = vmul.f32 %v12680_v63, %v1293_v17  ;;  %v9063_v17 = vor.u32 %v11962_v10, %v9060_v12  ;;  %v11917_v10 = vld [vmem:[#allocation8 + $0x48c] sm:$0xf]  ;;  %v8880_v12 = vld [vmem:[#allocation8 + $0x4ac] sm:$0xf0]  ;;  %v8850_v15 = vld [vmem:[#allocation8 + $0x448] sm:$0xf] }
 0x149   :  { %v11913_v16 = vld [vmem:[#allocation8 + $0x468] sm:$0xf0] }
 0x14a   :  { %v1298_v2 = vsel %vm1297_vm6, %v12680_v63, %v1294_v23  ;;  %v9099_v63 = vor.u32 %v11971_v55, %v9096_v56  ;;  %v11881_v23 = vld [vmem:[#allocation8 + $0x36c] sm:$0xf]  ;;  %v11926_v55 = vld [vmem:[#allocation8 + $0x4d4] sm:$0xf]  ;;  %v8916_v56 = vld [vmem:[#allocation8 + $0x4f4] sm:$0xf0] }
 0x14b   :  { %v1302_v31 = vmul.f32 %v1298_v2, %v13233_v28  ;;  %v1303_v20 = vmul.f32 %v1298_v2, %v13236_v29  ;;  %v1304_v21 = vmul.f32 %v1298_v2, %v13239_v30  ;;  %v11980_v28 = vld [vmem:[#allocation8 + $0x684] sm:$0xf]  ;;  %v9131_v29 = vor.u32 %v11984_v35, %v9130_v34  ;;  %v8986_v2 = vld [vmem:[#allocation8 + $0x560] sm:$0xf]  ;;  %v8988_v35 = vld [vmem:[#allocation8 + $0x584] sm:$0xf0] }
 0x14c   :  { %v9135_v50 = vor.u32 %v11980_v28, %v9132_v43  ;;  %v11944_v34 = vld [vmem:[#allocation8 + $0x564] sm:$0xf]  ;;  %v11935_v28 = vld [vmem:[#allocation8 + $0x51c] sm:$0xf]  ;;  %v8952_v43 = vld [vmem:[#allocation8 + $0x53c] sm:$0xf0] }
 0x14d   :  { %v1315_v32 = vmul.f32 %v1306_v13, %v1302_v31  ;;  %v1316_v33 = vmul.f32 %v1307_v14, %v1303_v20  ;;  %v1317_v22 = vmul.f32 %v1308_v19, %v1304_v21  ;;  %v9059_v13 = vor.u32 %v11966_v61, %v9058_v59  ;;  %v8448_v19 = vld [vmem:[#allocation8 + $0x14c] sm:$0xf0]  ;;  %v11800_v21 = vld [vmem:[#allocation8 + $0xe4] sm:$0xf]  ;;  %v11921_v61 = vld [vmem:[#allocation8 + $0x4a8] sm:$0xf0] }
 0x14e   :  { %v8487_v14 = vor.u32 %v11818_v3, %v8484_v6  ;;  %v8343_v59 = vor.u32 %v11782_v51, %v8340_v52  ;;  %v8631_v3 = vor.u32 %v11854_v53, %v8628_v54  ;;  %v8919_v6 = vor.u32 %v11926_v55, %v8916_v56  ;;  %v8742_v51 = vld [vmem:[#allocation8 + $0x370] sm:$0xf]  ;;  %v11886_v52 = vld [vmem:[#allocation8 + $0x390] sm:$0xf0]  ;;  %v8456_v56 = vld [vmem:[#allocation8 + $0x154] sm:$0xf0] }
 0x14f   :  { %v1328_v39 = vadd.f32 %v1319_v24, %v1315_v32  ;;  %v1329_v40 = vadd.f32 %v1320_v25, %v1316_v33  ;;  %v1330_v41 = vadd.f32 %v1321_v1, %v1317_v22  ;;  %v8736_v24 = vld [vmem:[#allocation8 + $0x38c] sm:$0xf0]  ;;  %v11953_v25 = vld [vmem:[#allocation8 + $0x5ac] sm:$0xf]  ;;  %v8451_v1 = vor.u32 %v11809_v18, %v8448_v19  ;;  %v8412_v32 = vld [vmem:[#allocation8 + $0x104] sm:$0xf0] }
 0x150   :  { %v8739_v31 = vor.u32 %v11881_v23, %v8736_v24  ;;  %v9027_v20 = vor.u32 %v11953_v25, %v9024_v0  ;;  %v11872_v33 = vld [vmem:[#allocation8 + $0x324] sm:$0xf]  ;;  %v8700_v22 = vld [vmem:[#allocation8 + $0x344] sm:$0xf0]  ;;  %v11985_v19 = vld [vmem:[#allocation8 + $0x6a8] sm:$0xf0]  ;;  %v8595_v25 = vor.u32 %v11845_v7, %v8592_v9  ;;  %v8883_v0 = vor.u32 %v11917_v10, %v8880_v12 }
 0x151   :  { %v13255_v44 = vpack.c.bf16 %v1328_v39, %v1325_v4  ;;  %v13257_v30 = vpack.c.bf16 %v1329_v40, %v1326_v36  ;;  %v13259_v45 = vpack.c.bf16 %v1330_v41, %v1327_v8  ;;  %v8987_v4 = vor.u32 %v11948_v27, %v8986_v2  ;;  %v11791_v39 = vld [vmem:[#allocation8 + $0x9c] sm:$0xf]  ;;  %v8376_v40 = vld [vmem:[#allocation8 + $0xbc] sm:$0xf0]  ;;  %v11837_v23 = vld [vmem:[#allocation8 + $0x20c] sm:$0xf] }
 0x152   :  { %v8415_v36 = vor.u32 %v11800_v21, %v8412_v32  ;;  %v8703_v38 = vor.u32 %v11872_v33, %v8700_v22  ;;  %v8991_v8 = vor.u32 %v11944_v34, %v8988_v35  ;;  %v11863_v41 = vld [vmem:[#allocation8 + $0x2dc] sm:$0xf]  ;;  %v8564_v24 = vld [vmem:[#allocation8 + $0x22c] sm:$0xf0]  ;;  %v8526_v2 = vld [vmem:[#allocation8 + $0x1c0] sm:$0xf] }
 0x153   :  { %2446 = vmatmul.bf16.vlgmr.msra.gmra.mxu0 %v13255_v44  ;;  %2460 = vmatmul.bf16.vlgmr.msra.gmra.mxu1 %v13257_v30  ;;  %v11832_v27 = vld [vmem:[#allocation8 + $0x1e0] sm:$0xf0]  ;;  %v8814_v21 = vld [vmem:[#allocation8 + $0x400] sm:$0xf]  ;;  %v8528_v35 = vld [vmem:[#allocation8 + $0x1e4] sm:$0xf0] }
 0x154   :  { %2474 = vmatmul.bf16.vlgmr.msra.gmra.mxu2 %v13259_v45  ;;  %2488 = vmatmul.bf16.vlgmr.msra.gmra.mxu3 %v13255_v44  ;;  %v11904_v32 = vld [vmem:[#allocation8 + $0x420] sm:$0xf0]  ;;  %v9102_v33 = vld [vmem:[#allocation8 + $0x640] sm:$0xf]  ;;  %v9030_v53 = vld [vmem:[#allocation8 + $0x5b0] sm:$0xf] }
 0x155   :  { %2550 = vmatpush.bf16.msra.mxu0 %v9131_v29  ;;  %2564 = vmatpush.bf16.msra.mxu1 %v8559_v46  ;;  %v8951_v29 = vor.u32 %v11939_v37, %v8950_v5  ;;  %v8379_v46 = vor.u32 %v11791_v39, %v8376_v40  ;;  %v11976_v22 = vld [vmem:[#allocation8 + $0x660] sm:$0xf0]  ;;  %v8490_v5 = vld [vmem:[#allocation8 + $0x178] sm:$0xf]  ;;  %v11823_v37 = vld [vmem:[#allocation8 + $0x198] sm:$0xf0] }
 0x156   :  { %2578 = vmatpush.bf16.msra.mxu2 %v8847_v49  ;;  %2592 = vmatpush.bf16.msra.mxu3 %v9135_v50  ;;  %v8667_v49 = vor.u32 %v11863_v41, %v8664_v42  ;;  %v8955_v50 = vor.u32 %v11935_v28, %v8952_v43  ;;  %v11828_v34 = vld [vmem:[#allocation8 + $0x1c4] sm:$0xf]  ;;  %v8778_v39 = vld [vmem:[#allocation8 + $0x3b8] sm:$0xf]  ;;  %v11895_v40 = vld [vmem:[#allocation8 + $0x3d8] sm:$0xf0] }
 0x157   :  { %v9066_v41 = vld [vmem:[#allocation8 + $0x5f8] sm:$0xf]  ;;  %v11967_v42 = vld [vmem:[#allocation8 + $0x618] sm:$0xf0]  ;;  %v8492_v43 = vld [vmem:[#allocation8 + $0x19c] sm:$0xf0] }
 0x158   :  { %v11819_v28 = vld [vmem:[#allocation8 + $0x17c] sm:$0xf]  ;;  %v11958_v54 = vld [vmem:[#allocation8 + $0x5d0] sm:$0xf0]  ;;  %v8994_v7 = vld [vmem:[#allocation8 + $0x568] sm:$0xf] }
 0x159   :  { %2551 = vmatpush.bf16.msra.mxu0 %v9095_v57  ;;  %2565 = vmatpush.bf16.msra.mxu1 %v8523_v58  ;;  %v8878_v57 = vld [vmem:[#allocation8 + $0x488] sm:$0xf]  ;;  %v8915_v58 = vor.u32 %v11930_v48, %v8914_v47  ;;  %v8454_v47 = vld [vmem:[#allocation8 + $0x130] sm:$0xf]  ;;  %v11814_v48 = vld [vmem:[#allocation8 + $0x150] sm:$0xf0] }
 0x15a   :  { %2579 = vmatpush.bf16.msra.mxu2 %v8811_v62  ;;  %2593 = vmatpush.bf16.msra.mxu3 %v9099_v63  ;;  %v11773_v62 = vld [vmem:[#allocation8 + $0xc] sm:$0xf]  ;;  %v8304_v63 = vld [vmem:[#allocation8 + $0x2c] sm:$0xf0]  ;;  %v11810_v55 = vld [vmem:[#allocation8 + $0x134] sm:$0xf] }
 0x15b   :  { %v8307_v18 = vor.u32 %v11773_v62, %v8304_v63  ;;  %v9031_v62 = vor.u32 %v11958_v54, %v9030_v53  ;;  %v8459_v63 = vor.u32 %v11810_v55, %v8456_v56  ;;  %v11949_v9 = vld [vmem:[#allocation8 + $0x588] sm:$0xf0]  ;;  %v8420_v12 = vld [vmem:[#allocation8 + $0x10c] sm:$0xf0]  ;;  %v11914_v54 = vld [vmem:[#allocation8 + $0x470] sm:$0xf0] }
 0x15c   :  { %v11801_v10 = vld [vmem:[#allocation8 + $0xec] sm:$0xf]  ;;  %v8858_v53 = vld [vmem:[#allocation8 + $0x450] sm:$0xf] }
 0x15d   :  { %2552 = vmatpush.bf16.msra.mxu0 %v9059_v13  ;;  %2566 = vmatpush.bf16.msra.mxu1 %v8487_v14  ;;  %v8562_v13 = vld [vmem:[#allocation8 + $0x208] sm:$0xf]  ;;  %v11841_v14 = vld [vmem:[#allocation8 + $0x228] sm:$0xf0] }
 0x15e   :  { %2580 = vmatpush.bf16.msra.mxu2 %v8775_v11  ;;  %2594 = vmatpush.bf16.msra.mxu3 %v9063_v17  ;;  %v9138_v11 = vld [vmem:[#allocation8 + $0x688] sm:$0xf]  ;;  %v8879_v17 = vor.u32 %v11921_v61, %v8878_v57  ;;  %v8455_v57 = vor.u32 %v11814_v48, %v8454_v47  ;;  %v11805_v61 = vld [vmem:[#allocation8 + $0x108] sm:$0xf0]  ;;  %v9140_v48 = vld [vmem:[#allocation8 + $0x6ac] sm:$0xf0] }
 0x15f   :  { %v11981_v47 = vld [vmem:[#allocation8 + $0x68c] sm:$0xf] }
 0x161   :  { %2553 = vmatpush.bf16.msra.mxu0 %v9023_v26  ;;  %2567 = vmatpush.bf16.msra.mxu1 %v8451_v1  ;;  %v8563_v26 = vor.u32 %v11841_v14, %v8562_v13  ;;  %v8851_v1 = vor.u32 %v11913_v16, %v8850_v15  ;;  %v8382_v15 = vld [vmem:[#allocation8 + $0xa0] sm:$0xf]  ;;  %v11796_v16 = vld [vmem:[#allocation8 + $0xc0] sm:$0xf0] }
 0x162   :  { %2581 = vmatpush.bf16.msra.mxu2 %v8739_v31  ;;  %2595 = vmatpush.bf16.msra.mxu3 %v9027_v20  ;;  %v9139_v31 = vor.u32 %v11985_v19, %v9138_v11  ;;  %v8567_v20 = vor.u32 %v11837_v23, %v8564_v24  ;;  %v8995_v11 = vor.u32 %v11949_v9, %v8994_v7  ;;  %v11868_v19 = vld [vmem:[#allocation8 + $0x300] sm:$0xf0]  ;;  %v8958_v23 = vld [vmem:[#allocation8 + $0x520] sm:$0xf]  ;;  %v8534_v7 = vld [vmem:[#allocation8 + $0x1c8] sm:$0xf] }
 0x163   :  { %2502 = vmatmul.bf16.vlgmr.msrb.gmra.mxu0 %v13257_v30  ;;  %2516 = vmatmul.bf16.vlgmr.msrb.gmra.mxu1 %v13259_v45  ;;  %v11940_v24 = vld [vmem:[#allocation8 + $0x540] sm:$0xf0]  ;;  %v11833_v9 = vld [vmem:[#allocation8 + $0x1e8] sm:$0xf0] }
 0x164   :  { %2530 = vmatmul.bf16.vlgmr.msrb.gmra.mxu2 %v13255_v44  ;;  %2544 = vmatmul.bf16.vlgmr.msrb.gmra.mxu3 %v13257_v30 }
 0x165   :  { %2554 = vmatpush.bf16.msra.mxu0 %v8987_v4  ;;  %2568 = vmatpush.bf16.msra.mxu1 %v8415_v36  ;;  %v8527_v4 = vor.u32 %v11832_v27, %v8526_v2  ;;  %v8815_v36 = vor.u32 %v11904_v32, %v8814_v21  ;;  %v8346_v2 = vld [vmem:[#allocation8 + $0x58] sm:$0xf]  ;;  %v11787_v27 = vld [vmem:[#allocation8 + $0x78] sm:$0xf0] }
 0x166   :  { %2582 = vmatpush.bf16.msra.mxu2 %v8703_v38  ;;  %2596 = vmatpush.bf16.msra.mxu3 %v8991_v8  ;;  %v9103_v38 = vor.u32 %v11976_v22, %v9102_v33  ;;  %v8531_v8 = vor.u32 %v11828_v34, %v8528_v35  ;;  %v8634_v21 = vld [vmem:[#allocation8 + $0x298] sm:$0xf]  ;;  %v11859_v32 = vld [vmem:[#allocation8 + $0x2b8] sm:$0xf0]  ;;  %v8348_v35 = vld [vmem:[#allocation8 + $0x7c] sm:$0xf0] }
 0x167   :  { %v8922_v33 = vld [vmem:[#allocation8 + $0x4d8] sm:$0xf]  ;;  %v11931_v22 = vld [vmem:[#allocation8 + $0x4f8] sm:$0xf0] }
 0x168   :  { %v11783_v34 = vld [vmem:[#allocation8 + $0x5c] sm:$0xf] }
 0x169   :  { %2555 = vmatpush.bf16.msra.mxu0 %v8951_v29  ;;  %2569 = vmatpush.bf16.msra.mxu1 %v8379_v46  ;;  %v8491_v29 = vor.u32 %v11823_v37, %v8490_v5  ;;  %v8779_v46 = vor.u32 %v11895_v40, %v8778_v39  ;;  %v8635_v5 = vor.u32 %v11859_v32, %v8634_v21  ;;  %v11778_v37 = vld [vmem:[#allocation8 + $0x30] sm:$0xf0]  ;;  %v9032_v32 = vld [vmem:[#allocation8 + $0x5d4] sm:$0xf0] }
 0x16a   :  { %2583 = vmatpush.bf16.msra.mxu2 %v8667_v49  ;;  %2597 = vmatpush.bf16.msra.mxu3 %v8955_v50  ;;  %v9067_v49 = vor.u32 %v11967_v42, %v9066_v41  ;;  %v8495_v50 = vor.u32 %v11819_v28, %v8492_v43  ;;  %v8923_v39 = vor.u32 %v11931_v22, %v8922_v33  ;;  %v8886_v41 = vld [vmem:[#allocation8 + $0x490] sm:$0xf]  ;;  %v11922_v42 = vld [vmem:[#allocation8 + $0x4b0] sm:$0xf0]  ;;  %v8312_v43 = vld [vmem:[#allocation8 + $0x34] sm:$0xf0] }
 0x16b   :  { %v8351_v40 = vor.u32 %v11783_v34, %v8348_v35  ;;  %v11774_v28 = vld [vmem:[#allocation8 + $0x14] sm:$0xf]  ;;  %v8887_v55 = vor.u32 %v11922_v42, %v8886_v41  ;;  %v8462_v33 = vld [vmem:[#allocation8 + $0x138] sm:$0xf]  ;;  %v11815_v22 = vld [vmem:[#allocation8 + $0x158] sm:$0xf0] }
 0x16c   :  { %v8315_v56 = vor.u32 %v11774_v28, %v8312_v43  ;;  %v11954_v21 = vld [vmem:[#allocation8 + $0x5b4] sm:$0xf]  ;;  %v8750_v34 = vld [vmem:[#allocation8 + $0x378] sm:$0xf]  ;;  %v11887_v35 = vld [vmem:[#allocation8 + $0x398] sm:$0xf0] }
 0x16d   :  { %2556 = vmatpush.bf16.msra.mxu0 %v8915_v58  ;;  %2570 = vmatpush.bf16.msra.mxu1 %v8343_v59  ;;  %v8743_v58 = vor.u32 %v11886_v52, %v8742_v51  ;;  %v8418_v59 = vld [vmem:[#allocation8 + $0xe8] sm:$0xf]  ;;  %v11842_v52 = vld [vmem:[#allocation8 + $0x230] sm:$0xf0]  ;;  %v8426_v41 = vld [vmem:[#allocation8 + $0xf0] sm:$0xf] }
 0x16e   :  { %2584 = vmatpush.bf16.msra.mxu2 %v8631_v3  ;;  %2598 = vmatpush.bf16.msra.mxu3 %v8919_v6  ;;  %v8706_v3 = vld [vmem:[#allocation8 + $0x328] sm:$0xf]  ;;  %v11877_v6 = vld [vmem:[#allocation8 + $0x348] sm:$0xf0]  ;;  %v8419_v13 = vor.u32 %v11805_v61, %v8418_v59  ;;  %v11900_v59 = vld [vmem:[#allocation8 + $0x404] sm:$0xf] }
 0x16f   :  { %v8707_v14 = vor.u32 %v11877_v6, %v8706_v3  ;;  %v8816_v61 = vld [vmem:[#allocation8 + $0x424] sm:$0xf0]  ;;  %v11972_v3 = vld [vmem:[#allocation8 + $0x644] sm:$0xf]  ;;  %v11806_v42 = vld [vmem:[#allocation8 + $0x110] sm:$0xf0] }
 0x170   :  { %v9104_v6 = vld [vmem:[#allocation8 + $0x664] sm:$0xf0]  ;;  %v8714_v28 = vld [vmem:[#allocation8 + $0x330] sm:$0xf]  ;;  %v11878_v43 = vld [vmem:[#allocation8 + $0x350] sm:$0xf0] }
 0x171   :  { %2557 = vmatpush.bf16.msra.mxu0 %v8879_v17  ;;  %2571 = vmatpush.bf16.msra.mxu1 %v8307_v18  ;;  %v8423_v17 = vor.u32 %v11801_v10, %v8420_v12  ;;  %v8670_v18 = vld [vmem:[#allocation8 + $0x2e0] sm:$0xf]  ;;  %v8822_v10 = vld [vmem:[#allocation8 + $0x408] sm:$0xf]  ;;  %v11905_v12 = vld [vmem:[#allocation8 + $0x428] sm:$0xf0] }
 0x172   :  { %2585 = vmatpush.bf16.msra.mxu2 %v8595_v25  ;;  %2599 = vmatpush.bf16.msra.mxu3 %v8883_v0  ;;  %v11792_v25 = vld [vmem:[#allocation8 + $0xa4] sm:$0xf]  ;;  %v8384_v0 = vld [vmem:[#allocation8 + $0xc4] sm:$0xf0] }
 0x174   :  { %2558 = vmatmul.bf16.vlgmr.msra.gmra.mxu0 %v13259_v45  ;;  %2572 = vmatmul.bf16.vlgmr.msra.gmra.mxu1 %v13255_v44 }
 0x175   :  { %2606 = vmatpush.bf16.msrb.mxu0 %v8563_v26  ;;  %2620 = vmatpush.bf16.msrb.mxu1 %v8851_v1  ;;  %v8383_v26 = vor.u32 %v11796_v16, %v8382_v15  ;;  %v8671_v1 = vor.u32 %v11868_v19, %v8670_v18  ;;  %v11891_v15 = vld [vmem:[#allocation8 + $0x3bc] sm:$0xf]  ;;  %v8780_v16 = vld [vmem:[#allocation8 + $0x3dc] sm:$0xf0] }
 0x176   :  { %2634 = vmatpush.bf16.msrb.mxu2 %v9139_v31  ;;  %2648 = vmatpush.bf16.msrb.mxu3 %v8567_v20  ;;  %v8959_v31 = vor.u32 %v11940_v24, %v8958_v23  ;;  %v8387_v20 = vor.u32 %v11792_v25, %v8384_v0  ;;  %v11963_v18 = vld [vmem:[#allocation8 + $0x5fc] sm:$0xf]  ;;  %v9068_v19 = vld [vmem:[#allocation8 + $0x61c] sm:$0xf0]  ;;  %v11824_v24 = vld [vmem:[#allocation8 + $0x1a0] sm:$0xf0] }
 0x177   :  { %2586 = vmatmul.bf16.vlgmr.msra.gmra.mxu2 %v13257_v30  ;;  %2600 = vmatmul.bf16.vlgmr.msra.gmra.mxu3 %v13259_v45  ;;  %v8498_v23 = vld [vmem:[#allocation8 + $0x180] sm:$0xf]  ;;  %v11896_v0 = vld [vmem:[#allocation8 + $0x3e0] sm:$0xf0] }
 0x178   :  { %v8786_v25 = vld [vmem:[#allocation8 + $0x3c0] sm:$0xf] }
 0x179   :  { %2607 = vmatpush.bf16.msrb.mxu0 %v8527_v4  ;;  %2621 = vmatpush.bf16.msrb.mxu1 %v8815_v36  ;;  %v8310_v4 = vld [vmem:[#allocation8 + $0x10] sm:$0xf]  ;;  %v8347_v36 = vor.u32 %v11787_v27, %v8346_v2  ;;  %v11882_v2 = vld [vmem:[#allocation8 + $0x374] sm:$0xf]  ;;  %v8744_v27 = vld [vmem:[#allocation8 + $0x394] sm:$0xf0] }
 0x17a   :  { %2635 = vmatpush.bf16.msrb.mxu2 %v9103_v38  ;;  %2649 = vmatpush.bf16.msrb.mxu3 %v8531_v8  ;;  %v8598_v38 = vld [vmem:[#allocation8 + $0x250] sm:$0xf]  ;;  %v11850_v8 = vld [vmem:[#allocation8 + $0x270] sm:$0xf0] }
 0x17b   :  { %v8599_v51 = vor.u32 %v11850_v8, %v8598_v38  ;;  %v8463_v38 = vor.u32 %v11815_v22, %v8462_v33  ;;  %v8751_v8 = vor.u32 %v11887_v35, %v8750_v34  ;;  %v11982_v33 = vld [vmem:[#allocation8 + $0x694] sm:$0xf]  ;;  %v9148_v22 = vld [vmem:[#allocation8 + $0x6b4] sm:$0xf0] }
 0x17d   :  { %2608 = vmatpush.bf16.msrb.mxu0 %v8491_v29  ;;  %2622 = vmatpush.bf16.msrb.mxu1 %v8779_v46  ;;  %v11909_v29 = vld [vmem:[#allocation8 + $0x44c] sm:$0xf]  ;;  %v8852_v46 = vld [vmem:[#allocation8 + $0x46c] sm:$0xf0] }
 0x17e   :  { %2636 = vmatpush.bf16.msrb.mxu2 %v9067_v49  ;;  %2650 = vmatpush.bf16.msrb.mxu3 %v8495_v50  ;;  %v8570_v49 = vld [vmem:[#allocation8 + $0x210] sm:$0xf]  ;;  %v8311_v50 = vor.u32 %v11778_v37, %v8310_v4  ;;  %v8747_v4 = vor.u32 %v11882_v2, %v8744_v27  ;;  %v11838_v2 = vld [vmem:[#allocation8 + $0x214] sm:$0xf]  ;;  %v8572_v27 = vld [vmem:[#allocation8 + $0x234] sm:$0xf0] }
 0x17f   :  { %v8708_v37 = vld [vmem:[#allocation8 + $0x34c] sm:$0xf0] }
 0x181   :  { %2609 = vmatpush.bf16.msrb.mxu0 %v8455_v57  ;;  %2623 = vmatpush.bf16.msrb.mxu1 %v8743_v58  ;;  %v8855_v57 = vor.u32 %v11909_v29, %v8852_v46  ;;  %v9143_v58 = vor.u32 %v11981_v47, %v9140_v48  ;;  %v11864_v47 = vld [vmem:[#allocation8 + $0x2e4] sm:$0xf]  ;;  %v8672_v48 = vld [vmem:[#allocation8 + $0x304] sm:$0xf0] }
 0x182   :  { %2637 = vmatpush.bf16.msrb.mxu2 %v9031_v62  ;;  %2651 = vmatpush.bf16.msrb.mxu3 %v8459_v63  ;;  %v8571_v62 = vor.u32 %v11842_v52, %v8570_v49  ;;  %v8859_v63 = vor.u32 %v11914_v54, %v8858_v53  ;;  %v8427_v49 = vor.u32 %v11806_v42, %v8426_v41  ;;  %v8960_v52 = vld [vmem:[#allocation8 + $0x544] sm:$0xf0]  ;;  %v11797_v54 = vld [vmem:[#allocation8 + $0xc8] sm:$0xf0]  ;;  %v8824_v42 = vld [vmem:[#allocation8 + $0x42c] sm:$0xf0] }
 0x183   :  { %v8390_v53 = vld [vmem:[#allocation8 + $0xa8] sm:$0xf]  ;;  %v11901_v41 = vld [vmem:[#allocation8 + $0x40c] sm:$0xf] }
 0x185   :  { %2610 = vmatpush.bf16.msrb.mxu0 %v8419_v13  ;;  %2624 = vmatpush.bf16.msrb.mxu1 %v8707_v14  ;;  %v8819_v13 = vor.u32 %v11900_v59, %v8816_v61  ;;  %v9107_v14 = vor.u32 %v11972_v3, %v9104_v6  ;;  %v11855_v59 = vld [vmem:[#allocation8 + $0x29c] sm:$0xf]  ;;  %v8636_v61 = vld [vmem:[#allocation8 + $0x2bc] sm:$0xf0] }
 0x186   :  { %2638 = vmatpush.bf16.msrb.mxu2 %v8995_v11  ;;  %2652 = vmatpush.bf16.msrb.mxu3 %v8423_v17  ;;  %v8535_v11 = vor.u32 %v11833_v9, %v8534_v7  ;;  %v8823_v17 = vor.u32 %v11905_v12, %v8822_v10  ;;  %v11927_v3 = vld [vmem:[#allocation8 + $0x4dc] sm:$0xf]  ;;  %v8924_v6 = vld [vmem:[#allocation8 + $0x4fc] sm:$0xf0]  ;;  %v11788_v9 = vld [vmem:[#allocation8 + $0x80] sm:$0xf0] }
 0x187   :  { %v8354_v7 = vld [vmem:[#allocation8 + $0x60] sm:$0xf]  ;;  %v11860_v12 = vld [vmem:[#allocation8 + $0x2c0] sm:$0xf0] }
 0x188   :  { %v8642_v10 = vld [vmem:[#allocation8 + $0x2a0] sm:$0xf] }
 0x189   :  { %2611 = vmatpush.bf16.msrb.mxu0 %v8383_v26  ;;  %2625 = vmatpush.bf16.msrb.mxu1 %v8671_v1  ;;  %v8783_v26 = vor.u32 %v11891_v15, %v8780_v16  ;;  %v9071_v1 = vor.u32 %v11963_v18, %v9068_v19  ;;  %v8927_v15 = vor.u32 %v11927_v3, %v8924_v6  ;;  %v8600_v16 = vld [vmem:[#allocation8 + $0x274] sm:$0xf0]  ;;  %v11811_v3 = vld [vmem:[#allocation8 + $0x13c] sm:$0xf]  ;;  %v8464_v6 = vld [vmem:[#allocation8 + $0x15c] sm:$0xf0] }
 0x18a   :  { %2639 = vmatpush.bf16.msrb.mxu2 %v8959_v31  ;;  %2653 = vmatpush.bf16.msrb.mxu3 %v8387_v20  ;;  %v8499_v31 = vor.u32 %v11824_v24, %v8498_v23  ;;  %v8787_v20 = vor.u32 %v11896_v0, %v8786_v25  ;;  %v8355_v18 = vor.u32 %v11788_v9, %v8354_v7  ;;  %v8318_v23 = vld [vmem:[#allocation8 + $0x18] sm:$0xf]  ;;  %v11779_v24 = vld [vmem:[#allocation8 + $0x38] sm:$0xf0]  ;;  %v8752_v9 = vld [vmem:[#allocation8 + $0x39c] sm:$0xf0] }
 0x18b   :  { %v8643_v19 = vor.u32 %v11860_v12, %v8642_v10  ;;  %v8606_v25 = vld [vmem:[#allocation8 + $0x258] sm:$0xf]  ;;  %v11851_v0 = vld [vmem:[#allocation8 + $0x278] sm:$0xf0]  ;;  %v8319_v34 = vor.u32 %v11779_v24, %v8318_v23  ;;  %v9040_v12 = vld [vmem:[#allocation8 + $0x5dc] sm:$0xf0] }
 0x18c   :  { %v8607_v35 = vor.u32 %v11851_v0, %v8606_v25  ;;  %v11883_v7 = vld [vmem:[#allocation8 + $0x37c] sm:$0xf]  ;;  %v11874_v23 = vld [vmem:[#allocation8 + $0x334] sm:$0xf]  ;;  %v8716_v24 = vld [vmem:[#allocation8 + $0x354] sm:$0xf0] }
 0x18d   :  { %2612 = vmatpush.bf16.msrb.mxu0 %v8347_v36  ;;  %2626 = vmatpush.bf16.msrb.mxu1 %v8635_v5  ;;  %v9035_v36 = vor.u32 %v11954_v21, %v9032_v32  ;;  %v11873_v5 = vld [vmem:[#allocation8 + $0x32c] sm:$0xf]  ;;  %v8860_v32 = vld [vmem:[#allocation8 + $0x474] sm:$0xf0]  ;;  %v11955_v10 = vld [vmem:[#allocation8 + $0x5bc] sm:$0xf] }
 0x18e   :  { %2640 = vmatpush.bf16.msrb.mxu2 %v8923_v39  ;;  %2654 = vmatpush.bf16.msrb.mxu3 %v8351_v40  ;;  %v11945_v39 = vld [vmem:[#allocation8 + $0x56c] sm:$0xf]  ;;  %v8996_v40 = vld [vmem:[#allocation8 + $0x58c] sm:$0xf0]  ;;  %v8711_v29 = vor.u32 %v11873_v5, %v8708_v37  ;;  %v9110_v5 = vld [vmem:[#allocation8 + $0x648] sm:$0xf] }
 0x18f   :  { %v8999_v46 = vor.u32 %v11945_v39, %v8996_v40  ;;  %v11977_v37 = vld [vmem:[#allocation8 + $0x668] sm:$0xf0]  ;;  %v8536_v40 = vld [vmem:[#allocation8 + $0x1ec] sm:$0xf0]  ;;  %v11946_v25 = vld [vmem:[#allocation8 + $0x574] sm:$0xf] }
 0x190   :  { %v11829_v39 = vld [vmem:[#allocation8 + $0x1cc] sm:$0xf]  ;;  %v9004_v0 = vld [vmem:[#allocation8 + $0x594] sm:$0xf0] }
 0x191   :  { %2613 = vmatpush.bf16.msrb.mxu0 %v8311_v50  ;;  %2627 = vmatpush.bf16.msrb.mxu1 %v8599_v51  ;;  %v8715_v50 = vor.u32 %v11878_v43, %v8714_v28  ;;  %v11936_v51 = vld [vmem:[#allocation8 + $0x524] sm:$0xf]  ;;  %v11973_v28 = vld [vmem:[#allocation8 + $0x64c] sm:$0xf]  ;;  %v9112_v43 = vld [vmem:[#allocation8 + $0x66c] sm:$0xf0] }
 0x192   :  { %2641 = vmatpush.bf16.msrb.mxu2 %v8887_v55  ;;  %2655 = vmatpush.bf16.msrb.mxu3 %v8315_v56  ;;  %v8678_v55 = vld [vmem:[#allocation8 + $0x2e8] sm:$0xf]  ;;  %v11869_v56 = vld [vmem:[#allocation8 + $0x308] sm:$0xf0] }
 0x194   :  { %2614 = vmatmul.bf16.vlgmr.msrb.gmra.mxu0 %v13255_v44  ;;  %2628 = vmatmul.bf16.vlgmr.msrb.gmra.mxu1 %v13257_v30 }
 0x195   :  { %2662 = vmatpush.bf16.msra.mxu0 %v8855_v57  ;;  %2676 = vmatpush.bf16.msra.mxu1 %v9143_v58  ;;  %v8675_v57 = vor.u32 %v11864_v47, %v8672_v48  ;;  %v8963_v58 = vor.u32 %v11936_v51, %v8960_v52  ;;  %v9074_v47 = vld [vmem:[#allocation8 + $0x600] sm:$0xf]  ;;  %v11968_v48 = vld [vmem:[#allocation8 + $0x620] sm:$0xf0]  ;;  %v8500_v52 = vld [vmem:[#allocation8 + $0x1a4] sm:$0xf0] }
 0x196   :  { %2690 = vmatpush.bf16.msra.mxu2 %v8571_v62  ;;  %2704 = vmatpush.bf16.msra.mxu3 %v8859_v63  ;;  %v8391_v62 = vor.u32 %v11797_v54, %v8390_v53  ;;  %v8679_v63 = vor.u32 %v11869_v56, %v8678_v55  ;;  %v11820_v51 = vld [vmem:[#allocation8 + $0x184] sm:$0xf]  ;;  %v8788_v54 = vld [vmem:[#allocation8 + $0x3e4] sm:$0xf0] }
 0x197   :  { %2642 = vmatmul.bf16.vlgmr.msrb.gmra.mxu2 %v13259_v45  ;;  %2656 = vmatmul.bf16.vlgmr.msrb.gmra.mxu3 %v13255_v44  ;;  %v11892_v53 = vld [vmem:[#allocation8 + $0x3c4] sm:$0xf]  ;;  %v9076_v56 = vld [vmem:[#allocation8 + $0x624] sm:$0xf0] }
 0x198   :  { %v11964_v55 = vld [vmem:[#allocation8 + $0x604] sm:$0xf] }
 0x199   :  { %2663 = vmatpush.bf16.msra.mxu0 %v8819_v13  ;;  %2677 = vmatpush.bf16.msra.mxu1 %v9107_v14  ;;  %v11846_v13 = vld [vmem:[#allocation8 + $0x254] sm:$0xf]  ;;  %v8639_v14 = vor.u32 %v11855_v59, %v8636_v61  ;;  %v9038_v59 = vld [vmem:[#allocation8 + $0x5b8] sm:$0xf]  ;;  %v11959_v61 = vld [vmem:[#allocation8 + $0x5d8] sm:$0xf0] }
 0x19a   :  { %2691 = vmatpush.bf16.msra.mxu2 %v8535_v11  ;;  %2705 = vmatpush.bf16.msra.mxu3 %v8823_v17  ;;  %v11918_v11 = vld [vmem:[#allocation8 + $0x494] sm:$0xf]  ;;  %v8888_v17 = vld [vmem:[#allocation8 + $0x4b4] sm:$0xf0] }
 0x19b   :  { %v8891_v21 = vor.u32 %v11918_v11, %v8888_v17  ;;  %v8755_v11 = vor.u32 %v11883_v7, %v8752_v9  ;;  %v9043_v17 = vor.u32 %v11955_v10, %v9040_v12 }
 0x19d   :  { %2664 = vmatpush.bf16.msra.mxu0 %v8783_v26  ;;  %2678 = vmatpush.bf16.msra.mxu1 %v9071_v1  ;;  %v9146_v26 = vld [vmem:[#allocation8 + $0x690] sm:$0xf]  ;;  %v11986_v1 = vld [vmem:[#allocation8 + $0x6b0] sm:$0xf0] }
 0x19e   :  { %2692 = vmatpush.bf16.msra.mxu2 %v8499_v31  ;;  %2706 = vmatpush.bf16.msra.mxu3 %v8787_v20  ;;  %v11910_v31 = vld [vmem:[#allocation8 + $0x454] sm:$0xf]  ;;  %v8603_v20 = vor.u32 %v11846_v13, %v8600_v16  ;;  %v9039_v13 = vor.u32 %v11959_v61, %v9038_v59  ;;  %v8866_v59 = vld [vmem:[#allocation8 + $0x458] sm:$0xf]  ;;  %v11915_v61 = vld [vmem:[#allocation8 + $0x478] sm:$0xf0] }
 0x19f   :  { %v11950_v16 = vld [vmem:[#allocation8 + $0x590] sm:$0xf0]  ;;  %v8867_v12 = vor.u32 %v11915_v61, %v8866_v59  ;;  %v8362_v61 = vld [vmem:[#allocation8 + $0x68] sm:$0xf] }
 0x1a1   :  { %2665 = vmatpush.bf16.msra.mxu0 %v8747_v4  ;;  %2679 = vmatpush.bf16.msra.mxu1 %v9035_v36  ;;  %v9147_v4 = vor.u32 %v11986_v1, %v9146_v26  ;;  %v8575_v36 = vor.u32 %v11838_v2, %v8572_v27  ;;  %v8966_v2 = vld [vmem:[#allocation8 + $0x528] sm:$0xf]  ;;  %v11941_v27 = vld [vmem:[#allocation8 + $0x548] sm:$0xf0] }
 0x1a2   :  { %2693 = vmatpush.bf16.msra.mxu2 %v8463_v38  ;;  %2707 = vmatpush.bf16.msra.mxu3 %v8751_v8  ;;  %v8863_v38 = vor.u32 %v11910_v31, %v8860_v32  ;;  %v9151_v8 = vor.u32 %v11982_v33, %v9148_v22  ;;  %v8719_v31 = vor.u32 %v11874_v23, %v8716_v24  ;;  %v8392_v32 = vld [vmem:[#allocation8 + $0xcc] sm:$0xf0]  ;;  %v11865_v33 = vld [vmem:[#allocation8 + $0x2ec] sm:$0xf]  ;;  %v8506_v24 = vld [vmem:[#allocation8 + $0x188] sm:$0xf] }
 0x1a3   :  { %v8680_v22 = vld [vmem:[#allocation8 + $0x30c] sm:$0xf0] }
 0x1a5   :  { %2666 = vmatpush.bf16.msra.mxu0 %v8711_v29  ;;  %2680 = vmatpush.bf16.msra.mxu1 %v8999_v46  ;;  %v9111_v29 = vor.u32 %v11977_v37, %v9110_v5  ;;  %v8539_v46 = vor.u32 %v11829_v39, %v8536_v40  ;;  %v8930_v5 = vld [vmem:[#allocation8 + $0x4e0] sm:$0xf]  ;;  %v11932_v37 = vld [vmem:[#allocation8 + $0x500] sm:$0xf0]  ;;  %v8356_v40 = vld [vmem:[#allocation8 + $0x84] sm:$0xf0] }
 0x1a6   :  { %2694 = vmatpush.bf16.msra.mxu2 %v8427_v49  ;;  %2708 = vmatpush.bf16.msra.mxu3 %v8715_v50  ;;  %v8827_v49 = vor.u32 %v11901_v41, %v8824_v42  ;;  %v9115_v50 = vor.u32 %v11973_v28, %v9112_v43  ;;  %v11784_v39 = vld [vmem:[#allocation8 + $0x64] sm:$0xf]  ;;  %v8644_v42 = vld [vmem:[#allocation8 + $0x2c4] sm:$0xf0] }
 0x1a7   :  { %v11856_v41 = vld [vmem:[#allocation8 + $0x2a4] sm:$0xf]  ;;  %v8932_v43 = vld [vmem:[#allocation8 + $0x504] sm:$0xf0] }
 0x1a8   :  { %v11928_v28 = vld [vmem:[#allocation8 + $0x4e4] sm:$0xf] }
 0x1a9   :  { %2667 = vmatpush.bf16.msra.mxu0 %v8675_v57  ;;  %2681 = vmatpush.bf16.msra.mxu1 %v8963_v58  ;;  %v9075_v57 = vor.u32 %v11968_v48, %v9074_v47  ;;  %v8503_v58 = vor.u32 %v11820_v51, %v8500_v52  ;;  %v8894_v47 = vld [vmem:[#allocation8 + $0x498] sm:$0xf]  ;;  %v11923_v48 = vld [vmem:[#allocation8 + $0x4b8] sm:$0xf0]  ;;  %v8935_v51 = vor.u32 %v11928_v28, %v8932_v43  ;;  %v8320_v52 = vld [vmem:[#allocation8 + $0x3c] sm:$0xf0] }
 0x1aa   :  { %2695 = vmatpush.bf16.msra.mxu2 %v8391_v62  ;;  %2709 = vmatpush.bf16.msra.mxu3 %v8679_v63  ;;  %v8791_v62 = vor.u32 %v11892_v53, %v8788_v54  ;;  %v9079_v63 = vor.u32 %v11964_v55, %v9076_v56  ;;  %v11847_v53 = vld [vmem:[#allocation8 + $0x25c] sm:$0xf]  ;;  %v8608_v54 = vld [vmem:[#allocation8 + $0x27c] sm:$0xf0] }
 0x1ab   :  { %v11919_v55 = vld [vmem:[#allocation8 + $0x49c] sm:$0xf]  ;;  %v8896_v56 = vld [vmem:[#allocation8 + $0x4bc] sm:$0xf0]  ;;  %v8611_v7 = vor.u32 %v11847_v53, %v8608_v54  ;;  %v8686_v53 = vld [vmem:[#allocation8 + $0x2f0] sm:$0xf] }
 0x1ac   :  { %v8899_v9 = vor.u32 %v11919_v55, %v8896_v56  ;;  %v11870_v54 = vld [vmem:[#allocation8 + $0x310] sm:$0xf0]  ;;  %v8974_v56 = vld [vmem:[#allocation8 + $0x530] sm:$0xf] }
 0x1ad   :  { %2668 = vmatpush.bf16.msra.mxu0 %v8639_v14  ;;  %2682 = vmatpush.bf16.msra.mxu1 %v8927_v15  ;;  %v8467_v14 = vor.u32 %v11811_v3, %v8464_v6  ;;  %v9002_v15 = vld [vmem:[#allocation8 + $0x570] sm:$0xf]  ;;  %v9154_v3 = vld [vmem:[#allocation8 + $0x698] sm:$0xf]  ;;  %v11987_v6 = vld [vmem:[#allocation8 + $0x6b8] sm:$0xf0]  ;;  %v8687_v59 = vor.u32 %v11870_v54, %v8686_v53 }
 0x1ae   :  { %2696 = vmatpush.bf16.msra.mxu2 %v8355_v18  ;;  %2710 = vmatpush.bf16.msra.mxu3 %v8643_v19  ;;  %v11802_v18 = vld [vmem:[#allocation8 + $0xf4] sm:$0xf]  ;;  %v8428_v19 = vld [vmem:[#allocation8 + $0x114] sm:$0xf0]  ;;  %v9003_v26 = vor.u32 %v11950_v16, %v9002_v15  ;;  %v8830_v16 = vld [vmem:[#allocation8 + $0x410] sm:$0xf] }
 0x1af   :  { %v8431_v1 = vor.u32 %v11802_v18, %v8428_v19  ;;  %v11834_v15 = vld [vmem:[#allocation8 + $0x1f0] sm:$0xf0] }
 0x1b0   :  { %v11978_v18 = vld [vmem:[#allocation8 + $0x670] sm:$0xf0] }
 0x1b1   :  { %2669 = vmatpush.bf16.msra.mxu0 %v8603_v20  ;;  %2683 = vmatpush.bf16.msra.mxu1 %v8891_v21  ;;  %v9007_v20 = vor.u32 %v11946_v25, %v9004_v0  ;;  %v11793_v21 = vld [vmem:[#allocation8 + $0xac] sm:$0xf] }
 0x1b2   :  { %2697 = vmatpush.bf16.msra.mxu2 %v8319_v34  ;;  %2711 = vmatpush.bf16.msra.mxu3 %v8607_v35  ;;  %v11937_v34 = vld [vmem:[#allocation8 + $0x52c] sm:$0xf]  ;;  %v8968_v35 = vld [vmem:[#allocation8 + $0x54c] sm:$0xf0] }
 0x1b3   :  { %v11825_v0 = vld [vmem:[#allocation8 + $0x1a8] sm:$0xf0] }
 0x1b4   :  { %2670 = vmatmul.bf16.vlgmr.msra.gmra.mxu0 %v13257_v30  ;;  %2684 = vmatmul.bf16.vlgmr.msra.gmra.mxu1 %v13259_v45 }
 0x1b5   :  { %2718 = vmatpush.bf16.msrb.mxu0 %v9147_v4  ;;  %2732 = vmatpush.bf16.msrb.mxu1 %v8575_v36  ;;  %v8967_v4 = vor.u32 %v11941_v27, %v8966_v2  ;;  %v8395_v36 = vor.u32 %v11793_v21, %v8392_v32  ;;  %v9082_v2 = vld [vmem:[#allocation8 + $0x608] sm:$0xf]  ;;  %v11969_v27 = vld [vmem:[#allocation8 + $0x628] sm:$0xf0] }
 0x1b6   :  { %2746 = vmatpush.bf16.msrb.mxu2 %v8863_v38  ;;  %2760 = vmatpush.bf16.msrb.mxu3 %v9151_v8  ;;  %v8683_v38 = vor.u32 %v11865_v33, %v8680_v22  ;;  %v8971_v8 = vor.u32 %v11937_v34, %v8968_v35  ;;  %v8470_v33 = vld [vmem:[#allocation8 + $0x140] sm:$0xf]  ;;  %v9083_v22 = vor.u32 %v11969_v27, %v9082_v2  ;;  %v11816_v34 = vld [vmem:[#allocation8 + $0x160] sm:$0xf0] }
 0x1b7   :  { %2698 = vmatmul.bf16.vlgmr.msra.gmra.mxu2 %v13255_v44  ;;  %2712 = vmatmul.bf16.vlgmr.msra.gmra.mxu3 %v13257_v30  ;;  %v8758_v35 = vld [vmem:[#allocation8 + $0x380] sm:$0xf] }
 0x1b9   :  { %2719 = vmatpush.bf16.msrb.mxu0 %v9111_v29  ;;  %2733 = vmatpush.bf16.msrb.mxu1 %v8539_v46  ;;  %v8931_v29 = vor.u32 %v11932_v37, %v8930_v5  ;;  %v8359_v46 = vor.u32 %v11784_v39, %v8356_v40  ;;  %v11960_v5 = vld [vmem:[#allocation8 + $0x5e0] sm:$0xf0]  ;;  %v8471_v37 = vor.u32 %v11816_v34, %v8470_v33  ;;  %v11807_v40 = vld [vmem:[#allocation8 + $0x118] sm:$0xf0] }
 0x1ba   :  { %2747 = vmatpush.bf16.msrb.mxu2 %v8827_v49  ;;  %2761 = vmatpush.bf16.msrb.mxu3 %v9115_v50  ;;  %v11775_v49 = vld [vmem:[#allocation8 + $0x1c] sm:$0xf]  ;;  %v8647_v50 = vor.u32 %v11856_v41, %v8644_v42  ;;  %v8722_v41 = vld [vmem:[#allocation8 + $0x338] sm:$0xf] }
 0x1bb   :  { %v11879_v42 = vld [vmem:[#allocation8 + $0x358] sm:$0xf0] }
 0x1bd   :  { %2720 = vmatpush.bf16.msrb.mxu0 %v9075_v57  ;;  %2734 = vmatpush.bf16.msrb.mxu1 %v8503_v58  ;;  %v8578_v57 = vld [vmem:[#allocation8 + $0x218] sm:$0xf]  ;;  %v11843_v58 = vld [vmem:[#allocation8 + $0x238] sm:$0xf0] }
 0x1be   :  { %2748 = vmatpush.bf16.msrb.mxu2 %v8791_v62  ;;  %2762 = vmatpush.bf16.msrb.mxu3 %v9079_v63  ;;  %v8895_v62 = vor.u32 %v11923_v48, %v8894_v47  ;;  %v8323_v63 = vor.u32 %v11775_v49, %v8320_v52  ;;  %v8579_v10 = vor.u32 %v11843_v58, %v8578_v57  ;;  %v11798_v52 = vld [vmem:[#allocation8 + $0xd0] sm:$0xf0] }
 0x1bf   :  { %v8723_v48 = vor.u32 %v11879_v42, %v8722_v41  ;;  %v11942_v57 = vld [vmem:[#allocation8 + $0x550] sm:$0xf0] }
 0x1c1   :  { %2721 = vmatpush.bf16.msrb.mxu0 %v9039_v13  ;;  %2735 = vmatpush.bf16.msrb.mxu1 %v8467_v14  ;;  %v8542_v13 = vld [vmem:[#allocation8 + $0x1d0] sm:$0xf]  ;;  %v9155_v14 = vor.u32 %v11987_v6, %v9154_v3  ;;  %v11789_v3 = vld [vmem:[#allocation8 + $0x88] sm:$0xf0]  ;;  %v8650_v6 = vld [vmem:[#allocation8 + $0x2a8] sm:$0xf] }
 0x1c2   :  { %2749 = vmatpush.bf16.msrb.mxu2 %v8755_v11  ;;  %2763 = vmatpush.bf16.msrb.mxu3 %v9043_v17  ;;  %v11906_v11 = vld [vmem:[#allocation8 + $0x430] sm:$0xf0]  ;;  %v9118_v17 = vld [vmem:[#allocation8 + $0x650] sm:$0xf]  ;;  %v8543_v19 = vor.u32 %v11834_v15, %v8542_v13  ;;  %v11933_v13 = vld [vmem:[#allocation8 + $0x508] sm:$0xf0]  ;;  %v8363_v15 = vor.u32 %v11789_v3, %v8362_v61 }
 0x1c3   :  { %v8831_v23 = vor.u32 %v11906_v11, %v8830_v16  ;;  %v9119_v25 = vor.u32 %v11978_v18, %v9118_v17  ;;  %v8326_v11 = vld [vmem:[#allocation8 + $0x20] sm:$0xf] }
 0x1c5   :  { %2722 = vmatpush.bf16.msrb.mxu0 %v9003_v26  ;;  %2736 = vmatpush.bf16.msrb.mxu1 %v8431_v1  ;;  %v8794_v26 = vld [vmem:[#allocation8 + $0x3c8] sm:$0xf]  ;;  %v11897_v1 = vld [vmem:[#allocation8 + $0x3e8] sm:$0xf0] }
 0x1c6   :  { %2750 = vmatpush.bf16.msrb.mxu2 %v8719_v31  ;;  %2764 = vmatpush.bf16.msrb.mxu3 %v9007_v20  ;;  %v8507_v20 = vor.u32 %v11825_v0, %v8506_v24  ;;  %v8795_v21 = vor.u32 %v11897_v1, %v8794_v26  ;;  %v11852_v24 = vld [vmem:[#allocation8 + $0x280] sm:$0xf0]  ;;  %v8902_v0 = vld [vmem:[#allocation8 + $0x4a0] sm:$0xf] }
 0x1c7   :  { %v11924_v26 = vld [vmem:[#allocation8 + $0x4c0] sm:$0xf0] }
 0x1c9   :  { %2723 = vmatpush.bf16.msrb.mxu0 %v8967_v4  ;;  %2737 = vmatpush.bf16.msrb.mxu1 %v8395_v36  ;;  %v11888_v4 = vld [vmem:[#allocation8 + $0x3a0] sm:$0xf0]  ;;  %v9046_v36 = vld [vmem:[#allocation8 + $0x5c0] sm:$0xf] }
 0x1ca   :  { %2751 = vmatpush.bf16.msrb.mxu2 %v8683_v38  ;;  %2765 = vmatpush.bf16.msrb.mxu3 %v8971_v8  ;;  %v8759_v38 = vor.u32 %v11888_v4, %v8758_v35  ;;  %v8434_v8 = vld [vmem:[#allocation8 + $0xf8] sm:$0xf]  ;;  %v9047_v39 = vor.u32 %v11960_v5, %v9046_v36 }
 0x1cb   :  { %v8435_v47 = vor.u32 %v11807_v40, %v8434_v8 }
 0x1cd   :  { %2724 = vmatpush.bf16.msrb.mxu0 %v8931_v29  ;;  %2738 = vmatpush.bf16.msrb.mxu1 %v8359_v46  ;;  %v9010_v29 = vld [vmem:[#allocation8 + $0x578] sm:$0xf]  ;;  %v11951_v46 = vld [vmem:[#allocation8 + $0x598] sm:$0xf0] }
 0x1ce   :  { %2752 = vmatpush.bf16.msrb.mxu2 %v8647_v50  ;;  %2766 = vmatpush.bf16.msrb.mxu3 %v8935_v51  ;;  %v8398_v50 = vld [vmem:[#allocation8 + $0xb0] sm:$0xf]  ;;  %v9011_v51 = vor.u32 %v11951_v46, %v9010_v29 }
 0x1cf   :  { %v8399_v58 = vor.u32 %v11798_v52, %v8398_v50 }
 0x1d0   :  { %v13285_v31 = vpop.f32.mrf.mxu1  ;;  %v13287_v32 = vpop.f32.mrf.mxu0 }
 0x1d1   :  { %2725 = vmatpush.bf16.msrb.mxu0 %v8895_v62  ;;  %2739 = vmatpush.bf16.msrb.mxu1 %v8323_v63  ;;  %v8975_v63 = vor.u32 %v11942_v57, %v8974_v56  ;;  %v2462_v40 = vadd.f32 %v13285_v31, %v13287_v32 }
 0x1d2   :  { %2753 = vmatpush.bf16.msrb.mxu2 %v8611_v7  ;;  %2767 = vmatpush.bf16.msrb.mxu3 %v8899_v9  ;;  %v11861_v7 = vld [vmem:[#allocation8 + $0x2c8] sm:$0xf0] }
 0x1d3   :  { %v8651_v16 = vor.u32 %v11861_v7, %v8650_v6 }
 0x1d4   :  { %2726 = vmatmul.bf16.vlgmr.msrb.gmra.mxu0 %v13259_v45  ;;  %2740 = vmatmul.bf16.vlgmr.msrb.gmra.mxu1 %v13255_v44 }
 0x1d5   :  { %2774 = vmatpush.bf16.msra.mxu0 %v8579_v10  ;;  %2788 = vmatpush.bf16.msra.mxu1 %v8867_v12  ;;  %v8938_v12 = vld [vmem:[#allocation8 + $0x4e8] sm:$0xf] }
 0x1d6   :  { %2802 = vmatpush.bf16.msra.mxu2 %v9155_v14  ;;  %2768 = vmatmul.bf16.vlgmr.msrb.gmra.mxu3 %v13259_v45  ;;  %v8939_v18 = vor.u32 %v11933_v13, %v8938_v12 }
 0x1d7   :  { %2754 = vmatmul.bf16.vlgmr.msrb.gmra.mxu2 %v13257_v30  ;;  %v13289_v28 = vpop.f32.mrf.mxu2  ;;  %v13291_v43 = vpop.f32.mrf.mxu3 }
 0x1d8   :  { %v2463_v49 = vpop.f32.mrf.mxu1  ;;  %v2449_v55 = vpop.f32.mrf.mxu0 }
 0x1d9   :  { %2775 = vmatpush.bf16.msra.mxu0 %v8543_v19  ;;  %2789 = vmatpush.bf16.msra.mxu1 %v8831_v23  ;;  %v2464_v62 = vadd.f32 %v2463_v49, %v2449_v55  ;;  %v11780_v19 = vld [vmem:[#allocation8 + $0x40] sm:$0xf0]  ;;  %v8614_v23 = vld [vmem:[#allocation8 + $0x260] sm:$0xf] }
 0x1da   :  { %2803 = vmatpush.bf16.msra.mxu2 %v9119_v25  ;;  %v8327_v2 = vor.u32 %v11780_v19, %v8326_v11  ;;  %v8615_v27 = vor.u32 %v11852_v24, %v8614_v23 }
 0x1dd   :  { %2776 = vmatpush.bf16.msra.mxu0 %v8507_v20  ;;  %2790 = vmatpush.bf16.msra.mxu1 %v8795_v21  ;;  %v8903_v20 = vor.u32 %v11924_v26, %v8902_v0 }
 0x1de   :  { %2804 = vmatpush.bf16.msra.mxu2 %v9083_v22 }
 0x1df   :  { %v2477_v9 = vpop.f32.mrf.mxu2  ;;  %v2491_v10 = vpop.f32.mrf.mxu3 }
 0x1e0   :  { %v2478_v14 = vadd.f32 %v2477_v9, %v2464_v62  ;;  %v13295_v25 = vpop.f32.mrf.mxu1  ;;  %v2503_v34 = vpop.f32.mrf.mxu0 }
 0x1e1   :  { %2777 = vmatpush.bf16.msra.mxu0 %v8471_v37  ;;  %2791 = vmatpush.bf16.msra.mxu1 %v8759_v38 }
 0x1e2   :  { %2805 = vmatpush.bf16.msra.mxu2 %v9047_v39  ;;  %v13293_v17 = vpack.c.bf16 %v2478_v14, %v2478_v14 }
 0x1e4   :  { %v2965_v1 = vunpack.c.l.b16 %v13293_v17 }
 0x1e5   :  { %2778 = vmatpush.bf16.msra.mxu0 %v8435_v47  ;;  %2792 = vmatpush.bf16.msra.mxu1 %v8723_v48 }
 0x1e6   :  { %2806 = vmatpush.bf16.msra.mxu2 %v9011_v51  ;;  %v2966_v21 = vpack.c.b16 %v2965_v1, %v2965_v1 }
 0x1e7   :  { %v2531_v33 = vpop.f32.mrf.mxu2  ;;  %v2545_v22 = vpop.f32.mrf.mxu3 }
 0x1e8   :  { %2967 = vrot.lane.b32.xlu1 %v2966_v21, %s13088_s10  ;;  %v2519_v35 = vpop.f32.mrf.mxu1  ;;  %v2505_v5 = vpop.f32.mrf.mxu0  ;;  %v2546_v61 = vadd.f32 %v2545_v22, %v2531_v33 }
 0x1e9   :  { %2779 = vmatpush.bf16.msra.mxu0 %v8399_v58  ;;  %2793 = vmatpush.bf16.msra.mxu1 %v8687_v59  ;;  %v2506_v49 = vadd.f32 %v2505_v5, %v2491_v10 }
 0x1ea   :  { %2807 = vmatpush.bf16.msra.mxu2 %v8975_v63 }
 0x1eb   :  { %v2520_v32 = vadd.f32 %v2519_v35, %v2506_v49 }
 0x1ed   :  { %2780 = vmatpush.bf16.msra.mxu0 %v8363_v15  ;;  %2794 = vmatpush.bf16.msra.mxu1 %v8651_v16  ;;  %v13313_v58 = vpack.c.bf16 %v2520_v32, %v2520_v32  ;;  %v2504_v15 = vadd.f32 %v2503_v34, %v13291_v43 }
 0x1ee   :  { %2808 = vmatpush.bf16.msra.mxu2 %v8939_v18 }
 0x1ef   :  { %v13302_v4 = vpop.f32.mrf.mxu2  ;;  %v13304_v36 = vpop.f32.mrf.mxu3  ;;  %v3209_v62 = vunpack.c.l.b16 %v13313_v58  ;;  %v2518_v0 = vadd.f32 %v13295_v25, %v2504_v15 }
 0x1f1   :  { %2781 = vmatpush.bf16.msra.mxu0 %v8327_v2  ;;  %2795 = vmatpush.bf16.msra.mxu1 %v8615_v27  ;;  %v2573_v37 = vpop.f32.mrf.mxu1  ;;  %v2559_v42 = vpop.f32.mrf.mxu0  ;;  %v3210_v9 = vpack.c.b16 %v3209_v62, %v3209_v62 }
 0x1f2   :  { %2809 = vmatpush.bf16.msra.mxu2 %v8903_v20  ;;  %v2560_v63 = vadd.f32 %v2559_v42, %v2546_v61 }
 0x1f4   :  { %2782 = vmatmul.bf16.vlgmr.msra.gmra.mxu0 %v13255_v44  ;;  %2796 = vmatmul.bf16.vlgmr.msra.gmra.mxu1 %v13257_v30  ;;  %v2476_v44 = vadd.f32 %v13289_v28, %v2462_v40  ;;  %v13318_v7 = vpack.c.bf16 %v2560_v63, %v2560_v63 }
 0x1f5   :  { %2810 = vmatmul.bf16.vlgmr.msra.gmra.mxu2 %v13259_v45 }
 0x1f6   :  { %v2822_v48 = vpack.c.bf16 %v2476_v44, %v2476_v44  ;;  %v3424_v10 = vunpack.c.l.b16 %v13318_v7 }
 0x1f8   :  { %v2936_v31 = vunpack.c.l.b16 %v2822_v48  ;;  %v3425_v16 = vpack.c.b16 %v3424_v10, %v3424_v10 }
 0x1f9   :  { %v2575_v46 = vpop.f32.mrf.mxu1  ;;  %v2561_v56 = vpop.f32.mrf.mxu0 }
 0x1fa   :  { %v2587_v38 = vpop.f32.mrf.mxu2  ;;  %v2601_v8 = vpop.f32.mrf.mxu3  ;;  %v2937_v57 = vpack.c.b16 %v2936_v31, %v2936_v31 }
 0x1fb   :  { %v2588_v39 = vadd.f32 %v2587_v38, %v2573_v37  ;;  %v2548_v37 = vadd.f32 %v13304_v36, %v13302_v4 }
 0x1fd   :  { %v2602_v41 = vadd.f32 %v2601_v8, %v2588_v39  ;;  %v2562_v8 = vadd.f32 %v2561_v56, %v2548_v37 }
 0x1ff   :  { %v2824_v30 = vpack.c.bf16 %v2602_v41, %v2602_v41 }
 0x201   :  { %v2833_v45 = vsel %vm2828_vm7, %v2824_v30, 0  ;;  %v2941_v29 = vunpack.c.l.b16 %v2824_v30  ;;  %v13337_v30 = vpack.c.bf16 %v2562_v8, %v2562_v8 }
 0x202   :  { %v2589_v47 = vpop.f32.mrf.mxu2  ;;  %2842 = vmatpush.bf16.xpose.msra.mxu3 %v2833_v45  ;;  %v2603_v52 = vpop.f32.mrf.mxu3 }
 0x203   :  { %v2590_v50 = vadd.f32 %v2589_v47, %v2575_v46  ;;  %v2942_v51 = vpack.c.b16 %v2941_v29, %v2941_v29  ;;  %v3453_v47 = vunpack.c.l.b16 %v13337_v30 }
 0x205   :  { %v2604_v53 = vadd.f32 %v2603_v52, %v2590_v50  ;;  %2943 = vrot.lane.b32.xlu2 %v2942_v51, %s13088_s10  ;;  %v3454_v36 = vpack.c.b16 %v3453_v47, %v3453_v47 }
 0x207   :  { %v2825_v54 = vpack.c.bf16 %v2604_v53, %v2604_v53 }
 0x209   :  { %v2970_v28 = vunpack.c.l.b16 %v2825_v54  ;;  %9156 = vmatmul.msk.bf16.vlgmr.msra.gmra.mxu3 %vm2828_vm7, %v2822_v48  ;;  %v2852_v55 = vsel %vm2828_vm7, %v2825_v54, 0 }
 0x20a   :  { %2861 = vmatpush.bf16.xpose.msrb.mxu3 %v2852_v55 }
 0x20b   :  { %v2971_v59 = vpack.c.b16 %v2970_v28, %v2970_v28 }
 0x20d   :  { %2972 = vrot.lane.b32.xlu0 %v2971_v59, %s13088_s10  ;;  %2938 = vrot.lane.b32.xlu2 %v2937_v57, %s13088_s10 }
 0x211   :  { %v2615_v3 = vpop.f32.mrf.mxu0  ;;  %v2629_v6 = vpop.f32.mrf.mxu1 }
 0x212   :  { %v2630_v12 = vadd.f32 %v2629_v6, %v2615_v3 }
 0x215   :  { %3211 = vrot.lane.b32.xlu0 %v3210_v9, %s13088_s10 }
 0x219   :  { %9157 = vmatmul.msk.bf16.vlgmr.msrb.gmra.mxu3 %vm2828_vm7, %v13293_v17  ;;  %v2617_v18 = vpop.f32.mrf.mxu0  ;;  %v2631_v19 = vpop.f32.mrf.mxu1  ;;  %v3069_v17 = vpack.c.bf16 %v2518_v0, %v2518_v0 }
 0x21a   :  { %v2643_v13 = vpop.f32.mrf.mxu2  ;;  %v2632_v1 = vadd.f32 %v2631_v19, %v2617_v18  ;;  %v2657_v22 = vpop.f32.mrf.mxu3 }
 0x21b   :  { %v2644_v14 = vadd.f32 %v2643_v13, %v2630_v12  ;;  %v3180_v33 = vunpack.c.l.b16 %v3069_v17 }
 0x21d   :  { %v3071_v11 = vpack.c.bf16 %v2644_v14, %v2644_v14  ;;  %3426 = vrot.lane.b32.xlu0 %v3425_v16, %s13088_s10  ;;  %v3181_v34 = vpack.c.b16 %v3180_v33, %v3180_v33  ;;  %v13089_v33 = vmov -1e+30  }
 0x21f   :  { %v3079_v23 = vsel %vm2828_vm7, %v3071_v11, 0  ;;  %v3185_v24 = vunpack.c.l.b16 %v3071_v11 }
 0x220   :  { %3088 = vmatpush.bf16.xpose.msrb.mxu2 %v3079_v23 }
 0x221   :  { %v3186_v26 = vpack.c.b16 %v3185_v24, %v3185_v24  ;;  %v2816_v24 = vlaneseq }
 0x222   :  { %v2645_v2 = vpop.f32.mrf.mxu2  ;;  %v2659_v41 = vpop.f32.mrf.mxu3 }
 0x223   :  { %v2646_v27 = vadd.f32 %v2645_v2, %v2632_v1  ;;  %3187 = vrot.lane.b32.xlu2 %v3186_v26, %s13088_s10  ;;  %v2817_v1 = vshrl.u32 %v2816_v24, 7  ;;  %v2819_v2 = vand.u32 127, %v2816_v24 }
 0x225   :  { %v13329_v43 = vpack.c.bf16 %v2646_v27, %v2646_v27  ;;  %vm2820_vm9 = vcmp.ge.s32.totalorder %v2817_v1, %v2819_v2 }
 0x227   :  { %v3214_v20 = vunpack.c.l.b16 %v13329_v43  ;;  %9164 = vmatmul.msk.bf16.vlgmr.msrb.gmra.mxu2 %vm2828_vm7, %v3069_v17  ;;  %v3098_v23 = vsel %vm2828_vm7, %v13329_v43, 0  ;;  %v13368_v43 = vsel %vm2820_vm9, 0.0, %v13089_v33 }
 0x229   :  { %v3215_v21 = vpack.c.b16 %v3214_v20, %v3214_v20 }
 0x22b   :  { %3216 = vrot.lane.b32.xlu2 %v3215_v21, %s13088_s10 }
 0x231   :  { %v2671_v25 = vpop.f32.mrf.mxu0  ;;  %v2685_v35 = vpop.f32.mrf.mxu1 }
 0x232   :  { %v2672_v5 = vadd.f32 %v2671_v25, %v2657_v22 }
 0x233   :  { %3182 = vrot.lane.b32.xlu2 %v3181_v34, %s13088_s10 }
 0x234   :  { %v2686_v38 = vadd.f32 %v2685_v35, %v2672_v5 }
 0x236   :  { %v3315_v39 = vpack.c.bf16 %v2686_v38, %v2686_v38 }
 0x238   :  { %v3429_v40 = vunpack.c.l.b16 %v3315_v39  ;;  %v3323_v11 = vsel %vm2828_vm7, %v3315_v39, 0 }
 0x239   :  { %v2673_v44 = vpop.f32.mrf.mxu0  ;;  %v2687_v29 = vpop.f32.mrf.mxu1 }
 0x23a   :  { %v3430_v42 = vpack.c.b16 %v3429_v40, %v3429_v40  ;;  %v2674_v45 = vadd.f32 %v2673_v44, %v2659_v41  ;;  %v2699_v50 = vpop.f32.mrf.mxu2  ;;  %v2713_v51 = vpop.f32.mrf.mxu3 }
 0x23b   :  { %v2714_v52 = vadd.f32 %v2713_v51, %v2699_v50 }
 0x23c   :  { %v2688_v46 = vadd.f32 %v2687_v29, %v2674_v45  ;;  %3431 = vrot.lane.b32.xlu2 %v3430_v42, %s13088_s10 }
 0x23e   :  { %v13341_v48 = vpack.c.bf16 %v2688_v46, %v2688_v46 }
 0x240   :  { %v3458_v4 = vunpack.c.l.b16 %v13341_v48  ;;  %v3342_v39 = vsel %vm2828_vm7, %v13341_v48, 0 }
 0x242   :  { %v3459_v49 = vpack.c.b16 %v3458_v4, %v3458_v4  ;;  %v2701_v53 = vpop.f32.mrf.mxu2  ;;  %v2715_v32 = vpop.f32.mrf.mxu3 }
 0x243   :  { %v2716_v56 = vadd.f32 %v2715_v32, %v2701_v53 }
 0x244   :  { %3455 = vrot.lane.b32.xlu2 %v3454_v36, %s13088_s10  ;;  %3460 = vrot.lane.b32.xlu1 %v3459_v49, %s13088_s10 }
 0x251   :  { %v2727_v31 = vpop.f32.mrf.mxu0  ;;  %v2741_v57 = vpop.f32.mrf.mxu1 }
 0x252   :  { %v2728_v54 = vadd.f32 %v2727_v31, %v2714_v52 }
 0x254   :  { %v13346_v28 = vpack.c.bf16 %v2728_v54, %v2728_v54 }
 0x256   :  { %v2901_v55 = vsel %vm2899_vm8, %v13346_v28, 0 }
 0x257   :  { %2910 = vmatpush.bf16.msrb.mxu0 %v2901_v55 }
 0x259   :  { %v2729_v62 = vpop.f32.mrf.mxu0  ;;  %v2769_v63 = vpop.f32.mrf.mxu3 }
 0x25a   :  { %v2755_v59 = vpop.f32.mrf.mxu2  ;;  %v2730_v3 = vadd.f32 %v2729_v62, %v2716_v56  ;;  %v2968_v27 = vpop.permute.xlu1 %2967 }
 0x25b   :  { %v2756_v61 = vadd.f32 %v2755_v59, %v2741_v57 }
 0x25c   :  { %v13352_v9 = vpack.c.bf16 %v2730_v3, %v2730_v3 }
 0x25d   :  { %v13350_v6 = vadd.f32 %v2769_v63, %v2756_v61 }
 0x25e   :  { %v2920_v10 = vsel %vm2899_vm8, %v13352_v9, 0 }
 0x25f   :  { %2929 = vmatpush.bf16.msrb.mxu1 %v2920_v10  ;;  %v2944_v12 = vpop.permute.xlu2 %2943 }
 0x260   :  { %v2949_v13 = vsel %vm2828_vm7, %v2944_v12, 0 }
 0x261   :  { %2958 = vmatpush.bf16.xpose.msra.mxu3 %v2949_v13  ;;  %v13363_v26 = vpop.f32.mrf.mxu3 }
 0x262   :  { %v13370_v34 = vpop.f32.mrf.mxu2 }
 0x267   :  { %v2939_v14 = vpop.permute.xlu2 %2938 }
 0x268   :  { %9160 = vmatmul.msk.bf16.vlgmr.msra.gmra.mxu3 %vm2828_vm7, %v2939_v14 }
 0x278   :  { %v13375_v8 = vpop.f32.mrf.mxu2 }
 0x27d   :  { %v3188_v15 = vpop.permute.xlu2 %3187 }
 0x27e   :  { %v3193_v16 = vsel %vm2828_vm7, %v3188_v15, 0 }
 0x27f   :  { %3202 = vmatpush.bf16.xpose.msra.mxu2 %v3193_v16  ;;  %v2973_v18 = vpop.permute.xlu0 %2972 }
 0x280   :  { %v2978_v19 = vsel %vm2828_vm7, %v2973_v18, 0  ;;  %v13383_v41 = vpop.f32.mrf.mxu2 }
 0x281   :  { %2987 = vmatpush.bf16.xpose.msrb.mxu3 %v2978_v19 }
 0x285   :  { %v3217_v0 = vpop.permute.xlu2 %3216 }
 0x286   :  { %v3222_v17 = vsel %vm2828_vm7, %v3217_v0, 0 }
 0x287   :  { %3332 = vmatpush.bf16.xpose.msrb.mxu2 %v3323_v11  ;;  %v3212_v44 = vpop.permute.xlu0 %3211 }
 0x288   :  { %9161 = vmatmul.msk.bf16.vlgmr.msrb.gmra.mxu3 %vm2828_vm7, %v2968_v27 }
 0x289   :  { %3107 = vmatpush.bf16.xpose.msra.mxu3 %v3098_v23 }
 0x28c   :  { %v2844_v21 = vpop.f32.mrf.mxu3 }
 0x28d   :  { %v3183_v20 = vpop.permute.xlu2 %3182  ;;  %v2867_v22 = vmul.f32 0.125, %v2844_v21 }
 0x28e   :  { %9168 = vmatmul.msk.bf16.vlgmr.msra.gmra.mxu2 %vm2828_vm7, %v3183_v20 }
 0x28f   :  { %v2869_v25 = vadd.f32 %v2867_v22, %v13368_v43  ;;  %v3427_v46 = vpop.permute.xlu0 %3426 }
 0x291   :  { %3231 = vmatpush.bf16.xpose.msrb.mxu3 %v3222_v17  ;;  %v2872_v35 = vsel %vm2871_vm10, %v2869_v25, -inf }
 0x292   :  { %2873 = vmax.xlane.f32.xlu1 %v2872_v35 }
 0x294   :  { %v2846_v37 = vpop.f32.mrf.mxu3 }
 0x296   :  { %v3432_v5 = vpop.permute.xlu2 %3431 }
 0x297   :  { %v3437_v38 = vsel %vm2828_vm7, %v3432_v5, 0 }
 0x298   :  { %3446 = vmatpush.bf16.xpose.msra.mxu2 %v3437_v38  ;;  %9165 = vmatmul.msk.bf16.vlgmr.msra.gmra.mxu3 %vm2828_vm7, %v13313_v58 }
 0x299   :  { %3351 = vmatpush.bf16.xpose.msra.mxu3 %v3342_v39 }
 0x29c   :  { %v2863_v40 = vpop.f32.mrf.mxu3 }
 0x29d   :  { %v2868_v58 = vmul.f32 0.125, %v2863_v40 }
 0x29e   :  { %9172 = vmatmul.msk.bf16.vlgmr.msrb.gmra.mxu2 %vm2828_vm7, %v13318_v7  ;;  %v3456_v51 = vpop.permute.xlu2 %3455 }
 0x29f   :  { %v2870_v4 = vadd.f32 %v2868_v58, %v13368_v43 }
 0x2a1   :  { %v2875_v50 = vsel %vm2871_vm10, %v2870_v4, -inf }
 0x2a4   :  { %v2865_v42 = vpop.f32.mrf.mxu3 }
 0x2a8   :  { %9169 = vmatmul.msk.bf16.vlgmr.msrb.gmra.mxu3 %vm2828_vm7, %v3212_v44 }
 0x2aa   :  { %v3090_v45 = vpop.f32.mrf.mxu2 }
 0x2ab   :  { %v3113_v29 = vmul.f32 0.125, %v3090_v45 }
 0x2ad   :  { %v13387_v47 = vadd.f32 %v3113_v29, %v13368_v43 }
 0x2ae   :  { %9176 = vmatmul.msk.bf16.vlgmr.msra.gmra.mxu2 %vm2828_vm7, %v3427_v46 }
 0x2af   :  { %v3117_v48 = vsel %vm2871_vm10, %v13387_v47, -inf }
 0x2b0   :  { %3118 = vmax.xlane.f32.xlu0 %v3117_v48 }
 0x2b2   :  { %v3092_v7 = vpop.f32.mrf.mxu2 }
 0x2b6   :  { %v3461_v36 = vpop.permute.xlu1 %3460 }
 0x2b7   :  { %v3466_v49 = vsel %vm2828_vm7, %v3461_v36, 0 }
 0x2b8   :  { %3475 = vmatpush.bf16.xpose.msrb.mxu3 %v3466_v49  ;;  %2876 = vmax.xlane.f32.xlu0 %v2875_v50 }
 0x2b9   :  { %9173 = vmatmul.msk.bf16.vlgmr.msra.gmra.mxu3 %vm2828_vm7, %v13337_v30 }
 0x2c9   :  { %9177 = vmatmul.msk.bf16.vlgmr.msrb.gmra.mxu3 %vm2828_vm7, %v3456_v51 }
 0x2eb   :  { %v2960_v52 = vpop.f32.mrf.mxu3 }
 0x2ec   :  { %v2993_v53 = vmul.f32 0.125, %v2960_v52 }
 0x2ee   :  { %v13399_v31 = vadd.f32 %v2993_v53, %v13368_v43 }
 0x2f0   :  { %v2997_v32 = vsel %vm2871_vm10, %v13399_v31, -inf }
 0x2f1   :  { %2998 = vmax.xlane.f32.xlu2 %v2997_v32 }
 0x2f3   :  { %v2962_v54 = vpop.f32.mrf.mxu3 }
 0x2f4   :  { %v3022_v54 = vunpack.c.l.b16 %v13346_v28 }
 0x305   :  { %v2874_v55 = vpop.xlane.xlu1 %2873 }
 0x306   :  { %v2878_v56 = vsub.f32 %v2869_v25, %v2874_v55 }
 0x308   :  { %v2880_v57 = vmul.f32 1.442695, %v2878_v56 }
 0x30a   :  { %12681 = vpow2.f32 %v2880_v57  ;;  %v3023_v57 = vpack.c.b16 %v3022_v54, %v3022_v54 }
 0x30b   :  { %v2989_v59 = vpop.f32.mrf.mxu3 }
 0x30c   :  { %v2994_v12 = vmul.f32 0.125, %v2989_v59 }
 0x30e   :  { %v13413_v15 = vadd.f32 %v2994_v12, %v13368_v43 }
 0x310   :  { %v13403_v30 = vpop.eup %12681  ;;  %v3000_v11 = vsel %vm2871_vm10, %v13413_v15, -inf }
 0x311   :  { %v3204_v61 = vpop.f32.mrf.mxu2  ;;  %v2884_v63 = vsel %vm2871_vm10, %v13403_v30, 0.0 }
 0x312   :  { %v3237_v62 = vmul.f32 0.125, %v3204_v61  ;;  %2885 = vadd.xlane.f32.xlu2 %v2884_v63 }
 0x313   :  { %v2991_v10 = vpop.f32.mrf.mxu3 }
 0x314   :  { %v13408_v3 = vadd.f32 %v3237_v62, %v13368_v43 }
 0x316   :  { %v3241_v13 = vsel %vm2871_vm10, %v13408_v3, -inf }
 0x317   :  { %3242 = vmax.xlane.f32.xlu1 %v3241_v13  ;;  %v3046_v13 = vunpack.c.l.b16 %v13352_v9 }
 0x319   :  { %v3206_v14 = vpop.f32.mrf.mxu2 }
 0x31b   :  { %v3109_v16 = vpop.f32.mrf.mxu3 }
 0x31c   :  { %v3114_v18 = vmul.f32 0.125, %v3109_v16  ;;  %v3047_v16 = vpack.c.b16 %v3046_v13, %v3046_v13 }
 0x31e   :  { %v13418_v19 = vadd.f32 %v3114_v18, %v13368_v43 }
 0x31f   :  { %3001 = vmax.xlane.f32.xlu1 %v3000_v11 }
 0x320   :  { %v3120_v0 = vsel %vm2871_vm10, %v13418_v19, -inf }
 0x321   :  { %v3334_v23 = vpop.f32.mrf.mxu2  ;;  %3121 = vmax.xlane.f32.xlu2 %v3120_v0 }
 0x322   :  { %v3357_v24 = vmul.f32 0.125, %v3334_v23 }
 0x323   :  { %v3119_v1 = vpop.xlane.xlu0 %3118  ;;  %v3111_v27 = vpop.f32.mrf.mxu3 }
 0x324   :  { %v13423_v2 = vadd.f32 %v3357_v24, %v13368_v43  ;;  %v3123_v49 = vsub.f32 %v13387_v47, %v3119_v1 }
 0x326   :  { %v3361_v17 = vsel %vm2871_vm10, %v13423_v2, -inf  ;;  %v3125_v50 = vmul.f32 1.442695, %v3123_v49 }
 0x327   :  { %3362 = vmax.xlane.f32.xlu0 %v3361_v17 }
 0x329   :  { %v3336_v20 = vpop.f32.mrf.mxu2 }
 0x32b   :  { %v2877_v21 = vpop.xlane.xlu0 %2876  ;;  %v3233_v22 = vpop.f32.mrf.mxu3 }
 0x32c   :  { %v2879_v33 = vsub.f32 %v2870_v4, %v2877_v21  ;;  %v3238_v35 = vmul.f32 0.125, %v3233_v22 }
 0x32e   :  { %v2882_v25 = vmul.f32 1.442695, %v2879_v33  ;;  %v13428_v5 = vadd.f32 %v3238_v35, %v13368_v43 }
 0x330   :  { %12683 = vpow2.f32 %v2882_v25  ;;  %v3244_v39 = vsel %vm2871_vm10, %v13428_v5, -inf }
 0x331   :  { %v3448_v37 = vpop.f32.mrf.mxu2  ;;  %3245 = vmax.xlane.f32.xlu0 %v3244_v39  ;;  %12685 = vpow2.f32 %v3125_v50 }
 0x332   :  { %v3481_v38 = vmul.f32 0.125, %v3448_v37 }
 0x333   :  { %v3235_v40 = vpop.f32.mrf.mxu3 }
 0x334   :  { %v13435_v42 = vadd.f32 %v3481_v38, %v13368_v43 }
 0x336   :  { %v13432_v44 = vpop.eup %12683  ;;  %v3485_v46 = vsel %vm2871_vm10, %v13435_v42, -inf }
 0x337   :  { %v2887_v45 = vsel %vm2871_vm10, %v13432_v44, 0.0  ;;  %v13453_v56 = vpop.eup %12685 }
 0x338   :  { %2888 = vadd.xlane.f32.xlu1 %v2887_v45  ;;  %v3129_v47 = vsel %vm2871_vm10, %v13453_v56, 0.0 }
 0x339   :  { %v3450_v29 = vpop.f32.mrf.mxu2  ;;  %3486 = vmax.xlane.f32.xlu0 %v3485_v46 }
 0x33c   :  { %v3353_v58 = vpop.f32.mrf.mxu3 }
 0x33d   :  { %v3358_v48 = vmul.f32 0.125, %v3353_v58 }
 0x33f   :  { %v13442_v7 = vadd.f32 %v3358_v48, %v13368_v43 }
 0x341   :  { %v3364_v4 = vsel %vm2871_vm10, %v13442_v7, -inf }
 0x342   :  { %3365 = vmax.xlane.f32.xlu2 %v3364_v4 }
 0x344   :  { %v3355_v36 = vpop.f32.mrf.mxu3 }
 0x34c   :  { %v3477_v51 = vpop.f32.mrf.mxu3 }
 0x34d   :  { %v3482_v52 = vmul.f32 0.125, %v3477_v51 }
 0x34f   :  { %v13448_v53 = vadd.f32 %v3482_v52, %v13368_v43  ;;  %v13460_v43 = vpack.c.bf16 %v13350_v6, %v13350_v6 }
 0x351   :  { %v3488_v32 = vsel %vm2871_vm10, %v13448_v53, -inf  ;;  %v3266_v62 = vunpack.c.l.b16 %v13460_v43 }
 0x352   :  { %3489 = vmax.xlane.f32.xlu0 %v3488_v32 }
 0x353   :  { %v3267_v63 = vpack.c.b16 %v3266_v62, %v3266_v62 }
 0x354   :  { %v3479_v55 = vpop.f32.mrf.mxu3 }
 0x355   :  { %v3145_v55 = vsel %vm2899_vm8, %v13460_v43, 0 }
 0x35a   :  { %3024 = vrot.lane.b32.xlu2 %v3023_v57, %s13088_s10  ;;  %3130 = vadd.xlane.f32.xlu0 %v3129_v47 }
 0x364   :  { %v2999_v59 = vpop.xlane.xlu2 %2998 }
 0x365   :  { %v3003_v61 = vsub.f32 %v13399_v31, %v2999_v59  ;;  %v2783_v59 = vpop.f32.mrf.mxu0 }
 0x367   :  { %v3005_v28 = vmul.f32 1.442695, %v3003_v61 }
 0x369   :  { %12687 = vpow2.f32 %v3005_v28 }
 0x36e   :  { %3268 = vrot.lane.b32.xlu0 %v3267_v63, %s13088_s10 }
 0x36f   :  { %v13465_v10 = vpop.eup %12687 }
 0x370   :  { %v3009_v12 = vsel %vm2871_vm10, %v13465_v10, 0.0 }
 0x371   :  { %3010 = vadd.xlane.f32.xlu1 %v3009_v12 }
 0x385   :  { %v2886_v6 = vpop.xlane.xlu2 %2885 }
 0x386   :  { %12689 = vrcp.f32 %v2886_v6 }
 0x38a   :  { %v3243_v14 = vpop.xlane.xlu1 %3242  ;;  %3048 = vrot.lane.b32.xlu1 %v3047_v16, %s13088_s10 }
 0x38c   :  { %v12690_v31 = vpop.eup %12689 }
 0x38d   :  { %v2892_v11 = vmul.f32 %v12690_v31, %v13403_v30 }
 0x38f   :  { %v2894_v18 = vpack.c.bf16 %v2892_v11, %v2892_v11  ;;  %v2785_v11 = vpop.f32.mrf.mxu0 }
 0x391   :  { %9158 = vmatmul.msk.bf16.vlgmr.msrb.gmra.mxu0 %vm2871_vm10, %v2894_v18 }
 0x392   :  { %v3002_v23 = vpop.xlane.xlu1 %3001 }
 0x393   :  { %v3004_v24 = vsub.f32 %v13413_v15, %v3002_v23  ;;  %v3247_v15 = vsub.f32 %v13408_v3, %v3243_v14 }
 0x394   :  { %v3122_v1 = vpop.xlane.xlu2 %3121 }
 0x395   :  { %v3007_v0 = vmul.f32 1.442695, %v3004_v24  ;;  %v3124_v9 = vsub.f32 %v13418_v19, %v3122_v1  ;;  %v3249_v22 = vmul.f32 1.442695, %v3247_v15 }
 0x397   :  { %12691 = vpow2.f32 %v3007_v0  ;;  %v3127_v27 = vmul.f32 1.442695, %v3124_v9 }
 0x399   :  { %12693 = vpow2.f32 %v3127_v27 }
 0x39a   :  { %v13477_v20 = vpop.xlane.xlu0 %3362  ;;  %12695 = vpow2.f32 %v3249_v22 }
 0x39d   :  { %v13475_v17 = vpop.eup %12691 }
 0x39e   :  { %v3012_v30 = vsel %vm2871_vm10, %v13475_v17, 0.0 }
 0x39f   :  { %3013 = vadd.xlane.f32.xlu0 %v3012_v30  ;;  %v13481_v21 = vpop.eup %12693 }
 0x3a0   :  { %v3132_v33 = vsel %vm2871_vm10, %v13481_v21, 0.0  ;;  %v13488_v40 = vpop.eup %12695 }
 0x3a1   :  { %3133 = vadd.xlane.f32.xlu2 %v3132_v33 }
 0x3a4   :  { %v3246_v19 = vpop.xlane.xlu0 %3245 }
 0x3a5   :  { %v3248_v25 = vsub.f32 %v13428_v5, %v3246_v19  ;;  %v2743_v5 = vpop.f32.mrf.mxu1 }
 0x3a6   :  { %v2758_v48 = vadd.f32 %v13370_v34, %v2743_v5 }
 0x3a7   :  { %v3251_v35 = vmul.f32 1.442695, %v3248_v25 }
 0x3a8   :  { %v2772_v50 = vadd.f32 %v13363_v26, %v2758_v48 }
 0x3a9   :  { %12697 = vpow2.f32 %v3251_v35 }
 0x3ab   :  { %v2889_v37 = vpop.xlane.xlu1 %2888 }
 0x3ac   :  { %12699 = vrcp.f32 %v2889_v37  ;;  %v3487_v38 = vpop.xlane.xlu0 %3486 }
 0x3ad   :  { %v3491_v39 = vsub.f32 %v13435_v42, %v3487_v38  ;;  %v3253_v42 = vsel %vm2871_vm10, %v13488_v40, 0.0  ;;  %v2797_v47 = vpop.f32.mrf.mxu1 }
 0x3ae   :  { %v2798_v28 = vadd.f32 %v2797_v47, %v2783_v59 }
 0x3af   :  { %v13490_v45 = vpop.eup %12697  ;;  %v3493_v3 = vmul.f32 1.442695, %v3491_v39 }
 0x3b0   :  { %v3256_v46 = vsel %vm2871_vm10, %v13490_v45, 0.0  ;;  %v2812_v43 = vadd.f32 %v13375_v8, %v2798_v28  ;;  %v3367_v8 = vsub.f32 %v13423_v2, %v13477_v20 }
 0x3b1   :  { %3257 = vadd.xlane.f32.xlu0 %v3256_v46  ;;  %12701 = vpow2.f32 %v3493_v3 }
 0x3b2   :  { %v12700_v29 = vpop.eup %12699  ;;  %v3317_v13 = vpack.c.bf16 %v2812_v43, %v2812_v43  ;;  %v3369_v0 = vmul.f32 1.442695, %v3367_v8 }
 0x3b3   :  { %v2893_v58 = vmul.f32 %v12700_v29, %v13432_v44  ;;  %v3074_v44 = vpack.c.bf16 %v2772_v50, %v2772_v50 }
 0x3b4   :  { %3254 = vadd.xlane.f32.xlu1 %v3253_v42  ;;  %v3510_v14 = vunpack.c.l.b16 %v3317_v13  ;;  %v3389_v3 = vsel %vm2899_vm8, %v3317_v13, 0 }
 0x3b5   :  { %v2895_v4 = vpack.c.bf16 %v2893_v58, %v2893_v58  ;;  %v3366_v36 = vpop.xlane.xlu2 %3365  ;;  %v2799_v18 = vpop.f32.mrf.mxu1 }
 0x3b6   :  { %v3368_v49 = vsub.f32 %v13442_v7, %v3366_v36  ;;  %v3290_v7 = vunpack.c.l.b16 %v3074_v44  ;;  %v3511_v31 = vpack.c.b16 %v3510_v14, %v3510_v14 }
 0x3b7   :  { %9159 = vmatmul.msk.bf16.vlgmr.msrb.gmra.mxu1 %vm2871_vm10, %v2895_v4  ;;  %v13501_v52 = vpop.eup %12701 }
 0x3b8   :  { %v3371_v51 = vmul.f32 1.442695, %v3368_v49  ;;  %v3497_v34 = vsel %vm2871_vm10, %v13501_v52, 0.0  ;;  %v3291_v61 = vpack.c.b16 %v3290_v7, %v3290_v7 }
 0x3ba   :  { %12703 = vpow2.f32 %v3371_v51 }
 0x3bc   :  { %3498 = vadd.xlane.f32.xlu1 %v3497_v34 }
 0x3bd   :  { %v3025_v32 = vpop.permute.xlu2 %3024 }
 0x3be   :  { %v3030_v54 = vsel %vm2899_vm8, %v3025_v32, 0 }
 0x3bf   :  { %3039 = vmatpush.bf16.msra.mxu0 %v3030_v54 }
 0x3c0   :  { %v13508_v57 = vpop.eup %12703 }
 0x3c1   :  { %v3376_v26 = vsel %vm2871_vm10, %v13508_v57, 0.0 }
 0x3c2   :  { %3377 = vadd.xlane.f32.xlu2 %v3376_v26 }
 0x3c3   :  { %3154 = vmatpush.bf16.msrb.mxu0 %v3145_v55 }
 0x3c5   :  { %v3490_v62 = vpop.xlane.xlu0 %3489  ;;  %3292 = vrot.lane.b32.xlu0 %v3291_v61, %s13088_s10 }
 0x3c6   :  { %v3492_v63 = vsub.f32 %v13448_v53, %v3490_v62  ;;  %v2800_v53 = vadd.f32 %v2799_v18, %v2785_v11 }
 0x3c8   :  { %v3495_v12 = vmul.f32 1.442695, %v3492_v63  ;;  %v2814_v23 = vadd.f32 %v13383_v41, %v2800_v53 }
 0x3ca   :  { %12705 = vpow2.f32 %v3495_v12  ;;  %v3318_v24 = vpack.c.bf16 %v2814_v23, %v2814_v23 }
 0x3cb   :  { %12707 = vpow2.f32 %v3369_v0 }
 0x3cc   :  { %v3534_v1 = vunpack.c.l.b16 %v3318_v24  ;;  %v3408_v26 = vsel %vm2899_vm8, %v3318_v24, 0 }
 0x3cd   :  { %v3131_v27 = vpop.xlane.xlu0 %3130 }
 0x3ce   :  { %v3535_v30 = vpack.c.b16 %v3534_v1, %v3534_v1 }
 0x3d0   :  { %v13515_v6 = vpop.eup %12705 }
 0x3d1   :  { %v3500_v16 = vsel %vm2871_vm10, %v13515_v6, 0.0  ;;  %v13524_v15 = vpop.eup %12707 }
 0x3d2   :  { %3501 = vadd.xlane.f32.xlu2 %v3500_v16  ;;  %v3373_v2 = vsel %vm2871_vm10, %v13524_v15, 0.0 }
 0x3d5   :  { %3512 = vrot.lane.b32.xlu1 %v3511_v31, %s13088_s10 }
 0x3e0   :  { %v3269_v19 = vpop.permute.xlu0 %3268 }
 0x3e1   :  { %v3274_v20 = vsel %vm2899_vm8, %v3269_v19, 0 }
 0x3e4   :  { %v3011_v9 = vpop.xlane.xlu1 %3010 }
 0x3e5   :  { %12709 = vrcp.f32 %v3011_v9 }
 0x3e6   :  { %12711 = vrcp.f32 %v3131_v27 }
 0x3ea   :  { %3536 = vrot.lane.b32.xlu2 %v3535_v30, %s13088_s10 }
 0x3eb   :  { %v12710_v33 = vpop.eup %12709 }
 0x3ec   :  { %v3017_v22 = vmul.f32 %v12710_v33, %v13465_v10  ;;  %v12712_v25 = vpop.eup %12711  ;;  %v3164_v10 = vsel %vm2899_vm8, %v3074_v44, 0 }
 0x3ed   :  { %v3137_v35 = vmul.f32 %v12712_v25, %v13453_v56 }
 0x3ee   :  { %v3019_v41 = vpack.c.bf16 %v3017_v22, %v3017_v22 }
 0x3ef   :  { %3374 = vadd.xlane.f32.xlu0 %v3373_v2  ;;  %v3139_v39 = vpack.c.bf16 %v3137_v35, %v3137_v35  ;;  %v9266_v35 = vld [vmem:[#allocation10 + $0xa8] sm:$0xf] }
 0x3f0   :  { %9162 = vmatmul.msk.bf16.vlgmr.msra.gmra.mxu0 %vm2871_vm10, %v3019_v41 }
 0x3f1   :  { %3283 = vmatpush.bf16.msra.mxu0 %v3274_v20 }
 0x3fc   :  { %v3049_v37 = vpop.permute.xlu1 %3048 }
 0x3fd   :  { %v3054_v38 = vsel %vm2899_vm8, %v3049_v37, 0  ;;  %v12010_v37 = vld [vmem:[#allocation10 + $0xb0] sm:$0xf0] }
 0x3fe   :  { %3063 = vmatpush.bf16.msra.mxu1 %v3054_v38  ;;  %v12009_v38 = vld [vmem:[#allocation10 + $0xac] sm:$0xf] }
 0x400   :  { %9166 = vmatmul.msk.bf16.vlgmr.msrb.gmra.mxu0 %vm2871_vm10, %v3139_v39  ;;  %v9267_v39 = vor.u32 %v12010_v37, %v9266_v35  ;;  %v9364_v35 = vld [vmem:[#allocation10 + $0x174] sm:$0xf0]  ;;  %v9370_v37 = vld [vmem:[#allocation10 + $0x170] sm:$0xf] }
 0x401   :  { %3398 = vmatpush.bf16.msrb.mxu0 %v3389_v3  ;;  %v9254_v3 = vld [vmem:[#allocation10 + $0x90] sm:$0xf] }
 0x402   :  { %3173 = vmatpush.bf16.msrb.mxu1 %v3164_v10  ;;  %v9268_v10 = vld [vmem:[#allocation10 + $0xb4] sm:$0xf0]  ;;  %3981 = vmatpush.bf16.msrb.mxu2 %v9267_v39  ;;  %v12035_v39 = vld [vmem:[#allocation10 + $0x178] sm:$0xf0] }
 0x40e   :  { %v13536_v29 = vpop.f32.mrf.mxu0 }
 0x412   :  { %v3014_v46 = vpop.xlane.xlu0 %3013 }
 0x413   :  { %12713 = vrcp.f32 %v3014_v46  ;;  %v12007_v46 = vld [vmem:[#allocation10 + $0x98] sm:$0xf0] }
 0x414   :  { %v3134_v4 = vpop.xlane.xlu2 %3133 }
 0x415   :  { %12715 = vrcp.f32 %v3134_v4 }
 0x416   :  { %v2914_v58 = vpop.f32.mrf.mxu0 }
 0x417   :  { %v9271_v58 = vor.u32 %v12009_v38, %v9268_v10  ;;  %v9338_v10 = vld [vmem:[#allocation10 + $0x138] sm:$0xf] }
 0x419   :  { %v12714_v5 = vpop.eup %12713 }
 0x41a   :  { %v3018_v56 = vmul.f32 %v12714_v5, %v13475_v17  ;;  %v12006_v5 = vld [vmem:[#allocation10 + $0x94] sm:$0xf] }
 0x41b   :  { %v12716_v42 = vpop.eup %12715 }
 0x41c   :  { %v3020_v48 = vpack.c.bf16 %v3018_v56, %v3018_v56  ;;  %v3138_v36 = vmul.f32 %v12716_v42, %v13481_v21  ;;  %v9256_v56 = vld [vmem:[#allocation10 + $0x9c] sm:$0xf0] }
 0x41d   :  { %v9259_v4 = vor.u32 %v12006_v5, %v9256_v56  ;;  %v12030_v5 = vld [vmem:[#allocation10 + $0x154] sm:$0xf]  ;;  %v9352_v56 = vld [vmem:[#allocation10 + $0x15c] sm:$0xf0] }
 0x41e   :  { %9163 = vmatmul.msk.bf16.vlgmr.msra.gmra.mxu1 %vm2871_vm10, %v3020_v48  ;;  %v3140_v50 = vpack.c.bf16 %v3138_v36, %v3138_v36  ;;  %v9255_v48 = vor.u32 %v12007_v46, %v9254_v3  ;;  %v9242_v36 = vld [vmem:[#allocation10 + $0x78] sm:$0xf]  ;;  %v12028_v3 = vld [vmem:[#allocation10 + $0x140] sm:$0xf0]  ;;  %v9371_v46 = vor.u32 %v12035_v39, %v9370_v37  ;;  %v9298_v37 = vld [vmem:[#allocation10 + $0xe0] sm:$0xf] }
 0x420   :  { %3982 = vmatpush.bf16.msrb.mxu2 %v9255_v48  ;;  %v9358_v48 = vld [vmem:[#allocation10 + $0x158] sm:$0xf] }
 0x424   :  { %v3258_v51 = vpop.xlane.xlu0 %3257 }
 0x427   :  { %v3255_v49 = vpop.xlane.xlu1 %3254 }
 0x428   :  { %12717 = vrcp.f32 %v3255_v49  ;;  %v12004_v49 = vld [vmem:[#allocation10 + $0x80] sm:$0xf0] }
 0x429   :  { %12719 = vrcp.f32 %v3258_v51  ;;  %v9243_v51 = vor.u32 %v12004_v49, %v9242_v36  ;;  %v12032_v36 = vld [vmem:[#allocation10 + $0x160] sm:$0xf0]  ;;  %v9326_v49 = vld [vmem:[#allocation10 + $0x120] sm:$0xf] }
 0x42b   :  { %3983 = vmatpush.bf16.msrb.mxu2 %v9243_v51  ;;  %v9359_v51 = vor.u32 %v12032_v36, %v9358_v48 }
 0x42e   :  { %9167 = vmatmul.msk.bf16.vlgmr.msrb.gmra.mxu1 %vm2871_vm10, %v3140_v50  ;;  %v12718_v44 = vpop.eup %12717  ;;  %v12003_v50 = vld [vmem:[#allocation10 + $0x7c] sm:$0xf] }
 0x42f   :  { %v3261_v34 = vmul.f32 %v12718_v44, %v13488_v40  ;;  %v12720_v54 = vpop.eup %12719  ;;  %v3499_v40 = vpop.xlane.xlu1 %3498  ;;  %v9244_v44 = vld [vmem:[#allocation10 + $0x84] sm:$0xf0] }
 0x430   :  { %v3262_v55 = vmul.f32 %v12720_v54, %v13490_v45  ;;  %v9247_v54 = vor.u32 %v12003_v50, %v9244_v44  ;;  %v12025_v50 = vld [vmem:[#allocation10 + $0x128] sm:$0xf0] }
 0x431   :  { %v3263_v32 = vpack.c.bf16 %v3261_v34, %v3261_v34  ;;  %v9230_v34 = vld [vmem:[#allocation10 + $0x60] sm:$0xf]  ;;  %v9327_v44 = vor.u32 %v12025_v50, %v9326_v49  ;;  %v9458_v49 = vld [vmem:[#allocation10 + $0x228] sm:$0xf]  ;;  %v12058_v50 = vld [vmem:[#allocation10 + $0x230] sm:$0xf0] }
 0x432   :  { %v3264_v47 = vpack.c.bf16 %v3262_v55, %v3262_v55  ;;  %v12000_v55 = vld [vmem:[#allocation10 + $0x64] sm:$0xf] }
 0x433   :  { %9170 = vmatmul.msk.bf16.vlgmr.msra.gmra.mxu0 %vm2871_vm10, %v3263_v32  ;;  %v12001_v32 = vld [vmem:[#allocation10 + $0x68] sm:$0xf0] }
 0x434   :  { %v13543_v17 = vpop.f32.mrf.mxu1 }
 0x435   :  { %v3378_v59 = vpop.xlane.xlu2 %3377 }
 0x436   :  { %12721 = vrcp.f32 %v3378_v59  ;;  %v9218_v59 = vld [vmem:[#allocation10 + $0x48] sm:$0xf] }
 0x437   :  { %v3293_v7 = vpop.permute.xlu0 %3292 }
 0x438   :  { %v3298_v21 = vsel %vm2899_vm8, %v3293_v7, 0  ;;  %v9232_v7 = vld [vmem:[#allocation10 + $0x6c] sm:$0xf0] }
 0x439   :  { %3307 = vmatpush.bf16.msra.mxu1 %v3298_v21  ;;  %v9231_v21 = vor.u32 %v12001_v32, %v9230_v34  ;;  %v12027_v34 = vld [vmem:[#allocation10 + $0x13c] sm:$0xf]  ;;  %v9340_v32 = vld [vmem:[#allocation10 + $0x144] sm:$0xf0] }
 0x43b   :  { %3984 = vmatpush.bf16.msrb.mxu2 %v9231_v21 }
 0x43c   :  { %v2933_v61 = vpop.f32.mrf.mxu1  ;;  %v12722_v62 = vpop.eup %12721 }
 0x43d   :  { %3417 = vmatpush.bf16.msrb.mxu1 %v3408_v26  ;;  %v3382_v63 = vmul.f32 %v12722_v62, %v13508_v57  ;;  %v9235_v26 = vor.u32 %v12000_v55, %v9232_v7  ;;  %v11998_v61 = vld [vmem:[#allocation10 + $0x50] sm:$0xf0]  ;;  %v12029_v55 = vld [vmem:[#allocation10 + $0x148] sm:$0xf0]  ;;  %v9343_v7 = vor.u32 %v12027_v34, %v9340_v32 }
 0x43e   :  { %9171 = vmatmul.msk.bf16.vlgmr.msra.gmra.mxu1 %vm2871_vm10, %v3264_v47  ;;  %v9219_v62 = vor.u32 %v11998_v61, %v9218_v59  ;;  %v12022_v59 = vld [vmem:[#allocation10 + $0x110] sm:$0xf0]  ;;  %v12057_v34 = vld [vmem:[#allocation10 + $0x22c] sm:$0xf] }
 0x43f   :  { %v3384_v12 = vpack.c.bf16 %v3382_v63, %v3382_v63  ;;  %v9206_v63 = vld [vmem:[#allocation10 + $0x30] sm:$0xf] }
 0x440   :  { %3985 = vmatpush.bf16.msrb.mxu2 %v9219_v62  ;;  %v9328_v62 = vld [vmem:[#allocation10 + $0x12c] sm:$0xf0] }
 0x445   :  { %v3502_v28 = vpop.xlane.xlu2 %3501 }
 0x446   :  { %12723 = vrcp.f32 %v3502_v28  ;;  %v9220_v28 = vld [vmem:[#allocation10 + $0x54] sm:$0xf0] }
 0x447   :  { %v3513_v43 = vpop.permute.xlu1 %3512 }
 0x448   :  { %v3518_v45 = vsel %vm2899_vm8, %v3513_v43, 0  ;;  %v11995_v43 = vld [vmem:[#allocation10 + $0x38] sm:$0xf0] }
 0x449   :  { %3527 = vmatpush.bf16.msra.mxu0 %v3518_v45 }
 0x44c   :  { %v12724_v16 = vpop.eup %12723 }
 0x44d   :  { %v3537_v13 = vpop.permute.xlu2 %3536  ;;  %v3506_v31 = vmul.f32 %v12724_v16, %v13515_v6 }
 0x44e   :  { %9175 = vmatmul.msk.bf16.vlgmr.msrb.gmra.mxu1 %vm2871_vm10, %v3384_v12  ;;  %v3542_v14 = vsel %vm2899_vm8, %v3537_v13, 0  ;;  %v11994_v12 = vld [vmem:[#allocation10 + $0x34] sm:$0xf]  ;;  %v9208_v13 = vld [vmem:[#allocation10 + $0x3c] sm:$0xf0] }
 0x44f   :  { %3551 = vmatpush.bf16.msra.mxu1 %v3542_v14  ;;  %v3508_v11 = vpack.c.bf16 %v3506_v31, %v3506_v31  ;;  %v9207_v14 = vor.u32 %v11995_v43, %v9206_v63  ;;  %v9211_v16 = vor.u32 %v11994_v12, %v9208_v13  ;;  %v12026_v43 = vld [vmem:[#allocation10 + $0x130] sm:$0xf0]  ;;  %v9302_v12 = vld [vmem:[#allocation10 + $0xf0] sm:$0xf]  ;;  %v12019_v13 = vld [vmem:[#allocation10 + $0xf8] sm:$0xf0] }
 0x451   :  { %3986 = vmatpush.bf16.msrb.mxu2 %v9207_v14 }
 0x453   :  { %4023 = vmatpush.bf16.msrb.mxu1 %v9271_v58  ;;  %v9339_v58 = vor.u32 %v12028_v3, %v9338_v10 }
 0x457   :  { %4024 = vmatpush.bf16.msrb.mxu1 %v9259_v4  ;;  %v9355_v4 = vor.u32 %v12030_v5, %v9352_v56  ;;  %v9286_v5 = vld [vmem:[#allocation10 + $0xc8] sm:$0xf]  ;;  %v12014_v56 = vld [vmem:[#allocation10 + $0xd0] sm:$0xf0] }
 0x45b   :  { %4025 = vmatpush.bf16.msrb.mxu1 %v9247_v54  ;;  %v9346_v54 = vld [vmem:[#allocation10 + $0x140] sm:$0xf] }
 0x45e   :  { %9179 = vmatmul.msk.bf16.vlgmr.msra.gmra.mxu1 %vm2871_vm10, %v3508_v11  ;;  %v9362_v11 = vld [vmem:[#allocation10 + $0x168] sm:$0xf] }
 0x45f   :  { %4026 = vmatpush.bf16.msrb.mxu1 %v9235_v26  ;;  %v9347_v26 = vor.u32 %v12029_v55, %v9346_v54  ;;  %v9460_v54 = vld [vmem:[#allocation10 + $0x234] sm:$0xf0] }
 0x460   :  { %v9434_v55 = vld [vmem:[#allocation10 + $0x1f8] sm:$0xf] }
 0x462   :  { %v3375_v18 = vpop.xlane.xlu0 %3374 }
 0x463   :  { %12725 = vrcp.f32 %v3375_v18  ;;  %v12034_v18 = vld [vmem:[#allocation10 + $0x170] sm:$0xf0] }
 0x464   :  { %12727 = vrcp.f32 %v3499_v40  ;;  %v11997_v40 = vld [vmem:[#allocation10 + $0x4c] sm:$0xf] }
 0x465   :  { %v9223_v45 = vor.u32 %v11997_v40, %v9220_v28  ;;  %v12024_v40 = vld [vmem:[#allocation10 + $0x124] sm:$0xf]  ;;  %v9334_v28 = vld [vmem:[#allocation10 + $0x128] sm:$0xf] }
 0x466   :  { %v9331_v63 = vor.u32 %v12024_v40, %v9328_v62  ;;  %v12051_v62 = vld [vmem:[#allocation10 + $0x1fc] sm:$0xf] }
 0x467   :  { %4027 = vmatpush.bf16.msrb.mxu1 %v9223_v45  ;;  %v9335_v45 = vor.u32 %v12026_v43, %v9334_v28  ;;  %v9436_v28 = vld [vmem:[#allocation10 + $0x204] sm:$0xf0]  ;;  %v12049_v43 = vld [vmem:[#allocation10 + $0x1e8] sm:$0xf0] }
 0x469   :  { %v12726_v57 = vpop.eup %12725 }
 0x46a   :  { %v3381_v53 = vmul.f32 %v12726_v57, %v13524_v15  ;;  %v12728_v24 = vpop.eup %12727  ;;  %v9194_v57 = vld [vmem:[#allocation10 + $0x18] sm:$0xf] }
 0x46b   :  { %v3505_v1 = vmul.f32 %v12728_v24, %v13501_v52  ;;  %4028 = vmatpush.bf16.msrb.mxu1 %v9211_v16  ;;  %v9196_v24 = vld [vmem:[#allocation10 + $0x24] sm:$0xf0]  ;;  %v9303_v16 = vor.u32 %v12019_v13, %v9302_v12  ;;  %v9466_v12 = vld [vmem:[#allocation10 + $0x230] sm:$0xf]  ;;  %v12059_v13 = vld [vmem:[#allocation10 + $0x238] sm:$0xf0] }
 0x46c   :  { %v3383_v23 = vpack.c.bf16 %v3381_v53, %v3381_v53  ;;  %v9363_v53 = vor.u32 %v12034_v18, %v9362_v11  ;;  %v12021_v11 = vld [vmem:[#allocation10 + $0x10c] sm:$0xf]  ;;  %v9316_v18 = vld [vmem:[#allocation10 + $0x114] sm:$0xf0] }
 0x46d   :  { %v3041_v8 = vpop.f32.mrf.mxu0  ;;  %v3507_v9 = vpack.c.bf16 %v3505_v1, %v3505_v1 }
 0x46e   :  { %9174 = vmatmul.msk.bf16.vlgmr.msrb.gmra.mxu0 %vm2871_vm10, %v3383_v23  ;;  %v11992_v23 = vld [vmem:[#allocation10 + $0x20] sm:$0xf0]  ;;  %3995 = vmatpush.bf16.msra.mxu3 %v9363_v53  ;;  %v9319_v53 = vor.u32 %v12021_v11, %v9316_v18 }
 0x475   :  { %v3043_v0 = vpop.f32.mrf.mxu0 }
 0x476   :  { %v9195_v0 = vor.u32 %v11992_v23, %v9194_v57  ;;  %v9322_v57 = vld [vmem:[#allocation10 + $0x110] sm:$0xf]  ;;  %v12023_v23 = vld [vmem:[#allocation10 + $0x118] sm:$0xf0] }
 0x478   :  { %3987 = vmatpush.bf16.msrb.mxu2 %v9195_v0  ;;  %v9323_v0 = vor.u32 %v12023_v23, %v9322_v57  ;;  %v12048_v57 = vld [vmem:[#allocation10 + $0x1e4] sm:$0xf]  ;;  %v9410_v23 = vld [vmem:[#allocation10 + $0x1c8] sm:$0xf] }
 0x47d   :  { %v13559_v27 = vpop.f32.mrf.mxu0 }
 0x47e   :  { %9178 = vmatmul.msk.bf16.vlgmr.msra.gmra.mxu0 %vm2871_vm10, %v3507_v9  ;;  %v9350_v9 = vld [vmem:[#allocation10 + $0x150] sm:$0xf] }
 0x485   :  { %v3158_v6 = vpop.f32.mrf.mxu0 }
 0x486   :  { %v12031_v6 = vld [vmem:[#allocation10 + $0x158] sm:$0xf0] }
 0x49b   :  { %v3065_v30 = vpop.f32.mrf.mxu1 }
 0x49c   :  { %v12660_v33 = vpack.i.bf16 %v3065_v30, %v3041_v8  ;;  %v11991_v8 = vld [vmem:[#allocation10 + $0x1c] sm:$0xf]  ;;  %v9182_v30 = vld [vmem:[#allocation10] sm:$0xf] }
 0x49d   :  { %v9199_v1 = vor.u32 %v11991_v8, %v9196_v24  ;;  %v9290_v8 = vld [vmem:[#allocation10 + $0xd8] sm:$0xf]  ;;  %v12016_v24 = vld [vmem:[#allocation10 + $0xe0] sm:$0xf0] }
 0x49e   :  { %12661 = vrot.lane.b32.xlu1 %v12660_v33, %s13088_s10  ;;  %v9351_v33 = vor.u32 %v12031_v6, %v9350_v9  ;;  %v12018_v9 = vld [vmem:[#allocation10 + $0xf4] sm:$0xf]  ;;  %v9304_v6 = vld [vmem:[#allocation10 + $0xfc] sm:$0xf0] }
 0x49f   :  { %4029 = vmatpush.bf16.msrb.mxu1 %v9199_v1  ;;  %v9291_v1 = vor.u32 %v12016_v24, %v9290_v8  ;;  %v12046_v8 = vld [vmem:[#allocation10 + $0x1d0] sm:$0xf0] }
 0x4a0   :  { %3996 = vmatpush.bf16.msra.mxu3 %v9351_v33  ;;  %v9307_v33 = vor.u32 %v12018_v9, %v9304_v6  ;;  %v9454_v6 = vld [vmem:[#allocation10 + $0x218] sm:$0xf] }
 0x4a3   :  { %v3067_v15 = vpop.f32.mrf.mxu1 }
 0x4a4   :  { %v11989_v15 = vld [vmem:[#allocation10 + $0x8] sm:$0xf0]  ;;  %3997 = vmatpush.bf16.msra.mxu3 %v9339_v58  ;;  %v9280_v58 = vld [vmem:[#allocation10 + $0xcc] sm:$0xf0] }
 0x4a8   :  { %3998 = vmatpush.bf16.msra.mxu3 %v9327_v44  ;;  %v12055_v44 = vld [vmem:[#allocation10 + $0x218] sm:$0xf0] }
 0x4ab   :  { %v13563_v22 = vpop.f32.mrf.mxu1 }
 0x4b0   :  { %v3285_v19 = vpop.f32.mrf.mxu0 }
 0x4b3   :  { %v3177_v41 = vpop.f32.mrf.mxu1 }
 0x4b4   :  { %v9184_v41 = vld [vmem:[#allocation10 + $0xc] sm:$0xf0] }
 0x4b8   :  { %v3287_v2 = vpop.f32.mrf.mxu0 }
 0x4b9   :  { %v9183_v2 = vor.u32 %v11989_v15, %v9182_v30  ;;  %v9310_v30 = vld [vmem:[#allocation10 + $0xf8] sm:$0xf]  ;;  %v12020_v15 = vld [vmem:[#allocation10 + $0x100] sm:$0xf0] }
 0x4bb   :  { %v3309_v20 = vpop.f32.mrf.mxu1  ;;  %3988 = vmatpush.bf16.msrb.mxu2 %v9183_v2  ;;  %v12013_v2 = vld [vmem:[#allocation10 + $0xc8] sm:$0xf0] }
 0x4bc   :  { %v12665_v25 = vpack.i.bf16 %v3309_v20, %v3285_v19  ;;  %v11988_v19 = vld [vmem:[#allocation10 + $0x4] sm:$0xf] }
 0x4bd   :  { %v9187_v20 = vor.u32 %v11988_v19, %v9184_v41  ;;  %v9311_v19 = vor.u32 %v12020_v15, %v9310_v30  ;;  %v9278_v41 = vld [vmem:[#allocation10 + $0xc0] sm:$0xf]  ;;  %v12056_v30 = vld [vmem:[#allocation10 + $0x220] sm:$0xf0]  ;;  %v9411_v15 = vor.u32 %v12046_v8, %v9410_v23  ;;  %v9238_v23 = vld [vmem:[#allocation10 + $0x68] sm:$0xf] }
 0x4be   :  { %12666 = vrot.lane.b32.xlu2 %v12665_v25, %s13088_s10 }
 0x4bf   :  { %4030 = vmatpush.bf16.msrb.mxu1 %v9187_v20  ;;  %v12015_v20 = vld [vmem:[#allocation10 + $0xdc] sm:$0xf] }
 0x4c3   :  { %v3311_v52 = vpop.f32.mrf.mxu1  ;;  %4079 = vmatpush.bf16.msra.mxu1 %v9371_v46  ;;  %v12012_v46 = vld [vmem:[#allocation10 + $0xc4] sm:$0xf] }
 0x4c4   :  { %v12033_v52 = vld [vmem:[#allocation10 + $0x16c] sm:$0xf]  ;;  %v9283_v48 = vor.u32 %v12012_v46, %v9280_v58  ;;  %v9386_v46 = vld [vmem:[#allocation10 + $0x198] sm:$0xf]  ;;  %v12040_v58 = vld [vmem:[#allocation10 + $0x1a0] sm:$0xf0] }
 0x4c5   :  { %v9367_v38 = vor.u32 %v12033_v52, %v9364_v35  ;;  %v9279_v52 = vor.u32 %v12013_v2, %v9278_v41  ;;  %v9292_v35 = vld [vmem:[#allocation10 + $0xe4] sm:$0xf0]  ;;  %v9412_v41 = vld [vmem:[#allocation10 + $0x1d4] sm:$0xf0]  ;;  %v9398_v2 = vld [vmem:[#allocation10 + $0x1b0] sm:$0xf] }
 0x4c6   :  { %v9295_v10 = vor.u32 %v12015_v20, %v9292_v35  ;;  %v9455_v20 = vor.u32 %v12056_v30, %v9454_v6 }
 0x4c7   :  { %4037 = vmatpush.bf16.msra.mxu2 %v9367_v38  ;;  %4080 = vmatpush.bf16.msra.mxu1 %v9359_v51  ;;  %v12017_v38 = vld [vmem:[#allocation10 + $0xe8] sm:$0xf0]  ;;  %v9459_v51 = vor.u32 %v12058_v50, %v9458_v49  ;;  %v12050_v49 = vld [vmem:[#allocation10 + $0x1f0] sm:$0xf0] }
 0x4c8   :  { %v9299_v3 = vor.u32 %v12017_v38, %v9298_v37 }
 0x4c9   :  { %4009 = vmatpush.bf16.msrb.mxu0 %v9459_v51  ;;  %v12039_v51 = vld [vmem:[#allocation10 + $0x19c] sm:$0xf] }
 0x4cb   :  { %v13566_v42 = vpop.f32.mrf.mxu1  ;;  %4038 = vmatpush.bf16.msra.mxu2 %v9355_v4  ;;  %4081 = vmatpush.bf16.msra.mxu1 %v9347_v26  ;;  %v9287_v4 = vor.u32 %v12014_v56, %v9286_v5  ;;  %v9463_v26 = vor.u32 %v12057_v34, %v9460_v54  ;;  %v9374_v34 = vld [vmem:[#allocation10 + $0x180] sm:$0xf] }
 0x4cf   :  { %4039 = vmatpush.bf16.msra.mxu2 %v9343_v7  ;;  %4082 = vmatpush.bf16.msra.mxu1 %v9335_v45  ;;  %v12052_v7 = vld [vmem:[#allocation10 + $0x200] sm:$0xf0] }
 0x4d0   :  { %v9435_v40 = vor.u32 %v12052_v7, %v9434_v55  ;;  %v12011_v55 = vld [vmem:[#allocation10 + $0xb8] sm:$0xf0]  ;;  %v9418_v7 = vld [vmem:[#allocation10 + $0x1d0] sm:$0xf] }
 0x4d3   :  { %v3421_v47 = vpop.f32.mrf.mxu1  ;;  %4040 = vmatpush.bf16.msra.mxu2 %v9331_v63  ;;  %4083 = vmatpush.bf16.msra.mxu1 %v9323_v0  ;;  %v9422_v63 = vld [vmem:[#allocation10 + $0x1e0] sm:$0xf] }
 0x4d4   :  { %v9314_v47 = vld [vmem:[#allocation10 + $0x108] sm:$0xf]  ;;  %v9423_v18 = vor.u32 %v12049_v43, %v9422_v63  ;;  %v12044_v63 = vld [vmem:[#allocation10 + $0x1c0] sm:$0xf0] }
 0x4d5   :  { %v9315_v61 = vor.u32 %v12022_v59, %v9314_v47  ;;  %v12054_v47 = vld [vmem:[#allocation10 + $0x214] sm:$0xf]  ;;  %v9448_v59 = vld [vmem:[#allocation10 + $0x21c] sm:$0xf0] }
 0x4d7   :  { %3999 = vmatpush.bf16.msra.mxu3 %v9315_v61  ;;  %4041 = vmatpush.bf16.msra.mxu2 %v9319_v53  ;;  %v9451_v61 = vor.u32 %v12054_v47, %v9448_v59  ;;  %v9424_v53 = vld [vmem:[#allocation10 + $0x1ec] sm:$0xf0] }
 0x4d8   :  { %4084 = vmatpush.bf16.msra.mxu1 %v9311_v19  ;;  %v12045_v19 = vld [vmem:[#allocation10 + $0x1cc] sm:$0xf] }
 0x4d9   :  { %v9415_v35 = vor.u32 %v12045_v19, %v9412_v41  ;;  %v9214_v41 = vld [vmem:[#allocation10 + $0x38] sm:$0xf] }
 0x4db   :  { %v13568_v31 = vpop.f32.mrf.mxu1  ;;  %4000 = vmatpush.bf16.msra.mxu3 %v9303_v16  ;;  %4042 = vmatpush.bf16.msra.mxu2 %v9307_v33  ;;  %v9427_v33 = vor.u32 %v12048_v57, %v9424_v53  ;;  %v12036_v57 = vld [vmem:[#allocation10 + $0x184] sm:$0xf]  ;;  %v9376_v53 = vld [vmem:[#allocation10 + $0x18c] sm:$0xf0] }
 0x4dc   :  { %4085 = vmatpush.bf16.msra.mxu1 %v9299_v3  ;;  %v9400_v3 = vld [vmem:[#allocation10 + $0x1bc] sm:$0xf0]  ;;  %v9379_v8 = vor.u32 %v12036_v57, %v9376_v53  ;;  %v12735_v53 = vld [vmem:[#allocation2 + $0x10] sm:$0xff] }
 0x4df   :  { %4001 = vmatpush.bf16.msra.mxu3 %v9291_v1  ;;  %4043 = vmatpush.bf16.msra.mxu2 %v9295_v10  ;;  %v9467_v1 = vor.u32 %v12059_v13, %v9466_v12  ;;  %v12042_v10 = vld [vmem:[#allocation10 + $0x1b4] sm:$0xf]  ;;  %v9250_v12 = vld [vmem:[#allocation10 + $0x80] sm:$0xf]  ;;  %v12005_v13 = vld [vmem:[#allocation10 + $0x88] sm:$0xf0] }
 0x4e0   :  { %4086 = vmatpush.bf16.msra.mxu1 %v9287_v4  ;;  %v9403_v50 = vor.u32 %v12042_v10, %v9400_v3 }
 0x4e3   :  { %v3555_v25 = vpop.f32.mrf.mxu1  ;;  %4002 = vmatpush.bf16.msra.mxu3 %v9279_v52  ;;  %4044 = vmatpush.bf16.msra.mxu2 %v9283_v48  ;;  %v12053_v52 = vld [vmem:[#allocation10 + $0x208] sm:$0xf0] }
 0x4e7   :  { %4051 = vmatpush.bf16.msrb.mxu3 %v9463_v26 }
 0x4eb   :  { %v13570_v21 = vpop.f32.mrf.mxu0  ;;  %4052 = vmatpush.bf16.msrb.mxu3 %v9451_v61 }
 0x4f3   :  { %v3402_v14 = vpop.f32.mrf.mxu0 }
 0x4f4   :  { %v9439_v14 = vor.u32 %v12051_v62, %v9436_v28  ;;  %v12008_v62 = vld [vmem:[#allocation10 + $0xa0] sm:$0xf0]  ;;  %v9406_v28 = vld [vmem:[#allocation10 + $0x1b8] sm:$0xf] }
 0x4f6   :  { %4053 = vmatpush.bf16.msrb.mxu3 %v9439_v14  ;;  %v9394_v14 = vld [vmem:[#allocation10 + $0x1a0] sm:$0xf] }
 0x4fa   :  { %4054 = vmatpush.bf16.msrb.mxu3 %v9427_v33  ;;  %v9226_v33 = vld [vmem:[#allocation10 + $0x50] sm:$0xf] }
 0x4fb   :  { %v3529_v25 = vpop.f32.mrf.mxu0 }
 0x4fc   :  { %v12670_v39 = vpack.i.bf16 %v13568_v31, %v3529_v25  ;;  %v9446_v31 = vld [vmem:[#allocation10 + $0x210] sm:$0xf]  ;;  %v9442_v25 = vld [vmem:[#allocation10 + $0x200] sm:$0xf] }
 0x4fd   :  { %v9447_v32 = vor.u32 %v12055_v44, %v9446_v31  ;;  %v9443_v48 = vor.u32 %v12053_v52, %v9442_v25  ;;  %v9387_v31 = vor.u32 %v12040_v58, %v9386_v46  ;;  %v9388_v44 = vld [vmem:[#allocation10 + $0x1a4] sm:$0xf0] }
 0x4fe   :  { %12671 = vrot.lane.b32.xlu0 %v12670_v39, %s13088_s10  ;;  %4055 = vmatpush.bf16.msrb.mxu3 %v9415_v35  ;;  %v9391_v26 = vor.u32 %v12039_v51, %v9388_v44  ;;  %v9190_v52 = vld [vmem:[#allocation10 + $0x8] sm:$0xf]  ;;  %v11990_v35 = vld [vmem:[#allocation10 + $0x10] sm:$0xf0] }
 0x4ff   :  { %4010 = vmatpush.bf16.msrb.mxu0 %v9447_v32  ;;  %v12037_v32 = vld [vmem:[#allocation10 + $0x188] sm:$0xf0] }
 0x500   :  { %v9375_v47 = vor.u32 %v12037_v32, %v9374_v34 }
 0x502   :  { %4056 = vmatpush.bf16.msrb.mxu3 %v9403_v50 }
 0x503   :  { %v3531_v36 = vpop.f32.mrf.mxu0  ;;  %4011 = vmatpush.bf16.msrb.mxu0 %v9435_v40  ;;  %v9262_v40 = vld [vmem:[#allocation10 + $0x98] sm:$0xf] }
 0x504   :  { %v9430_v36 = vld [vmem:[#allocation10 + $0x1e8] sm:$0xf]  ;;  %v9263_v43 = vor.u32 %v12008_v62, %v9262_v40 }
 0x505   :  { %v9431_v54 = vor.u32 %v12050_v49, %v9430_v36 }
 0x506   :  { %4057 = vmatpush.bf16.msrb.mxu3 %v9391_v26 }
 0x507   :  { %4012 = vmatpush.bf16.msrb.mxu0 %v9423_v18 }
 0x50a   :  { %4058 = vmatpush.bf16.msrb.mxu3 %v9379_v8 }
 0x50b   :  { %4013 = vmatpush.bf16.msrb.mxu0 %v9411_v15  ;;  %v11999_v15 = vld [vmem:[#allocation10 + $0x58] sm:$0xf0] }
 0x50c   :  { %v9227_v19 = vor.u32 %v11999_v15, %v9226_v33  ;;  %v12736_v33 = vld [vmem:[#allocation2 + $0x20] sm:$0xff] }
 0x510   :  { %v12662_v45 = vpop.permute.xlu1 %12661 }
 0x511   :  { %v12664_v16 = vunpack.i.h.bf16 %v12662_v45  ;;  %v12663_v11 = vunpack.i.l.bf16 %v12662_v45  ;;  %v9407_v45 = vor.u32 %v12044_v63, %v9406_v28  ;;  %v12733_v28 = vld [vmem:[#allocation2 + $0x8] sm:$0xff] }
 0x513   :  { %v3582_v24 = vsel %vm2828_vm7, %v13543_v17, %v12664_v16  ;;  %v3581_v0 = vsel %vm2828_vm7, %v13536_v29, %v12663_v11  ;;  %v12043_v17 = vld [vmem:[#allocation10 + $0x1b8] sm:$0xf0]  ;;  %v12041_v16 = vld [vmem:[#allocation10 + $0x1a8] sm:$0xf0]  ;;  %v9251_v11 = vor.u32 %v12005_v13, %v9250_v12 }
 0x514   :  { %v13578_v9 = vpack.c.bf16 %v3582_v24, %v3581_v0  ;;  %v9399_v39 = vor.u32 %v12043_v17, %v9398_v2  ;;  %v9395_v18 = vor.u32 %v12041_v16, %v9394_v14  ;;  %v12002_v24 = vld [vmem:[#allocation10 + $0x70] sm:$0xf0]  ;;  %v9382_v0 = vld [vmem:[#allocation10 + $0x188] sm:$0xf]  ;;  %v11996_v2 = vld [vmem:[#allocation10 + $0x40] sm:$0xf0] }
 0x515   :  { %v9239_v6 = vor.u32 %v12002_v24, %v9238_v23  ;;  %v9215_v17 = vor.u32 %v11996_v2, %v9214_v41  ;;  %v12734_v14 = vld [vmem:[#allocation2] sm:$0xff]  ;;  %v12737_v2 = vld [vmem:[#allocation2 + $0x18] sm:$0xff] }
 0x516   :  { %3989 = vmatmul.bf16.vlgmr.msrb.gmra.mxu2 %v13578_v9  ;;  %4031 = vmatmul.bf16.vlgmr.msrb.gmra.mxu1 %v13578_v9 }
 0x517   :  { %4093 = vmatpush.bf16.msrb.mxu2 %v9467_v1  ;;  %4014 = vmatpush.bf16.msrb.mxu0 %v9399_v39  ;;  %v12038_v1 = vld [vmem:[#allocation10 + $0x190] sm:$0xf0] }
 0x518   :  { %v12667_v29 = vpop.permute.xlu2 %12666  ;;  %v9383_v30 = vor.u32 %v12038_v1, %v9382_v0 }
 0x519   :  { %v12669_v37 = vunpack.i.h.bf16 %v12667_v29  ;;  %v12668_v38 = vunpack.i.l.bf16 %v12667_v29  ;;  %v11993_v29 = vld [vmem:[#allocation10 + $0x28] sm:$0xf0] }
 0x51b   :  { %v3584_v5 = vsel %vm2828_vm7, %v13563_v22, %v12669_v37  ;;  %v3583_v56 = vsel %vm2828_vm7, %v13559_v27, %v12668_v38  ;;  %4094 = vmatpush.bf16.msrb.mxu2 %v9455_v20  ;;  %v9274_v22 = vld [vmem:[#allocation10 + $0xb0] sm:$0xf]  ;;  %v12047_v27 = vld [vmem:[#allocation10 + $0x1d8] sm:$0xf0]  ;;  %4015 = vmatpush.bf16.msrb.mxu0 %v9387_v31  ;;  %v9202_v20 = vld [vmem:[#allocation10 + $0x20] sm:$0xf]  ;;  %v9191_v37 = vor.u32 %v11990_v35, %v9190_v52 }
 0x51c   :  { %v3588_v4 = vpack.c.bf16 %v3584_v5, %v3583_v56  ;;  %v9275_v59 = vor.u32 %v12011_v55, %v9274_v22  ;;  %v9419_v61 = vor.u32 %v12047_v27, %v9418_v7  ;;  %v9203_v25 = vor.u32 %v11993_v29, %v9202_v20  ;;  %v554_v31 = vld [vmem:[#allocation11] sm:$0x7]  ;;  %v12738_v29 = vld [vmem:[#allocation2 + $0x28] sm:$0xff] }
 0x51d   :  { %v3592_v44 = vperm.slane %v554_v31, 1  ;;  %v3591_v34 = vperm.slane %v554_v31, 0  ;;  %v3593_v7 = vperm.slane %v554_v31, 2  ;;  %v10142_v31 = vld [vmem:[#allocation16 + $0x540] sm:$0xf] }
 0x51e   :  { %4003 = vmatmul.bf16.vlgmr.msra.gmra.mxu3 %v3588_v4 }
 0x51f   :  { %4095 = vmatpush.bf16.msrb.mxu2 %v9443_v48  ;;  %4016 = vmatpush.bf16.msrb.mxu0 %v9375_v47 }
 0x523   :  { %4096 = vmatpush.bf16.msrb.mxu2 %v9431_v54  ;;  %4065 = vmatpush.bf16.msra.mxu0 %v9275_v59 }
 0x526   :  { %4045 = vmatmul.bf16.vlgmr.msra.gmra.mxu2 %v3588_v4  ;;  %4087 = vmatmul.bf16.vlgmr.msra.gmra.mxu1 %v3588_v4 }
 0x527   :  { %4097 = vmatpush.bf16.msrb.mxu2 %v9419_v61  ;;  %4066 = vmatpush.bf16.msra.mxu0 %v9263_v43 }
 0x52b   :  { %4098 = vmatpush.bf16.msrb.mxu2 %v9407_v45  ;;  %4067 = vmatpush.bf16.msra.mxu0 %v9251_v11 }
 0x52f   :  { %4099 = vmatpush.bf16.msrb.mxu2 %v9395_v18  ;;  %4068 = vmatpush.bf16.msra.mxu0 %v9239_v6 }
 0x533   :  { %4100 = vmatpush.bf16.msrb.mxu2 %v9383_v30  ;;  %4069 = vmatpush.bf16.msra.mxu0 %v9227_v19 }
 0x537   :  { %4070 = vmatpush.bf16.msra.mxu0 %v9215_v17 }
 0x53b   :  { %4071 = vmatpush.bf16.msra.mxu0 %v9203_v25 }
 0x53f   :  { %4072 = vmatpush.bf16.msra.mxu0 %v9191_v37  ;;  %v9806_v37 = vld [vmem:[#allocation16 + $0x2a0] sm:$0xf] }
 0x570   :  { %v12672_v38 = vpop.permute.xlu0 %12671 }
 0x571   :  { %v12674_v39 = vunpack.i.h.bf16 %v12672_v38  ;;  %v12673_v10 = vunpack.i.l.bf16 %v12672_v38  ;;  %v12150_v38 = vld [vmem:[#allocation16 + $0x2cc] sm:$0xf0] }
 0x573   :  { %v3586_v3 = vsel %vm2828_vm7, %v13566_v42, %v12674_v39  ;;  %v3585_v46 = vsel %vm2828_vm7, %v13570_v21, %v12673_v10  ;;  %v10190_v39 = vld [vmem:[#allocation16 + $0x5a0] sm:$0xf]  ;;  %v9807_v10 = vor.u32 %v12150_v38, %v9806_v37  ;;  %v9616_v37 = vld [vmem:[#allocation16 + $0x150] sm:$0xf0] }
 0x574   :  { %v3589_v58 = vpack.c.bf16 %v3586_v3, %v3585_v46  ;;  %v12246_v3 = vld [vmem:[#allocation16 + $0x5cc] sm:$0xf0]  ;;  %v10574_v46 = vld [vmem:[#allocation16 + $0x8a0] sm:$0xf] }
 0x575   :  { %5668 = vmatpush.bf16.msra.mxu3 %v9807_v10 }
 0x576   :  { %4017 = vmatmul.bf16.vlgmr.msrb.gmra.mxu0 %v3589_v58  ;;  %4059 = vmatmul.bf16.vlgmr.msrb.gmra.mxu3 %v3589_v58 }
 0x577   :  { %4101 = vmatmul.bf16.vlgmr.msrb.gmra.mxu2 %v3589_v58  ;;  %v12342_v58 = vld [vmem:[#allocation16 + $0x8cc] sm:$0xf0] }
 0x586   :  { %4073 = vmatmul.bf16.vlgmr.msra.gmra.mxu0 %v13578_v9 }
 0x593   :  { %v4032_v4 = vpop.f32.mrf.mxu1 }
 0x594   :  { %v4033_v54 = vadd.f32 %v4032_v4, %v3592_v44  ;;  %v9808_v4 = vld [vmem:[#allocation16 + $0x2d0] sm:$0xf0] }
 0x599   :  { %v3990_v5 = vpop.f32.mrf.mxu2 }
 0x59a   :  { %v3991_v22 = vadd.f32 %v3990_v5, %v3591_v34  ;;  %v10191_v5 = vor.u32 %v12246_v3, %v10190_v39 }
 0x59b   :  { %v4034_v51 = vpop.f32.mrf.mxu1 }
 0x59c   :  { %v4035_v62 = vadd.f32 %v4034_v51, %v3592_v44  ;;  %v12234_v51 = vld [vmem:[#allocation16 + $0x56c] sm:$0xf0]  ;;  %5682 = vmatpush.bf16.msrb.mxu0 %v10191_v5 }
 0x5a1   :  { %v3992_v56 = vpop.f32.mrf.mxu2  ;;  %v4004_v48 = vpop.f32.mrf.mxu3 }
 0x5a2   :  { %v4005_v27 = vadd.f32 %v4004_v48, %v3991_v22  ;;  %v3993_v12 = vadd.f32 %v3992_v56, %v3591_v34  ;;  %v10575_v56 = vor.u32 %v12342_v58, %v10574_v46  ;;  %v12144_v48 = vld [vmem:[#allocation16 + $0x2a4] sm:$0xf]  ;;  %v10526_v34 = vld [vmem:[#allocation16 + $0x840] sm:$0xf]  ;;  %v9760_v22 = vld [vmem:[#allocation16 + $0x270] sm:$0xf0] }
 0x5a3   :  { %v4088_v26 = vpop.f32.mrf.mxu1 }
 0x5a4   :  { %5696 = vmatpush.bf16.msrb.mxu1 %v10575_v56 }
 0x5a9   :  { %v4046_v36 = vpop.f32.mrf.mxu2  ;;  %v4006_v50 = vpop.f32.mrf.mxu3 }
 0x5aa   :  { %v4047_v55 = vadd.f32 %v4046_v36, %v4033_v54  ;;  %v4007_v18 = vadd.f32 %v4006_v50, %v3993_v12  ;;  %v9758_v36 = vld [vmem:[#allocation16 + $0x240] sm:$0xf]  ;;  %v12138_v50 = vld [vmem:[#allocation16 + $0x26c] sm:$0xf0] }
 0x5ab   :  { %v4090_v30 = vpop.f32.mrf.mxu1  ;;  %v9759_v44 = vor.u32 %v12138_v50, %v9758_v36  ;;  %v12114_v12 = vld [vmem:[#allocation16 + $0x1ac] sm:$0xf0] }
 0x5ad   :  { %5669 = vmatpush.bf16.msra.mxu3 %v9759_v44 }
 0x5b1   :  { %v4048_v32 = vpop.f32.mrf.mxu2 }
 0x5b2   :  { %v4049_v13 = vadd.f32 %v4048_v32, %v4035_v62  ;;  %v12330_v32 = vld [vmem:[#allocation16 + $0x86c] sm:$0xf0]  ;;  %v9712_v62 = vld [vmem:[#allocation16 + $0x210] sm:$0xf0] }
 0x5b3   :  { %v10527_v54 = vor.u32 %v12330_v32, %v10526_v34 }
 0x5b5   :  { %5697 = vmatpush.bf16.msrb.mxu1 %v10527_v54 }
 0x5f3   :  { %v4018_v49 = vpop.f32.mrf.mxu0 }
 0x5f4   :  { %v4019_v59 = vadd.f32 %v4018_v49, %v4005_v27  ;;  %v9811_v49 = vor.u32 %v12144_v48, %v9808_v4 }
 0x5f6   :  { %v13593_v16 = vadd.f32 %v12734_v14, %v4019_v59  ;;  %5710 = vmatpush.bf16.msra.mxu2 %v9811_v49 }
 0x5f9   :  { %v4060_v21 = vpop.f32.mrf.mxu3 }
 0x5fa   :  { %v4061_v9 = vadd.f32 %v4060_v21, %v4047_v55  ;;  %v4102_v40 = vpop.f32.mrf.mxu2  ;;  %v12132_v21 = vld [vmem:[#allocation16 + $0x244] sm:$0xf]  ;;  %v9710_v55 = vld [vmem:[#allocation16 + $0x1e0] sm:$0xf] }
 0x5fb   :  { %v4020_v42 = vpop.f32.mrf.mxu0  ;;  %v9763_v27 = vor.u32 %v12132_v21, %v9760_v22 }
 0x5fc   :  { %v13591_v63 = vadd.f32 %v12733_v28, %v4061_v9  ;;  %v4021_v0 = vadd.f32 %v4020_v42, %v4007_v18  ;;  %v10143_v42 = vor.u32 %v12234_v51, %v10142_v31  ;;  %v10094_v9 = vld [vmem:[#allocation16 + $0x4e0] sm:$0xf] }
 0x5fd   :  { %5711 = vmatpush.bf16.msra.mxu2 %v9763_v27  ;;  %v10430_v18 = vld [vmem:[#allocation16 + $0x780] sm:$0xf] }
 0x5fe   :  { %v4113_v8 = vadd.f32 %v13591_v63, %v13593_v16  ;;  %v13602_v17 = vadd.f32 %v12737_v2, %v4021_v0  ;;  %5683 = vmatpush.bf16.msrb.mxu0 %v10143_v42  ;;  %v9614_v0 = vld [vmem:[#allocation16 + $0x120] sm:$0xf]  ;;  %v12294_v2 = vld [vmem:[#allocation16 + $0x74c] sm:$0xf0] }
 0x5ff   :  { %v9950_v27 = vld [vmem:[#allocation16 + $0x3c0] sm:$0xf] }
 0x601   :  { %v4062_v45 = vpop.f32.mrf.mxu3 }
 0x602   :  { %v4063_v57 = vadd.f32 %v4062_v45, %v4049_v13  ;;  %v4104_v41 = vpop.f32.mrf.mxu2  ;;  %v9662_v45 = vld [vmem:[#allocation16 + $0x180] sm:$0xf] }
 0x603   :  { %v4074_v47 = vpop.f32.mrf.mxu0  ;;  %v10046_v13 = vld [vmem:[#allocation16 + $0x480] sm:$0xf] }
 0x604   :  { %v4075_v61 = vadd.f32 %v4074_v47, %v3593_v7  ;;  %v13600_v15 = vadd.f32 %v12736_v33, %v4063_v57  ;;  %v10478_v47 = vld [vmem:[#allocation16 + $0x7e0] sm:$0xf]  ;;  %v12306_v57 = vld [vmem:[#allocation16 + $0x7ac] sm:$0xf0] }
 0x605   :  { %v10431_v33 = vor.u32 %v12306_v57, %v10430_v18  ;;  %v10286_v18 = vld [vmem:[#allocation16 + $0x660] sm:$0xf]  ;;  %v12270_v57 = vld [vmem:[#allocation16 + $0x68c] sm:$0xf0] }
 0x606   :  { %v4089_v43 = vadd.f32 %v4088_v26, %v4075_v61  ;;  %v4117_v52 = vadd.f32 %v13600_v15, %v13602_v17  ;;  %v12222_v26 = vld [vmem:[#allocation16 + $0x50c] sm:$0xf0] }
 0x607   :  { %v12318_v61 = vld [vmem:[#allocation16 + $0x80c] sm:$0xf0]  ;;  %v10095_v28 = vor.u32 %v12222_v26, %v10094_v9 }
 0x608   :  { %v4103_v11 = vadd.f32 %v4102_v40, %v4089_v43  ;;  %v12120_v40 = vld [vmem:[#allocation16 + $0x1e4] sm:$0xf]  ;;  %v10479_v43 = vor.u32 %v12318_v61, %v10478_v47  ;;  %v12186_v26 = vld [vmem:[#allocation16 + $0x3ec] sm:$0xf0]  ;;  %v10334_v47 = vld [vmem:[#allocation16 + $0x6c0] sm:$0xf] }
 0x609   :  { %v9715_v14 = vor.u32 %v12120_v40, %v9712_v62  ;;  %5684 = vmatpush.bf16.msrb.mxu0 %v10095_v28  ;;  %v9951_v61 = vor.u32 %v12186_v26, %v9950_v27  ;;  %v12084_v62 = vld [vmem:[#allocation16 + $0xc4] sm:$0xf]  ;;  %v9568_v28 = vld [vmem:[#allocation16 + $0xf0] sm:$0xf0]  ;;  %v9766_v27 = vld [vmem:[#allocation16 + $0x248] sm:$0xf] }
 0x60a   :  { %v13595_v23 = vadd.f32 %v12735_v53, %v4103_v11  ;;  %v12210_v11 = vld [vmem:[#allocation16 + $0x4ac] sm:$0xf0]  ;;  %v12108_v53 = vld [vmem:[#allocation16 + $0x184] sm:$0xf]  ;;  %5698 = vmatpush.bf16.msrb.mxu1 %v10479_v43  ;;  %v9571_v43 = vor.u32 %v12084_v62, %v9568_v28  ;;  %v12139_v26 = vld [vmem:[#allocation16 + $0x274] sm:$0xf0] }
 0x60b   :  { %v4076_v24 = vpop.f32.mrf.mxu0  ;;  %5712 = vmatpush.bf16.msra.mxu2 %v9715_v14  ;;  %v12216_v62 = vld [vmem:[#allocation16 + $0x4e4] sm:$0xf]  ;;  %v10096_v28 = vld [vmem:[#allocation16 + $0x510] sm:$0xf0] }
 0x60c   :  { %v4077_v1 = vadd.f32 %v4076_v24, %v3593_v7  ;;  %v4114_v6 = vadd.f32 %v4113_v8, %v13595_v23  ;;  %v12126_v7 = vld [vmem:[#allocation16 + $0x20c] sm:$0xf0]  ;;  %v9664_v8 = vld [vmem:[#allocation16 + $0x1b0] sm:$0xf0]  ;;  %v9663_v24 = vor.u32 %v12114_v12, %v9662_v45  ;;  %v9518_v45 = vld [vmem:[#allocation16 + $0x60] sm:$0xf] }
 0x60d   :  { %v9711_v59 = vor.u32 %v12126_v7, %v9710_v55  ;;  %v9566_v55 = vld [vmem:[#allocation16 + $0xc0] sm:$0xf]  ;;  %v12090_v7 = vld [vmem:[#allocation16 + $0xec] sm:$0xf0] }
 0x60e   :  { %v4091_v19 = vadd.f32 %v4090_v30, %v4077_v1  ;;  %4115 = vadd.xlane.f32.xlu1 %v4114_v6  ;;  %v12102_v1 = vld [vmem:[#allocation16 + $0x14c] sm:$0xf0]  ;;  %v9998_v6 = vld [vmem:[#allocation16 + $0x420] sm:$0xf]  ;;  %v10047_v30 = vor.u32 %v12210_v11, %v10046_v13  ;;  %5699 = vmatpush.bf16.msrb.mxu1 %v10431_v33  ;;  %v9567_v9 = vor.u32 %v12090_v7, %v9566_v55  ;;  %v12324_v55 = vld [vmem:[#allocation16 + $0x844] sm:$0xf] }
 0x60f   :  { %5670 = vmatpush.bf16.msra.mxu3 %v9711_v59  ;;  %v9615_v38 = vor.u32 %v12102_v1, %v9614_v0  ;;  %v12282_v59 = vld [vmem:[#allocation16 + $0x6ec] sm:$0xf0]  ;;  %v9902_v13 = vld [vmem:[#allocation16 + $0x360] sm:$0xf]  ;;  %v9520_v0 = vld [vmem:[#allocation16 + $0x90] sm:$0xf0] }
 0x610   :  { %v4105_v20 = vadd.f32 %v4104_v41, %v4091_v19  ;;  %v12198_v19 = vld [vmem:[#allocation16 + $0x44c] sm:$0xf0]  ;;  %v10382_v41 = vld [vmem:[#allocation16 + $0x720] sm:$0xf]  ;;  %5685 = vmatpush.bf16.msrb.mxu0 %v10047_v30  ;;  %v10335_v40 = vor.u32 %v12282_v59, %v10334_v47  ;;  %v10528_v7 = vld [vmem:[#allocation16 + $0x870] sm:$0xf0] }
 0x611   :  { %v9999_v39 = vor.u32 %v12198_v19, %v9998_v6  ;;  %v10383_v10 = vor.u32 %v12294_v2, %v10382_v41  ;;  %v12078_v12 = vld [vmem:[#allocation16 + $0x8c] sm:$0xf0]  ;;  %v9470_v6 = vld [vmem:[#allocation16] sm:$0xf]  ;;  %v10150_v47 = vld [vmem:[#allocation16 + $0x548] sm:$0xf] }
 0x612   :  { %v13604_v25 = vadd.f32 %v12738_v29, %v4105_v20  ;;  %v9667_v29 = vor.u32 %v12108_v53, %v9664_v8  ;;  %v9519_v14 = vor.u32 %v12078_v12, %v9518_v45  ;;  %v12174_v11 = vld [vmem:[#allocation16 + $0x38c] sm:$0xf0]  ;;  %v10287_v8 = vor.u32 %v12270_v57, %v10286_v18  ;;  %v9854_v33 = vld [vmem:[#allocation16 + $0x300] sm:$0xf]  ;;  %v12235_v59 = vld [vmem:[#allocation16 + $0x574] sm:$0xf0] }
 0x613   :  { %5671 = vmatpush.bf16.msra.mxu3 %v9663_v24  ;;  %5700 = vmatpush.bf16.msrb.mxu1 %v10383_v10  ;;  %v9903_v53 = vor.u32 %v12174_v11, %v9902_v13  ;;  %v12072_v24 = vld [vmem:[#allocation16 + $0x64] sm:$0xf]  ;;  %v12066_v30 = vld [vmem:[#allocation16 + $0x2c] sm:$0xf0]  ;;  %v10238_v2 = vld [vmem:[#allocation16 + $0x600] sm:$0xf]  ;;  %v10099_v45 = vor.u32 %v12216_v62, %v10096_v28 }
 0x614   :  { %v4118_v35 = vadd.f32 %v4117_v52, %v13604_v25  ;;  %5713 = vmatpush.bf16.msra.mxu2 %v9667_v29  ;;  %5686 = vmatpush.bf16.msrb.mxu0 %v9999_v39  ;;  %v9523_v1 = vor.u32 %v12072_v24, %v9520_v0  ;;  %v9471_v19 = vor.u32 %v12066_v30, %v9470_v6  ;;  %v12162_v41 = vld [vmem:[#allocation16 + $0x32c] sm:$0xf0]  ;;  %v10192_v10 = vld [vmem:[#allocation16 + $0x5d0] sm:$0xf0]  ;;  %v9718_v13 = vld [vmem:[#allocation16 + $0x1e8] sm:$0xf] }
 0x615   :  { %v9855_v29 = vor.u32 %v12162_v41, %v9854_v33  ;;  %v10480_v12 = vld [vmem:[#allocation16 + $0x810] sm:$0xf0]  ;;  %v10102_v57 = vld [vmem:[#allocation16 + $0x4e8] sm:$0xf]  ;;  %v12204_v24 = vld [vmem:[#allocation16 + $0x484] sm:$0xf] }
 0x616   :  { %4119 = vadd.xlane.f32.xlu2 %v4118_v35  ;;  %v12096_v35 = vld [vmem:[#allocation16 + $0x124] sm:$0xf]  ;;  %v10048_v0 = vld [vmem:[#allocation16 + $0x4b0] sm:$0xf0]  ;;  %v9670_v33 = vld [vmem:[#allocation16 + $0x188] sm:$0xf] }
 0x617   :  { %v9619_v5 = vor.u32 %v12096_v35, %v9616_v37  ;;  %5672 = vmatpush.bf16.msra.mxu3 %v9615_v38  ;;  %5701 = vmatpush.bf16.msrb.mxu1 %v10335_v40  ;;  %v12060_v35 = vld [vmem:[#allocation16 + $0x4] sm:$0xf]  ;;  %v9472_v37 = vld [vmem:[#allocation16 + $0x30] sm:$0xf0]  ;;  %v10151_v40 = vor.u32 %v12235_v59, %v10150_v47  ;;  %v10051_v6 = vor.u32 %v12204_v24, %v10048_v0  ;;  %v9958_v47 = vld [vmem:[#allocation16 + $0x3c8] sm:$0xf] }
 0x618   :  { %5687 = vmatpush.bf16.msrb.mxu0 %v9951_v61  ;;  %v12240_v38 = vld [vmem:[#allocation16 + $0x5a4] sm:$0xf]  ;;  %v9475_v39 = vor.u32 %v12060_v35, %v9472_v37  ;;  %v9767_v61 = vor.u32 %v12139_v26, %v9766_v27  ;;  %v10432_v30 = vld [vmem:[#allocation16 + $0x7b0] sm:$0xf0]  ;;  %v12187_v59 = vld [vmem:[#allocation16 + $0x3f4] sm:$0xf0] }
 0x619   :  { %5714 = vmatpush.bf16.msra.mxu2 %v9619_v5  ;;  %v12336_v5 = vld [vmem:[#allocation16 + $0x8a4] sm:$0xf]  ;;  %v10000_v37 = vld [vmem:[#allocation16 + $0x450] sm:$0xf0] }
 0x61a   :  { %v12192_v35 = vld [vmem:[#allocation16 + $0x424] sm:$0xf]  ;;  %v9904_v28 = vld [vmem:[#allocation16 + $0x390] sm:$0xf0] }
 0x61b   :  { %5673 = vmatpush.bf16.msra.mxu3 %v9567_v9  ;;  %5702 = vmatpush.bf16.msrb.mxu1 %v10287_v8  ;;  %v10531_v9 = vor.u32 %v12324_v55, %v10528_v7  ;;  %v9574_v55 = vld [vmem:[#allocation16 + $0xc8] sm:$0xf]  ;;  %v12091_v7 = vld [vmem:[#allocation16 + $0xf4] sm:$0xf0]  ;;  %v12168_v62 = vld [vmem:[#allocation16 + $0x364] sm:$0xf] }
 0x61c   :  { %5688 = vmatpush.bf16.msrb.mxu0 %v9903_v53  ;;  %v12223_v53 = vld [vmem:[#allocation16 + $0x514] sm:$0xf0]  ;;  %v9575_v26 = vor.u32 %v12091_v7, %v9574_v55  ;;  %v12156_v24 = vld [vmem:[#allocation16 + $0x304] sm:$0xf]  ;;  %v9856_v0 = vld [vmem:[#allocation16 + $0x330] sm:$0xf0] }
 0x61d   :  { %5715 = vmatpush.bf16.msra.mxu2 %v9571_v43  ;;  %v12312_v43 = vld [vmem:[#allocation16 + $0x7e4] sm:$0xf]  ;;  %v10103_v8 = vor.u32 %v12223_v53, %v10102_v57  ;;  %v12175_v57 = vld [vmem:[#allocation16 + $0x394] sm:$0xf0] }
 0x61e   :  { %v10483_v11 = vor.u32 %v12312_v43, %v10480_v12  ;;  %v9907_v43 = vor.u32 %v12168_v62, %v9904_v28  ;;  %v10288_v12 = vld [vmem:[#allocation16 + $0x690] sm:$0xf0] }
 0x61f   :  { %5674 = vmatpush.bf16.msra.mxu3 %v9519_v14  ;;  %v12127_v14 = vld [vmem:[#allocation16 + $0x214] sm:$0xf0] }
 0x620   :  { %5689 = vmatpush.bf16.msrb.mxu0 %v9855_v29  ;;  %v9719_v18 = vor.u32 %v12127_v14, %v9718_v13  ;;  %v12211_v29 = vld [vmem:[#allocation16 + $0x4b4] sm:$0xf0]  ;;  %v9526_v13 = vld [vmem:[#allocation16 + $0x68] sm:$0xf] }
 0x621   :  { %5716 = vmatpush.bf16.msra.mxu2 %v9523_v1  ;;  %v12300_v1 = vld [vmem:[#allocation16 + $0x784] sm:$0xf] }
 0x622   :  { %v10435_v41 = vor.u32 %v12300_v1, %v10432_v30  ;;  %v12252_v1 = vld [vmem:[#allocation16 + $0x604] sm:$0xf]  ;;  %v9478_v30 = vld [vmem:[#allocation16 + $0x8] sm:$0xf] }
 0x623   :  { %5675 = vmatpush.bf16.msra.mxu3 %v9471_v19  ;;  %v12115_v19 = vld [vmem:[#allocation16 + $0x1b4] sm:$0xf0] }
 0x625   :  { %5717 = vmatpush.bf16.msra.mxu2 %v9475_v39  ;;  %v10003_v39 = vor.u32 %v12192_v35, %v10000_v37 }
 0x681   :  { %v4116_v20 = vpop.xlane.xlu1 %4115 }
 0x682   :  { %v4121_v52 = vmul.f32 %v4116_v20, %v13213_v60  ;;  %v12258_v20 = vld [vmem:[#allocation16 + $0x62c] sm:$0xf0] }
 0x684   :  { %v13611_v3 = vsub.f32 %v13593_v16, %v4121_v52  ;;  %v13614_v46 = vsub.f32 %v13591_v63, %v4121_v52  ;;  %v13617_v58 = vsub.f32 %v13595_v23, %v4121_v52  ;;  %v10239_v52 = vor.u32 %v12258_v20, %v10238_v2  ;;  %v10054_v20 = vld [vmem:[#allocation16 + $0x488] sm:$0xf] }
 0x685   :  { %v9671_v2 = vor.u32 %v12115_v19, %v9670_v33  ;;  %v12067_v33 = vld [vmem:[#allocation16 + $0x34] sm:$0xf0] }
 0x686   :  { %v4129_v56 = vmul.f32 %v13611_v3, %v13611_v3  ;;  %v4130_v48 = vmul.f32 %v13614_v46, %v13614_v46  ;;  %v4131_v4 = vmul.f32 %v13617_v58, %v13617_v58  ;;  %5703 = vmatpush.bf16.msrb.mxu1 %v10239_v52  ;;  %v10055_v52 = vor.u32 %v12211_v29, %v10054_v20  ;;  %v9862_v20 = vld [vmem:[#allocation16 + $0x308] sm:$0xf]  ;;  %v12163_v29 = vld [vmem:[#allocation16 + $0x334] sm:$0xf0] }
 0x687   :  { %v9479_v35 = vor.u32 %v12067_v33, %v9478_v30  ;;  %v9863_v37 = vor.u32 %v12163_v29, %v9862_v20  ;;  %v10200_v33 = vld [vmem:[#allocation16 + $0x5d8] sm:$0xf0]  ;;  %v10534_v29 = vld [vmem:[#allocation16 + $0x848] sm:$0xf] }
 0x688   :  { %v4135_v36 = vadd.f32 %v4130_v48, %v4129_v56  ;;  %v10576_v56 = vld [vmem:[#allocation16 + $0x8d0] sm:$0xf0]  ;;  %v10195_v48 = vor.u32 %v12240_v38, %v10192_v10  ;;  %v12288_v38 = vld [vmem:[#allocation16 + $0x724] sm:$0xf] }
 0x689   :  { %v4120_v49 = vpop.xlane.xlu2 %4119  ;;  %v10384_v10 = vld [vmem:[#allocation16 + $0x750] sm:$0xf0] }
 0x68a   :  { %v4122_v50 = vmul.f32 %v4120_v49, %v13213_v60  ;;  %v4136_v31 = vadd.f32 %v4135_v36, %v4131_v4  ;;  %v10579_v4 = vor.u32 %v12336_v5, %v10576_v56  ;;  %v9814_v36 = vld [vmem:[#allocation16 + $0x2a8] sm:$0xf]  ;;  %v12151_v49 = vld [vmem:[#allocation16 + $0x2d4] sm:$0xf0]  ;;  %5724 = vmatpush.bf16.msrb.mxu3 %v10195_v48  ;;  %v10387_v48 = vor.u32 %v12288_v38, %v10384_v10 }
 0x68b   :  { %v9622_v5 = vld [vmem:[#allocation16 + $0x128] sm:$0xf]  ;;  %v12103_v56 = vld [vmem:[#allocation16 + $0x154] sm:$0xf0] }
 0x68c   :  { %v13627_v51 = vsub.f32 %v13602_v17, %v4122_v50  ;;  %v13630_v44 = vsub.f32 %v13600_v15, %v4122_v50  ;;  %v13633_v42 = vsub.f32 %v13604_v25, %v4122_v50  ;;  %4137 = vadd.xlane.f32.xlu0 %v4136_v31  ;;  %v10198_v50 = vld [vmem:[#allocation16 + $0x5a8] sm:$0xf]  ;;  %v9815_v31 = vor.u32 %v12151_v49, %v9814_v36  ;;  %v12199_v49 = vld [vmem:[#allocation16 + $0x454] sm:$0xf0] }
 0x68d   :  { %5738 = vmatpush.bf16.msra.mxu0 %v10579_v4  ;;  %v9623_v4 = vor.u32 %v12103_v56, %v9622_v5  ;;  %v10006_v36 = vld [vmem:[#allocation16 + $0x428] sm:$0xf] }
 0x68e   :  { %v4132_v34 = vmul.f32 %v13627_v51, %v13627_v51  ;;  %v4133_v32 = vmul.f32 %v13630_v44, %v13630_v44  ;;  %v4134_v21 = vmul.f32 %v13633_v42, %v13633_v42  ;;  %5752 = vmatpush.bf16.msra.mxu1 %v9815_v31  ;;  %v12180_v31 = vld [vmem:[#allocation16 + $0x3c4] sm:$0xf] }
 0x690   :  { %v4139_v54 = vadd.f32 %v4133_v32, %v4132_v34  ;;  %v12247_v34 = vld [vmem:[#allocation16 + $0x5d4] sm:$0xf0]  ;;  %v12228_v32 = vld [vmem:[#allocation16 + $0x544] sm:$0xf] }
 0x691   :  { %5739 = vmatpush.bf16.msra.mxu0 %v10531_v9 }
 0x692   :  { %v4140_v22 = vadd.f32 %v4139_v54, %v4134_v21  ;;  %v10144_v21 = vld [vmem:[#allocation16 + $0x570] sm:$0xf0]  ;;  %v10199_v54 = vor.u32 %v12247_v34, %v10198_v50  ;;  %5753 = vmatpush.bf16.msra.mxu1 %v9767_v61  ;;  %v10007_v50 = vor.u32 %v12199_v49, %v10006_v36  ;;  %v9959_v61 = vor.u32 %v12187_v59, %v9958_v47 }
 0x693   :  { %v9952_v34 = vld [vmem:[#allocation16 + $0x3f0] sm:$0xf0] }
 0x694   :  { %4141 = vadd.xlane.f32.xlu1 %v4140_v22  ;;  %v10147_v22 = vor.u32 %v12228_v32, %v10144_v21  ;;  %5766 = vmatpush.bf16.msrb.mxu2 %v10199_v54  ;;  %v12276_v32 = vld [vmem:[#allocation16 + $0x6c4] sm:$0xf]  ;;  %v9955_v54 = vor.u32 %v12180_v31, %v9952_v34 }
 0x695   :  { %5740 = vmatpush.bf16.msra.mxu0 %v10483_v11  ;;  %v12079_v11 = vld [vmem:[#allocation16 + $0x94] sm:$0xf0] }
 0x696   :  { %5725 = vmatpush.bf16.msrb.mxu3 %v10147_v22  ;;  %5754 = vmatpush.bf16.msra.mxu1 %v9719_v18  ;;  %v10336_v22 = vld [vmem:[#allocation16 + $0x6f0] sm:$0xf0]  ;;  %v9910_v18 = vld [vmem:[#allocation16 + $0x368] sm:$0xf]  ;;  %v9527_v53 = vor.u32 %v12079_v11, %v9526_v13  ;;  %v12343_v11 = vld [vmem:[#allocation16 + $0x8d4] sm:$0xf0] }
 0x697   :  { %v10339_v9 = vor.u32 %v12276_v32, %v10336_v22 }
 0x698   :  { %5767 = vmatpush.bf16.msrb.mxu2 %v10151_v40 }
 0x699   :  { %5741 = vmatpush.bf16.msra.mxu0 %v10435_v41  ;;  %v9859_v41 = vor.u32 %v12156_v24, %v9856_v0  ;;  %v12241_v24 = vld [vmem:[#allocation16 + $0x5ac] sm:$0xf] }
 0x69a   :  { %5726 = vmatpush.bf16.msrb.mxu3 %v10099_v45  ;;  %5755 = vmatpush.bf16.msra.mxu1 %v9671_v2  ;;  %v12264_v45 = vld [vmem:[#allocation16 + $0x664] sm:$0xf] }
 0x69b   :  { %v10291_v14 = vor.u32 %v12264_v45, %v10288_v12 }
 0x69c   :  { %5768 = vmatpush.bf16.msrb.mxu2 %v10103_v8  ;;  %v9911_v8 = vor.u32 %v12175_v57, %v9910_v18 }
 0x69d   :  { %5742 = vmatpush.bf16.msra.mxu0 %v10387_v48 }
 0x69e   :  { %5727 = vmatpush.bf16.msrb.mxu3 %v10051_v6  ;;  %5756 = vmatpush.bf16.msra.mxu1 %v9623_v4  ;;  %v10240_v6 = vld [vmem:[#allocation16 + $0x630] sm:$0xf0] }
 0x69f   :  { %v10243_v2 = vor.u32 %v12252_v1, %v10240_v6 }
 0x6a0   :  { %5769 = vmatpush.bf16.msrb.mxu2 %v10055_v52 }
 0x6a1   :  { %5743 = vmatpush.bf16.msra.mxu0 %v10339_v9 }
 0x6a2   :  { %5728 = vmatpush.bf16.msrb.mxu3 %v10003_v39  ;;  %5757 = vmatpush.bf16.msra.mxu1 %v9575_v26 }
 0x6a4   :  { %5770 = vmatpush.bf16.msrb.mxu2 %v10007_v50 }
 0x6a5   :  { %5744 = vmatpush.bf16.msra.mxu0 %v10291_v14 }
 0x6a6   :  { %5729 = vmatpush.bf16.msrb.mxu3 %v9955_v54  ;;  %5758 = vmatpush.bf16.msra.mxu1 %v9527_v53  ;;  %v556_v54 = vld [vmem:[#allocation14] sm:$0x7]  ;;  %v12145_v53 = vld [vmem:[#allocation16 + $0x2ac] sm:$0xf] }
 0x6a7   :  { %v4187_v47 = vperm.slane %v556_v54, 0  ;;  %v4188_v59 = vperm.slane %v556_v54, 1 }
 0x6a8   :  { %5771 = vmatpush.bf16.msrb.mxu2 %v9959_v61  ;;  %v4189_v61 = vperm.slane %v556_v54, 2  ;;  %v10104_v54 = vld [vmem:[#allocation16 + $0x518] sm:$0xf0] }
 0x6a9   :  { %5745 = vmatpush.bf16.msra.mxu0 %v10243_v2 }
 0x6aa   :  { %5730 = vmatpush.bf16.msrb.mxu3 %v9907_v43  ;;  %5759 = vmatpush.bf16.msra.mxu1 %v9479_v35  ;;  %v10203_v35 = vor.u32 %v12241_v24, %v10200_v33  ;;  %v10392_v24 = vld [vmem:[#allocation16 + $0x758] sm:$0xf0] }
 0x6ac   :  { %5772 = vmatpush.bf16.msrb.mxu2 %v9911_v8  ;;  %v9816_v8 = vld [vmem:[#allocation16 + $0x2d8] sm:$0xf0] }
 0x6ad   :  { %v9819_v20 = vor.u32 %v12145_v53, %v9816_v8  ;;  %v10008_v53 = vld [vmem:[#allocation16 + $0x458] sm:$0xf0]  ;;  %v12289_v8 = vld [vmem:[#allocation16 + $0x72c] sm:$0xf] }
 0x6ae   :  { %5731 = vmatpush.bf16.msrb.mxu3 %v9859_v41 }
 0x6b0   :  { %5773 = vmatpush.bf16.msrb.mxu2 %v9863_v37 }
 0x6ff   :  { %v4138_v21 = vpop.xlane.xlu0 %4137 }
 0x700   :  { %v4143_v27 = vmul.f32 %v4138_v21, %v13213_v60 }
 0x702   :  { %v4145_v40 = vadd.f32 1e-05, %v4143_v27 }
 0x704   :  { %12729 = vrsqrt.f32 %v4145_v40  ;;  %vm4153_vm12 = vweird.f32 %v4145_v40 }
 0x707   :  { %v4142_v19 = vpop.xlane.xlu1 %4141 }
 0x708   :  { %v4144_v52 = vmul.f32 %v4142_v19, %v13213_v60  ;;  %v555_v60 = vld [vmem:[#allocation13] sm:$0x7]  ;;  %v10584_v19 = vld [vmem:[#allocation16 + $0x8d8] sm:$0xf0] }
 0x709   :  { %v4174_v32 = vperm.slane %v555_v60, 0  ;;  %v4175_v21 = vperm.slane %v555_v60, 1  ;;  %v4176_v27 = vperm.slane %v555_v60, 2  ;;  %v12319_v60 = vld [vmem:[#allocation16 + $0x814] sm:$0xf0] }
 0x70a   :  { %v12730_v38 = vpop.eup %12729  ;;  %v4146_v39 = vadd.f32 1e-05, %v4144_v52  ;;  %v12331_v52 = vld [vmem:[#allocation16 + $0x874] sm:$0xf0] }
 0x70b   :  { %v4148_v10 = vmul.f32 %v12730_v38, %v4145_v40  ;;  %vm4154_vm11 = vweird.f32 %v12730_v38 }
 0x70c   :  { %12731 = vrsqrt.f32 %v4146_v39  ;;  %vm4155_vm13 = vmor %vm4153_vm12, %vm4154_vm11  ;;  %vm4163_vm15 = vweird.f32 %v4146_v39 }
 0x70d   :  { %v4149_v5 = vmul.f32 %v12730_v38, %v4148_v10  ;;  %v12229_v10 = vld [vmem:[#allocation16 + $0x54c] sm:$0xf] }
 0x70f   :  { %v4150_v56 = vmul.f32 0.5, %v4149_v5  ;;  %v10152_v5 = vld [vmem:[#allocation16 + $0x578] sm:$0xf0] }
 0x711   :  { %v4151_v48 = vsub.f32 1.5, %v4150_v56  ;;  %v12325_v56 = vld [vmem:[#allocation16 + $0x84c] sm:$0xf] }
 0x712   :  { %v12732_v4 = vpop.eup %12731 }
 0x713   :  { %v4152_v36 = vmul.f32 %v12730_v38, %v4151_v48  ;;  %v4158_v49 = vmul.f32 %v12732_v4, %v4146_v39  ;;  %vm4164_vm14 = vweird.f32 %v12732_v4  ;;  %v9768_v39 = vld [vmem:[#allocation16 + $0x278] sm:$0xf0] }
 0x714   :  { %vm4165_vm0 = vmor %vm4163_vm15, %vm4164_vm14  ;;  %v10536_v48 = vld [vmem:[#allocation16 + $0x878] sm:$0xf0] }
 0x715   :  { %v4159_v50 = vmul.f32 %v12732_v4, %v4158_v49  ;;  %v4156_v31 = vsel %vm4155_vm13, %v12730_v38, %v4152_v36  ;;  %v12133_v38 = vld [vmem:[#allocation16 + $0x24c] sm:$0xf]  ;;  %v10486_v49 = vld [vmem:[#allocation16 + $0x7e8] sm:$0xf] }
 0x716   :  { %v4167_v22 = vmul.f32 %v4156_v31, %v13611_v3  ;;  %v4168_v55 = vmul.f32 %v4156_v31, %v13614_v46  ;;  %v4169_v9 = vmul.f32 %v4156_v31, %v13617_v58  ;;  %v10582_v58 = vld [vmem:[#allocation16 + $0x8a8] sm:$0xf]  ;;  %v9771_v36 = vor.u32 %v12133_v38, %v9768_v39 }
 0x717   :  { %v4160_v34 = vmul.f32 0.5, %v4159_v50  ;;  %v10155_v50 = vor.u32 %v12229_v10, %v10152_v5  ;;  %v10539_v31 = vor.u32 %v12325_v56, %v10536_v48  ;;  %v10294_v39 = vld [vmem:[#allocation16 + $0x668] sm:$0xf]  ;;  %v12271_v10 = vld [vmem:[#allocation16 + $0x694] sm:$0xf0] }
 0x718   :  { %v4180_v40 = vmul.f32 %v4174_v32, %v4167_v22  ;;  %v4181_v62 = vmul.f32 %v4175_v21, %v4168_v55  ;;  %v4182_v43 = vmul.f32 %v4176_v27, %v4169_v9  ;;  %v12313_v22 = vld [vmem:[#allocation16 + $0x7ec] sm:$0xf]  ;;  %v10488_v55 = vld [vmem:[#allocation16 + $0x818] sm:$0xf0]  ;;  %v10438_v9 = vld [vmem:[#allocation16 + $0x788] sm:$0xf] }
 0x719   :  { %v4161_v7 = vsub.f32 1.5, %v4160_v34  ;;  %v12121_v34 = vld [vmem:[#allocation16 + $0x1ec] sm:$0xf] }
 0x71a   :  { %v4193_v18 = vadd.f32 %v4187_v47, %v4180_v40  ;;  %v4194_v57 = vadd.f32 %v4188_v59, %v4181_v62  ;;  %v4195_v0 = vadd.f32 %v4189_v61, %v4182_v43  ;;  %v9672_v40 = vld [vmem:[#allocation16 + $0x1b8] sm:$0xf0]  ;;  %v12205_v62 = vld [vmem:[#allocation16 + $0x48c] sm:$0xf] }
 0x71b   :  { %v4162_v26 = vmul.f32 %v12732_v4, %v4161_v7  ;;  %v10487_v7 = vor.u32 %v12319_v60, %v10486_v49  ;;  %v12301_v43 = vld [vmem:[#allocation16 + $0x78c] sm:$0xf]  ;;  %v9912_v49 = vld [vmem:[#allocation16 + $0x398] sm:$0xf0] }
 0x71c   :  { %v12073_v48 = vld [vmem:[#allocation16 + $0x6c] sm:$0xf] }
 0x71d   :  { %v4166_v28 = vsel %vm4165_vm0, %v12732_v4, %v4162_v26  ;;  %v10535_v4 = vor.u32 %v12331_v52, %v10534_v29  ;;  %v12307_v26 = vld [vmem:[#allocation16 + $0x7b4] sm:$0xf0]  ;;  %v9960_v29 = vld [vmem:[#allocation16 + $0x3f8] sm:$0xf0]  ;;  %v12277_v52 = vld [vmem:[#allocation16 + $0x6cc] sm:$0xf] }
 0x71e   :  { %v4170_v45 = vmul.f32 %v4166_v28, %v13627_v51  ;;  %v4171_v3 = vmul.f32 %v4166_v28, %v13630_v44  ;;  %v4172_v46 = vmul.f32 %v4166_v28, %v13633_v42  ;;  %v12337_v51 = vld [vmem:[#allocation16 + $0x8ac] sm:$0xf]  ;;  %v10583_v44 = vor.u32 %v12343_v11, %v10582_v58  ;;  %v10056_v28 = vld [vmem:[#allocation16 + $0x4b8] sm:$0xf0] }
 0x71f   :  { %v10587_v37 = vor.u32 %v12337_v51, %v10584_v19  ;;  %v12097_v11 = vld [vmem:[#allocation16 + $0x12c] sm:$0xf]  ;;  %v10395_v51 = vor.u32 %v12289_v8, %v10392_v24  ;;  %v10158_v24 = vld [vmem:[#allocation16 + $0x550] sm:$0xf] }
 0x720   :  { %v4183_v12 = vmul.f32 %v4174_v32, %v4170_v45  ;;  %v4184_v13 = vmul.f32 %v4175_v21, %v4171_v3  ;;  %v4185_v14 = vmul.f32 %v4176_v27, %v4172_v46  ;;  %v9720_v32 = vld [vmem:[#allocation16 + $0x218] sm:$0xf0]  ;;  %v12217_v21 = vld [vmem:[#allocation16 + $0x4ec] sm:$0xf]  ;;  %v10439_v3 = vor.u32 %v12307_v26, %v10438_v9 }
 0x721   :  { %v9723_v27 = vor.u32 %v12121_v34, %v9720_v32  ;;  %v10440_v45 = vld [vmem:[#allocation16 + $0x7b8] sm:$0xf0]  ;;  %v12085_v19 = vld [vmem:[#allocation16 + $0xcc] sm:$0xf]  ;;  %v10295_v34 = vor.u32 %v12271_v10, %v10294_v39  ;;  %v12320_v39 = vld [vmem:[#allocation16 + $0x81c] sm:$0xf0] }
 0x722   :  { %v4196_v1 = vadd.f32 %v4187_v47, %v4183_v12  ;;  %v4197_v6 = vadd.f32 %v4188_v59, %v4184_v13  ;;  %v4198_v30 = vadd.f32 %v4189_v61, %v4185_v14  ;;  %v10107_v47 = vor.u32 %v12217_v21, %v10104_v54  ;;  %v12109_v61 = vld [vmem:[#allocation16 + $0x18c] sm:$0xf]  ;;  %v10390_v12 = vld [vmem:[#allocation16 + $0x728] sm:$0xf]  ;;  %v12295_v13 = vld [vmem:[#allocation16 + $0x754] sm:$0xf0] }
 0x723   :  { %v10491_v59 = vor.u32 %v12313_v22, %v10488_v55  ;;  %v9675_v46 = vor.u32 %v12109_v61, %v9672_v40  ;;  %v10059_v14 = vor.u32 %v12205_v62, %v10056_v28  ;;  %v10443_v58 = vor.u32 %v12301_v43, %v10440_v45  ;;  %v12265_v60 = vld [vmem:[#allocation16 + $0x66c] sm:$0xf]  ;;  %v12259_v21 = vld [vmem:[#allocation16 + $0x634] sm:$0xf0]  ;;  %v9480_v22 = vld [vmem:[#allocation16 + $0x38] sm:$0xf0] }
 0x724   :  { %v13649_v41 = vpack.c.bf16 %v4196_v1, %v4193_v18  ;;  %v13651_v42 = vpack.c.bf16 %v4197_v6, %v4194_v57  ;;  %v13653_v2 = vpack.c.bf16 %v4198_v30, %v4195_v0  ;;  %v9624_v18 = vld [vmem:[#allocation16 + $0x158] sm:$0xf0]  ;;  %v12193_v57 = vld [vmem:[#allocation16 + $0x42c] sm:$0xf]  ;;  %v10391_v0 = vor.u32 %v12295_v13, %v10390_v12  ;;  %v10342_v6 = vld [vmem:[#allocation16 + $0x6c8] sm:$0xf] }
 0x725   :  { %v9627_v1 = vor.u32 %v12097_v11, %v9624_v18  ;;  %v12283_v30 = vld [vmem:[#allocation16 + $0x6f4] sm:$0xf0]  ;;  %v10011_v33 = vor.u32 %v12193_v57, %v10008_v53  ;;  %v12061_v54 = vld [vmem:[#allocation16 + $0xc] sm:$0xf]  ;;  %v9864_v9 = vld [vmem:[#allocation16 + $0x338] sm:$0xf0] }
 0x726   :  { %5676 = vmatmul.bf16.vlgmr.msra.gmra.mxu3 %v13649_v41  ;;  %5690 = vmatmul.bf16.vlgmr.msrb.gmra.mxu0 %v13651_v42  ;;  %v12253_v26 = vld [vmem:[#allocation16 + $0x60c] sm:$0xf]  ;;  %v12152_v61 = vld [vmem:[#allocation16 + $0x2dc] sm:$0xf0]  ;;  %v10206_v40 = vld [vmem:[#allocation16 + $0x5b0] sm:$0xf]  ;;  %v9483_v45 = vor.u32 %v12061_v54, %v9480_v22 }
 0x727   :  { %5704 = vmatmul.bf16.vlgmr.msrb.gmra.mxu1 %v13653_v2  ;;  %5718 = vmatmul.bf16.vlgmr.msra.gmra.mxu2 %v13649_v41  ;;  %v12248_v62 = vld [vmem:[#allocation16 + $0x5dc] sm:$0xf0]  ;;  %v10590_v28 = vld [vmem:[#allocation16 + $0x8b0] sm:$0xf]  ;;  %v9824_v12 = vld [vmem:[#allocation16 + $0x2e0] sm:$0xf0] }
 0x728   :  { %5780 = vmatpush.bf16.msra.mxu3 %v10583_v44  ;;  %5794 = vmatpush.bf16.msrb.mxu0 %v9819_v20  ;;  %v9576_v44 = vld [vmem:[#allocation16 + $0xf8] sm:$0xf0]  ;;  %v12181_v20 = vld [vmem:[#allocation16 + $0x3cc] sm:$0xf]  ;;  %v10207_v11 = vor.u32 %v12248_v62, %v10206_v40  ;;  %v9774_v18 = vld [vmem:[#allocation16 + $0x250] sm:$0xf] }
 0x729   :  { %5808 = vmatpush.bf16.msrb.mxu1 %v10203_v35  ;;  %5822 = vmatpush.bf16.msra.mxu2 %v10587_v37  ;;  %v10344_v35 = vld [vmem:[#allocation16 + $0x6f8] sm:$0xf0]  ;;  %v10343_v37 = vor.u32 %v12283_v30, %v10342_v6  ;;  %v9579_v38 = vor.u32 %v12085_v19, %v9576_v44  ;;  %v9963_v5 = vor.u32 %v12181_v20, %v9960_v29  ;;  %v12140_v57 = vld [vmem:[#allocation16 + $0x27c] sm:$0xf0]  ;;  %v12134_v30 = vld [vmem:[#allocation16 + $0x254] sm:$0xf] }
 0x72a   :  { %v10347_v56 = vor.u32 %v12277_v52, %v10344_v35  ;;  %v12332_v6 = vld [vmem:[#allocation16 + $0x87c] sm:$0xf0]  ;;  %v9726_v44 = vld [vmem:[#allocation16 + $0x1f0] sm:$0xf]  ;;  %v12122_v10 = vld [vmem:[#allocation16 + $0x1f4] sm:$0xf] }
 0x72b   :  { %v12128_v20 = vld [vmem:[#allocation16 + $0x21c] sm:$0xf0]  ;;  %v10110_v35 = vld [vmem:[#allocation16 + $0x4f0] sm:$0xf]  ;;  %v9680_v54 = vld [vmem:[#allocation16 + $0x1c0] sm:$0xf0] }
 0x72c   :  { %5781 = vmatpush.bf16.msra.mxu3 %v10535_v4  ;;  %5795 = vmatpush.bf16.msrb.mxu0 %v9771_v36  ;;  %v9528_v4 = vld [vmem:[#allocation16 + $0x98] sm:$0xf0]  ;;  %v12169_v36 = vld [vmem:[#allocation16 + $0x36c] sm:$0xf]  ;;  %v12296_v40 = vld [vmem:[#allocation16 + $0x75c] sm:$0xf0] }
 0x72d   :  { %5809 = vmatpush.bf16.msrb.mxu1 %v10155_v50  ;;  %5823 = vmatpush.bf16.msra.mxu2 %v10539_v31  ;;  %v10296_v50 = vld [vmem:[#allocation16 + $0x698] sm:$0xf0]  ;;  %v10246_v31 = vld [vmem:[#allocation16 + $0x608] sm:$0xf]  ;;  %v9531_v32 = vor.u32 %v12073_v48, %v9528_v4  ;;  %v9915_v55 = vor.u32 %v12169_v36, %v9912_v49  ;;  %v9678_v4 = vld [vmem:[#allocation16 + $0x190] sm:$0xf] }
 0x72e   :  { %v10247_v43 = vor.u32 %v12259_v21, %v10246_v31  ;;  %v12116_v36 = vld [vmem:[#allocation16 + $0x1bc] sm:$0xf0]  ;;  %v12110_v21 = vld [vmem:[#allocation16 + $0x194] sm:$0xf] }
 0x72f   :  { %v12212_v31 = vld [vmem:[#allocation16 + $0x4bc] sm:$0xf0]  ;;  %v9679_v22 = vor.u32 %v12116_v36, %v9678_v4  ;;  %v12098_v62 = vld [vmem:[#allocation16 + $0x134] sm:$0xf] }
 0x730   :  { %5782 = vmatpush.bf16.msra.mxu3 %v10487_v7  ;;  %5796 = vmatpush.bf16.msrb.mxu0 %v9723_v27  ;;  %v10299_v7 = vor.u32 %v12265_v60, %v10296_v50  ;;  %v12157_v27 = vld [vmem:[#allocation16 + $0x30c] sm:$0xf]  ;;  %v10062_v50 = vld [vmem:[#allocation16 + $0x490] sm:$0xf]  ;;  %v12260_v4 = vld [vmem:[#allocation16 + $0x63c] sm:$0xf0] }
 0x731   :  { %5810 = vmatpush.bf16.msrb.mxu1 %v10107_v47  ;;  %5824 = vmatpush.bf16.msra.mxu2 %v10491_v59  ;;  %v10248_v47 = vld [vmem:[#allocation16 + $0x638] sm:$0xf0]  ;;  %v9822_v59 = vld [vmem:[#allocation16 + $0x2b0] sm:$0xf]  ;;  %v9867_v13 = vor.u32 %v12157_v27, %v9864_v9  ;;  %v12104_v27 = vld [vmem:[#allocation16 + $0x15c] sm:$0xf0] }
 0x732   :  { %v12062_v36 = vld [vmem:[#allocation16 + $0x14] sm:$0xf] }
 0x734   :  { %5783 = vmatpush.bf16.msra.mxu3 %v10439_v3  ;;  %5797 = vmatpush.bf16.msrb.mxu0 %v9675_v46  ;;  %v12344_v3 = vld [vmem:[#allocation16 + $0x8dc] sm:$0xf0]  ;;  %v12146_v46 = vld [vmem:[#allocation16 + $0x2b4] sm:$0xf] }
 0x735   :  { %5811 = vmatpush.bf16.msrb.mxu1 %v10059_v14  ;;  %5825 = vmatpush.bf16.msra.mxu2 %v10443_v58  ;;  %v10251_v14 = vor.u32 %v12253_v26, %v10248_v47  ;;  %v9823_v58 = vor.u32 %v12152_v61, %v9822_v59  ;;  %v10591_v53 = vor.u32 %v12344_v3, %v10590_v28  ;;  %v10014_v47 = vld [vmem:[#allocation16 + $0x430] sm:$0xf]  ;;  %v12200_v59 = vld [vmem:[#allocation16 + $0x45c] sm:$0xf0]  ;;  %v9632_v28 = vld [vmem:[#allocation16 + $0x160] sm:$0xf0] }
 0x736   :  { %5732 = vmatmul.bf16.vlgmr.msrb.gmra.mxu3 %v13651_v42  ;;  %5746 = vmatmul.bf16.vlgmr.msra.gmra.mxu0 %v13653_v2  ;;  %v9827_v8 = vor.u32 %v12146_v46, %v9824_v12  ;;  %v9683_v26 = vor.u32 %v12110_v21, %v9680_v54  ;;  %v10398_v61 = vld [vmem:[#allocation16 + $0x730] sm:$0xf]  ;;  %v12092_v46 = vld [vmem:[#allocation16 + $0xfc] sm:$0xf0] }
 0x737   :  { %5760 = vmatmul.bf16.vlgmr.msra.gmra.mxu1 %v13649_v41  ;;  %5774 = vmatmul.bf16.vlgmr.msrb.gmra.mxu2 %v13651_v42  ;;  %v9582_v3 = vld [vmem:[#allocation16 + $0xd0] sm:$0xf]  ;;  %v10399_v12 = vor.u32 %v12296_v40, %v10398_v61  ;;  %v10160_v61 = vld [vmem:[#allocation16 + $0x580] sm:$0xf0] }
 0x738   :  { %5784 = vmatpush.bf16.msra.mxu3 %v10391_v0  ;;  %5798 = vmatpush.bf16.msrb.mxu0 %v9627_v1  ;;  %v12236_v0 = vld [vmem:[#allocation16 + $0x57c] sm:$0xf0]  ;;  %v10542_v1 = vld [vmem:[#allocation16 + $0x850] sm:$0xf] }
 0x739   :  { %5812 = vmatpush.bf16.msrb.mxu1 %v10011_v33  ;;  %5826 = vmatpush.bf16.msra.mxu2 %v10395_v51  ;;  %v9776_v33 = vld [vmem:[#allocation16 + $0x280] sm:$0xf0]  ;;  %v9775_v51 = vor.u32 %v12140_v57, %v9774_v18  ;;  %v10159_v19 = vor.u32 %v12236_v0, %v10158_v24  ;;  %v10543_v29 = vor.u32 %v12332_v6, %v10542_v1  ;;  %v12284_v18 = vld [vmem:[#allocation16 + $0x6fc] sm:$0xf0]  ;;  %v12086_v57 = vld [vmem:[#allocation16 + $0xd4] sm:$0xf] }
 0x73a   :  { %v9779_v52 = vor.u32 %v12134_v30, %v9776_v33  ;;  %v9534_v0 = vld [vmem:[#allocation16 + $0x70] sm:$0xf]  ;;  %v12080_v1 = vld [vmem:[#allocation16 + $0x9c] sm:$0xf0] }
 0x73b   :  { %v9918_v33 = vld [vmem:[#allocation16 + $0x370] sm:$0xf] }
 0x73c   :  { %5785 = vmatpush.bf16.msra.mxu3 %v10343_v37  ;;  %5799 = vmatpush.bf16.msrb.mxu0 %v9579_v38  ;;  %v12224_v37 = vld [vmem:[#allocation16 + $0x51c] sm:$0xf0]  ;;  %v10494_v38 = vld [vmem:[#allocation16 + $0x7f0] sm:$0xf] }
 0x73d   :  { %5813 = vmatpush.bf16.msrb.mxu1 %v9963_v5  ;;  %5827 = vmatpush.bf16.msra.mxu2 %v10347_v56  ;;  %v9728_v5 = vld [vmem:[#allocation16 + $0x220] sm:$0xf0]  ;;  %v9727_v56 = vor.u32 %v12128_v20, %v9726_v44  ;;  %v10111_v48 = vor.u32 %v12224_v37, %v10110_v35  ;;  %v10495_v49 = vor.u32 %v12320_v39, %v10494_v38  ;;  %v12272_v44 = vld [vmem:[#allocation16 + $0x69c] sm:$0xf0]  ;;  %v12074_v20 = vld [vmem:[#allocation16 + $0x74] sm:$0xf] }
 0x73e   :  { %v9731_v60 = vor.u32 %v12122_v10, %v9728_v5  ;;  %v9535_v35 = vor.u32 %v12080_v1, %v9534_v0  ;;  %v12068_v38 = vld [vmem:[#allocation16 + $0x3c] sm:$0xf0]  ;;  %v9870_v39 = vld [vmem:[#allocation16 + $0x310] sm:$0xf]  ;;  %v12129_v0 = vld [vmem:[#allocation16 + $0x224] sm:$0xf0] }
 0x73f   :  { %v12164_v10 = vld [vmem:[#allocation16 + $0x33c] sm:$0xf0]  ;;  %v10118_v1 = vld [vmem:[#allocation16 + $0x4f8] sm:$0xf] }
 0x740   :  { %5786 = vmatpush.bf16.msra.mxu3 %v10295_v34  ;;  %5800 = vmatpush.bf16.msrb.mxu0 %v9531_v32  ;;  %v10446_v34 = vld [vmem:[#allocation16 + $0x790] sm:$0xf]  ;;  %v12308_v32 = vld [vmem:[#allocation16 + $0x7bc] sm:$0xf0]  ;;  %v9871_v54 = vor.u32 %v12164_v10, %v9870_v39  ;;  %v12213_v39 = vld [vmem:[#allocation16 + $0x4c4] sm:$0xf0] }
 0x741   :  { %5814 = vmatpush.bf16.msrb.mxu1 %v9915_v55  ;;  %5828 = vmatpush.bf16.msra.mxu2 %v10299_v7  ;;  %v10063_v55 = vor.u32 %v12212_v31, %v10062_v50  ;;  %v9630_v7 = vld [vmem:[#allocation16 + $0x130] sm:$0xf]  ;;  %v10447_v9 = vor.u32 %v12308_v32, %v10446_v34  ;;  %v10208_v50 = vld [vmem:[#allocation16 + $0x5e0] sm:$0xf0]  ;;  %v12338_v31 = vld [vmem:[#allocation16 + $0x8b4] sm:$0xf] }
 0x742   :  { %v10592_v34 = vld [vmem:[#allocation16 + $0x8e0] sm:$0xf0]  ;;  %v9830_v32 = vld [vmem:[#allocation16 + $0x2b8] sm:$0xf] }
 0x744   :  { %5787 = vmatpush.bf16.msra.mxu3 %v10247_v43  ;;  %5801 = vmatpush.bf16.msrb.mxu0 %v9483_v45  ;;  %v9631_v43 = vor.u32 %v12104_v27, %v9630_v7  ;;  %v10015_v45 = vor.u32 %v12200_v59, %v10014_v47  ;;  %v12249_v7 = vld [vmem:[#allocation16 + $0x5e4] sm:$0xf0]  ;;  %v10595_v47 = vor.u32 %v12338_v31, %v10592_v34  ;;  %v12230_v59 = vld [vmem:[#allocation16 + $0x554] sm:$0xf]  ;;  %v10022_v34 = vld [vmem:[#allocation16 + $0x438] sm:$0xf] }
 0x745   :  { %5815 = vmatpush.bf16.msrb.mxu1 %v9867_v13  ;;  %5829 = vmatpush.bf16.msra.mxu2 %v10251_v14  ;;  %v9635_v13 = vor.u32 %v12098_v62, %v9632_v28  ;;  %v9966_v14 = vld [vmem:[#allocation16 + $0x3d0] sm:$0xf]  ;;  %v12326_v28 = vld [vmem:[#allocation16 + $0x854] sm:$0xf]  ;;  %v12105_v31 = vld [vmem:[#allocation16 + $0x164] sm:$0xf0] }
 0x747   :  { %5788 = vmatmul.bf16.vlgmr.msra.gmra.mxu3 %v13653_v2  ;;  %5802 = vmatmul.bf16.vlgmr.msrb.gmra.mxu0 %v13649_v41 }
 0x748   :  { %5836 = vmatpush.bf16.msrb.mxu3 %v9823_v58  ;;  %5850 = vmatpush.bf16.msra.mxu0 %v10207_v11  ;;  %v12188_v58 = vld [vmem:[#allocation16 + $0x3fc] sm:$0xf0]  ;;  %v10350_v11 = vld [vmem:[#allocation16 + $0x6d0] sm:$0xf] }
 0x749   :  { %5864 = vmatpush.bf16.msra.mxu1 %v10591_v53  ;;  %5878 = vmatpush.bf16.msrb.mxu2 %v9827_v8  ;;  %v9584_v53 = vld [vmem:[#allocation16 + $0x100] sm:$0xf0]  ;;  %v9583_v8 = vor.u32 %v12092_v46, %v9582_v3  ;;  %v9967_v24 = vor.u32 %v12188_v58, %v9966_v14  ;;  %v10351_v6 = vor.u32 %v12284_v18, %v10350_v11  ;;  %v12141_v3 = vld [vmem:[#allocation16 + $0x284] sm:$0xf0]  ;;  %v10166_v46 = vld [vmem:[#allocation16 + $0x558] sm:$0xf] }
 0x74a   :  { %5816 = vmatmul.bf16.vlgmr.msrb.gmra.mxu1 %v13651_v42  ;;  %5830 = vmatmul.bf16.vlgmr.msra.gmra.mxu2 %v13653_v2  ;;  %v9587_v30 = vor.u32 %v12086_v57, %v9584_v53  ;;  %v12218_v58 = vld [vmem:[#allocation16 + $0x4f4] sm:$0xf]  ;;  %v10112_v11 = vld [vmem:[#allocation16 + $0x520] sm:$0xf0] }
 0x74b   :  { %v12314_v53 = vld [vmem:[#allocation16 + $0x7f4] sm:$0xf] }
 0x74c   :  { %5837 = vmatpush.bf16.msrb.mxu3 %v9775_v51  ;;  %5851 = vmatpush.bf16.msra.mxu0 %v10159_v19  ;;  %v12176_v51 = vld [vmem:[#allocation16 + $0x39c] sm:$0xf0]  ;;  %v10302_v19 = vld [vmem:[#allocation16 + $0x670] sm:$0xf] }
 0x74d   :  { %5865 = vmatpush.bf16.msra.mxu1 %v10543_v29  ;;  %5879 = vmatpush.bf16.msrb.mxu2 %v9779_v52  ;;  %v9536_v29 = vld [vmem:[#allocation16 + $0xa0] sm:$0xf0]  ;;  %v9486_v52 = vld [vmem:[#allocation16 + $0x10] sm:$0xf]  ;;  %v9919_v37 = vor.u32 %v12176_v51, %v9918_v33  ;;  %v10303_v5 = vor.u32 %v12272_v44, %v10302_v19  ;;  %v12206_v51 = vld [vmem:[#allocation16 + $0x494] sm:$0xf] }
 0x74e   :  { %v9487_v21 = vor.u32 %v12068_v38, %v9486_v52  ;;  %v10064_v19 = vld [vmem:[#allocation16 + $0x4c0] sm:$0xf0]  ;;  %v10070_v38 = vld [vmem:[#allocation16 + $0x498] sm:$0xf] }
 0x74f   :  { %v10448_v52 = vld [vmem:[#allocation16 + $0x7c0] sm:$0xf0]  ;;  %v10067_v10 = vor.u32 %v12206_v51, %v10064_v19  ;;  %v12069_v51 = vld [vmem:[#allocation16 + $0x44] sm:$0xf0]  ;;  %v9878_v19 = vld [vmem:[#allocation16 + $0x318] sm:$0xf] }
 0x750   :  { %5838 = vmatpush.bf16.msrb.mxu3 %v9727_v56  ;;  %5852 = vmatpush.bf16.msra.mxu0 %v10111_v48  ;;  %v9539_v56 = vor.u32 %v12074_v20, %v9536_v29  ;;  %v10254_v48 = vld [vmem:[#allocation16 + $0x610] sm:$0xf]  ;;  %v12302_v29 = vld [vmem:[#allocation16 + $0x794] sm:$0xf] }
 0x751   :  { %5866 = vmatpush.bf16.msra.mxu1 %v10495_v49  ;;  %5880 = vmatpush.bf16.msrb.mxu2 %v9731_v60  ;;  %v9488_v49 = vld [vmem:[#allocation16 + $0x40] sm:$0xf0]  ;;  %v12242_v60 = vld [vmem:[#allocation16 + $0x5b4] sm:$0xf]  ;;  %v10255_v27 = vor.u32 %v12260_v4, %v10254_v48 }
 0x752   :  { %v10016_v48 = vld [vmem:[#allocation16 + $0x460] sm:$0xf0] }
 0x754   :  { %5839 = vmatpush.bf16.msrb.mxu3 %v9679_v22  ;;  %5853 = vmatpush.bf16.msra.mxu0 %v10063_v55  ;;  %v12153_v22 = vld [vmem:[#allocation16 + $0x2e4] sm:$0xf0]  ;;  %v10214_v55 = vld [vmem:[#allocation16 + $0x5b8] sm:$0xf] }
 0x755   :  { %5867 = vmatpush.bf16.msra.mxu1 %v10447_v9  ;;  %5881 = vmatpush.bf16.msrb.mxu2 %v9683_v26  ;;  %v9491_v9 = vor.u32 %v12062_v36, %v9488_v49  ;;  %v10211_v26 = vor.u32 %v12242_v60, %v10208_v50  ;;  %v9831_v40 = vor.u32 %v12153_v22, %v9830_v32  ;;  %v12290_v49 = vld [vmem:[#allocation16 + $0x734] sm:$0xf]  ;;  %v10400_v60 = vld [vmem:[#allocation16 + $0x760] sm:$0xf0]  ;;  %v9638_v50 = vld [vmem:[#allocation16 + $0x138] sm:$0xf] }
 0x756   :  { %v10215_v62 = vor.u32 %v12249_v7, %v10214_v55  ;;  %v10071_v36 = vor.u32 %v12213_v39, %v10070_v38  ;;  %v12201_v32 = vld [vmem:[#allocation16 + $0x464] sm:$0xf0]  ;;  %v12182_v22 = vld [vmem:[#allocation16 + $0x3d4] sm:$0xf]  ;;  %v9968_v55 = vld [vmem:[#allocation16 + $0x400] sm:$0xf0]  ;;  %v9639_v7 = vor.u32 %v12105_v31, %v9638_v50 }
 0x757   :  { %v12333_v50 = vld [vmem:[#allocation16 + $0x884] sm:$0xf0] }
 0x758   :  { %5840 = vmatpush.bf16.msrb.mxu3 %v9631_v43  ;;  %5854 = vmatpush.bf16.msra.mxu0 %v10015_v45  ;;  %v10544_v43 = vld [vmem:[#allocation16 + $0x880] sm:$0xf0]  ;;  %v9782_v45 = vld [vmem:[#allocation16 + $0x258] sm:$0xf] }
 0x759   :  { %5868 = vmatpush.bf16.msra.mxu1 %v10399_v12  ;;  %5882 = vmatpush.bf16.msrb.mxu2 %v9635_v13  ;;  %v12237_v12 = vld [vmem:[#allocation16 + $0x584] sm:$0xf0]  ;;  %v10163_v13 = vor.u32 %v12230_v59, %v10160_v61  ;;  %v10547_v14 = vor.u32 %v12326_v28, %v10544_v43  ;;  %v9783_v18 = vor.u32 %v12141_v3, %v9782_v45  ;;  %v9974_v61 = vld [vmem:[#allocation16 + $0x3d8] sm:$0xf]  ;;  %v12170_v43 = vld [vmem:[#allocation16 + $0x374] sm:$0xf] }
 0x75a   :  { %v10167_v57 = vor.u32 %v12237_v12, %v10166_v46  ;;  %v12093_v59 = vld [vmem:[#allocation16 + $0x104] sm:$0xf0]  ;;  %v9920_v45 = vld [vmem:[#allocation16 + $0x3a0] sm:$0xf0]  ;;  %v12266_v12 = vld [vmem:[#allocation16 + $0x674] sm:$0xf] }
 0x75c   :  { %5841 = vmatpush.bf16.msrb.mxu3 %v9583_v8  ;;  %5855 = vmatpush.bf16.msra.mxu0 %v9967_v24  ;;  %v10496_v8 = vld [vmem:[#allocation16 + $0x820] sm:$0xf0]  ;;  %v9734_v24 = vld [vmem:[#allocation16 + $0x1f8] sm:$0xf] }
 0x75d   :  { %5869 = vmatpush.bf16.msra.mxu1 %v10351_v6  ;;  %5883 = vmatpush.bf16.msrb.mxu2 %v9587_v30  ;;  %v12225_v6 = vld [vmem:[#allocation16 + $0x524] sm:$0xf0]  ;;  %v10115_v30 = vor.u32 %v12218_v58, %v10112_v11  ;;  %v10499_v33 = vor.u32 %v12314_v53, %v10496_v8  ;;  %v9735_v44 = vor.u32 %v12129_v0, %v9734_v24  ;;  %v9926_v11 = vld [vmem:[#allocation16 + $0x378] sm:$0xf]  ;;  %v9872_v24 = vld [vmem:[#allocation16 + $0x340] sm:$0xf0] }
 0x75e   :  { %v10119_v20 = vor.u32 %v12225_v6, %v10118_v1  ;;  %v12081_v58 = vld [vmem:[#allocation16 + $0xa4] sm:$0xf0]  ;;  %v9923_v53 = vor.u32 %v12170_v43, %v9920_v45  ;;  %v12254_v0 = vld [vmem:[#allocation16 + $0x614] sm:$0xf]  ;;  %v10256_v1 = vld [vmem:[#allocation16 + $0x640] sm:$0xf0] }
 0x75f   :  { %v10259_v39 = vor.u32 %v12254_v0, %v10256_v1  ;;  %v10120_v43 = vld [vmem:[#allocation16 + $0x528] sm:$0xf0]  ;;  %v12315_v45 = vld [vmem:[#allocation16 + $0x7fc] sm:$0xf] }
 0x760   :  { %5842 = vmatpush.bf16.msrb.mxu3 %v9535_v35  ;;  %5856 = vmatpush.bf16.msra.mxu0 %v9919_v37  ;;  %v9686_v35 = vld [vmem:[#allocation16 + $0x198] sm:$0xf]  ;;  %v12117_v37 = vld [vmem:[#allocation16 + $0x1c4] sm:$0xf0]  ;;  %v10456_v0 = vld [vmem:[#allocation16 + $0x7c8] sm:$0xf0] }
 0x761   :  { %5870 = vmatpush.bf16.msra.mxu1 %v10303_v5  ;;  %5884 = vmatpush.bf16.msrb.mxu2 %v9539_v56  ;;  %v10451_v5 = vor.u32 %v12302_v29, %v10448_v52  ;;  %v12194_v56 = vld [vmem:[#allocation16 + $0x434] sm:$0xf]  ;;  %v9687_v4 = vor.u32 %v12117_v37, %v9686_v35  ;;  %v12345_v29 = vld [vmem:[#allocation16 + $0x8e4] sm:$0xf0]  ;;  %v12147_v52 = vld [vmem:[#allocation16 + $0x2bc] sm:$0xf] }
 0x762   :  { %v9832_v35 = vld [vmem:[#allocation16 + $0x2e8] sm:$0xf0]  ;;  %v12243_v37 = vld [vmem:[#allocation16 + $0x5bc] sm:$0xf] }
 0x764   :  { %5843 = vmatpush.bf16.msrb.mxu3 %v9487_v21  ;;  %5857 = vmatpush.bf16.msra.mxu0 %v9871_v54  ;;  %v10019_v21 = vor.u32 %v12194_v56, %v10016_v48  ;;  %v10403_v54 = vor.u32 %v12290_v49, %v10400_v60  ;;  %v10600_v56 = vld [vmem:[#allocation16 + $0x8e8] sm:$0xf0]  ;;  %v9835_v49 = vor.u32 %v12147_v52, %v9832_v35  ;;  %v10550_v60 = vld [vmem:[#allocation16 + $0x858] sm:$0xf]  ;;  %v12291_v35 = vld [vmem:[#allocation16 + $0x73c] sm:$0xf] }
 0x765   :  { %5871 = vmatpush.bf16.msra.mxu1 %v10255_v27  ;;  %5885 = vmatpush.bf16.msrb.mxu2 %v9491_v9  ;;  %v10023_v27 = vor.u32 %v12201_v32, %v10022_v34  ;;  %v12278_v9 = vld [vmem:[#allocation16 + $0x6d4] sm:$0xf]  ;;  %v12135_v32 = vld [vmem:[#allocation16 + $0x25c] sm:$0xf]  ;;  %v10024_v52 = vld [vmem:[#allocation16 + $0x468] sm:$0xf0] }
 0x767   :  { %5844 = vmatmul.bf16.vlgmr.msrb.gmra.mxu3 %v13649_v41  ;;  %5858 = vmatmul.bf16.vlgmr.msra.gmra.mxu0 %v13651_v42 }
 0x768   :  { %5892 = vmatpush.bf16.msra.mxu3 %v10211_v26  ;;  %5906 = vmatpush.bf16.msrb.mxu0 %v10595_v47  ;;  %v10352_v26 = vld [vmem:[#allocation16 + $0x700] sm:$0xf0]  ;;  %v9590_v47 = vld [vmem:[#allocation16 + $0xd8] sm:$0xf] }
 0x769   :  { %5920 = vmatpush.bf16.msrb.mxu1 %v9831_v40  ;;  %5934 = vmatpush.bf16.msra.mxu2 %v10215_v62  ;;  %v12189_v40 = vld [vmem:[#allocation16 + $0x404] sm:$0xf0]  ;;  %v9971_v62 = vor.u32 %v12182_v22, %v9968_v55  ;;  %v10355_v28 = vor.u32 %v12278_v9, %v10352_v26  ;;  %v9591_v3 = vor.u32 %v12093_v59, %v9590_v47  ;;  %v10168_v22 = vld [vmem:[#allocation16 + $0x588] sm:$0xf0]  ;;  %v12327_v55 = vld [vmem:[#allocation16 + $0x85c] sm:$0xf] }
 0x76a   :  { %5872 = vmatmul.bf16.vlgmr.msra.gmra.mxu1 %v13653_v2  ;;  %5886 = vmatmul.bf16.vlgmr.msrb.gmra.mxu2 %v13649_v41  ;;  %v9975_v46 = vor.u32 %v12189_v40, %v9974_v61  ;;  %v10502_v26 = vld [vmem:[#allocation16 + $0x7f8] sm:$0xf]  ;;  %v12321_v47 = vld [vmem:[#allocation16 + $0x824] sm:$0xf0]  ;;  %v12123_v40 = vld [vmem:[#allocation16 + $0x1fc] sm:$0xf] }
 0x76c   :  { %5893 = vmatpush.bf16.msra.mxu3 %v10163_v13  ;;  %5907 = vmatpush.bf16.msrb.mxu0 %v10547_v14  ;;  %v10304_v13 = vld [vmem:[#allocation16 + $0x6a0] sm:$0xf0]  ;;  %v9542_v14 = vld [vmem:[#allocation16 + $0x78] sm:$0xf] }
 0x76d   :  { %5921 = vmatpush.bf16.msrb.mxu1 %v9783_v18  ;;  %5935 = vmatpush.bf16.msra.mxu2 %v10167_v57  ;;  %v12177_v18 = vld [vmem:[#allocation16 + $0x3a4] sm:$0xf0]  ;;  %v12158_v57 = vld [vmem:[#allocation16 + $0x314] sm:$0xf]  ;;  %v10307_v8 = vor.u32 %v12266_v12, %v10304_v13  ;;  %v9543_v6 = vor.u32 %v12081_v58, %v9542_v14  ;;  %v10454_v13 = vld [vmem:[#allocation16 + $0x798] sm:$0xf] }
 0x76e   :  { %v9875_v38 = vor.u32 %v12158_v57, %v9872_v24  ;;  %v12309_v14 = vld [vmem:[#allocation16 + $0x7c4] sm:$0xf0]  ;;  %v9688_v57 = vld [vmem:[#allocation16 + $0x1c8] sm:$0xf0]  ;;  %v12303_v24 = vld [vmem:[#allocation16 + $0x79c] sm:$0xf] }
 0x76f   :  { %v10455_v1 = vor.u32 %v12309_v14, %v10454_v13  ;;  %v9880_v13 = vld [vmem:[#allocation16 + $0x348] sm:$0xf0]  ;;  %v12255_v14 = vld [vmem:[#allocation16 + $0x61c] sm:$0xf] }
 0x770   :  { %5894 = vmatpush.bf16.msra.mxu3 %v10115_v30  ;;  %5908 = vmatpush.bf16.msrb.mxu0 %v10499_v33  ;;  %v9927_v30 = vor.u32 %v12177_v18, %v9926_v11  ;;  %v9494_v33 = vld [vmem:[#allocation16 + $0x18] sm:$0xf]  ;;  %v12111_v18 = vld [vmem:[#allocation16 + $0x19c] sm:$0xf] }
 0x771   :  { %5922 = vmatpush.bf16.msrb.mxu1 %v9735_v44  ;;  %5936 = vmatpush.bf16.msra.mxu2 %v10119_v20  ;;  %v12165_v44 = vld [vmem:[#allocation16 + $0x344] sm:$0xf0]  ;;  %v10598_v20 = vld [vmem:[#allocation16 + $0x8b8] sm:$0xf]  ;;  %v9495_v48 = vor.u32 %v12069_v51, %v9494_v33 }
 0x772   :  { %v12297_v33 = vld [vmem:[#allocation16 + $0x764] sm:$0xf0] }
 0x774   :  { %5895 = vmatpush.bf16.msra.mxu3 %v10067_v10  ;;  %5909 = vmatpush.bf16.msrb.mxu0 %v10451_v5  ;;  %v10216_v10 = vld [vmem:[#allocation16 + $0x5e8] sm:$0xf0]  ;;  %v12339_v5 = vld [vmem:[#allocation16 + $0x8bc] sm:$0xf] }
 0x775   :  { %5923 = vmatpush.bf16.msrb.mxu1 %v9687_v4  ;;  %5937 = vmatpush.bf16.msra.mxu2 %v10071_v36  ;;  %v9879_v4 = vor.u32 %v12165_v44, %v9878_v19  ;;  %v10599_v36 = vor.u32 %v12345_v29, %v10598_v20  ;;  %v10219_v31 = vor.u32 %v12243_v37, %v10216_v10  ;;  %v12099_v44 = vld [vmem:[#allocation16 + $0x13c] sm:$0xf]  ;;  %v9640_v20 = vld [vmem:[#allocation16 + $0x168] sm:$0xf0]  ;;  %v10358_v10 = vld [vmem:[#allocation16 + $0x6d8] sm:$0xf] }
 0x776   :  { %v10603_v34 = vor.u32 %v12339_v5, %v10600_v56  ;;  %v10459_v19 = vor.u32 %v12303_v24, %v10456_v0  ;;  %v12195_v29 = vld [vmem:[#allocation16 + $0x43c] sm:$0xf]  ;;  %v10408_v37 = vld [vmem:[#allocation16 + $0x768] sm:$0xf0]  ;;  %v12285_v5 = vld [vmem:[#allocation16 + $0x704] sm:$0xf0] }
 0x777   :  { %v10027_v56 = vor.u32 %v12195_v29, %v10024_v52  ;;  %v12142_v29 = vld [vmem:[#allocation16 + $0x28c] sm:$0xf0] }
 0x778   :  { %5896 = vmatpush.bf16.msra.mxu3 %v10019_v21  ;;  %5910 = vmatpush.bf16.msrb.mxu0 %v10403_v54  ;;  %v9784_v21 = vld [vmem:[#allocation16 + $0x288] sm:$0xf0]  ;;  %v12231_v54 = vld [vmem:[#allocation16 + $0x55c] sm:$0xf] }
 0x779   :  { %5924 = vmatpush.bf16.msrb.mxu1 %v9639_v7  ;;  %5938 = vmatpush.bf16.msra.mxu2 %v10023_v27  ;;  %v10552_v7 = vld [vmem:[#allocation16 + $0x888] sm:$0xf0]  ;;  %v10551_v27 = vor.u32 %v12333_v50, %v10550_v60  ;;  %v9787_v9 = vor.u32 %v12135_v32, %v9784_v21  ;;  %v10171_v59 = vor.u32 %v12231_v54, %v10168_v22  ;;  %v12279_v50 = vld [vmem:[#allocation16 + $0x6dc] sm:$0xf]  ;;  %v10310_v21 = vld [vmem:[#allocation16 + $0x678] sm:$0xf] }
 0x77a   :  { %v10555_v61 = vor.u32 %v12327_v55, %v10552_v7  ;;  %v9976_v60 = vld [vmem:[#allocation16 + $0x408] sm:$0xf0]  ;;  %v12273_v54 = vld [vmem:[#allocation16 + $0x6a4] sm:$0xf0]  ;;  %v12075_v7 = vld [vmem:[#allocation16 + $0x7c] sm:$0xf] }
 0x77c   :  { %5897 = vmatpush.bf16.msra.mxu3 %v9971_v62  ;;  %5911 = vmatpush.bf16.msrb.mxu0 %v10355_v28  ;;  %v9736_v62 = vld [vmem:[#allocation16 + $0x228] sm:$0xf0]  ;;  %v12219_v28 = vld [vmem:[#allocation16 + $0x4fc] sm:$0xf] }
 0x77d   :  { %5925 = vmatpush.bf16.msrb.mxu1 %v9591_v3  ;;  %5939 = vmatpush.bf16.msra.mxu2 %v9975_v46  ;;  %v10504_v3 = vld [vmem:[#allocation16 + $0x828] sm:$0xf0]  ;;  %v10503_v46 = vor.u32 %v12321_v47, %v10502_v26  ;;  %v9739_v12 = vor.u32 %v12123_v40, %v9736_v62  ;;  %v10123_v58 = vor.u32 %v12219_v28, %v10120_v43  ;;  %v12267_v47 = vld [vmem:[#allocation16 + $0x67c] sm:$0xf]  ;;  %v12261_v28 = vld [vmem:[#allocation16 + $0x644] sm:$0xf0] }
 0x77e   :  { %v10507_v11 = vor.u32 %v12315_v45, %v10504_v3  ;;  %v9928_v26 = vld [vmem:[#allocation16 + $0x3a8] sm:$0xf0]  ;;  %v10311_v40 = vor.u32 %v12273_v54, %v10310_v21  ;;  %v12063_v43 = vld [vmem:[#allocation16 + $0x1c] sm:$0xf]  ;;  %v12322_v21 = vld [vmem:[#allocation16 + $0x82c] sm:$0xf0] }
 0x77f   :  { %v9496_v45 = vld [vmem:[#allocation16 + $0x48] sm:$0xf0]  ;;  %v12124_v54 = vld [vmem:[#allocation16 + $0x204] sm:$0xf] }
 0x780   :  { %5898 = vmatpush.bf16.msra.mxu3 %v9923_v53  ;;  %5912 = vmatpush.bf16.msrb.mxu0 %v10307_v8  ;;  %v12207_v53 = vld [vmem:[#allocation16 + $0x49c] sm:$0xf]  ;;  %v10072_v8 = vld [vmem:[#allocation16 + $0x4c8] sm:$0xf0]  ;;  %v9499_v0 = vor.u32 %v12063_v43, %v9496_v45  ;;  %v9696_v43 = vld [vmem:[#allocation16 + $0x1d0] sm:$0xf0] }
 0x781   :  { %5926 = vmatpush.bf16.msrb.mxu1 %v9543_v6  ;;  %5940 = vmatpush.bf16.msra.mxu2 %v9927_v30  ;;  %v9691_v6 = vor.u32 %v12111_v18, %v9688_v57  ;;  %v10406_v30 = vld [vmem:[#allocation16 + $0x738] sm:$0xf]  ;;  %v10075_v51 = vor.u32 %v12207_v53, %v10072_v8  ;;  %v12154_v18 = vld [vmem:[#allocation16 + $0x2ec] sm:$0xf0]  ;;  %v10222_v57 = vld [vmem:[#allocation16 + $0x5c0] sm:$0xf] }
 0x782   :  { %v12250_v53 = vld [vmem:[#allocation16 + $0x5ec] sm:$0xf0]  ;;  %v10606_v8 = vld [vmem:[#allocation16 + $0x8c0] sm:$0xf] }
 0x784   :  { %5899 = vmatpush.bf16.msra.mxu3 %v9875_v38  ;;  %5913 = vmatpush.bf16.msrb.mxu0 %v10259_v39  ;;  %v10407_v38 = vor.u32 %v12297_v33, %v10406_v30  ;;  %v9643_v39 = vor.u32 %v12099_v44, %v9640_v20  ;;  %v9840_v30 = vld [vmem:[#allocation16 + $0x2f0] sm:$0xf0]  ;;  %v10223_v44 = vor.u32 %v12250_v53, %v10222_v57  ;;  %v9790_v20 = vld [vmem:[#allocation16 + $0x260] sm:$0xf]  ;;  %v12298_v57 = vld [vmem:[#allocation16 + $0x76c] sm:$0xf0] }
 0x785   :  { %5927 = vmatpush.bf16.msrb.mxu1 %v9495_v48  ;;  %5941 = vmatpush.bf16.msra.mxu2 %v9879_v4  ;;  %v10411_v48 = vor.u32 %v12291_v35, %v10408_v37  ;;  %v12087_v4 = vld [vmem:[#allocation16 + $0xdc] sm:$0xf]  ;;  %v10174_v37 = vld [vmem:[#allocation16 + $0x560] sm:$0xf]  ;;  %v12100_v53 = vld [vmem:[#allocation16 + $0x144] sm:$0xf] }
 0x787   :  { %5900 = vmatmul.bf16.vlgmr.msra.gmra.mxu3 %v13651_v42  ;;  %5914 = vmatmul.bf16.vlgmr.msrb.gmra.mxu0 %v13653_v2 }
 0x788   :  { %5948 = vmatpush.bf16.msrb.mxu3 %v10599_v36  ;;  %5962 = vmatpush.bf16.msra.mxu0 %v9835_v49  ;;  %v9592_v36 = vld [vmem:[#allocation16 + $0x108] sm:$0xf0]  ;;  %v12183_v49 = vld [vmem:[#allocation16 + $0x3dc] sm:$0xf] }
 0x789   :  { %5976 = vmatpush.bf16.msra.mxu1 %v10219_v31  ;;  %5990 = vmatpush.bf16.msrb.mxu2 %v10603_v34  ;;  %v10360_v31 = vld [vmem:[#allocation16 + $0x708] sm:$0xf0]  ;;  %v10359_v34 = vor.u32 %v12285_v5, %v10358_v10  ;;  %v9595_v32 = vor.u32 %v12087_v4, %v9592_v36  ;;  %v9979_v22 = vor.u32 %v12183_v49, %v9976_v60  ;;  %v12334_v10 = vld [vmem:[#allocation16 + $0x88c] sm:$0xf0]  ;;  %v12136_v5 = vld [vmem:[#allocation16 + $0x264] sm:$0xf] }
 0x78a   :  { %5928 = vmatmul.bf16.vlgmr.msrb.gmra.mxu1 %v13649_v41  ;;  %5942 = vmatmul.bf16.vlgmr.msra.gmra.mxu2 %v13651_v42  ;;  %v10363_v55 = vor.u32 %v12279_v50, %v10360_v31  ;;  %v9742_v36 = vld [vmem:[#allocation16 + $0x200] sm:$0xf]  ;;  %v12130_v49 = vld [vmem:[#allocation16 + $0x22c] sm:$0xf0] }
 0x78b   :  { %v10126_v31 = vld [vmem:[#allocation16 + $0x500] sm:$0xf] }
 0x78c   :  { %5949 = vmatpush.bf16.msrb.mxu3 %v10551_v27  ;;  %5963 = vmatpush.bf16.msra.mxu0 %v9787_v9  ;;  %v9544_v27 = vld [vmem:[#allocation16 + $0xa8] sm:$0xf0]  ;;  %v12171_v9 = vld [vmem:[#allocation16 + $0x37c] sm:$0xf] }
 0x78d   :  { %5977 = vmatpush.bf16.msra.mxu1 %v10171_v59  ;;  %5991 = vmatpush.bf16.msrb.mxu2 %v10555_v61  ;;  %v10312_v59 = vld [vmem:[#allocation16 + $0x6a8] sm:$0xf0]  ;;  %v10262_v61 = vld [vmem:[#allocation16 + $0x618] sm:$0xf]  ;;  %v9547_v62 = vor.u32 %v12075_v7, %v9544_v27  ;;  %v9931_v3 = vor.u32 %v12171_v9, %v9928_v26  ;;  %v9694_v27 = vld [vmem:[#allocation16 + $0x1a0] sm:$0xf] }
 0x78e   :  { %v10263_v24 = vor.u32 %v12261_v28, %v10262_v61  ;;  %v12118_v9 = vld [vmem:[#allocation16 + $0x1cc] sm:$0xf0]  ;;  %v12112_v28 = vld [vmem:[#allocation16 + $0x1a4] sm:$0xf] }
 0x78f   :  { %v12214_v61 = vld [vmem:[#allocation16 + $0x4cc] sm:$0xf0]  ;;  %v9695_v45 = vor.u32 %v12118_v9, %v9694_v27  ;;  %v12064_v9 = vld [vmem:[#allocation16 + $0x24] sm:$0xf] }
 0x790   :  { %5950 = vmatpush.bf16.msrb.mxu3 %v10503_v46  ;;  %5964 = vmatpush.bf16.msra.mxu0 %v9739_v12  ;;  %v10315_v46 = vor.u32 %v12267_v47, %v10312_v59  ;;  %v12159_v12 = vld [vmem:[#allocation16 + $0x31c] sm:$0xf]  ;;  %v10078_v59 = vld [vmem:[#allocation16 + $0x4a0] sm:$0xf]  ;;  %v12262_v27 = vld [vmem:[#allocation16 + $0x64c] sm:$0xf0] }
 0x791   :  { %5978 = vmatpush.bf16.msra.mxu1 %v10123_v58  ;;  %5992 = vmatpush.bf16.msrb.mxu2 %v10507_v11  ;;  %v10264_v58 = vld [vmem:[#allocation16 + $0x648] sm:$0xf0]  ;;  %v9838_v11 = vld [vmem:[#allocation16 + $0x2c0] sm:$0xf]  ;;  %v9883_v33 = vor.u32 %v12159_v12, %v9880_v13  ;;  %v12106_v12 = vld [vmem:[#allocation16 + $0x16c] sm:$0xf0] }
 0x794   :  { %5951 = vmatpush.bf16.msrb.mxu3 %v10455_v1  ;;  %5965 = vmatpush.bf16.msra.mxu0 %v9691_v6  ;;  %v12346_v1 = vld [vmem:[#allocation16 + $0x8ec] sm:$0xf0]  ;;  %v12148_v6 = vld [vmem:[#allocation16 + $0x2c4] sm:$0xf] }
 0x795   :  { %5979 = vmatpush.bf16.msra.mxu1 %v10075_v51  ;;  %5993 = vmatpush.bf16.msrb.mxu2 %v10459_v19  ;;  %v10267_v51 = vor.u32 %v12255_v14, %v10264_v58  ;;  %v9839_v19 = vor.u32 %v12154_v18, %v9838_v11  ;;  %v10607_v52 = vor.u32 %v12346_v1, %v10606_v8  ;;  %v10030_v58 = vld [vmem:[#allocation16 + $0x440] sm:$0xf]  ;;  %v12202_v11 = vld [vmem:[#allocation16 + $0x46c] sm:$0xf0]  ;;  %v9648_v8 = vld [vmem:[#allocation16 + $0x170] sm:$0xf0] }
 0x796   :  { %v9843_v35 = vor.u32 %v12148_v6, %v9840_v30  ;;  %v9699_v14 = vor.u32 %v12112_v28, %v9696_v43  ;;  %v10414_v18 = vld [vmem:[#allocation16 + $0x740] sm:$0xf]  ;;  %v12094_v6 = vld [vmem:[#allocation16 + $0x10c] sm:$0xf0] }
 0x797   :  { %v9598_v1 = vld [vmem:[#allocation16 + $0xe0] sm:$0xf]  ;;  %v10415_v30 = vor.u32 %v12298_v57, %v10414_v18  ;;  %v10176_v18 = vld [vmem:[#allocation16 + $0x590] sm:$0xf0] }
 0x798   :  { %5952 = vmatpush.bf16.msrb.mxu3 %v10407_v38  ;;  %5966 = vmatpush.bf16.msra.mxu0 %v9643_v39  ;;  %v12238_v38 = vld [vmem:[#allocation16 + $0x58c] sm:$0xf0]  ;;  %v10558_v39 = vld [vmem:[#allocation16 + $0x860] sm:$0xf] }
 0x799   :  { %5980 = vmatpush.bf16.msra.mxu1 %v10027_v56  ;;  %5994 = vmatpush.bf16.msrb.mxu2 %v10411_v48  ;;  %v9792_v56 = vld [vmem:[#allocation16 + $0x290] sm:$0xf0]  ;;  %v9791_v48 = vor.u32 %v12142_v29, %v9790_v20  ;;  %v10175_v4 = vor.u32 %v12238_v38, %v10174_v37  ;;  %v10559_v60 = vor.u32 %v12334_v10, %v10558_v39  ;;  %v12286_v20 = vld [vmem:[#allocation16 + $0x70c] sm:$0xf0]  ;;  %v12088_v29 = vld [vmem:[#allocation16 + $0xe4] sm:$0xf] }
 0x79a   :  { %v9795_v50 = vor.u32 %v12136_v5, %v9792_v56  ;;  %v9550_v38 = vld [vmem:[#allocation16 + $0x80] sm:$0xf]  ;;  %v12082_v39 = vld [vmem:[#allocation16 + $0xac] sm:$0xf0] }
 0x79b   :  { %v9934_v56 = vld [vmem:[#allocation16 + $0x380] sm:$0xf] }
 0x79c   :  { %5953 = vmatpush.bf16.msrb.mxu3 %v10359_v34  ;;  %5967 = vmatpush.bf16.msra.mxu0 %v9595_v32  ;;  %v12226_v34 = vld [vmem:[#allocation16 + $0x52c] sm:$0xf0]  ;;  %v10510_v32 = vld [vmem:[#allocation16 + $0x800] sm:$0xf] }
 0x79d   :  { %5981 = vmatpush.bf16.msra.mxu1 %v9979_v22  ;;  %5995 = vmatpush.bf16.msrb.mxu2 %v10363_v55  ;;  %v9744_v22 = vld [vmem:[#allocation16 + $0x230] sm:$0xf0]  ;;  %v9743_v55 = vor.u32 %v12130_v49, %v9742_v36  ;;  %v10127_v7 = vor.u32 %v12226_v34, %v10126_v31  ;;  %v10511_v26 = vor.u32 %v12322_v21, %v10510_v32  ;;  %v12274_v36 = vld [vmem:[#allocation16 + $0x6ac] sm:$0xf0]  ;;  %v12076_v49 = vld [vmem:[#allocation16 + $0x84] sm:$0xf] }
 0x79e   :  { %v9747_v47 = vor.u32 %v12124_v54, %v9744_v22  ;;  %v9551_v31 = vor.u32 %v12082_v39, %v9550_v38  ;;  %v12070_v32 = vld [vmem:[#allocation16 + $0x4c] sm:$0xf0]  ;;  %v9886_v21 = vld [vmem:[#allocation16 + $0x320] sm:$0xf]  ;;  %v12131_v38 = vld [vmem:[#allocation16 + $0x234] sm:$0xf0] }
 0x79f   :  { %v12166_v54 = vld [vmem:[#allocation16 + $0x34c] sm:$0xf0]  ;;  %v10134_v39 = vld [vmem:[#allocation16 + $0x508] sm:$0xf] }
 0x7a0   :  { %5954 = vmatpush.bf16.msrb.mxu3 %v10311_v40  ;;  %5968 = vmatpush.bf16.msra.mxu0 %v9547_v62  ;;  %v10462_v40 = vld [vmem:[#allocation16 + $0x7a0] sm:$0xf]  ;;  %v12310_v62 = vld [vmem:[#allocation16 + $0x7cc] sm:$0xf0]  ;;  %v9887_v43 = vor.u32 %v12166_v54, %v9886_v21  ;;  %v12119_v21 = vld [vmem:[#allocation16 + $0x1d4] sm:$0xf0] }
 0x7a1   :  { %5982 = vmatpush.bf16.msra.mxu1 %v9931_v3  ;;  %5996 = vmatpush.bf16.msrb.mxu2 %v10315_v46  ;;  %v10079_v3 = vor.u32 %v12214_v61, %v10078_v59  ;;  %v9646_v46 = vld [vmem:[#allocation16 + $0x140] sm:$0xf]  ;;  %v10463_v13 = vor.u32 %v12310_v62, %v10462_v40  ;;  %v10224_v59 = vld [vmem:[#allocation16 + $0x5f0] sm:$0xf0]  ;;  %v12340_v61 = vld [vmem:[#allocation16 + $0x8c4] sm:$0xf] }
 0x7a2   :  { %v10608_v40 = vld [vmem:[#allocation16 + $0x8f0] sm:$0xf0]  ;;  %v9846_v62 = vld [vmem:[#allocation16 + $0x2c8] sm:$0xf] }
 0x7a3   :  { %v10086_v54 = vld [vmem:[#allocation16 + $0x4a8] sm:$0xf] }
 0x7a4   :  { %5955 = vmatpush.bf16.msrb.mxu3 %v10263_v24  ;;  %5969 = vmatpush.bf16.msra.mxu0 %v9499_v0  ;;  %v9647_v24 = vor.u32 %v12106_v12, %v9646_v46  ;;  %v10031_v0 = vor.u32 %v12202_v11, %v10030_v58  ;;  %v12251_v46 = vld [vmem:[#allocation16 + $0x5f4] sm:$0xf0]  ;;  %v10611_v58 = vor.u32 %v12340_v61, %v10608_v40  ;;  %v12232_v11 = vld [vmem:[#allocation16 + $0x564] sm:$0xf]  ;;  %v10416_v40 = vld [vmem:[#allocation16 + $0x770] sm:$0xf0] }
 0x7a5   :  { %5983 = vmatpush.bf16.msra.mxu1 %v9883_v33  ;;  %5997 = vmatpush.bf16.msrb.mxu2 %v10267_v51  ;;  %v9651_v33 = vor.u32 %v12100_v53, %v9648_v8  ;;  %v9982_v51 = vld [vmem:[#allocation16 + $0x3e0] sm:$0xf]  ;;  %v12328_v8 = vld [vmem:[#allocation16 + $0x864] sm:$0xf] }
 0x7a6   :  { %v12292_v61 = vld [vmem:[#allocation16 + $0x744] sm:$0xf] }
 0x7a7   :  { %5956 = vmatmul.bf16.vlgmr.msrb.gmra.mxu3 %v13653_v2  ;;  %5970 = vmatmul.bf16.vlgmr.msra.gmra.mxu0 %v13649_v41 }
 0x7a8   :  { %6004 = vmatpush.bf16.msra.mxu3 %v9839_v19  ;;  %6018 = vmatpush.bf16.msrb.mxu0 %v10223_v44  ;;  %v12190_v19 = vld [vmem:[#allocation16 + $0x40c] sm:$0xf0]  ;;  %v10366_v44 = vld [vmem:[#allocation16 + $0x6e0] sm:$0xf] }
 0x7a9   :  { %6032 = vmatpush.bf16.msrb.mxu1 %v10607_v52  ;;  %6046 = vmatpush.bf16.msra.mxu2 %v9843_v35  ;;  %v9600_v52 = vld [vmem:[#allocation16 + $0x110] sm:$0xf0]  ;;  %v9599_v35 = vor.u32 %v12094_v6, %v9598_v1  ;;  %v9983_v37 = vor.u32 %v12190_v19, %v9982_v51  ;;  %v10367_v10 = vor.u32 %v12286_v20, %v10366_v44  ;;  %v12143_v1 = vld [vmem:[#allocation16 + $0x294] sm:$0xf0]  ;;  %v10182_v6 = vld [vmem:[#allocation16 + $0x568] sm:$0xf] }
 0x7aa   :  { %5984 = vmatmul.bf16.vlgmr.msra.gmra.mxu1 %v13651_v42  ;;  %5998 = vmatmul.bf16.vlgmr.msrb.gmra.mxu2 %v13653_v2  ;;  %v9603_v5 = vor.u32 %v12088_v29, %v9600_v52  ;;  %v12220_v19 = vld [vmem:[#allocation16 + $0x504] sm:$0xf]  ;;  %v10128_v44 = vld [vmem:[#allocation16 + $0x530] sm:$0xf0] }
 0x7ab   :  { %v12316_v52 = vld [vmem:[#allocation16 + $0x804] sm:$0xf] }
 0x7ac   :  { %6005 = vmatpush.bf16.msra.mxu3 %v9791_v48  ;;  %6019 = vmatpush.bf16.msrb.mxu0 %v10175_v4  ;;  %v12178_v48 = vld [vmem:[#allocation16 + $0x3ac] sm:$0xf0]  ;;  %v10318_v4 = vld [vmem:[#allocation16 + $0x680] sm:$0xf] }
 0x7ad   :  { %6033 = vmatpush.bf16.msrb.mxu1 %v10559_v60  ;;  %6047 = vmatpush.bf16.msra.mxu2 %v9795_v50  ;;  %v9552_v60 = vld [vmem:[#allocation16 + $0xb0] sm:$0xf0]  ;;  %v9502_v50 = vld [vmem:[#allocation16 + $0x20] sm:$0xf]  ;;  %v9935_v34 = vor.u32 %v12178_v48, %v9934_v56  ;;  %v10319_v22 = vor.u32 %v12274_v36, %v10318_v4  ;;  %v10131_v56 = vor.u32 %v12220_v19, %v10128_v44  ;;  %v12208_v4 = vld [vmem:[#allocation16 + $0x4a4] sm:$0xf] }
 0x7ae   :  { %v9503_v28 = vor.u32 %v12070_v32, %v9502_v50  ;;  %v10080_v36 = vld [vmem:[#allocation16 + $0x4d0] sm:$0xf0]  ;;  %v12304_v50 = vld [vmem:[#allocation16 + $0x7a4] sm:$0xf]  ;;  %v13685_v32 = vpop.f32.mrf.mxu1 }
 0x7af   :  { %v9936_v19 = vld [vmem:[#allocation16 + $0x3b0] sm:$0xf0] }
 0x7b0   :  { %6006 = vmatpush.bf16.msra.mxu3 %v9743_v55  ;;  %6020 = vmatpush.bf16.msrb.mxu0 %v10127_v7  ;;  %v9555_v55 = vor.u32 %v12076_v49, %v9552_v60  ;;  %v10270_v7 = vld [vmem:[#allocation16 + $0x620] sm:$0xf] }
 0x7b1   :  { %6034 = vmatpush.bf16.msrb.mxu1 %v10511_v26  ;;  %6048 = vmatpush.bf16.msra.mxu2 %v9747_v47  ;;  %v9504_v26 = vld [vmem:[#allocation16 + $0x50] sm:$0xf0]  ;;  %v12244_v47 = vld [vmem:[#allocation16 + $0x5c4] sm:$0xf]  ;;  %v10271_v12 = vor.u32 %v12262_v27, %v10270_v7 }
 0x7b2   :  { %v12196_v27 = vld [vmem:[#allocation16 + $0x444] sm:$0xf] }
 0x7b4   :  { %6007 = vmatpush.bf16.msra.mxu3 %v9695_v45  ;;  %6021 = vmatpush.bf16.msrb.mxu0 %v10079_v3  ;;  %v12155_v45 = vld [vmem:[#allocation16 + $0x2f4] sm:$0xf0]  ;;  %v10230_v3 = vld [vmem:[#allocation16 + $0x5c8] sm:$0xf] }
 0x7b5   :  { %6035 = vmatpush.bf16.msrb.mxu1 %v10463_v13  ;;  %6049 = vmatpush.bf16.msra.mxu2 %v9699_v14  ;;  %v9507_v13 = vor.u32 %v12064_v9, %v9504_v26  ;;  %v10227_v14 = vor.u32 %v12244_v47, %v10224_v59  ;;  %v9847_v57 = vor.u32 %v12155_v45, %v9846_v62  ;;  %v10032_v9 = vld [vmem:[#allocation16 + $0x470] sm:$0xf0]  ;;  %v13687_v26 = vpop.f32.mrf.mxu3  ;;  %v9654_v62 = vld [vmem:[#allocation16 + $0x148] sm:$0xf] }
 0x7b6   :  { %v10231_v53 = vor.u32 %v12251_v46, %v10230_v3  ;;  %v10038_v45 = vld [vmem:[#allocation16 + $0x448] sm:$0xf]  ;;  %v12203_v3 = vld [vmem:[#allocation16 + $0x474] sm:$0xf0]  ;;  %v10035_v46 = vor.u32 %v12196_v27, %v10032_v9 }
 0x7b7   :  { %v12347_v27 = vld [vmem:[#allocation16 + $0x8f4] sm:$0xf0] }
 0x7b8   :  { %6008 = vmatpush.bf16.msra.mxu3 %v9647_v24  ;;  %6022 = vmatpush.bf16.msrb.mxu0 %v10031_v0  ;;  %v10560_v24 = vld [vmem:[#allocation16 + $0x890] sm:$0xf0]  ;;  %v9798_v0 = vld [vmem:[#allocation16 + $0x268] sm:$0xf] }
 0x7b9   :  { %6036 = vmatpush.bf16.msrb.mxu1 %v10415_v30  ;;  %6050 = vmatpush.bf16.msra.mxu2 %v9651_v33  ;;  %v12239_v30 = vld [vmem:[#allocation16 + $0x594] sm:$0xf0]  ;;  %v10179_v33 = vor.u32 %v12232_v11, %v10176_v18  ;;  %v10563_v51 = vor.u32 %v12328_v8, %v10560_v24  ;;  %v9799_v20 = vor.u32 %v12143_v1, %v9798_v0  ;;  %v9606_v8 = vld [vmem:[#allocation16 + $0xe8] sm:$0xf] }
 0x7ba   :  { %v10183_v29 = vor.u32 %v12239_v30, %v10182_v6  ;;  %v10039_v18 = vor.u32 %v12203_v3, %v10038_v45  ;;  %v12095_v24 = vld [vmem:[#allocation16 + $0x114] sm:$0xf0]  ;;  %v9990_v0 = vld [vmem:[#allocation16 + $0x3e8] sm:$0xf]  ;;  %v13693_v6 = vpop.f32.mrf.mxu1  ;;  %v12341_v45 = vld [vmem:[#allocation16 + $0x8cc] sm:$0xf] }
 0x7bb   :  { %v12191_v1 = vld [vmem:[#allocation16 + $0x414] sm:$0xf0]  ;;  %v9607_v44 = vor.u32 %v12095_v24, %v9606_v8  ;;  %v10616_v3 = vld [vmem:[#allocation16 + $0x8f8] sm:$0xf0]  ;;  %v12137_v24 = vld [vmem:[#allocation16 + $0x26c] sm:$0xf] }
 0x7bc   :  { %6009 = vmatpush.bf16.msra.mxu3 %v9599_v35  ;;  %6023 = vmatpush.bf16.msrb.mxu0 %v9983_v37  ;;  %v10512_v35 = vld [vmem:[#allocation16 + $0x830] sm:$0xf0]  ;;  %v9750_v37 = vld [vmem:[#allocation16 + $0x208] sm:$0xf]  ;;  %v10619_v8 = vor.u32 %v12341_v45, %v10616_v3 }
 0x7bd   :  { %6037 = vmatpush.bf16.msrb.mxu1 %v10367_v10  ;;  %6051 = vmatpush.bf16.msra.mxu2 %v9603_v5  ;;  %v12227_v10 = vld [vmem:[#allocation16 + $0x534] sm:$0xf0]  ;;  %v13681_v5 = vpop.f32.mrf.mxu0  ;;  %v10515_v48 = vor.u32 %v12316_v52, %v10512_v35  ;;  %v9751_v49 = vor.u32 %v12131_v38, %v9750_v37  ;;  %v10320_v52 = vld [vmem:[#allocation16 + $0x6b0] sm:$0xf0]  ;;  %v9558_v35 = vld [vmem:[#allocation16 + $0x88] sm:$0xf] }
 0x7be   :  { %v10135_v60 = vor.u32 %v12227_v10, %v10134_v39  ;;  %v12083_v37 = vld [vmem:[#allocation16 + $0xb4] sm:$0xf0]  ;;  %v9942_v38 = vld [vmem:[#allocation16 + $0x388] sm:$0xf]  ;;  %v13695_v10 = vpop.f32.mrf.mxu3 }
 0x7bf   :  { %v12179_v39 = vld [vmem:[#allocation16 + $0x3b4] sm:$0xf0]  ;;  %v10422_v3 = vld [vmem:[#allocation16 + $0x748] sm:$0xf] }
 0x7c0   :  { %6010 = vmatpush.bf16.msra.mxu3 %v9551_v31  ;;  %6024 = vmatpush.bf16.msrb.mxu0 %v9935_v34  ;;  %v10464_v31 = vld [vmem:[#allocation16 + $0x7d0] sm:$0xf0]  ;;  %v9702_v34 = vld [vmem:[#allocation16 + $0x1a8] sm:$0xf] }
 0x7c1   :  { %6038 = vmatpush.bf16.msrb.mxu1 %v10319_v22  ;;  %6052 = vmatpush.bf16.msra.mxu2 %v9555_v55  ;;  %v12215_v22 = vld [vmem:[#allocation16 + $0x4d4] sm:$0xf0]  ;;  %v10083_v55 = vor.u32 %v12208_v4, %v10080_v36  ;;  %v10467_v7 = vor.u32 %v12304_v50, %v10464_v31  ;;  %v9703_v47 = vor.u32 %v12119_v21, %v9702_v34  ;;  %v10272_v50 = vld [vmem:[#allocation16 + $0x650] sm:$0xf0]  ;;  %v9510_v21 = vld [vmem:[#allocation16 + $0x28] sm:$0xf] }
 0x7c2   :  { %v10087_v59 = vor.u32 %v12215_v22, %v10086_v54  ;;  %v9559_v31 = vor.u32 %v12083_v37, %v9558_v35  ;;  %v9943_v34 = vor.u32 %v12179_v39, %v9942_v38  ;;  %v12071_v54 = vld [vmem:[#allocation16 + $0x54] sm:$0xf0]  ;;  %v9894_v22 = vld [vmem:[#allocation16 + $0x328] sm:$0xf]  ;;  %v12125_v39 = vld [vmem:[#allocation16 + $0x20c] sm:$0xf] }
 0x7c3   :  { %v12323_v35 = vld [vmem:[#allocation16 + $0x834] sm:$0xf0] }
 0x7c4   :  { %6011 = vmatpush.bf16.msra.mxu3 %v9503_v28  ;;  %6025 = vmatpush.bf16.msrb.mxu0 %v9887_v43  ;;  %v13689_v28 = vpop.f32.mrf.mxu2  ;;  %v12107_v43 = vld [vmem:[#allocation16 + $0x174] sm:$0xf0] }
 0x7c5   :  { %6039 = vmatpush.bf16.msrb.mxu1 %v10271_v12  ;;  %6053 = vmatpush.bf16.msra.mxu2 %v9507_v13  ;;  %v10419_v12 = vor.u32 %v12292_v61, %v10416_v40  ;;  %v12184_v13 = vld [vmem:[#allocation16 + $0x3e4] sm:$0xf]  ;;  %v9655_v11 = vor.u32 %v12107_v43, %v9654_v62  ;;  %v12245_v61 = vld [vmem:[#allocation16 + $0x5cc] sm:$0xf]  ;;  %v10232_v43 = vld [vmem:[#allocation16 + $0x5f8] sm:$0xf0] }
 0x7c7   :  { %6012 = vmatmul.bf16.vlgmr.msra.gmra.mxu3 %v13649_v41  ;;  %6026 = vmatmul.bf16.vlgmr.msrb.gmra.mxu0 %v13651_v42 }
 0x7c8   :  { %6060 = vmatpush.bf16.msrb.mxu3 %v10227_v14  ;;  %6074 = vmatpush.bf16.msra.mxu0 %v10611_v58  ;;  %v9984_v14 = vld [vmem:[#allocation16 + $0x410] sm:$0xf0]  ;;  %v13691_v58 = vpop.f32.mrf.mxu0 }
 0x7c9   :  { %6088 = vmatpush.bf16.msra.mxu1 %v9847_v57  ;;  %6102 = vmatpush.bf16.msrb.mxu2 %v10231_v53  ;;  %v12280_v57 = vld [vmem:[#allocation16 + $0x6e4] sm:$0xf]  ;;  %v10368_v53 = vld [vmem:[#allocation16 + $0x710] sm:$0xf0]  ;;  %v9987_v30 = vor.u32 %v12184_v13, %v9984_v14  ;;  %v13701_v13 = vpop.f32.mrf.mxu1 }
 0x7ca   :  { %6040 = vmatmul.bf16.vlgmr.msrb.gmra.mxu1 %v13653_v2  ;;  %6054 = vmatmul.bf16.vlgmr.msra.gmra.mxu2 %v13649_v41 }
 0x7cc   :  { %6061 = vmatpush.bf16.msrb.mxu3 %v10179_v33  ;;  %6075 = vmatpush.bf16.msra.mxu0 %v10563_v51  ;;  %v10371_v33 = vor.u32 %v12280_v57, %v10368_v53  ;;  %v12172_v51 = vld [vmem:[#allocation16 + $0x384] sm:$0xf]  ;;  %v12335_v57 = vld [vmem:[#allocation16 + $0x894] sm:$0xf0]  ;;  %v10235_v53 = vor.u32 %v12245_v61, %v10232_v43  ;;  %v10088_v61 = vld [vmem:[#allocation16 + $0x4d8] sm:$0xf0] }
 0x7cd   :  { %6089 = vmatpush.bf16.msra.mxu1 %v9799_v20  ;;  %6103 = vmatpush.bf16.msrb.mxu2 %v10183_v29  ;;  %v9991_v20 = vor.u32 %v12191_v1, %v9990_v0  ;;  %v12268_v29 = vld [vmem:[#allocation16 + $0x684] sm:$0xf]  ;;  %v9939_v4 = vor.u32 %v12172_v51, %v9936_v19  ;;  %v9800_v0 = vld [vmem:[#allocation16 + $0x298] sm:$0xf0]  ;;  %v12233_v1 = vld [vmem:[#allocation16 + $0x56c] sm:$0xf]  ;;  %v13703_v19 = vpop.f32.mrf.mxu3 }
 0x7ce   :  { %v10323_v36 = vor.u32 %v12268_v29, %v10320_v52  ;;  %v10568_v51 = vld [vmem:[#allocation16 + $0x898] sm:$0xf0]  ;;  %v9803_v29 = vor.u32 %v12137_v24, %v9800_v0  ;;  %v10518_v52 = vld [vmem:[#allocation16 + $0x808] sm:$0xf]  ;;  %v12293_v0 = vld [vmem:[#allocation16 + $0x74c] sm:$0xf] }
 0x7cf   :  { %v10040_v24 = vld [vmem:[#allocation16 + $0x478] sm:$0xf0] }
 0x7d0   :  { %6062 = vmatpush.bf16.msrb.mxu3 %v10131_v56  ;;  %6076 = vmatpush.bf16.msra.mxu0 %v10515_v48  ;;  %v12160_v56 = vld [vmem:[#allocation16 + $0x324] sm:$0xf]  ;;  %v13697_v48 = vpop.f32.mrf.mxu2  ;;  %v13699_v9 = vpop.f32.mrf.mxu0 }
 0x7d1   :  { %6090 = vmatpush.bf16.msra.mxu1 %v9751_v49  ;;  %6104 = vmatpush.bf16.msrb.mxu2 %v10135_v60  ;;  %v9888_v49 = vld [vmem:[#allocation16 + $0x350] sm:$0xf0]  ;;  %v12256_v60 = vld [vmem:[#allocation16 + $0x624] sm:$0xf] }
 0x7d2   :  { %v9891_v40 = vor.u32 %v12160_v56, %v9888_v49  ;;  %v10275_v62 = vor.u32 %v12256_v60, %v10272_v50  ;;  %v9752_v56 = vld [vmem:[#allocation16 + $0x238] sm:$0xf0]  ;;  %v12317_v49 = vld [vmem:[#allocation16 + $0x80c] sm:$0xf] }
 0x7d3   :  { %v10520_v60 = vld [vmem:[#allocation16 + $0x838] sm:$0xf0] }
 0x7d4   :  { %6063 = vmatpush.bf16.msrb.mxu3 %v10083_v55  ;;  %6077 = vmatpush.bf16.msra.mxu0 %v10467_v7  ;;  %v12167_v55 = vld [vmem:[#allocation16 + $0x354] sm:$0xf0]  ;;  %v10614_v7 = vld [vmem:[#allocation16 + $0x8c8] sm:$0xf] }
 0x7d5   :  { %6091 = vmatpush.bf16.msra.mxu1 %v9703_v47  ;;  %6105 = vmatpush.bf16.msrb.mxu2 %v10087_v59  ;;  %v12149_v47 = vld [vmem:[#allocation16 + $0x2cc] sm:$0xf]  ;;  %v9848_v59 = vld [vmem:[#allocation16 + $0x2f8] sm:$0xf0]  ;;  %v10615_v14 = vor.u32 %v12347_v27, %v10614_v7 }
 0x7d6   :  { %v12113_v7 = vld [vmem:[#allocation16 + $0x1ac] sm:$0xf]  ;;  %v9704_v27 = vld [vmem:[#allocation16 + $0x1d8] sm:$0xf0] }
 0x7d7   :  { %v9707_v45 = vor.u32 %v12113_v7, %v9704_v27  ;;  %v9560_v7 = vld [vmem:[#allocation16 + $0xb8] sm:$0xf0]  ;;  %v12173_v27 = vld [vmem:[#allocation16 + $0x38c] sm:$0xf] }
 0x7d8   :  { %6064 = vmatpush.bf16.msrb.mxu3 %v10035_v46  ;;  %6078 = vmatpush.bf16.msra.mxu0 %v10419_v12  ;;  %v9511_v46 = vor.u32 %v12071_v54, %v9510_v21  ;;  %v9895_v12 = vor.u32 %v12167_v55, %v9894_v22  ;;  %v13709_v50 = vpop.f32.mrf.mxu0  ;;  %v10470_v21 = vld [vmem:[#allocation16 + $0x7a8] sm:$0xf]  ;;  %v12311_v54 = vld [vmem:[#allocation16 + $0x7d4] sm:$0xf0]  ;;  %v10523_v55 = vor.u32 %v12317_v49, %v10520_v60 }
 0x7d9   :  { %6092 = vmatpush.bf16.msra.mxu1 %v9655_v11  ;;  %6106 = vmatpush.bf16.msrb.mxu2 %v10039_v18  ;;  %v9851_v11 = vor.u32 %v12149_v47, %v9848_v59  ;;  %v10566_v18 = vld [vmem:[#allocation16 + $0x868] sm:$0xf]  ;;  %v12209_v47 = vld [vmem:[#allocation16 + $0x4ac] sm:$0xf]  ;;  %v13713_v59 = vpop.f32.mrf.mxu1  ;;  %v10471_v43 = vor.u32 %v12311_v54, %v10470_v21  ;;  %v12275_v21 = vld [vmem:[#allocation16 + $0x6b4] sm:$0xf0] }
 0x7dc   :  { %6065 = vmatpush.bf16.msrb.mxu3 %v9987_v30  ;;  %6079 = vmatpush.bf16.msra.mxu0 %v10371_v33  ;;  %v10184_v30 = vld [vmem:[#allocation16 + $0x598] sm:$0xf0]  ;;  %v12329_v33 = vld [vmem:[#allocation16 + $0x86c] sm:$0xf] }
 0x7dd   :  { %6093 = vmatpush.bf16.msra.mxu1 %v9607_v44  ;;  %6107 = vmatpush.bf16.msrb.mxu2 %v9991_v20  ;;  %v13705_v44 = vpop.f32.mrf.mxu2  ;;  %v10567_v20 = vor.u32 %v12335_v57, %v10566_v18  ;;  %v10187_v37 = vor.u32 %v12233_v1, %v10184_v30  ;;  %v10571_v38 = vor.u32 %v12329_v33, %v10568_v51  ;;  %v12101_v18 = vld [vmem:[#allocation16 + $0x14c] sm:$0xf]  ;;  %v9656_v57 = vld [vmem:[#allocation16 + $0x178] sm:$0xf0]  ;;  %v10374_v51 = vld [vmem:[#allocation16 + $0x6e8] sm:$0xf] }
 0x7de   :  { %v10424_v1 = vld [vmem:[#allocation16 + $0x778] sm:$0xf0]  ;;  %v9659_v33 = vor.u32 %v12101_v18, %v9656_v57 }
 0x7df   :  { %v9512_v18 = vld [vmem:[#allocation16 + $0x58] sm:$0xf0] }
 0x7e0   :  { %6066 = vmatpush.bf16.msrb.mxu3 %v9939_v4  ;;  %6080 = vmatpush.bf16.msra.mxu0 %v10323_v36  ;;  %v12221_v4 = vld [vmem:[#allocation16 + $0x50c] sm:$0xf]  ;;  %v10136_v36 = vld [vmem:[#allocation16 + $0x538] sm:$0xf0] }
 0x7e1   :  { %6094 = vmatpush.bf16.msra.mxu1 %v9559_v31  ;;  %6108 = vmatpush.bf16.msrb.mxu2 %v9943_v34  ;;  %v10519_v31 = vor.u32 %v12323_v35, %v10518_v52  ;;  %v9755_v34 = vor.u32 %v12125_v39, %v9752_v56  ;;  %v10139_v22 = vor.u32 %v12221_v4, %v10136_v36  ;;  %v12185_v39 = vld [vmem:[#allocation16 + $0x3ec] sm:$0xf]  ;;  %v9992_v56 = vld [vmem:[#allocation16 + $0x418] sm:$0xf0]  ;;  %v13721_v49 = vpop.f32.mrf.mxu1 }
 0x7e2   :  { %v10427_v35 = vor.u32 %v12293_v0, %v10424_v1  ;;  %v12281_v4 = vld [vmem:[#allocation16 + $0x6ec] sm:$0xf]  ;;  %v10376_v36 = vld [vmem:[#allocation16 + $0x718] sm:$0xf0]  ;;  %v9995_v54 = vor.u32 %v12185_v39, %v9992_v56  ;;  %v12418_v56 = vld [vmem:[#allocation19 + $0x230] sm:$0xf0] }
 0x7e3   :  { %v9896_v0 = vld [vmem:[#allocation16 + $0x358] sm:$0xf0]  ;;  %v12257_v1 = vld [vmem:[#allocation16 + $0x62c] sm:$0xf] }
 0x7e4   :  { %6067 = vmatpush.bf16.msrb.mxu3 %v9891_v40  ;;  %6081 = vmatpush.bf16.msra.mxu0 %v10275_v62  ;;  %v12305_v40 = vld [vmem:[#allocation16 + $0x7ac] sm:$0xf]  ;;  %v10472_v62 = vld [vmem:[#allocation16 + $0x7d8] sm:$0xf0] }
 0x7e5   :  { %6095 = vmatpush.bf16.msra.mxu1 %v9511_v46  ;;  %6109 = vmatpush.bf16.msrb.mxu2 %v9895_v12  ;;  %v12299_v46 = vld [vmem:[#allocation16 + $0x774] sm:$0xf0]  ;;  %v13715_v12 = vpop.f32.mrf.mxu3 }
 0x7e6   :  { %v10423_v30 = vor.u32 %v12299_v46, %v10422_v3 }
 0x7e7   :  { %6068 = vmatmul.bf16.vlgmr.msrb.gmra.mxu3 %v13651_v42  ;;  %6082 = vmatmul.bf16.vlgmr.msra.gmra.mxu0 %v13653_v2 }
 0x7e8   :  { %6116 = vmatpush.bf16.msra.mxu3 %v10615_v14  ;;  %6130 = vmatpush.bf16.msrb.mxu0 %v9851_v11  ;;  %v10091_v14 = vor.u32 %v12209_v47, %v10088_v61  ;;  %v10475_v11 = vor.u32 %v12305_v40, %v10472_v62  ;;  %v9944_v47 = vld [vmem:[#allocation16 + $0x3b8] sm:$0xf0]  ;;  %v12269_v61 = vld [vmem:[#allocation16 + $0x68c] sm:$0xf] }
 0x7e9   :  { %6144 = vmatpush.bf16.msrb.mxu1 %v10235_v53  ;;  %6158 = vmatpush.bf16.msra.mxu2 %v10619_v8  ;;  %v12197_v53 = vld [vmem:[#allocation16 + $0x44c] sm:$0xf]  ;;  %v13717_v8 = vpop.f32.mrf.mxu2  ;;  %v10328_v40 = vld [vmem:[#allocation16 + $0x6b8] sm:$0xf0]  ;;  %v9947_v57 = vor.u32 %v12173_v27, %v9944_v47 }
 0x7ea   :  { %6096 = vmatmul.bf16.vlgmr.msra.gmra.mxu1 %v13649_v41  ;;  %6110 = vmatmul.bf16.vlgmr.msrb.gmra.mxu2 %v13651_v42  ;;  %v10043_v52 = vor.u32 %v12197_v53, %v10040_v24  ;;  %v10331_v53 = vor.u32 %v12269_v61, %v10328_v40  ;;  %v12161_v24 = vld [vmem:[#allocation16 + $0x32c] sm:$0xf]  ;;  %v10790_v61 = vld [vmem:[#allocation19 + $0x150] sm:$0xf]  ;;  %v12391_v40 = vld [vmem:[#allocation19 + $0x158] sm:$0xf0] }
 0x7ec   :  { %6117 = vmatpush.bf16.msra.mxu3 %v10567_v20  ;;  %6131 = vmatpush.bf16.msrb.mxu0 %v9803_v29  ;;  %v12287_v20 = vld [vmem:[#allocation16 + $0x714] sm:$0xf0]  ;;  %v13719_v29 = vpop.f32.mrf.mxu0 }
 0x7ed   :  { %6145 = vmatpush.bf16.msrb.mxu1 %v10187_v37  ;;  %6159 = vmatpush.bf16.msra.mxu2 %v10571_v38  ;;  %v12089_v37 = vld [vmem:[#allocation16 + $0xec] sm:$0xf]  ;;  %v9608_v38 = vld [vmem:[#allocation16 + $0x118] sm:$0xf0]  ;;  %v10375_v60 = vor.u32 %v12287_v20, %v10374_v51  ;;  %v13723_v62 = vpop.f32.mrf.mxu3  ;;  %v12370_v51 = vld [vmem:[#allocation19 + $0xb0] sm:$0xf0] }
 0x7f0   :  { %6118 = vmatpush.bf16.msra.mxu3 %v10519_v31  ;;  %6132 = vmatpush.bf16.msrb.mxu0 %v9755_v34  ;;  %v9611_v31 = vor.u32 %v12089_v37, %v9608_v38  ;;  %v10326_v34 = vld [vmem:[#allocation16 + $0x688] sm:$0xf]  ;;  %v10898_v37 = vld [vmem:[#allocation19 + $0x228] sm:$0xf] }
 0x7f1   :  { %6146 = vmatpush.bf16.msrb.mxu1 %v10139_v22  ;;  %6160 = vmatpush.bf16.msra.mxu2 %v10523_v55  ;;  %v10379_v22 = vor.u32 %v12281_v4, %v10376_v36  ;;  %v12077_v55 = vld [vmem:[#allocation16 + $0x8c] sm:$0xf]  ;;  %v10327_v3 = vor.u32 %v12275_v21, %v10326_v34  ;;  %v10994_v4 = vld [vmem:[#allocation19 + $0x2e8] sm:$0xf]  ;;  %v12442_v36 = vld [vmem:[#allocation19 + $0x2f0] sm:$0xf0]  ;;  %v13731_v21 = vpop.f32.mrf.mxu1  ;;  %v10899_v27 = vor.u32 %v12418_v56, %v10898_v37 }
 0x7f2   :  { %v9563_v46 = vor.u32 %v12077_v55, %v9560_v7  ;;  %v13729_v34 = vld [vmem:[#allocation17] sm:$0xff]  ;;  %v10694_v55 = vld [vmem:[#allocation19 + $0x90] sm:$0xf]  ;;  %v12367_v7 = vld [vmem:[#allocation19 + $0x98] sm:$0xf0]  ;;  %v10995_v47 = vor.u32 %v12442_v36, %v10994_v4 }
 0x7f3   :  { %v10874_v37 = vld [vmem:[#allocation19 + $0x1f8] sm:$0xf]  ;;  %v12436_v56 = vld [vmem:[#allocation19 + $0x2c0] sm:$0xf0]  ;;  %v4205_v36 = vperm.slane %v13729_v34, 1 }
 0x7f4   :  { %6119 = vmatpush.bf16.msra.mxu3 %v10471_v43  ;;  %6133 = vmatpush.bf16.msrb.mxu0 %v9707_v45  ;;  %v10278_v43 = vld [vmem:[#allocation16 + $0x628] sm:$0xf]  ;;  %v13725_v45 = vpop.f32.mrf.mxu2  ;;  %v13727_v20 = vpop.f32.mrf.mxu0 }
 0x7f5   :  { %6147 = vmatpush.bf16.msrb.mxu1 %v10091_v14  ;;  %6161 = vmatpush.bf16.msra.mxu2 %v10475_v11  ;;  %v12263_v14 = vld [vmem:[#allocation16 + $0x654] sm:$0xf0]  ;;  %v12065_v11 = vld [vmem:[#allocation16 + $0x2c] sm:$0xf] }
 0x7f6   :  { %v10279_v38 = vor.u32 %v12263_v14, %v10278_v43  ;;  %v9515_v39 = vor.u32 %v12065_v11, %v9512_v18  ;;  %v10886_v43 = vld [vmem:[#allocation19 + $0x210] sm:$0xf]  ;;  %v12439_v14 = vld [vmem:[#allocation19 + $0x2d8] sm:$0xf0]  ;;  %v4204_v11 = vperm.slane %v13729_v34, 0  ;;  %v13734_v18 = vpop.f32.mrf.mxu3 }
 0x7f8   :  { %6120 = vmatpush.bf16.msra.mxu3 %v10423_v30  ;;  %6134 = vmatpush.bf16.msrb.mxu0 %v9659_v33  ;;  %v10280_v30 = vld [vmem:[#allocation16 + $0x658] sm:$0xf0]  ;;  %v10706_v33 = vld [vmem:[#allocation19 + $0xa8] sm:$0xf]  ;;  %v5678_v4 = vadd.f32 %v13687_v26, %v4204_v11 }
 0x7f9   :  { %6148 = vmatpush.bf16.msrb.mxu1 %v10043_v52  ;;  %6162 = vmatpush.bf16.msra.mxu2 %v10427_v35  ;;  %v10802_v52 = vld [vmem:[#allocation19 + $0x168] sm:$0xf]  ;;  %v12394_v35 = vld [vmem:[#allocation19 + $0x170] sm:$0xf0] }
 0x7fc   :  { %6121 = vmatpush.bf16.msra.mxu3 %v10375_v60  ;;  %6135 = vmatpush.bf16.msrb.mxu0 %v9611_v31  ;;  %v9899_v60 = vor.u32 %v12161_v24, %v9896_v0  ;;  %v10283_v31 = vor.u32 %v12257_v1, %v10280_v30  ;;  %v10791_v24 = vor.u32 %v12391_v40, %v10790_v61  ;;  %v10682_v0 = vld [vmem:[#allocation19 + $0x78] sm:$0xf]  ;;  %v12364_v1 = vld [vmem:[#allocation19 + $0x80] sm:$0xf0]  ;;  %v13738_v30 = vpop.f32.mrf.mxu0  ;;  %v10862_v61 = vld [vmem:[#allocation19 + $0x1e0] sm:$0xf] }
 0x7fd   :  { %6149 = vmatpush.bf16.msrb.mxu1 %v9995_v54  ;;  %6163 = vmatpush.bf16.msra.mxu2 %v10379_v22  ;;  %v10707_v54 = vor.u32 %v12370_v51, %v10706_v33  ;;  %v10803_v22 = vor.u32 %v12394_v35, %v10802_v52  ;;  %v10778_v52 = vld [vmem:[#allocation19 + $0x138] sm:$0xf]  ;;  %v12388_v35 = vld [vmem:[#allocation19 + $0x140] sm:$0xf0]  ;;  %v10958_v40 = vld [vmem:[#allocation19 + $0x2a0] sm:$0xf] }
 0x800   :  { %6122 = vmatpush.bf16.msra.mxu3 %v10327_v3  ;;  %6136 = vmatpush.bf16.msrb.mxu0 %v9563_v46  ;;  %v12415_v3 = vld [vmem:[#allocation19 + $0x218] sm:$0xf0]  ;;  %v10982_v46 = vld [vmem:[#allocation19 + $0x2d0] sm:$0xf] }
 0x801   :  { %6150 = vmatpush.bf16.msrb.mxu1 %v9947_v57  ;;  %6164 = vmatpush.bf16.msra.mxu2 %v10331_v53  ;;  %v13736_v57 = vpop.f32.mrf.mxu2  ;;  %v10695_v53 = vor.u32 %v12367_v7, %v10694_v55  ;;  %v10887_v33 = vor.u32 %v12415_v3, %v10886_v43  ;;  %v10983_v51 = vor.u32 %v12439_v14, %v10982_v46  ;;  %v12361_v55 = vld [vmem:[#allocation19 + $0x68] sm:$0xf0]  ;;  %v13751_v3 = vpop.f32.mrf.mxu3 }
 0x802   :  { %v5720_v43 = vadd.f32 %v13689_v28, %v4205_v36  ;;  %v12382_v28 = vld [vmem:[#allocation19 + $0x110] sm:$0xf0] }
 0x804   :  { %6123 = vmatpush.bf16.msra.mxu3 %v10279_v38  ;;  %6137 = vmatpush.bf16.msrb.mxu0 %v9515_v39  ;;  %v12412_v38 = vld [vmem:[#allocation19 + $0x200] sm:$0xf0]  ;;  %v10970_v39 = vld [vmem:[#allocation19 + $0x2b8] sm:$0xf] }
 0x805   :  { %6151 = vmatpush.bf16.msrb.mxu1 %v9899_v60  ;;  %6165 = vmatpush.bf16.msra.mxu2 %v10283_v31  ;;  %v5680_v60 = vadd.f32 %v13695_v10, %v4204_v11  ;;  %v13747_v31 = vpop.f32.mrf.mxu1  ;;  %v10875_v7 = vor.u32 %v12412_v38, %v10874_v37  ;;  %v10971_v26 = vor.u32 %v12436_v56, %v10970_v39  ;;  %v10946_v37 = vld [vmem:[#allocation19 + $0x288] sm:$0xf]  ;;  %v4206_v39 = vperm.slane %v13729_v34, 2 }
 0x806   :  { %v5692_v10 = vadd.f32 %v13681_v5, %v5678_v4  ;;  %v5734_v56 = vadd.f32 %v13703_v19, %v5720_v43  ;;  %v10742_v19 = vld [vmem:[#allocation19 + $0xf0] sm:$0xf] }
 0x807   :  { %6124 = vmatmul.bf16.vlgmr.msra.gmra.mxu3 %v13653_v2  ;;  %6138 = vmatmul.bf16.vlgmr.msrb.gmra.mxu0 %v13649_v41  ;;  %v10670_v41 = vld [vmem:[#allocation19 + $0x60] sm:$0xf]  ;;  %v5694_v46 = vadd.f32 %v13691_v58, %v5680_v60  ;;  %v12430_v58 = vld [vmem:[#allocation19 + $0x290] sm:$0xf0]  ;;  %v4207_v60 = vperm.slane %v13729_v34, 3 }
 0x808   :  { %7751 = vmatpush.bf16.msrb.mxu3 %v10707_v54  ;;  %7765 = vmatpush.bf16.msra.mxu0 %v10803_v22  ;;  %v10683_v54 = vor.u32 %v12364_v1, %v10682_v0  ;;  %v10779_v22 = vor.u32 %v12388_v35, %v10778_v52  ;;  %v10671_v11 = vor.u32 %v12361_v55, %v10670_v41  ;;  %v12358_v0 = vld [vmem:[#allocation19 + $0x50] sm:$0xf0]  ;;  %v10850_v52 = vld [vmem:[#allocation19 + $0x1c8] sm:$0xf]  ;;  %v10646_v41 = vld [vmem:[#allocation19 + $0x30] sm:$0xf] }
 0x809   :  { %7779 = vmatpush.bf16.msra.mxu1 %v10899_v27  ;;  %7793 = vmatpush.bf16.msrb.mxu2 %v10995_v47  ;;  %v10766_v27 = vld [vmem:[#allocation19 + $0x120] sm:$0xf]  ;;  %v12385_v47 = vld [vmem:[#allocation19 + $0x128] sm:$0xf0]  ;;  %v13754_v14 = vpop.f32.mrf.mxu2  ;;  %v5722_v1 = vadd.f32 %v13697_v48, %v4205_v36  ;;  %v12406_v35 = vld [vmem:[#allocation19 + $0x1d0] sm:$0xf0]  ;;  %v13758_v38 = vadd.f32 %v13685_v32, %v5692_v10  ;;  %v13763_v48 = vpop.f32.mrf.mxu0  ;;  %v13766_v36 = vadd.f32 %v13693_v6, %v5694_v46 }
 0x80a   :  { %6152 = vmatmul.bf16.vlgmr.msrb.gmra.mxu1 %v13651_v42  ;;  %6166 = vmatmul.bf16.vlgmr.msra.gmra.mxu2 %v13653_v2  ;;  %v12409_v42 = vld [vmem:[#allocation19 + $0x1e8] sm:$0xf0]  ;;  %v12355_v32 = vld [vmem:[#allocation19 + $0x38] sm:$0xf0]  ;;  %v10851_v55 = vor.u32 %v12406_v35, %v10850_v52  ;;  %v10934_v6 = vld [vmem:[#allocation19 + $0x270] sm:$0xf]  ;;  %v5806_v46 = vadd.f32 %v13727_v20, %v4207_v60 }
 0x80b   :  { %v12433_v2 = vld [vmem:[#allocation19 + $0x2a8] sm:$0xf0]  ;;  %v5736_v4 = vadd.f32 %v13715_v12, %v5722_v1  ;;  %v10838_v12 = vld [vmem:[#allocation19 + $0x1b0] sm:$0xf]  ;;  %v6184_v43 = vmax.f32 %v13766_v36, 0.0  ;;  %v5764_v1 = vadd.f32 %v13713_v59, %v4206_v39 }
 0x80c   :  { %7752 = vmatpush.bf16.msrb.mxu3 %v10695_v53  ;;  %7766 = vmatpush.bf16.msra.mxu0 %v10791_v24  ;;  %v10767_v53 = vor.u32 %v12385_v47, %v10766_v27  ;;  %v10658_v24 = vld [vmem:[#allocation19 + $0x48] sm:$0xf]  ;;  %v10959_v5 = vor.u32 %v12433_v2, %v10958_v40  ;;  %v12403_v47 = vld [vmem:[#allocation19 + $0x1b8] sm:$0xf0]  ;;  %v5762_v40 = vadd.f32 %v13701_v13, %v4206_v39  ;;  %v12400_v52 = vld [vmem:[#allocation19 + $0x1a0] sm:$0xf0] }
 0x80d   :  { %7780 = vmatpush.bf16.msra.mxu1 %v10887_v33  ;;  %7794 = vmatpush.bf16.msrb.mxu2 %v10983_v51  ;;  %v10863_v33 = vor.u32 %v12409_v42, %v10862_v61  ;;  %v10754_v51 = vld [vmem:[#allocation19 + $0x108] sm:$0xf]  ;;  %v13769_v27 = vpop.f32.mrf.mxu1  ;;  %v12427_v61 = vld [vmem:[#allocation19 + $0x278] sm:$0xf0]  ;;  %v6172_v42 = vmax.f32 %v13758_v38, 0.0  ;;  %v13774_v2 = vadd.f32 %v13699_v9, %v5734_v56  ;;  %v13777_v10 = vadd.f32 %v13709_v50, %v5736_v4 }
 0x80e   :  { %v10839_v9 = vor.u32 %v12403_v47, %v10838_v12  ;;  %v10935_v13 = vor.u32 %v12427_v61, %v10934_v6  ;;  %v10730_v50 = vld [vmem:[#allocation19 + $0xd8] sm:$0xf]  ;;  %v5778_v39 = vadd.f32 %v13717_v8, %v5764_v1  ;;  %v5804_v56 = vadd.f32 %v13719_v29, %v4207_v60  ;;  %v10814_v12 = vld [vmem:[#allocation19 + $0x180] sm:$0xf]  ;;  %v12397_v29 = vld [vmem:[#allocation19 + $0x188] sm:$0xf0] }
 0x80f   :  { %v10922_v35 = vld [vmem:[#allocation19 + $0x258] sm:$0xf]  ;;  %v6185_v59 = vmax.f32 %v13777_v10, 0.0  ;;  %v10910_v60 = vld [vmem:[#allocation19 + $0x240] sm:$0xf] }
 0x810   :  { %7753 = vmatpush.bf16.msrb.mxu3 %v10683_v54  ;;  %7767 = vmatpush.bf16.msra.mxu0 %v10779_v22  ;;  %v10659_v54 = vor.u32 %v12358_v0, %v10658_v24  ;;  %v10755_v22 = vor.u32 %v12382_v28, %v10754_v51  ;;  %v10634_v24 = vld [vmem:[#allocation19 + $0x18] sm:$0xf]  ;;  %v12352_v0 = vld [vmem:[#allocation19 + $0x20] sm:$0xf0]  ;;  %v5776_v28 = vadd.f32 %v13705_v44, %v5762_v40  ;;  %v12421_v61 = vld [vmem:[#allocation19 + $0x248] sm:$0xf0] }
 0x811   :  { %7781 = vmatpush.bf16.msra.mxu1 %v10875_v7  ;;  %7795 = vmatpush.bf16.msrb.mxu2 %v10971_v26  ;;  %v10947_v7 = vor.u32 %v12430_v58, %v10946_v37  ;;  %v12379_v26 = vld [vmem:[#allocation19 + $0xf8] sm:$0xf0]  ;;  %v10826_v51 = vld [vmem:[#allocation19 + $0x198] sm:$0xf]  ;;  %v13785_v20 = vpop.f32.mrf.mxu2  ;;  %v12424_v37 = vld [vmem:[#allocation19 + $0x260] sm:$0xf0]  ;;  %v13791_v4 = vpop.f32.mrf.mxu0  ;;  %v10635_v44 = vor.u32 %v12352_v0, %v10634_v24  ;;  %v5792_v47 = vadd.f32 %v13734_v18, %v5778_v39 }
 0x812   :  { %v6173_v58 = vmax.f32 %v13774_v2, 0.0  ;;  %v10923_v8 = vor.u32 %v12424_v37, %v10922_v35  ;;  %v11090_v40 = vld [vmem:[#allocation19 + $0x3a8] sm:$0xf] }
 0x813   :  { %v11282_v24 = vld [vmem:[#allocation19 + $0x528] sm:$0xf] }
 0x814   :  { %7754 = vmatpush.bf16.msrb.mxu3 %v10671_v11  ;;  %7768 = vmatpush.bf16.msra.mxu0 %v10767_v53  ;;  %v10647_v11 = vor.u32 %v12355_v32, %v10646_v41  ;;  %v10743_v53 = vor.u32 %v12379_v26, %v10742_v19  ;;  %v12349_v32 = vld [vmem:[#allocation19 + $0x8] sm:$0xf0]  ;;  %v5790_v19 = vadd.f32 %v13723_v62, %v5776_v28  ;;  %v12490_v62 = vld [vmem:[#allocation19 + $0x470] sm:$0xf0] }
 0x815   :  { %7782 = vmatpush.bf16.msra.mxu1 %v10863_v33  ;;  %7796 = vmatpush.bf16.msrb.mxu2 %v10959_v5  ;;  %v13782_v33 = vpop.f32.mrf.mxu3  ;;  %v12376_v5 = vld [vmem:[#allocation19 + $0xe0] sm:$0xf0]  ;;  %v10827_v26 = vor.u32 %v12400_v52, %v10826_v51  ;;  %v13797_v6 = vpop.f32.mrf.mxu1  ;;  %v10815_v51 = vor.u32 %v12397_v29, %v10814_v12  ;;  %v10911_v28 = vor.u32 %v12421_v61, %v10910_v60  ;;  %v11258_v61 = vld [vmem:[#allocation19 + $0x4f8] sm:$0xf] }
 0x816   :  { %v10731_v41 = vor.u32 %v12376_v5, %v10730_v50  ;;  %v12538_v50 = vld [vmem:[#allocation19 + $0x5f0] sm:$0xf0]  ;;  %v6174_v18 = vmax.f32 %v5790_v19, 0.0  ;;  %v12535_v19 = vld [vmem:[#allocation19 + $0x5d8] sm:$0xf0] }
 0x818   :  { %7755 = vmatpush.bf16.msrb.mxu3 %v10659_v54  ;;  %7769 = vmatpush.bf16.msra.mxu0 %v10755_v22  ;;  %v10622_v54 = vld [vmem:[#allocation19] sm:$0xf]  ;;  %v5820_v22 = vadd.f32 %v13731_v21, %v5806_v46  ;;  %v12466_v46 = vld [vmem:[#allocation19 + $0x3b0] sm:$0xf0] }
 0x819   :  { %7783 = vmatpush.bf16.msra.mxu1 %v10851_v55  ;;  %7797 = vmatpush.bf16.msrb.mxu2 %v10947_v7  ;;  %v10718_v55 = vld [vmem:[#allocation19 + $0xc0] sm:$0xf]  ;;  %v12373_v7 = vld [vmem:[#allocation19 + $0xc8] sm:$0xf0]  ;;  %v10623_v0 = vor.u32 %v12349_v32, %v10622_v54  ;;  %v13803_v35 = vpop.f32.mrf.mxu2  ;;  %v11091_v37 = vor.u32 %v12466_v46, %v11090_v40  ;;  %v12463_v54 = vld [vmem:[#allocation19 + $0x398] sm:$0xf0]  ;;  %v13817_v29 = vpop.f32.mrf.mxu0 }
 0x81a   :  { %v5834_v21 = vadd.f32 %v13736_v57, %v5820_v22  ;;  %v10719_v1 = vor.u32 %v12373_v7, %v10718_v55  ;;  %v12487_v32 = vld [vmem:[#allocation19 + $0x458] sm:$0xf0]  ;;  %v11270_v55 = vld [vmem:[#allocation19 + $0x510] sm:$0xf]  ;;  %v12508_v46 = vld [vmem:[#allocation19 + $0x500] sm:$0xf0] }
 0x81b   :  { %v11366_v7 = vld [vmem:[#allocation19 + $0x5d0] sm:$0xf] }
 0x81c   :  { %7756 = vmatpush.bf16.msrb.mxu3 %v10647_v11  ;;  %7770 = vmatpush.bf16.msra.mxu0 %v10743_v53  ;;  %v5818_v11 = vadd.f32 %v13721_v49, %v5804_v56  ;;  %v11186_v53 = vld [vmem:[#allocation19 + $0x468] sm:$0xf]  ;;  %v6186_v49 = vmax.f32 %v5792_v47, 0.0  ;;  %v6187_v52 = vmax.f32 %v5834_v21, 0.0  ;;  %v11078_v56 = vld [vmem:[#allocation19 + $0x390] sm:$0xf] }
 0x81d   :  { %7784 = vmatpush.bf16.msra.mxu1 %v10839_v9  ;;  %7798 = vmatpush.bf16.msrb.mxu2 %v10935_v13  ;;  %v12514_v9 = vld [vmem:[#allocation19 + $0x530] sm:$0xf0]  ;;  %v11378_v13 = vld [vmem:[#allocation19 + $0x5e8] sm:$0xf]  ;;  %v13801_v5 = vpop.f32.mrf.mxu3  ;;  %v11187_v39 = vor.u32 %v12490_v62, %v11186_v53  ;;  %v4208_v47 = vperm.slane %v13729_v34, 4  ;;  %v11079_v38 = vor.u32 %v12463_v54, %v11078_v56  ;;  %v13824_v40 = vpop.f32.mrf.mxu1 }
 0x81e   :  { %v5832_v57 = vadd.f32 %v13725_v45, %v5818_v11  ;;  %v11283_v22 = vor.u32 %v12514_v9, %v11282_v24  ;;  %v12511_v45 = vld [vmem:[#allocation19 + $0x518] sm:$0xf0]  ;;  %v13819_v60 = vpack.c.bf16 %v6186_v49, %v6174_v18  ;;  %v12484_v21 = vld [vmem:[#allocation19 + $0x440] sm:$0xf0]  ;;  %v11354_v11 = vld [vmem:[#allocation19 + $0x5b8] sm:$0xf] }
 0x81f   :  { %v11271_v10 = vor.u32 %v12511_v45, %v11270_v55  ;;  %v12532_v53 = vld [vmem:[#allocation19 + $0x5c0] sm:$0xf0]  ;;  %v11150_v18 = vld [vmem:[#allocation19 + $0x420] sm:$0xf]  ;;  %v5848_v49 = vadd.f32 %v13782_v33, %v4208_v47  ;;  %v12529_v56 = vld [vmem:[#allocation19 + $0x5a8] sm:$0xf0] }
 0x820   :  { %7757 = vmatpush.bf16.msrb.mxu3 %v10635_v44  ;;  %7771 = vmatpush.bf16.msra.mxu0 %v10731_v41  ;;  %v11379_v44 = vor.u32 %v12538_v50, %v11378_v13  ;;  %v11174_v41 = vld [vmem:[#allocation19 + $0x450] sm:$0xf]  ;;  %v6175_v12 = vmax.f32 %v5832_v57, 0.0  ;;  %v11259_v13 = vor.u32 %v12508_v46, %v11258_v61  ;;  %v11355_v50 = vor.u32 %v12532_v53, %v11354_v11  ;;  %v12481_v57 = vld [vmem:[#allocation19 + $0x428] sm:$0xf0] }
 0x821   :  { %7785 = vmatpush.bf16.msra.mxu1 %v10827_v26  ;;  %7799 = vmatpush.bf16.msrb.mxu2 %v10923_v8  ;;  %v13809_v26 = vpack.c.bf16 %v6184_v43, %v6172_v42  ;;  %v13815_v8 = vpack.c.bf16 %v6185_v59, %v6173_v58  ;;  %v11175_v36 = vor.u32 %v12487_v32, %v11174_v41  ;;  %v11066_v42 = vld [vmem:[#allocation19 + $0x378] sm:$0xf]  ;;  %v12460_v43 = vld [vmem:[#allocation19 + $0x380] sm:$0xf0]  ;;  %v11042_v32 = vld [vmem:[#allocation19 + $0x348] sm:$0xf] }
 0x822   :  { %v13822_v2 = vpack.c.bf16 %v6187_v52, %v6175_v12  ;;  %v11367_v58 = vor.u32 %v12535_v19, %v11366_v7  ;;  %v11162_v59 = vld [vmem:[#allocation19 + $0x438] sm:$0xf]  ;;  %v11067_v62 = vor.u32 %v12460_v43, %v11066_v42  ;;  %v13834_v52 = vpop.f32.mrf.mxu2  ;;  %v11151_v41 = vor.u32 %v12481_v57, %v11150_v18  ;;  %v12454_v55 = vld [vmem:[#allocation19 + $0x350] sm:$0xf0]  ;;  %v11138_v7 = vld [vmem:[#allocation19 + $0x408] sm:$0xf] }
 0x823   :  { %v11163_v24 = vor.u32 %v12484_v21, %v11162_v59  ;;  %v12478_v33 = vld [vmem:[#allocation19 + $0x410] sm:$0xf0]  ;;  %v11234_v19 = vld [vmem:[#allocation19 + $0x4c8] sm:$0xf]  ;;  %v11043_v59 = vor.u32 %v12454_v55, %v11042_v32  ;;  %v11030_v61 = vld [vmem:[#allocation19 + $0x330] sm:$0xf] }
 0x824   :  { %7758 = vmatpush.bf16.msrb.mxu3 %v10623_v0  ;;  %7772 = vmatpush.bf16.msra.mxu0 %v10719_v1  ;;  %v11054_v0 = vld [vmem:[#allocation19 + $0x360] sm:$0xf]  ;;  %v12457_v1 = vld [vmem:[#allocation19 + $0x368] sm:$0xf0]  ;;  %v5971_v54 = vpop.f32.mrf.mxu0  ;;  %v11330_v42 = vld [vmem:[#allocation19 + $0x588] sm:$0xf]  ;;  %v11139_v21 = vor.u32 %v12478_v33, %v11138_v7 }
 0x825   :  { %7786 = vmatpush.bf16.msra.mxu1 %v10815_v51  ;;  %7800 = vmatpush.bf16.msrb.mxu2 %v10911_v28  ;;  %v13830_v9 = vpop.f32.mrf.mxu3  ;;  %v11246_v51 = vld [vmem:[#allocation19 + $0x4e0] sm:$0xf]  ;;  %v5846_v28 = vadd.f32 %v13751_v3, %v4208_v47  ;;  %v5862_v47 = vadd.f32 %v13763_v48, %v5848_v49  ;;  %v12526_v43 = vld [vmem:[#allocation19 + $0x590] sm:$0xf0]  ;;  %v12451_v46 = vld [vmem:[#allocation19 + $0x338] sm:$0xf0] }
 0x826   :  { %v11126_v11 = vld [vmem:[#allocation19 + $0x3f0] sm:$0xf]  ;;  %v12523_v57 = vld [vmem:[#allocation19 + $0x578] sm:$0xf0]  ;;  %v12472_v32 = vld [vmem:[#allocation19 + $0x3e0] sm:$0xf0] }
 0x827   :  { %7759 = vmatmul.bf16.vlgmr.msrb.gmra.mxu3 %v13809_v26  ;;  %7773 = vmatmul.bf16.vlgmr.msra.gmra.mxu0 %v13815_v8  ;;  %v5860_v12 = vadd.f32 %v13738_v30, %v5846_v28  ;;  %v11318_v18 = vld [vmem:[#allocation19 + $0x570] sm:$0xf]  ;;  %v11306_v7 = vld [vmem:[#allocation19 + $0x558] sm:$0xf]  ;;  %v12520_v33 = vld [vmem:[#allocation19 + $0x560] sm:$0xf0] }
 0x828   :  { %7807 = vmatpush.bf16.msra.mxu3 %v11091_v37  ;;  %7821 = vmatpush.bf16.msrb.mxu0 %v11187_v39  ;;  %v12505_v37 = vld [vmem:[#allocation19 + $0x4e8] sm:$0xf0]  ;;  %v11342_v39 = vld [vmem:[#allocation19 + $0x5a0] sm:$0xf] }
 0x829   :  { %7835 = vmatpush.bf16.msrb.mxu1 %v11283_v22  ;;  %7849 = vmatpush.bf16.msra.mxu2 %v11379_v44  ;;  %v4209_v22 = vperm.slane %v13729_v34, 5  ;;  %v11055_v44 = vor.u32 %v12457_v1, %v11054_v0  ;;  %v11247_v45 = vor.u32 %v12505_v37, %v11246_v51  ;;  %v11343_v3 = vor.u32 %v12529_v56, %v11342_v39  ;;  %v11222_v0 = vld [vmem:[#allocation19 + $0x4b0] sm:$0xf]  ;;  %v12499_v1 = vld [vmem:[#allocation19 + $0x4b8] sm:$0xf0] }
 0x82a   :  { %7787 = vmatmul.bf16.vlgmr.msra.gmra.mxu1 %v13819_v60  ;;  %7801 = vmatmul.bf16.vlgmr.msrb.gmra.mxu2 %v13822_v2  ;;  %v11031_v37 = vor.u32 %v12451_v46, %v11030_v61  ;;  %v11018_v39 = vld [vmem:[#allocation19 + $0x318] sm:$0xf]  ;;  %v11102_v61 = vld [vmem:[#allocation19 + $0x3c0] sm:$0xf]  ;;  %v11307_v46 = vor.u32 %v12520_v33, %v11306_v7  ;;  %v12634_v33 = vld [vmem:[#allocation19 + $0x8f0] sm:$0xf0] }
 0x82b   :  { %v5888_v53 = vadd.f32 %v13754_v14, %v4209_v22  ;;  %v5890_v51 = vadd.f32 %v13785_v20, %v4209_v22  ;;  %v11319_v22 = vor.u32 %v12523_v57, %v11318_v18  ;;  %v11570_v18 = vld [vmem:[#allocation19 + $0x768] sm:$0xf]  ;;  %v12586_v57 = vld [vmem:[#allocation19 + $0x770] sm:$0xf0] }
 0x82c   :  { %7808 = vmatpush.bf16.msra.mxu3 %v11079_v38  ;;  %7822 = vmatpush.bf16.msrb.mxu0 %v11175_v36  ;;  %v5985_v38 = vpop.f32.mrf.mxu1  ;;  %v12502_v36 = vld [vmem:[#allocation19 + $0x4d0] sm:$0xf0]  ;;  %v5973_v49 = vpop.f32.mrf.mxu0 }
 0x82d   :  { %7836 = vmatpush.bf16.msrb.mxu1 %v11271_v10  ;;  %7850 = vmatpush.bf16.msra.mxu2 %v11367_v58  ;;  %v4210_v10 = vperm.slane %v13729_v34, 6  ;;  %v4211_v58 = vperm.slane %v13729_v34, 7  ;;  %v5957_v30 = vpop.f32.mrf.mxu3  ;;  %v11235_v48 = vor.u32 %v12502_v36, %v11234_v19  ;;  %v13846_v34 = vadd.f32 %v13769_v27, %v5862_v47  ;;  %v11114_v27 = vld [vmem:[#allocation19 + $0x3d8] sm:$0xf] }
 0x82e   :  { %v5902_v28 = vadd.f32 %v13801_v5, %v5888_v53  ;;  %v5904_v55 = vadd.f32 %v13830_v9, %v5890_v51  ;;  %v11115_v47 = vor.u32 %v12472_v32, %v11114_v27  ;;  %v12493_v53 = vld [vmem:[#allocation19 + $0x488] sm:$0xf0]  ;;  %v11571_v27 = vor.u32 %v12586_v57, %v11570_v18  ;;  %v11558_v32 = vld [vmem:[#allocation19 + $0x750] sm:$0xf]  ;;  %v13874_v57 = vld [vmem:[#allocation17 + $0x8] sm:$0xf] }
 0x82f   :  { %v5930_v14 = vadd.f32 %v13797_v6, %v4210_v10  ;;  %v5972_v56 = vadd.f32 %v5971_v54, %v4211_v58  ;;  %v5974_v20 = vadd.f32 %v5973_v49, %v4211_v58  ;;  %v11210_v6 = vld [vmem:[#allocation19 + $0x498] sm:$0xf]  ;;  %v5932_v54 = vadd.f32 %v13824_v40, %v4210_v10 }
 0x830   :  { %7809 = vmatpush.bf16.msra.mxu3 %v11067_v62  ;;  %7823 = vmatpush.bf16.msrb.mxu0 %v11163_v24  ;;  %v11331_v62 = vor.u32 %v12526_v43, %v11330_v42  ;;  %v12475_v24 = vld [vmem:[#allocation19 + $0x3f8] sm:$0xf0]  ;;  %v13856_v19 = vadd.f32 %v13791_v4, %v5902_v28  ;;  %v5918_v40 = vadd.f32 %v13817_v29, %v5904_v55 }
 0x831   :  { %7837 = vmatpush.bf16.msrb.mxu1 %v11259_v13  ;;  %7851 = vmatpush.bf16.msra.mxu2 %v11355_v50  ;;  %v13843_v13 = vadd.f32 %v13747_v31, %v5860_v12  ;;  %v5999_v50 = vpop.f32.mrf.mxu2  ;;  %v11127_v31 = vor.u32 %v12475_v24, %v11126_v11  ;;  %v5944_v12 = vadd.f32 %v13803_v35, %v5930_v14  ;;  %v12469_v35 = vld [vmem:[#allocation19 + $0x3c8] sm:$0xf0]  ;;  %v11198_v11 = vld [vmem:[#allocation19 + $0x480] sm:$0xf]  ;;  %v12583_v55 = vld [vmem:[#allocation19 + $0x758] sm:$0xf0] }
 0x832   :  { %v5946_v36 = vadd.f32 %v13834_v52, %v5932_v54  ;;  %v5986_v42 = vadd.f32 %v5985_v38, %v5972_v56  ;;  %v11294_v24 = vld [vmem:[#allocation19 + $0x540] sm:$0xf]  ;;  %v6177_v29 = vmax.f32 %v13856_v19, 0.0  ;;  %v11103_v28 = vor.u32 %v12469_v35, %v11102_v61  ;;  %v12559_v56 = vld [vmem:[#allocation19 + $0x698] sm:$0xf0] }
 0x833   :  { %v6176_v5 = vmax.f32 %v13843_v13, 0.0  ;;  %v6189_v49 = vmax.f32 %v5918_v40, 0.0  ;;  %v12631_v61 = vld [vmem:[#allocation19 + $0x8d8] sm:$0xf0]  ;;  %v12553_v35 = vld [vmem:[#allocation19 + $0x668] sm:$0xf0] }
 0x834   :  { %7810 = vmatpush.bf16.msra.mxu3 %v11055_v44  ;;  %7824 = vmatpush.bf16.msrb.mxu0 %v11151_v41  ;;  %v11223_v44 = vor.u32 %v12499_v1, %v11222_v0  ;;  %v12448_v41 = vld [vmem:[#allocation19 + $0x320] sm:$0xf0]  ;;  %v5987_v43 = vpop.f32.mrf.mxu1  ;;  %v6000_v52 = vadd.f32 %v5999_v50, %v5986_v42  ;;  %v12517_v0 = vld [vmem:[#allocation19 + $0x548] sm:$0xf0]  ;;  %v11474_v1 = vld [vmem:[#allocation19 + $0x6a8] sm:$0xf] }
 0x835   :  { %7838 = vmatpush.bf16.msrb.mxu1 %v11247_v45  ;;  %7852 = vmatpush.bf16.msra.mxu2 %v11343_v3  ;;  %v12496_v45 = vld [vmem:[#allocation19 + $0x4a0] sm:$0xf0]  ;;  %v6188_v3 = vmax.f32 %v13846_v34, 0.0  ;;  %v11019_v9 = vor.u32 %v12448_v41, %v11018_v39  ;;  %v5988_v10 = vadd.f32 %v5987_v43, %v5974_v20  ;;  %v5959_v4 = vpop.f32.mrf.mxu3  ;;  %v12562_v34 = vld [vmem:[#allocation19 + $0x6b0] sm:$0xf0]  ;;  %v11295_v50 = vor.u32 %v12517_v0, %v11294_v24 }
 0x836   :  { %v11211_v58 = vor.u32 %v12496_v45, %v11210_v6  ;;  %v5960_v38 = vadd.f32 %v5959_v4, %v5946_v36  ;;  %v11462_v39 = vld [vmem:[#allocation19 + $0x690] sm:$0xf]  ;;  %v11475_v41 = vor.u32 %v12562_v34, %v11474_v1  ;;  %v11666_v20 = vld [vmem:[#allocation19 + $0x828] sm:$0xf]  ;;  %v13868_v19 = vpack.c.bf16 %v6189_v49, %v6177_v29  ;;  %v12556_v42 = vld [vmem:[#allocation19 + $0x680] sm:$0xf0] }
 0x837   :  { %v11762_v6 = vld [vmem:[#allocation19 + $0x8e8] sm:$0xf]  ;;  %v13862_v45 = vpack.c.bf16 %v6188_v3, %v6176_v5  ;;  %v11463_v36 = vor.u32 %v12559_v56, %v11462_v39  ;;  %v11559_v5 = vor.u32 %v12583_v55, %v11558_v32  ;;  %v11546_v3 = vld [vmem:[#allocation19 + $0x738] sm:$0xf]  ;;  %v12580_v43 = vld [vmem:[#allocation19 + $0x740] sm:$0xf0] }
 0x838   :  { %7811 = vmatpush.bf16.msra.mxu3 %v11043_v59  ;;  %7825 = vmatpush.bf16.msrb.mxu0 %v11139_v21  ;;  %v11006_v59 = vld [vmem:[#allocation19 + $0x300] sm:$0xf]  ;;  %v12445_v21 = vld [vmem:[#allocation19 + $0x308] sm:$0xf0]  ;;  %v6190_v51 = vmax.f32 %v5960_v38, 0.0 }
 0x839   :  { %7839 = vmatpush.bf16.msrb.mxu1 %v11235_v48  ;;  %7853 = vmatpush.bf16.msra.mxu2 %v11331_v62  ;;  %v5958_v48 = vadd.f32 %v5957_v30, %v5944_v12  ;;  %v6001_v62 = vpop.f32.mrf.mxu2  ;;  %v11007_v14 = vor.u32 %v12445_v21, %v11006_v59  ;;  %v11199_v30 = vor.u32 %v12493_v53, %v11198_v11  ;;  %v11450_v12 = vld [vmem:[#allocation19 + $0x678] sm:$0xf]  ;;  %v12607_v59 = vld [vmem:[#allocation19 + $0x818] sm:$0xf0]  ;;  %v11750_v21 = vld [vmem:[#allocation19 + $0x8d0] sm:$0xf] }
 0x83a   :  { %v6002_v13 = vadd.f32 %v6001_v62, %v5988_v10  ;;  %v11751_v10 = vor.u32 %v12631_v61, %v11750_v21  ;;  %v11451_v4 = vor.u32 %v12556_v42, %v11450_v12  ;;  %v11547_v11 = vor.u32 %v12580_v43, %v11546_v3  ;;  %v11534_v53 = vld [vmem:[#allocation19 + $0x720] sm:$0xf]  ;;  %v12604_v38 = vld [vmem:[#allocation19 + $0x800] sm:$0xf0]  ;;  %v11738_v62 = vld [vmem:[#allocation19 + $0x8b8] sm:$0xf] }
 0x83b   :  { %v12628_v24 = vld [vmem:[#allocation19 + $0x8c0] sm:$0xf0]  ;;  %v11426_v0 = vld [vmem:[#allocation19 + $0x648] sm:$0xf]  ;;  %v12550_v1 = vld [vmem:[#allocation19 + $0x650] sm:$0xf0] }
 0x83c   :  { %7812 = vmatpush.bf16.msra.mxu3 %v11031_v37  ;;  %7826 = vmatpush.bf16.msrb.mxu0 %v11127_v31  ;;  %v6191_v37 = vmax.f32 %v6002_v13, 0.0  ;;  %v6178_v31 = vmax.f32 %v5958_v48, 0.0  ;;  %v12577_v48 = vld [vmem:[#allocation19 + $0x728] sm:$0xf0]  ;;  %v11739_v34 = vor.u32 %v12628_v24, %v11738_v62  ;;  %v11414_v39 = vld [vmem:[#allocation19 + $0x630] sm:$0xf] }
 0x83d   :  { %7840 = vmatpush.bf16.msrb.mxu1 %v11223_v44  ;;  %7854 = vmatpush.bf16.msra.mxu2 %v11319_v22  ;;  %v6179_v44 = vmax.f32 %v6000_v52, 0.0  ;;  %v12610_v22 = vld [vmem:[#allocation19 + $0x830] sm:$0xf0]  ;;  %v11642_v52 = vld [vmem:[#allocation19 + $0x7f8] sm:$0xf]  ;;  %v11535_v29 = vor.u32 %v12577_v48, %v11534_v53 }
 0x83e   :  { %v13864_v54 = vpack.c.bf16 %v6190_v51, %v6178_v31  ;;  %v11643_v13 = vor.u32 %v12604_v38, %v11642_v52  ;;  %v11522_v51 = vld [vmem:[#allocation19 + $0x708] sm:$0xf]  ;;  %v12601_v49 = vld [vmem:[#allocation19 + $0x7e8] sm:$0xf0]  ;;  %v11510_v32 = vld [vmem:[#allocation19 + $0x6f0] sm:$0xf] }
 0x83f   :  { %v13866_v7 = vpack.c.bf16 %v6191_v37, %v6179_v44  ;;  %v11726_v37 = vld [vmem:[#allocation19 + $0x8a0] sm:$0xf]  ;;  %v11427_v44 = vor.u32 %v12550_v1, %v11426_v0  ;;  %v12571_v55 = vld [vmem:[#allocation19 + $0x6f8] sm:$0xf0]  ;;  %v11714_v12 = vld [vmem:[#allocation19 + $0x888] sm:$0xf] }
 0x840   :  { %7813 = vmatpush.bf16.msra.mxu3 %v11019_v9  ;;  %7827 = vmatpush.bf16.msrb.mxu0 %v11115_v47  ;;  %v11667_v9 = vor.u32 %v12610_v22, %v11666_v20  ;;  %v11763_v47 = vor.u32 %v12634_v33, %v11762_v6  ;;  %v11618_v6 = vld [vmem:[#allocation19 + $0x7c8] sm:$0xf]  ;;  %v12598_v33 = vld [vmem:[#allocation19 + $0x7d0] sm:$0xf0]  ;;  %v11498_v21 = vld [vmem:[#allocation19 + $0x6d8] sm:$0xf] }
 0x841   :  { %7841 = vmatpush.bf16.msrb.mxu1 %v11211_v58  ;;  %7855 = vmatpush.bf16.msra.mxu2 %v11307_v46  ;;  %v11654_v58 = vld [vmem:[#allocation19 + $0x810] sm:$0xf]  ;;  %v11438_v46 = vld [vmem:[#allocation19 + $0x660] sm:$0xf]  ;;  %v11619_v42 = vor.u32 %v12598_v33, %v11618_v6  ;;  %v12568_v61 = vld [vmem:[#allocation19 + $0x6e0] sm:$0xf0] }
 0x842   :  { %v11655_v40 = vor.u32 %v12607_v59, %v11654_v58  ;;  %v11439_v18 = vor.u32 %v12553_v35, %v11438_v46  ;;  %v12544_v58 = vld [vmem:[#allocation19 + $0x620] sm:$0xf0]  ;;  %v11511_v59 = vor.u32 %v12571_v55, %v11510_v32  ;;  %v12619_v46 = vld [vmem:[#allocation19 + $0x878] sm:$0xf0]  ;;  %v11390_v35 = vld [vmem:[#allocation19 + $0x600] sm:$0xf]  ;;  %v11499_v62 = vor.u32 %v12568_v61, %v11498_v21 }
 0x843   :  { %v12369_v24 = vld [vmem:[#allocation19 + $0xac] sm:$0xf]  ;;  %v10708_v0 = vld [vmem:[#allocation19 + $0xb4] sm:$0xf0]  ;;  %v11486_v1 = vld [vmem:[#allocation19 + $0x6c0] sm:$0xf] }
 0x844   :  { %7814 = vmatpush.bf16.msra.mxu3 %v11007_v14  ;;  %7828 = vmatpush.bf16.msrb.mxu0 %v11103_v28  ;;  %v12574_v14 = vld [vmem:[#allocation19 + $0x710] sm:$0xf0]  ;;  %v11630_v28 = vld [vmem:[#allocation19 + $0x7e0] sm:$0xf]  ;;  %v6027_v20 = vpop.f32.mrf.mxu0  ;;  %v10996_v21 = vld [vmem:[#allocation19 + $0x2f4] sm:$0xf0] }
 0x845   :  { %7842 = vmatpush.bf16.msrb.mxu1 %v11199_v30  ;;  %7856 = vmatpush.bf16.msra.mxu2 %v11295_v50  ;;  %v12625_v30 = vld [vmem:[#allocation19 + $0x8a8] sm:$0xf0]  ;;  %v4212_v50 = vperm.slane %v13874_v57, 0  ;;  %v11631_v56 = vor.u32 %v12601_v49, %v11630_v28  ;;  %v10804_v49 = vld [vmem:[#allocation19 + $0x174] sm:$0xf0] }
 0x846   :  { %v11727_v31 = vor.u32 %v12625_v30, %v11726_v37  ;;  %v12393_v28 = vld [vmem:[#allocation19 + $0x16c] sm:$0xf]  ;;  %v12616_v37 = vld [vmem:[#allocation19 + $0x860] sm:$0xf0]  ;;  %v12366_v32 = vld [vmem:[#allocation19 + $0x94] sm:$0xf] }
 0x847   :  { %7815 = vmatmul.bf16.vlgmr.msra.gmra.mxu3 %v13862_v45  ;;  %7829 = vmatmul.bf16.vlgmr.msrb.gmra.mxu0 %v13868_v19  ;;  %v10696_v55 = vld [vmem:[#allocation19 + $0x9c] sm:$0xf0]  ;;  %v10807_v33 = vor.u32 %v12393_v28, %v10804_v49  ;;  %v10768_v28 = vld [vmem:[#allocation19 + $0x12c] sm:$0xf0] }
 0x848   :  { %7863 = vmatpush.bf16.msrb.mxu3 %v11475_v41  ;;  %7877 = vmatpush.bf16.msra.mxu0 %v11571_v27  ;;  %v12547_v41 = vld [vmem:[#allocation19 + $0x638] sm:$0xf0]  ;;  %v11523_v27 = vor.u32 %v12574_v14, %v11522_v51  ;;  %v11690_v51 = vld [vmem:[#allocation19 + $0x858] sm:$0xf] }
 0x849   :  { %7843 = vmatmul.bf16.vlgmr.msrb.gmra.mxu1 %v13864_v54  ;;  %7857 = vmatmul.bf16.vlgmr.msra.gmra.mxu2 %v13866_v7  ;;  %v11415_v43 = vor.u32 %v12547_v41, %v11414_v39 }
 0x84a   :  { %7891 = vmatpush.bf16.msra.mxu1 %v11667_v9  ;;  %7905 = vmatpush.bf16.msrb.mxu2 %v11763_v47  ;;  %v6013_v22 = vpop.f32.mrf.mxu3  ;;  %v12622_v9 = vld [vmem:[#allocation19 + $0x890] sm:$0xf0]  ;;  %v6041_v47 = vpop.f32.mrf.mxu1 }
 0x84b   :  { %v6014_v3 = vadd.f32 %v6013_v22, %v4212_v50  ;;  %v10792_v22 = vld [vmem:[#allocation19 + $0x15c] sm:$0xf0] }
 0x84c   :  { %7864 = vmatpush.bf16.msrb.mxu3 %v11463_v36  ;;  %7878 = vmatpush.bf16.msra.mxu0 %v11559_v5  ;;  %v11402_v36 = vld [vmem:[#allocation19 + $0x618] sm:$0xf]  ;;  %v11715_v5 = vor.u32 %v12622_v9, %v11714_v12  ;;  %v6029_v30 = vpop.f32.mrf.mxu0  ;;  %v11582_v12 = vld [vmem:[#allocation19 + $0x780] sm:$0xf]  ;;  %v12589_v9 = vld [vmem:[#allocation19 + $0x788] sm:$0xf0] }
 0x84d   :  { %v6028_v52 = vadd.f32 %v6027_v20, %v6014_v3  ;;  %v11403_v38 = vor.u32 %v12544_v58, %v11402_v36  ;;  %v12390_v20 = vld [vmem:[#allocation19 + $0x154] sm:$0xf]  ;;  %v11678_v36 = vld [vmem:[#allocation19 + $0x840] sm:$0xf]  ;;  %v12417_v3 = vld [vmem:[#allocation19 + $0x22c] sm:$0xf] }
 0x84e   :  { %7892 = vmatpush.bf16.msra.mxu1 %v11655_v40  ;;  %7906 = vmatpush.bf16.msrb.mxu2 %v11751_v10  ;;  %v11606_v40 = vld [vmem:[#allocation19 + $0x7b0] sm:$0xf]  ;;  %v12595_v10 = vld [vmem:[#allocation19 + $0x7b8] sm:$0xf0] }
 0x84f   :  { %v11607_v53 = vor.u32 %v12595_v10, %v11606_v40 }
 0x850   :  { %7865 = vmatpush.bf16.msrb.mxu3 %v11451_v4  ;;  %7879 = vmatpush.bf16.msra.mxu0 %v11547_v11  ;;  %v11702_v4 = vld [vmem:[#allocation19 + $0x870] sm:$0xf]  ;;  %v12541_v11 = vld [vmem:[#allocation19 + $0x608] sm:$0xf0] }
 0x851   :  { %v11703_v48 = vor.u32 %v12619_v46, %v11702_v4  ;;  %v11391_v39 = vor.u32 %v12541_v11, %v11390_v35  ;;  %v10699_v4 = vor.u32 %v12366_v32, %v10696_v55  ;;  %v12363_v46 = vld [vmem:[#allocation19 + $0x7c] sm:$0xf]  ;;  %v10684_v35 = vld [vmem:[#allocation19 + $0x84] sm:$0xf0]  ;;  %v10795_v11 = vor.u32 %v12390_v20, %v10792_v22  ;;  %v10660_v32 = vld [vmem:[#allocation19 + $0x54] sm:$0xf0] }
 0x852   :  { %7893 = vmatpush.bf16.msra.mxu1 %v11643_v13  ;;  %7907 = vmatpush.bf16.msrb.mxu2 %v11739_v34  ;;  %v12565_v13 = vld [vmem:[#allocation19 + $0x6c8] sm:$0xf0]  ;;  %v6015_v34 = vpop.f32.mrf.mxu3  ;;  %v6043_v6 = vpop.f32.mrf.mxu1  ;;  %v10756_v22 = vld [vmem:[#allocation19 + $0x114] sm:$0xf0] }
 0x853   :  { %v6016_v14 = vadd.f32 %v6015_v34, %v4212_v50  ;;  %v10711_v50 = vor.u32 %v12369_v24, %v10708_v0  ;;  %v10888_v24 = vld [vmem:[#allocation19 + $0x21c] sm:$0xf0]  ;;  %v12438_v0 = vld [vmem:[#allocation19 + $0x2d4] sm:$0xf]  ;;  %v10687_v34 = vor.u32 %v12363_v46, %v10684_v35  ;;  %v12381_v20 = vld [vmem:[#allocation19 + $0x10c] sm:$0xf] }
 0x854   :  { %7866 = vmatpush.bf16.msrb.mxu3 %v11439_v18  ;;  %7880 = vmatpush.bf16.msra.mxu0 %v11535_v29  ;;  %v11594_v18 = vld [vmem:[#allocation19 + $0x798] sm:$0xf]  ;;  %v12592_v29 = vld [vmem:[#allocation19 + $0x7a0] sm:$0xf0]  ;;  %v12429_v46 = vld [vmem:[#allocation19 + $0x28c] sm:$0xf] }
 0x855   :  { %v6030_v41 = vadd.f32 %v6029_v30, %v6016_v14  ;;  %v12384_v14 = vld [vmem:[#allocation19 + $0x124] sm:$0xf]  ;;  %v10876_v30 = vld [vmem:[#allocation19 + $0x204] sm:$0xf0]  ;;  %v10948_v35 = vld [vmem:[#allocation19 + $0x294] sm:$0xf0] }
 0x856   :  { %7894 = vmatpush.bf16.msra.mxu1 %v11631_v56  ;;  %7908 = vmatpush.bf16.msrb.mxu2 %v11727_v31  ;;  %v11595_v56 = vor.u32 %v12592_v29, %v11594_v18  ;;  %v11691_v31 = vor.u32 %v12616_v37, %v11690_v51  ;;  %v12360_v18 = vld [vmem:[#allocation19 + $0x64] sm:$0xf]  ;;  %v10672_v29 = vld [vmem:[#allocation19 + $0x6c] sm:$0xf0]  ;;  %v12411_v37 = vld [vmem:[#allocation19 + $0x1fc] sm:$0xf]  ;;  %v10771_v55 = vor.u32 %v12384_v14, %v10768_v28 }
 0x857   :  { %v10936_v14 = vld [vmem:[#allocation19 + $0x27c] sm:$0xf0] }
 0x858   :  { %7867 = vmatpush.bf16.msrb.mxu3 %v11427_v44  ;;  %7881 = vmatpush.bf16.msra.mxu0 %v11523_v27  ;;  %v6042_v44 = vadd.f32 %v6041_v47, %v6028_v52  ;;  %v11487_v27 = vor.u32 %v12565_v13, %v11486_v1  ;;  %v11583_v47 = vor.u32 %v12589_v9, %v11582_v12  ;;  %v10780_v52 = vld [vmem:[#allocation19 + $0x144] sm:$0xf0]  ;;  %v10984_v1 = vld [vmem:[#allocation19 + $0x2dc] sm:$0xf0]  ;;  %v12432_v12 = vld [vmem:[#allocation19 + $0x2a4] sm:$0xf] }
 0x859   :  { %v10987_v49 = vor.u32 %v12438_v0, %v10984_v1  ;;  %v10960_v9 = vld [vmem:[#allocation19 + $0x2ac] sm:$0xf0]  ;;  %v10732_v1 = vld [vmem:[#allocation19 + $0xe4] sm:$0xf0] }
 0x85a   :  { %7895 = vmatpush.bf16.msra.mxu1 %v11619_v42  ;;  %7909 = vmatpush.bf16.msrb.mxu2 %v11715_v5  ;;  %v6044_v42 = vadd.f32 %v6043_v6, %v6030_v41  ;;  %v12613_v5 = vld [vmem:[#allocation19 + $0x848] sm:$0xf0]  ;;  %v6180_v61 = vmax.f32 %v6042_v44, 0.0  ;;  %v6055_v44 = vpop.f32.mrf.mxu2  ;;  %v10675_v41 = vor.u32 %v12360_v18, %v10672_v29  ;;  %v10840_v18 = vld [vmem:[#allocation19 + $0x1bc] sm:$0xf0] }
 0x85b   :  { %v11679_v58 = vor.u32 %v12613_v5, %v11678_v36  ;;  %v4213_v36 = vperm.slane %v13874_v57, 1 }
 0x85c   :  { %7868 = vmatpush.bf16.msrb.mxu3 %v11415_v43  ;;  %7882 = vmatpush.bf16.msra.mxu0 %v11511_v59  ;;  %v10900_v43 = vld [vmem:[#allocation19 + $0x234] sm:$0xf0]  ;;  %v12441_v59 = vld [vmem:[#allocation19 + $0x2ec] sm:$0xf]  ;;  %v6192_v40 = vmax.f32 %v6044_v42, 0.0 }
 0x85d   :  { %v10903_v10 = vor.u32 %v12417_v3, %v10900_v43  ;;  %v12354_v3 = vld [vmem:[#allocation19 + $0x34] sm:$0xf]  ;;  %v10648_v43 = vld [vmem:[#allocation19 + $0x3c] sm:$0xf0]  ;;  %v6056_v0 = vadd.f32 %v6055_v44, %v4213_v36 }
 0x85e   :  { %7896 = vmatpush.bf16.msra.mxu1 %v11607_v53  ;;  %7910 = vmatpush.bf16.msrb.mxu2 %v11703_v48  ;;  %v12387_v53 = vld [vmem:[#allocation19 + $0x13c] sm:$0xf]  ;;  %v13877_v48 = vpack.c.bf16 %v6192_v40, %v6180_v61  ;;  %v12405_v61 = vld [vmem:[#allocation19 + $0x1cc] sm:$0xf]  ;;  %v10852_v40 = vld [vmem:[#allocation19 + $0x1d4] sm:$0xf0] }
 0x85f   :  { %v10783_v51 = vor.u32 %v12387_v53, %v10780_v52  ;;  %v10651_v53 = vor.u32 %v12354_v3, %v10648_v43  ;;  %v12351_v52 = vld [vmem:[#allocation19 + $0x1c] sm:$0xf] }
 0x860   :  { %7869 = vmatpush.bf16.msrb.mxu3 %v11403_v38  ;;  %7883 = vmatpush.bf16.msra.mxu0 %v11499_v62  ;;  %v10999_v38 = vor.u32 %v12441_v59, %v10996_v21  ;;  %v12414_v62 = vld [vmem:[#allocation19 + $0x214] sm:$0xf]  ;;  %v10744_v59 = vld [vmem:[#allocation19 + $0xfc] sm:$0xf0]  ;;  %v10963_v21 = vor.u32 %v12432_v12, %v10960_v9 }
 0x861   :  { %v10891_v13 = vor.u32 %v12414_v62, %v10888_v24  ;;  %v12375_v24 = vld [vmem:[#allocation19 + $0xdc] sm:$0xf] }
 0x862   :  { %7897 = vmatpush.bf16.msra.mxu1 %v11595_v56  ;;  %7911 = vmatpush.bf16.msrb.mxu2 %v11691_v31  ;;  %v10972_v56 = vld [vmem:[#allocation19 + $0x2c4] sm:$0xf0]  ;;  %v10879_v31 = vor.u32 %v12411_v37, %v10876_v30  ;;  %v6057_v29 = vpop.f32.mrf.mxu2 }
 0x863   :  { %v6058_v44 = vadd.f32 %v6057_v29, %v4213_v36  ;;  %v12459_v29 = vld [vmem:[#allocation19 + $0x37c] sm:$0xf] }
 0x864   :  { %7870 = vmatpush.bf16.msrb.mxu3 %v11391_v39  ;;  %7884 = vmatpush.bf16.msra.mxu0 %v11487_v27  ;;  %v12435_v39 = vld [vmem:[#allocation19 + $0x2bc] sm:$0xf]  ;;  %v12357_v27 = vld [vmem:[#allocation19 + $0x4c] sm:$0xf] }
 0x865   :  { %v10975_v6 = vor.u32 %v12435_v39, %v10972_v56  ;;  %v10663_v5 = vor.u32 %v12357_v27, %v10660_v32  ;;  %v10624_v39 = vld [vmem:[#allocation19 + $0xc] sm:$0xf0]  ;;  %v10735_v56 = vor.u32 %v12375_v24, %v10732_v1 }
 0x866   :  { %7898 = vmatpush.bf16.msra.mxu1 %v11583_v47  ;;  %7912 = vmatpush.bf16.msrb.mxu2 %v11679_v58  ;;  %v10759_v47 = vor.u32 %v12381_v20, %v10756_v22  ;;  %v12378_v58 = vld [vmem:[#allocation19 + $0xf4] sm:$0xf]  ;;  %v10720_v27 = vld [vmem:[#allocation19 + $0xcc] sm:$0xf0]  ;;  %v10828_v20 = vld [vmem:[#allocation19 + $0x1a4] sm:$0xf0] }
 0x867   :  { %7871 = vmatmul.bf16.vlgmr.msrb.gmra.mxu3 %v13877_v48  ;;  %v10747_v62 = vor.u32 %v12378_v58, %v10744_v59  ;;  %v13881_v12 = vpop.f32.mrf.mxu1  ;;  %v12489_v58 = vld [vmem:[#allocation19 + $0x46c] sm:$0xf] }
 0x868   :  { %7919 = vmatpush.bf16.msra.mxu3 %v10711_v50  ;;  %7933 = vmatpush.bf16.msrb.mxu0 %v10807_v33  ;;  %v12408_v50 = vld [vmem:[#allocation19 + $0x1e4] sm:$0xf]  ;;  %v10864_v33 = vld [vmem:[#allocation19 + $0x1ec] sm:$0xf0] }
 0x869   :  { %v10867_v42 = vor.u32 %v12408_v50, %v10864_v33  ;;  %v12423_v50 = vld [vmem:[#allocation19 + $0x25c] sm:$0xf]  ;;  %v10924_v33 = vld [vmem:[#allocation19 + $0x264] sm:$0xf0] }
 0x86a   :  { %7947 = vmatpush.bf16.msrb.mxu1 %v10903_v10  ;;  %7961 = vmatpush.bf16.msra.mxu2 %v10999_v38  ;;  %v6083_v10 = vpop.f32.mrf.mxu0  ;;  %v10636_v38 = vld [vmem:[#allocation19 + $0x24] sm:$0xf0] }
 0x86b   :  { %v10639_v30 = vor.u32 %v12351_v52, %v10636_v38 }
 0x86c   :  { %7920 = vmatpush.bf16.msra.mxu3 %v10699_v4  ;;  %7934 = vmatpush.bf16.msrb.mxu0 %v10795_v11  ;;  %v6069_v4 = vpop.f32.mrf.mxu3  ;;  %v10855_v11 = vor.u32 %v12405_v61, %v10852_v40  ;;  %v11188_v61 = vld [vmem:[#allocation19 + $0x474] sm:$0xf0]  ;;  %v10927_v40 = vor.u32 %v12423_v50, %v10924_v33 }
 0x86d   :  { %v6070_v28 = vadd.f32 %v6069_v4, %v6056_v0  ;;  %v12396_v4 = vld [vmem:[#allocation19 + $0x184] sm:$0xf]  ;;  %v13883_v52 = vpop.f32.mrf.mxu2 }
 0x86e   :  { %7948 = vmatpush.bf16.msrb.mxu1 %v10891_v13  ;;  %7962 = vmatpush.bf16.msra.mxu2 %v10987_v49  ;;  %v10951_v13 = vor.u32 %v12429_v46, %v10948_v35  ;;  %v12348_v49 = vld [vmem:[#allocation19 + $0x4] sm:$0xf]  ;;  %v10816_v46 = vld [vmem:[#allocation19 + $0x18c] sm:$0xf0]  ;;  %v11080_v35 = vld [vmem:[#allocation19 + $0x39c] sm:$0xf0] }
 0x86f   :  { %v6084_v9 = vadd.f32 %v6083_v10, %v6070_v28  ;;  %v10627_v43 = vor.u32 %v12348_v49, %v10624_v39  ;;  %v10912_v10 = vld [vmem:[#allocation19 + $0x24c] sm:$0xf0]  ;;  %v10819_v24 = vor.u32 %v12396_v4, %v10816_v46  ;;  %v6099_v28 = vpop.f32.mrf.mxu1  ;;  %v12456_v39 = vld [vmem:[#allocation19 + $0x364] sm:$0xf] }
 0x870   :  { %7921 = vmatpush.bf16.msra.mxu3 %v10687_v34  ;;  %7935 = vmatpush.bf16.msrb.mxu0 %v10783_v51  ;;  %v12402_v34 = vld [vmem:[#allocation19 + $0x1b4] sm:$0xf] }
 0x871   :  { %v12426_v51 = vld [vmem:[#allocation19 + $0x274] sm:$0xf]  ;;  %v10843_v37 = vor.u32 %v12402_v34, %v10840_v18  ;;  %v11176_v34 = vld [vmem:[#allocation19 + $0x45c] sm:$0xf0] }
 0x872   :  { %7949 = vmatpush.bf16.msrb.mxu1 %v10879_v31  ;;  %7963 = vmatpush.bf16.msra.mxu2 %v10975_v6  ;;  %v12465_v31 = vld [vmem:[#allocation19 + $0x3ac] sm:$0xf]  ;;  %v10939_v32 = vor.u32 %v12426_v51, %v10936_v14  ;;  %v11092_v6 = vld [vmem:[#allocation19 + $0x3b4] sm:$0xf0]  ;;  %v6085_v3 = vpop.f32.mrf.mxu0  ;;  %v11068_v51 = vld [vmem:[#allocation19 + $0x384] sm:$0xf0] }
 0x873   :  { %v11071_v49 = vor.u32 %v12459_v29, %v11068_v51  ;;  %v11008_v29 = vld [vmem:[#allocation19 + $0x30c] sm:$0xf0] }
 0x874   :  { %7922 = vmatpush.bf16.msra.mxu3 %v10675_v41  ;;  %7936 = vmatpush.bf16.msrb.mxu0 %v10771_v55  ;;  %v12372_v41 = vld [vmem:[#allocation19 + $0xc4] sm:$0xf]  ;;  %v12399_v55 = vld [vmem:[#allocation19 + $0x19c] sm:$0xf]  ;;  %v6071_v22 = vpop.f32.mrf.mxu3 }
 0x875   :  { %v10723_v36 = vor.u32 %v12372_v41, %v10720_v27  ;;  %v6113_v41 = vpop.f32.mrf.mxu2  ;;  %v12480_v27 = vld [vmem:[#allocation19 + $0x424] sm:$0xf] }
 0x876   :  { %7950 = vmatpush.bf16.msrb.mxu1 %v10867_v42  ;;  %7964 = vmatpush.bf16.msra.mxu2 %v10963_v21  ;;  %v6072_v42 = vadd.f32 %v6071_v22, %v6058_v44  ;;  %v11095_v21 = vor.u32 %v12465_v31, %v11092_v6  ;;  %v11044_v22 = vld [vmem:[#allocation19 + $0x354] sm:$0xf0] }
 0x878   :  { %7923 = vmatpush.bf16.msra.mxu3 %v10663_v5  ;;  %7937 = vmatpush.bf16.msrb.mxu0 %v10759_v47  ;;  %v10831_v5 = vor.u32 %v12399_v55, %v10828_v20  ;;  %v12462_v47 = vld [vmem:[#allocation19 + $0x394] sm:$0xf]  ;;  %v6086_v59 = vadd.f32 %v6085_v3, %v6072_v42  ;;  %v12453_v20 = vld [vmem:[#allocation19 + $0x34c] sm:$0xf]  ;;  %v11140_v42 = vld [vmem:[#allocation19 + $0x414] sm:$0xf0] }
 0x879   :  { %v11083_v1 = vor.u32 %v12462_v47, %v11080_v35  ;;  %v11047_v33 = vor.u32 %v12453_v20, %v11044_v22  ;;  %v12450_v3 = vld [vmem:[#allocation19 + $0x334] sm:$0xf]  ;;  %v12447_v35 = vld [vmem:[#allocation19 + $0x31c] sm:$0xf] }
 0x87a   :  { %7951 = vmatpush.bf16.msrb.mxu1 %v10855_v11  ;;  %7965 = vmatpush.bf16.msra.mxu2 %v10951_v13  ;;  %v12420_v11 = vld [vmem:[#allocation19 + $0x244] sm:$0xf]  ;;  %v6193_v38 = vmax.f32 %v6086_v59, 0.0  ;;  %v12486_v13 = vld [vmem:[#allocation19 + $0x454] sm:$0xf] }
 0x87b   :  { %v10915_v18 = vor.u32 %v12420_v11, %v10912_v10  ;;  %v11179_v14 = vor.u32 %v12486_v13, %v11176_v34  ;;  %v11020_v11 = vld [vmem:[#allocation19 + $0x324] sm:$0xf0] }
 0x87c   :  { %7924 = vmatpush.bf16.msra.mxu3 %v10651_v53  ;;  %7938 = vmatpush.bf16.msrb.mxu0 %v10747_v62  ;;  %v6181_v53 = vmax.f32 %v6084_v9, 0.0  ;;  %v11191_v62 = vor.u32 %v12489_v58, %v11188_v61  ;;  %v12477_v9 = vld [vmem:[#allocation19 + $0x40c] sm:$0xf]  ;;  %v12474_v61 = vld [vmem:[#allocation19 + $0x3f4] sm:$0xf] }
 0x87d   :  { %v11143_v58 = vor.u32 %v12477_v9, %v11140_v42  ;;  %v11116_v13 = vld [vmem:[#allocation19 + $0x3e4] sm:$0xf0]  ;;  %v12558_v42 = vld [vmem:[#allocation19 + $0x694] sm:$0xf] }
 0x87e   :  { %7952 = vmatpush.bf16.msrb.mxu1 %v10843_v37  ;;  %7966 = vmatpush.bf16.msra.mxu2 %v10939_v32  ;;  %v13885_v0 = vpack.c.bf16 %v6193_v38, %v6181_v53  ;;  %v12483_v37 = vld [vmem:[#allocation19 + $0x43c] sm:$0xf]  ;;  %v11152_v32 = vld [vmem:[#allocation19 + $0x42c] sm:$0xf0] }
 0x87f   :  { %v11155_v6 = vor.u32 %v12480_v27, %v11152_v32  ;;  %v12513_v27 = vld [vmem:[#allocation19 + $0x52c] sm:$0xf]  ;;  %v11284_v32 = vld [vmem:[#allocation19 + $0x534] sm:$0xf0] }
 0x880   :  { %7925 = vmatpush.bf16.msra.mxu3 %v10639_v30  ;;  %7939 = vmatpush.bf16.msrb.mxu0 %v10735_v56  ;;  %v11164_v30 = vld [vmem:[#allocation19 + $0x444] sm:$0xf0]  ;;  %v11056_v56 = vld [vmem:[#allocation19 + $0x36c] sm:$0xf0] }
 0x881   :  { %7885 = vmatmul.bf16.vlgmr.msra.gmra.mxu0 %v13885_v0  ;;  %v11167_v31 = vor.u32 %v12483_v37, %v11164_v30  ;;  %v11059_v44 = vor.u32 %v12456_v39, %v11056_v56  ;;  %v12561_v37 = vld [vmem:[#allocation19 + $0x6ac] sm:$0xf] }
 0x882   :  { %7953 = vmatpush.bf16.msrb.mxu1 %v10831_v5  ;;  %7967 = vmatpush.bf16.msra.mxu2 %v10927_v40  ;;  %v4215_v5 = vperm.slane %v13874_v57, 3  ;;  %v11128_v40 = vld [vmem:[#allocation19 + $0x3fc] sm:$0xf0] }
 0x883   :  { %v11131_v38 = vor.u32 %v12474_v61, %v11128_v40  ;;  %v12510_v61 = vld [vmem:[#allocation19 + $0x514] sm:$0xf] }
 0x884   :  { %7926 = vmatpush.bf16.msra.mxu3 %v10627_v43  ;;  %7940 = vmatpush.bf16.msrb.mxu0 %v10723_v36  ;;  %v6139_v55 = vpop.f32.mrf.mxu0  ;;  %v11032_v43 = vld [vmem:[#allocation19 + $0x33c] sm:$0xf0]  ;;  %v4214_v36 = vperm.slane %v13874_v57, 2 }
 0x885   :  { %v6140_v4 = vadd.f32 %v6139_v55, %v4215_v5  ;;  %v12537_v55 = vld [vmem:[#allocation19 + $0x5ec] sm:$0xf] }
 0x886   :  { %7954 = vmatpush.bf16.msrb.mxu1 %v10819_v24  ;;  %7968 = vmatpush.bf16.msra.mxu2 %v10915_v18  ;;  %v6098_v10 = vadd.f32 %v13881_v12, %v4214_v36  ;;  %v11023_v24 = vor.u32 %v12447_v35, %v11020_v11  ;;  %v12444_v18 = vld [vmem:[#allocation19 + $0x304] sm:$0xf]  ;;  %v11476_v12 = vld [vmem:[#allocation19 + $0x6b4] sm:$0xf0]  ;;  %v11272_v35 = vld [vmem:[#allocation19 + $0x51c] sm:$0xf0] }
 0x887   :  { %7927 = vmatmul.bf16.vlgmr.msra.gmra.mxu3 %v13809_v26  ;;  %v6153_v50 = vpop.f32.mrf.mxu1  ;;  %v11479_v22 = vor.u32 %v12561_v37, %v11476_v12  ;;  %v12534_v11 = vld [vmem:[#allocation19 + $0x5d4] sm:$0xf]  ;;  %v12552_v37 = vld [vmem:[#allocation19 + $0x664] sm:$0xf]  ;;  %v11440_v12 = vld [vmem:[#allocation19 + $0x66c] sm:$0xf0] }
 0x888   :  { %7975 = vmatpush.bf16.msrb.mxu3 %v11095_v21  ;;  %7989 = vmatpush.bf16.msra.mxu0 %v11191_v62  ;;  %v11035_v21 = vor.u32 %v12450_v3, %v11032_v43  ;;  %v6112_v57 = vadd.f32 %v13883_v52, %v6098_v10  ;;  %v6100_v62 = vadd.f32 %v6099_v28, %v4214_v36  ;;  %v12585_v36 = vld [vmem:[#allocation19 + $0x76c] sm:$0xf]  ;;  %v11368_v10 = vld [vmem:[#allocation19 + $0x5dc] sm:$0xf0] }
 0x889   :  { %v6154_v34 = vadd.f32 %v6153_v50, %v6140_v4  ;;  %v11104_v50 = vld [vmem:[#allocation19 + $0x3cc] sm:$0xf0] }
 0x88a   :  { %v6125_v47 = vpop.f32.mrf.mxu3  ;;  %v6114_v51 = vadd.f32 %v6113_v41, %v6100_v62  ;;  %v12468_v41 = vld [vmem:[#allocation19 + $0x3c4] sm:$0xf]  ;;  %v12582_v62 = vld [vmem:[#allocation19 + $0x754] sm:$0xf] }
 0x88b   :  { %v11107_v4 = vor.u32 %v12468_v41, %v11104_v50  ;;  %v11536_v41 = vld [vmem:[#allocation19 + $0x72c] sm:$0xf0] }
 0x88c   :  { %7976 = vmatpush.bf16.msrb.mxu3 %v11083_v1  ;;  %7990 = vmatpush.bf16.msra.mxu0 %v11179_v14  ;;  %v6141_v46 = vpop.f32.mrf.mxu0  ;;  %v12471_v1 = vld [vmem:[#allocation19 + $0x3dc] sm:$0xf]  ;;  %v6126_v14 = vadd.f32 %v6125_v47, %v6112_v57  ;;  %v11572_v47 = vld [vmem:[#allocation19 + $0x774] sm:$0xf0]  ;;  %v11452_v57 = vld [vmem:[#allocation19 + $0x684] sm:$0xf0] }
 0x88d   :  { %v6167_v59 = vpop.f32.mrf.mxu2  ;;  %v6142_v53 = vadd.f32 %v6141_v46, %v4215_v5  ;;  %v11464_v5 = vld [vmem:[#allocation19 + $0x69c] sm:$0xf0] }
 0x88e   :  { %v6168_v30 = vadd.f32 %v6167_v59, %v6154_v34  ;;  %v11287_v59 = vor.u32 %v12513_v27, %v11284_v32  ;;  %v11467_v46 = vor.u32 %v12558_v42, %v11464_v5  ;;  %v12507_v34 = vld [vmem:[#allocation19 + $0x4fc] sm:$0xf]  ;;  %v12528_v27 = vld [vmem:[#allocation19 + $0x5a4] sm:$0xf]  ;;  %v11344_v32 = vld [vmem:[#allocation19 + $0x5ac] sm:$0xf0] }
 0x88f   :  { %v11236_v5 = vld [vmem:[#allocation19 + $0x4d4] sm:$0xf0] }
 0x890   :  { %7977 = vmatpush.bf16.msrb.mxu3 %v11071_v49  ;;  %7991 = vmatpush.bf16.msra.mxu0 %v11167_v31  ;;  %v6155_v49 = vpop.f32.mrf.mxu1  ;;  %v11119_v31 = vor.u32 %v12471_v1, %v11116_v13  ;;  %v6183_v3 = vmax.f32 %v6168_v30, 0.0  ;;  %v11275_v1 = vor.u32 %v12510_v61, %v11272_v35  ;;  %v11371_v13 = vor.u32 %v12534_v11, %v11368_v10  ;;  %v12579_v30 = vld [vmem:[#allocation19 + $0x73c] sm:$0xf]  ;;  %v11524_v61 = vld [vmem:[#allocation19 + $0x714] sm:$0xf0] }
 0x891   :  { %7941 = vmatmul.bf16.vlgmr.msrb.gmra.mxu0 %v13815_v8  ;;  %v6156_v39 = vadd.f32 %v6155_v49, %v6142_v53  ;;  %v11575_v53 = vor.u32 %v12585_v36, %v11572_v47  ;;  %v12546_v47 = vld [vmem:[#allocation19 + $0x634] sm:$0xf]  ;;  %v11224_v10 = vld [vmem:[#allocation19 + $0x4bc] sm:$0xf0] }
 0x892   :  { %v6127_v56 = vpop.f32.mrf.mxu3  ;;  %v12498_v35 = vld [vmem:[#allocation19 + $0x4b4] sm:$0xf] }
 0x893   :  { %v6128_v52 = vadd.f32 %v6127_v56, %v6114_v51  ;;  %v12531_v51 = vld [vmem:[#allocation19 + $0x5bc] sm:$0xf] }
 0x894   :  { %7978 = vmatpush.bf16.msrb.mxu3 %v11059_v44  ;;  %7992 = vmatpush.bf16.msra.mxu0 %v11155_v6  ;;  %v11011_v44 = vor.u32 %v12444_v18, %v11008_v29  ;;  %v11380_v6 = vld [vmem:[#allocation19 + $0x5f4] sm:$0xf0]  ;;  %v11260_v29 = vld [vmem:[#allocation19 + $0x504] sm:$0xf0] }
 0x895   :  { %v6169_v28 = vpop.f32.mrf.mxu2  ;;  %v6194_v9 = vmax.f32 %v6128_v52, 0.0  ;;  %v11263_v56 = vor.u32 %v12507_v34, %v11260_v29  ;;  %v12504_v52 = vld [vmem:[#allocation19 + $0x4e4] sm:$0xf]  ;;  %v11227_v34 = vor.u32 %v12498_v35, %v11224_v10  ;;  %v12495_v29 = vld [vmem:[#allocation19 + $0x49c] sm:$0xf] }
 0x896   :  { %v6170_v20 = vadd.f32 %v6169_v28, %v6156_v39  ;;  %v11548_v39 = vld [vmem:[#allocation19 + $0x744] sm:$0xf0]  ;;  %v11443_v28 = vor.u32 %v12552_v37, %v11440_v12  ;;  %v12606_v10 = vld [vmem:[#allocation19 + $0x814] sm:$0xf] }
 0x897   :  { %v11308_v37 = vld [vmem:[#allocation19 + $0x564] sm:$0xf0] }
 0x898   :  { %7979 = vmatpush.bf16.msrb.mxu3 %v11047_v33  ;;  %7993 = vmatpush.bf16.msra.mxu0 %v11143_v58  ;;  %v6182_v33 = vmax.f32 %v6126_v14, 0.0  ;;  %v6195_v43 = vmax.f32 %v6170_v20, 0.0  ;;  %v11356_v14 = vld [vmem:[#allocation19 + $0x5c4] sm:$0xf0]  ;;  %v12549_v20 = vld [vmem:[#allocation19 + $0x64c] sm:$0xf] }
 0x89a   :  { %v13894_v58 = vpack.c.bf16 %v6194_v9, %v6182_v33  ;;  %v13896_v40 = vpack.c.bf16 %v6195_v43, %v6183_v3  ;;  %v11347_v33 = vor.u32 %v12528_v27, %v11344_v32  ;;  %v12501_v9 = vld [vmem:[#allocation19 + $0x4cc] sm:$0xf]  ;;  %v11332_v43 = vld [vmem:[#allocation19 + $0x594] sm:$0xf0]  ;;  %v12492_v32 = vld [vmem:[#allocation19 + $0x484] sm:$0xf] }
 0x89b   :  { %v12525_v3 = vld [vmem:[#allocation19 + $0x58c] sm:$0xf] }
 0x89c   :  { %7980 = vmatpush.bf16.msrb.mxu3 %v11035_v21  ;;  %7994 = vmatpush.bf16.msra.mxu0 %v11131_v38  ;;  %v11383_v21 = vor.u32 %v12537_v55, %v11380_v6  ;;  %v12555_v38 = vld [vmem:[#allocation19 + $0x67c] sm:$0xf]  ;;  %v11551_v55 = vor.u32 %v12579_v30, %v11548_v39  ;;  %v12576_v6 = vld [vmem:[#allocation19 + $0x724] sm:$0xf]  ;;  %v11392_v39 = vld [vmem:[#allocation19 + $0x60c] sm:$0xf0] }
 0x89d   :  { %7899 = vmatmul.bf16.vlgmr.msra.gmra.mxu1 %v13894_v58  ;;  %7913 = vmatmul.bf16.vlgmr.msrb.gmra.mxu2 %v13896_v40  ;;  %v11455_v18 = vor.u32 %v12555_v38, %v11452_v57  ;;  %v11539_v36 = vor.u32 %v12576_v6, %v11536_v41  ;;  %v11320_v38 = vld [vmem:[#allocation19 + $0x57c] sm:$0xf0]  ;;  %v12540_v30 = vld [vmem:[#allocation19 + $0x604] sm:$0xf]  ;;  %v11296_v6 = vld [vmem:[#allocation19 + $0x54c] sm:$0xf0] }
 0x89e   :  { %8003 = vmatpush.bf16.msra.mxu1 %v11287_v59  ;;  %8017 = vmatpush.bf16.msrb.mxu2 %v11383_v21  ;;  %v11416_v59 = vld [vmem:[#allocation19 + $0x63c] sm:$0xf0]  ;;  %v12573_v21 = vld [vmem:[#allocation19 + $0x70c] sm:$0xf] }
 0x89f   :  { %v11419_v11 = vor.u32 %v12546_v47, %v11416_v59  ;;  %v11527_v57 = vor.u32 %v12573_v21, %v11524_v61  ;;  %v12609_v41 = vld [vmem:[#allocation19 + $0x82c] sm:$0xf]  ;;  %v12368_v21 = vld [vmem:[#allocation19 + $0xa0] sm:$0xf0]  ;;  %v10810_v61 = vld [vmem:[#allocation19 + $0x170] sm:$0xf] }
 0x8a0   :  { %7981 = vmatpush.bf16.msrb.mxu3 %v11023_v24  ;;  %7995 = vmatpush.bf16.msra.mxu0 %v11119_v31  ;;  %v11560_v24 = vld [vmem:[#allocation19 + $0x75c] sm:$0xf0]  ;;  %v11359_v31 = vor.u32 %v12531_v51, %v11356_v14  ;;  %v11212_v14 = vld [vmem:[#allocation19 + $0x4a4] sm:$0xf0] }
 0x8a1   :  { %v11563_v49 = vor.u32 %v12582_v62, %v11560_v24  ;;  %v12543_v62 = vld [vmem:[#allocation19 + $0x61c] sm:$0xf]  ;;  %v11404_v24 = vld [vmem:[#allocation19 + $0x624] sm:$0xf0] }
 0x8a2   :  { %8004 = vmatpush.bf16.msra.mxu1 %v11275_v1  ;;  %8018 = vmatpush.bf16.msrb.mxu2 %v11371_v13  ;;  %v12570_v1 = vld [vmem:[#allocation19 + $0x6f4] sm:$0xf]  ;;  %v11512_v13 = vld [vmem:[#allocation19 + $0x6fc] sm:$0xf0]  ;;  %v11407_v51 = vor.u32 %v12543_v62, %v11404_v24 }
 0x8a3   :  { %v11515_v12 = vor.u32 %v12570_v1, %v11512_v13  ;;  %v12630_v62 = vld [vmem:[#allocation19 + $0x8d4] sm:$0xf]  ;;  %v11752_v24 = vld [vmem:[#allocation19 + $0x8dc] sm:$0xf0]  ;;  %v12365_v13 = vld [vmem:[#allocation19 + $0x88] sm:$0xf0] }
 0x8a4   :  { %7982 = vmatpush.bf16.msrb.mxu3 %v11011_v44  ;;  %7996 = vmatpush.bf16.msra.mxu0 %v11107_v4  ;;  %v11248_v44 = vld [vmem:[#allocation19 + $0x4ec] sm:$0xf0]  ;;  %v11239_v4 = vor.u32 %v12501_v9, %v11236_v5  ;;  %v11668_v9 = vld [vmem:[#allocation19 + $0x834] sm:$0xf0]  ;;  %v10690_v1 = vld [vmem:[#allocation19 + $0x80] sm:$0xf] }
 0x8a5   :  { %v11251_v50 = vor.u32 %v12504_v52, %v11248_v44  ;;  %v10714_v52 = vld [vmem:[#allocation19 + $0xb0] sm:$0xf]  ;;  %v11215_v44 = vor.u32 %v12495_v29, %v11212_v14  ;;  %v11764_v5 = vld [vmem:[#allocation19 + $0x8f4] sm:$0xf0]  ;;  %v12603_v14 = vld [vmem:[#allocation19 + $0x7fc] sm:$0xf] }
 0x8a6   :  { %8005 = vmatpush.bf16.msra.mxu1 %v11263_v56  ;;  %8019 = vmatpush.bf16.msrb.mxu2 %v11359_v31  ;;  %v12567_v56 = vld [vmem:[#allocation19 + $0x6dc] sm:$0xf]  ;;  %v11500_v31 = vld [vmem:[#allocation19 + $0x6e4] sm:$0xf0] }
 0x8a7   :  { %7983 = vmatmul.bf16.vlgmr.msrb.gmra.mxu3 %v13862_v45  ;;  %7997 = vmatmul.bf16.vlgmr.msra.gmra.mxu0 %v13868_v19 }
 0x8a8   :  { %8031 = vmatpush.bf16.msra.mxu3 %v11479_v22  ;;  %8045 = vmatpush.bf16.msrb.mxu0 %v11575_v53  ;;  %v11428_v22 = vld [vmem:[#allocation19 + $0x654] sm:$0xf0]  ;;  %v12522_v53 = vld [vmem:[#allocation19 + $0x574] sm:$0xf] }
 0x8a9   :  { %v11431_v42 = vor.u32 %v12549_v20, %v11428_v22  ;;  %v11395_v20 = vor.u32 %v12540_v30, %v11392_v39  ;;  %v12516_v22 = vld [vmem:[#allocation19 + $0x544] sm:$0xf]  ;;  %v12627_v30 = vld [vmem:[#allocation19 + $0x8bc] sm:$0xf]  ;;  %v11740_v39 = vld [vmem:[#allocation19 + $0x8c4] sm:$0xf0] }
 0x8aa   :  { %8006 = vmatpush.bf16.msra.mxu1 %v11251_v50  ;;  %8020 = vmatpush.bf16.msrb.mxu2 %v11347_v33  ;;  %v11503_v50 = vor.u32 %v12567_v56, %v11500_v31  ;;  %v11299_v59 = vor.u32 %v12516_v22, %v11296_v6  ;;  %v10678_v56 = vld [vmem:[#allocation19 + $0x68] sm:$0xf]  ;;  %v12362_v31 = vld [vmem:[#allocation19 + $0x70] sm:$0xf0]  ;;  %v12624_v6 = vld [vmem:[#allocation19 + $0x8a4] sm:$0xf] }
 0x8ac   :  { %8032 = vmatpush.bf16.msra.mxu3 %v11467_v46  ;;  %8046 = vmatpush.bf16.msrb.mxu0 %v11563_v49  ;;  %v11335_v46 = vor.u32 %v12525_v3, %v11332_v43  ;;  %v12519_v49 = vld [vmem:[#allocation19 + $0x55c] sm:$0xf]  ;;  %v12564_v3 = vld [vmem:[#allocation19 + $0x6c4] sm:$0xf]  ;;  %v11488_v43 = vld [vmem:[#allocation19 + $0x6cc] sm:$0xf0] }
 0x8ad   :  { %7955 = vmatmul.bf16.vlgmr.msrb.gmra.mxu1 %v13819_v60  ;;  %7969 = vmatmul.bf16.vlgmr.msra.gmra.mxu2 %v13822_v2  ;;  %v11311_v27 = vor.u32 %v12519_v49, %v11308_v37  ;;  %v11644_v49 = vld [vmem:[#allocation19 + $0x804] sm:$0xf0]  ;;  %v10691_v37 = vor.u32 %v12365_v13, %v10690_v1  ;;  %v12618_v1 = vld [vmem:[#allocation19 + $0x874] sm:$0xf]  ;;  %v11704_v13 = vld [vmem:[#allocation19 + $0x87c] sm:$0xf0] }
 0x8ae   :  { %8007 = vmatpush.bf16.msra.mxu1 %v11239_v4  ;;  %8021 = vmatpush.bf16.msrb.mxu2 %v11335_v46  ;;  %v12395_v4 = vld [vmem:[#allocation19 + $0x178] sm:$0xf0]  ;;  %v11671_v46 = vor.u32 %v12609_v41, %v11668_v9  ;;  %v11728_v41 = vld [vmem:[#allocation19 + $0x8ac] sm:$0xf0]  ;;  %v10774_v9 = vld [vmem:[#allocation19 + $0x128] sm:$0xf] }
 0x8b0   :  { %8033 = vmatpush.bf16.msra.mxu3 %v11455_v18  ;;  %8047 = vmatpush.bf16.msrb.mxu0 %v11551_v55  ;;  %v11323_v18 = vor.u32 %v12522_v53, %v11320_v38  ;;  %v11200_v55 = vld [vmem:[#allocation19 + $0x48c] sm:$0xf0]  ;;  %v11656_v53 = vld [vmem:[#allocation19 + $0x81c] sm:$0xf0] }
 0x8b1   :  { %v11203_v47 = vor.u32 %v12492_v32, %v11200_v55  ;;  %v11659_v29 = vor.u32 %v12606_v10, %v11656_v53  ;;  %v12600_v32 = vld [vmem:[#allocation19 + $0x7e4] sm:$0xf]  ;;  %v11632_v55 = vld [vmem:[#allocation19 + $0x7ec] sm:$0xf0] }
 0x8b2   :  { %8008 = vmatpush.bf16.msra.mxu1 %v11227_v34  ;;  %8022 = vmatpush.bf16.msrb.mxu2 %v11323_v18  ;;  %v10798_v34 = vld [vmem:[#allocation19 + $0x158] sm:$0xf]  ;;  %v12392_v18 = vld [vmem:[#allocation19 + $0x160] sm:$0xf0] }
 0x8b4   :  { %8034 = vmatpush.bf16.msra.mxu3 %v11443_v28  ;;  %8048 = vmatpush.bf16.msrb.mxu0 %v11539_v36  ;;  %v12371_v28 = vld [vmem:[#allocation19 + $0xb8] sm:$0xf0]  ;;  %v10702_v36 = vld [vmem:[#allocation19 + $0x98] sm:$0xf] }
 0x8b5   :  { %v10715_v33 = vor.u32 %v12371_v28, %v10714_v52  ;;  %v10703_v38 = vor.u32 %v12368_v21, %v10702_v36  ;;  %v10786_v52 = vld [vmem:[#allocation19 + $0x140] sm:$0xf]  ;;  %v12389_v28 = vld [vmem:[#allocation19 + $0x148] sm:$0xf0]  ;;  %v11620_v36 = vld [vmem:[#allocation19 + $0x7d4] sm:$0xf0] }
 0x8b6   :  { %8009 = vmatpush.bf16.msra.mxu1 %v11215_v44  ;;  %8023 = vmatpush.bf16.msrb.mxu2 %v11311_v27  ;;  %v11647_v44 = vor.u32 %v12603_v14, %v11644_v49  ;;  %v11743_v27 = vor.u32 %v12627_v30, %v11740_v39  ;;  %v10787_v22 = vor.u32 %v12389_v28, %v10786_v52  ;;  %v12621_v21 = vld [vmem:[#allocation19 + $0x88c] sm:$0xf]  ;;  %v10630_v52 = vld [vmem:[#allocation19 + $0x8] sm:$0xf]  ;;  %v12350_v28 = vld [vmem:[#allocation19 + $0x10] sm:$0xf0] }
 0x8b7   :  { %v11707_v49 = vor.u32 %v12618_v1, %v11704_v13  ;;  %v12416_v1 = vld [vmem:[#allocation19 + $0x220] sm:$0xf0]  ;;  %v10990_v13 = vld [vmem:[#allocation19 + $0x2d8] sm:$0xf] }
 0x8b8   :  { %8035 = vmatpush.bf16.msra.mxu3 %v11431_v42  ;;  %8049 = vmatpush.bf16.msrb.mxu0 %v11527_v57  ;;  %v12633_v42 = vld [vmem:[#allocation19 + $0x8ec] sm:$0xf]  ;;  %v10811_v57 = vor.u32 %v12395_v4, %v10810_v61  ;;  %v11716_v61 = vld [vmem:[#allocation19 + $0x894] sm:$0xf0] }
 0x8b9   :  { %v11767_v35 = vor.u32 %v12633_v42, %v11764_v5  ;;  %v12386_v42 = vld [vmem:[#allocation19 + $0x130] sm:$0xf0]  ;;  %v11635_v5 = vor.u32 %v12600_v32, %v11632_v55  ;;  %v10654_v4 = vld [vmem:[#allocation19 + $0x38] sm:$0xf]  ;;  %v11719_v53 = vor.u32 %v12621_v21, %v11716_v61  ;;  %v11098_v55 = vld [vmem:[#allocation19 + $0x3b0] sm:$0xf] }
 0x8ba   :  { %8010 = vmatpush.bf16.msra.mxu1 %v11203_v47  ;;  %8024 = vmatpush.bf16.msrb.mxu2 %v11299_v59  ;;  %v10775_v59 = vor.u32 %v12386_v42, %v10774_v9  ;;  %v11680_v42 = vld [vmem:[#allocation19 + $0x84c] sm:$0xf0]  ;;  %v12374_v61 = vld [vmem:[#allocation19 + $0xd0] sm:$0xf0] }
 0x8bc   :  { %8036 = vmatpush.bf16.msra.mxu3 %v11419_v11  ;;  %8050 = vmatpush.bf16.msrb.mxu0 %v11515_v12  ;;  %v11491_v11 = vor.u32 %v12564_v3, %v11488_v43  ;;  %v10799_v12 = vor.u32 %v12392_v18, %v10798_v34  ;;  %v11731_v3 = vor.u32 %v12624_v6, %v11728_v41  ;;  %v12597_v43 = vld [vmem:[#allocation19 + $0x7cc] sm:$0xf]  ;;  %v10642_v34 = vld [vmem:[#allocation19 + $0x20] sm:$0xf]  ;;  %v12588_v6 = vld [vmem:[#allocation19 + $0x784] sm:$0xf] }
 0x8bd   :  { %8011 = vmatmul.bf16.vlgmr.msra.gmra.mxu1 %v13864_v54  ;;  %8025 = vmatmul.bf16.vlgmr.msrb.gmra.mxu2 %v13866_v7  ;;  %v11623_v10 = vor.u32 %v12597_v43, %v11620_v36  ;;  %v12353_v18 = vld [vmem:[#allocation19 + $0x28] sm:$0xf0]  ;;  %v11584_v41 = vld [vmem:[#allocation19 + $0x78c] sm:$0xf0] }
 0x8be   :  { %8059 = vmatpush.bf16.msrb.mxu1 %v11671_v46  ;;  %8073 = vmatpush.bf16.msra.mxu2 %v11767_v35  ;;  %v12356_v46 = vld [vmem:[#allocation19 + $0x40] sm:$0xf0]  ;;  %v10762_v35 = vld [vmem:[#allocation19 + $0x110] sm:$0xf]  ;;  %v10643_v30 = vor.u32 %v12353_v18, %v10642_v34  ;;  %v11587_v21 = vor.u32 %v12588_v6, %v11584_v41  ;;  %v11074_v18 = vld [vmem:[#allocation19 + $0x380] sm:$0xf] }
 0x8bf   :  { %v11002_v36 = vld [vmem:[#allocation19 + $0x2f0] sm:$0xf]  ;;  %v12440_v34 = vld [vmem:[#allocation19 + $0x2e0] sm:$0xf0]  ;;  %v10870_v6 = vld [vmem:[#allocation19 + $0x1e8] sm:$0xf] }
 0x8c0   :  { %8037 = vmatpush.bf16.msra.mxu3 %v11407_v51  ;;  %8051 = vmatpush.bf16.msrb.mxu0 %v11503_v50  ;;  %v11755_v51 = vor.u32 %v12630_v62, %v11752_v24  ;;  %v10666_v50 = vld [vmem:[#allocation19 + $0x50] sm:$0xf]  ;;  %v10655_v62 = vor.u32 %v12356_v46, %v10654_v4  ;;  %v11086_v4 = vld [vmem:[#allocation19 + $0x398] sm:$0xf]  ;;  %v12464_v46 = vld [vmem:[#allocation19 + $0x3a0] sm:$0xf0] }
 0x8c1   :  { %v12410_v41 = vld [vmem:[#allocation19 + $0x1f0] sm:$0xf0] }
 0x8c2   :  { %8060 = vmatpush.bf16.msrb.mxu1 %v11659_v29  ;;  %8074 = vmatpush.bf16.msra.mxu2 %v11755_v51  ;;  %v10750_v29 = vld [vmem:[#allocation19 + $0xf8] sm:$0xf]  ;;  %v12380_v51 = vld [vmem:[#allocation19 + $0x100] sm:$0xf0] }
 0x8c3   :  { %v10751_v39 = vor.u32 %v12380_v51, %v10750_v29  ;;  %v12461_v29 = vld [vmem:[#allocation19 + $0x388] sm:$0xf0] }
 0x8c4   :  { %8038 = vmatpush.bf16.msra.mxu3 %v11395_v20  ;;  %8052 = vmatpush.bf16.msrb.mxu0 %v11491_v11  ;;  %v10679_v20 = vor.u32 %v12362_v31, %v10678_v56  ;;  %v12383_v11 = vld [vmem:[#allocation19 + $0x118] sm:$0xf0]  ;;  %v11692_v31 = vld [vmem:[#allocation19 + $0x864] sm:$0xf0] }
 0x8c5   :  { %v10763_v24 = vor.u32 %v12383_v11, %v10762_v35  ;;  %v12615_v56 = vld [vmem:[#allocation19 + $0x85c] sm:$0xf] }
 0x8c6   :  { %8061 = vmatpush.bf16.msrb.mxu1 %v11647_v44  ;;  %8075 = vmatpush.bf16.msra.mxu2 %v11743_v27  ;;  %v10738_v44 = vld [vmem:[#allocation19 + $0xe0] sm:$0xf]  ;;  %v12377_v27 = vld [vmem:[#allocation19 + $0xe8] sm:$0xf0] }
 0x8c7   :  { %8039 = vmatmul.bf16.vlgmr.msra.gmra.mxu3 %v13877_v48  ;;  %8053 = vmatmul.bf16.vlgmr.msrb.gmra.mxu0 %v13885_v0  ;;  %v10739_v9 = vor.u32 %v12377_v27, %v10738_v44 }
 0x8c8   :  { %8087 = vmatpush.bf16.msrb.mxu3 %v10715_v33  ;;  %8101 = vmatpush.bf16.msra.mxu0 %v10811_v57  ;;  %v12359_v33 = vld [vmem:[#allocation19 + $0x58] sm:$0xf0]  ;;  %v11608_v57 = vld [vmem:[#allocation19 + $0x7bc] sm:$0xf0] }
 0x8c9   :  { %v10667_v47 = vor.u32 %v12359_v33, %v10666_v50  ;;  %v12612_v50 = vld [vmem:[#allocation19 + $0x844] sm:$0xf]  ;;  %v10631_v33 = vor.u32 %v12350_v28, %v10630_v52  ;;  %v12437_v52 = vld [vmem:[#allocation19 + $0x2c8] sm:$0xf0]  ;;  %v11062_v28 = vld [vmem:[#allocation19 + $0x368] sm:$0xf] }
 0x8ca   :  { %8062 = vmatpush.bf16.msrb.mxu1 %v11635_v5  ;;  %8076 = vmatpush.bf16.msra.mxu2 %v11731_v3  ;;  %v10906_v5 = vld [vmem:[#allocation19 + $0x230] sm:$0xf]  ;;  %v12419_v3 = vld [vmem:[#allocation19 + $0x238] sm:$0xf0]  ;;  %v11683_v35 = vor.u32 %v12612_v50, %v11680_v42  ;;  %v10966_v50 = vld [vmem:[#allocation19 + $0x2a8] sm:$0xf] }
 0x8cb   :  { %v10907_v11 = vor.u32 %v12419_v3, %v10906_v5  ;;  %v12455_v42 = vld [vmem:[#allocation19 + $0x358] sm:$0xf0]  ;;  %v10871_v3 = vor.u32 %v12410_v41, %v10870_v6  ;;  %v10822_v6 = vld [vmem:[#allocation19 + $0x188] sm:$0xf] }
 0x8cc   :  { %8088 = vmatpush.bf16.msrb.mxu3 %v10703_v38  ;;  %8102 = vmatpush.bf16.msra.mxu0 %v10799_v12  ;;  %v12594_v38 = vld [vmem:[#allocation19 + $0x7b4] sm:$0xf]  ;;  %v11596_v12 = vld [vmem:[#allocation19 + $0x7a4] sm:$0xf0] }
 0x8cd   :  { %v11611_v14 = vor.u32 %v12594_v38, %v11608_v57  ;;  %v12491_v38 = vld [vmem:[#allocation19 + $0x478] sm:$0xf0] }
 0x8ce   :  { %8063 = vmatpush.bf16.msrb.mxu1 %v11623_v10  ;;  %8077 = vmatpush.bf16.msra.mxu2 %v11719_v53  ;;  %v11194_v53 = vld [vmem:[#allocation19 + $0x470] sm:$0xf] }
 0x8cf   :  { %v11195_v51 = vor.u32 %v12491_v38, %v11194_v53  ;;  %v11146_v53 = vld [vmem:[#allocation19 + $0x410] sm:$0xf]  ;;  %v12479_v38 = vld [vmem:[#allocation19 + $0x418] sm:$0xf0] }
 0x8d0   :  { %8089 = vmatpush.bf16.msrb.mxu3 %v10691_v37  ;;  %8103 = vmatpush.bf16.msra.mxu0 %v10787_v22  ;;  %v12591_v37 = vld [vmem:[#allocation19 + $0x79c] sm:$0xf]  ;;  %v11695_v22 = vor.u32 %v12615_v56, %v11692_v31  ;;  %v12413_v56 = vld [vmem:[#allocation19 + $0x208] sm:$0xf0]  ;;  %v10978_v31 = vld [vmem:[#allocation19 + $0x2c0] sm:$0xf] }
 0x8d1   :  { %v11599_v32 = vor.u32 %v12591_v37, %v11596_v12  ;;  %v12488_v37 = vld [vmem:[#allocation19 + $0x460] sm:$0xf0]  ;;  %v10991_v12 = vor.u32 %v12440_v34, %v10990_v13  ;;  %v10942_v13 = vld [vmem:[#allocation19 + $0x278] sm:$0xf] }
 0x8d2   :  { %8064 = vmatpush.bf16.msrb.mxu1 %v11611_v14  ;;  %8078 = vmatpush.bf16.msra.mxu2 %v11707_v49  ;;  %v11182_v49 = vld [vmem:[#allocation19 + $0x458] sm:$0xf]  ;;  %v12428_v34 = vld [vmem:[#allocation19 + $0x280] sm:$0xf0] }
 0x8d3   :  { %v11183_v44 = vor.u32 %v12488_v37, %v11182_v49  ;;  %v11134_v49 = vld [vmem:[#allocation19 + $0x3f8] sm:$0xf]  ;;  %v12476_v37 = vld [vmem:[#allocation19 + $0x400] sm:$0xf0] }
 0x8d4   :  { %8090 = vmatpush.bf16.msrb.mxu3 %v10679_v20  ;;  %8104 = vmatpush.bf16.msra.mxu0 %v10775_v59  ;;  %v12467_v20 = vld [vmem:[#allocation19 + $0x3b8] sm:$0xf0]  ;;  %v10726_v59 = vld [vmem:[#allocation19 + $0xc8] sm:$0xf] }
 0x8d5   :  { %v11099_v43 = vor.u32 %v12467_v20, %v11098_v55  ;;  %v10727_v57 = vor.u32 %v12374_v61, %v10726_v59  ;;  %v12485_v55 = vld [vmem:[#allocation19 + $0x448] sm:$0xf0]  ;;  %v10979_v20 = vor.u32 %v12437_v52, %v10978_v31  ;;  %v10858_v59 = vld [vmem:[#allocation19 + $0x1d0] sm:$0xf]  ;;  %v10930_v31 = vld [vmem:[#allocation19 + $0x260] sm:$0xf] }
 0x8d6   :  { %8065 = vmatpush.bf16.msrb.mxu1 %v11599_v32  ;;  %8079 = vmatpush.bf16.msra.mxu2 %v11695_v22  ;;  %v11170_v32 = vld [vmem:[#allocation19 + $0x440] sm:$0xf]  ;;  %v10954_v61 = vld [vmem:[#allocation19 + $0x290] sm:$0xf]  ;;  %v12425_v52 = vld [vmem:[#allocation19 + $0x268] sm:$0xf0] }
 0x8d7   :  { %v11171_v5 = vor.u32 %v12485_v55, %v11170_v32  ;;  %v12563_v32 = vld [vmem:[#allocation19 + $0x6b8] sm:$0xf0]  ;;  %v10931_v41 = vor.u32 %v12425_v52, %v10930_v31  ;;  %v11266_v31 = vld [vmem:[#allocation19 + $0x500] sm:$0xf]  ;;  %v12509_v52 = vld [vmem:[#allocation19 + $0x508] sm:$0xf0] }
 0x8d8   :  { %8091 = vmatpush.bf16.msrb.mxu3 %v10667_v47  ;;  %8105 = vmatpush.bf16.msra.mxu0 %v10763_v24  ;;  %v12443_v47 = vld [vmem:[#allocation19 + $0x2f8] sm:$0xf0]  ;;  %v10894_v24 = vld [vmem:[#allocation19 + $0x218] sm:$0xf] }
 0x8d9   :  { %v11003_v10 = vor.u32 %v12443_v47, %v11002_v36  ;;  %v10895_v14 = vor.u32 %v12416_v1, %v10894_v24  ;;  %v10846_v24 = vld [vmem:[#allocation19 + $0x1b8] sm:$0xf]  ;;  %v12404_v1 = vld [vmem:[#allocation19 + $0x1c0] sm:$0xf0] }
 0x8da   :  { %8066 = vmatpush.bf16.msrb.mxu1 %v11587_v21  ;;  %8080 = vmatpush.bf16.msra.mxu2 %v11683_v35  ;;  %v12407_v21 = vld [vmem:[#allocation19 + $0x1d8] sm:$0xf0]  ;;  %v12452_v35 = vld [vmem:[#allocation19 + $0x340] sm:$0xf0] }
 0x8dc   :  { %8092 = vmatpush.bf16.msrb.mxu3 %v10655_v62  ;;  %8106 = vmatpush.bf16.msra.mxu0 %v10751_v39  ;;  %v11087_v62 = vor.u32 %v12464_v46, %v11086_v4  ;;  %v10882_v39 = vld [vmem:[#allocation19 + $0x200] sm:$0xf]  ;;  %v12431_v4 = vld [vmem:[#allocation19 + $0x298] sm:$0xf0]  ;;  %v11038_v46 = vld [vmem:[#allocation19 + $0x338] sm:$0xf] }
 0x8dd   :  { %8067 = vmatmul.bf16.vlgmr.msrb.gmra.mxu1 %v13894_v58  ;;  %8081 = vmatmul.bf16.vlgmr.msra.gmra.mxu2 %v13896_v40  ;;  %v10883_v27 = vor.u32 %v12413_v56, %v10882_v39  ;;  %v10834_v39 = vld [vmem:[#allocation19 + $0x1a0] sm:$0xf]  ;;  %v12401_v56 = vld [vmem:[#allocation19 + $0x1a8] sm:$0xf0] }
 0x8de   :  { %8115 = vmatpush.bf16.msra.mxu1 %v10907_v11  ;;  %8129 = vmatpush.bf16.msrb.mxu2 %v11003_v10  ;;  %v10859_v10 = vor.u32 %v12407_v21, %v10858_v59  ;;  %v10835_v55 = vor.u32 %v12401_v56, %v10834_v39  ;;  %v11470_v59 = vld [vmem:[#allocation19 + $0x698] sm:$0xf]  ;;  %v12560_v21 = vld [vmem:[#allocation19 + $0x6a0] sm:$0xf0]  ;;  %v13917_v39 = vpop.f32.mrf.mxu1 }
 0x8e0   :  { %8093 = vmatpush.bf16.msrb.mxu3 %v10643_v30  ;;  %8107 = vmatpush.bf16.msra.mxu0 %v10739_v9  ;;  %v11075_v30 = vor.u32 %v12461_v29, %v11074_v18  ;;  %v11050_v9 = vld [vmem:[#allocation19 + $0x350] sm:$0xf]  ;;  %v11026_v18 = vld [vmem:[#allocation19 + $0x320] sm:$0xf]  ;;  %v12449_v29 = vld [vmem:[#allocation19 + $0x328] sm:$0xf0] }
 0x8e1   :  { %v11051_v47 = vor.u32 %v12455_v42, %v11050_v9  ;;  %v10918_v9 = vld [vmem:[#allocation19 + $0x248] sm:$0xf]  ;;  %v12422_v42 = vld [vmem:[#allocation19 + $0x250] sm:$0xf0] }
 0x8e2   :  { %8116 = vmatpush.bf16.msra.mxu1 %v10895_v14  ;;  %8130 = vmatpush.bf16.msrb.mxu2 %v10991_v12  ;;  %v10847_v14 = vor.u32 %v12404_v1, %v10846_v24  ;;  %v10943_v12 = vor.u32 %v12428_v34, %v10942_v13  ;;  %v11278_v24 = vld [vmem:[#allocation19 + $0x518] sm:$0xf]  ;;  %v12512_v1 = vld [vmem:[#allocation19 + $0x520] sm:$0xf0] }
 0x8e3   :  { %v11374_v34 = vld [vmem:[#allocation19 + $0x5d8] sm:$0xf] }
 0x8e4   :  { %8094 = vmatpush.bf16.msrb.mxu3 %v10631_v33  ;;  %8108 = vmatpush.bf16.msra.mxu0 %v10727_v57  ;;  %v12434_v33 = vld [vmem:[#allocation19 + $0x2b0] sm:$0xf0]  ;;  %v10955_v57 = vor.u32 %v12431_v4, %v10954_v61  ;;  %v11110_v4 = vld [vmem:[#allocation19 + $0x3c8] sm:$0xf] }
 0x8e5   :  { %v10967_v36 = vor.u32 %v12434_v33, %v10966_v50  ;;  %v12398_v33 = vld [vmem:[#allocation19 + $0x190] sm:$0xf0] }
 0x8e6   :  { %8117 = vmatpush.bf16.msra.mxu1 %v10883_v27  ;;  %8131 = vmatpush.bf16.msrb.mxu2 %v10979_v20  ;;  %v11482_v27 = vld [vmem:[#allocation19 + $0x6b0] sm:$0xf]  ;;  %v11122_v20 = vld [vmem:[#allocation19 + $0x3e0] sm:$0xf]  ;;  %v10823_v61 = vor.u32 %v12398_v33, %v10822_v6  ;;  %v12581_v6 = vld [vmem:[#allocation19 + $0x748] sm:$0xf0] }
 0x8e7   :  { %8095 = vmatmul.bf16.vlgmr.msrb.gmra.mxu3 %v13809_v26  ;;  %v12458_v26 = vld [vmem:[#allocation19 + $0x370] sm:$0xf0]  ;;  %8109 = vmatmul.bf16.vlgmr.msra.gmra.mxu0 %v13815_v8 }
 0x8e8   :  { %8143 = vmatpush.bf16.msra.mxu3 %v11099_v43  ;;  %8157 = vmatpush.bf16.msrb.mxu0 %v11195_v51  ;;  %v11063_v22 = vor.u32 %v12458_v26, %v11062_v28  ;;  %v11158_v43 = vld [vmem:[#allocation19 + $0x428] sm:$0xf]  ;;  %v12482_v8 = vld [vmem:[#allocation19 + $0x430] sm:$0xf0]  ;;  %v11147_v51 = vor.u32 %v12479_v38, %v11146_v53  ;;  %v12587_v53 = vld [vmem:[#allocation19 + $0x778] sm:$0xf0]  ;;  %v13912_v38 = vpop.f32.mrf.mxu3 }
 0x8e9   :  { %v11159_v11 = vor.u32 %v12482_v8, %v11158_v43  ;;  %v11014_v28 = vld [vmem:[#allocation19 + $0x308] sm:$0xf]  ;;  %v12446_v26 = vld [vmem:[#allocation19 + $0x310] sm:$0xf0]  ;;  %v12515_v43 = vld [vmem:[#allocation19 + $0x538] sm:$0xf0] }
 0x8ea   :  { %8118 = vmatpush.bf16.msra.mxu1 %v10871_v3  ;;  %8132 = vmatpush.bf16.msrb.mxu2 %v10967_v36  ;;  %v11015_v50 = vor.u32 %v12446_v26, %v11014_v28  ;;  %v11290_v3 = vld [vmem:[#allocation19 + $0x530] sm:$0xf]  ;;  %v12533_v26 = vld [vmem:[#allocation19 + $0x5c8] sm:$0xf0] }
 0x8eb   :  { %v11386_v8 = vld [vmem:[#allocation19 + $0x5f0] sm:$0xf] }
 0x8ec   :  { %8144 = vmatpush.bf16.msra.mxu3 %v11087_v62  ;;  %8158 = vmatpush.bf16.msrb.mxu0 %v11183_v44  ;;  %v11039_v62 = vor.u32 %v12452_v35, %v11038_v46  ;;  %v11135_v44 = vor.u32 %v12476_v37, %v11134_v49  ;;  %v12470_v46 = vld [vmem:[#allocation19 + $0x3d0] sm:$0xf0]  ;;  %v10919_v35 = vor.u32 %v12422_v42, %v10918_v9  ;;  %v12557_v49 = vld [vmem:[#allocation19 + $0x688] sm:$0xf0]  ;;  %v11350_v42 = vld [vmem:[#allocation19 + $0x5a8] sm:$0xf] }
 0x8ed   :  { %v11111_v13 = vor.u32 %v12470_v46, %v11110_v4  ;;  %v11279_v37 = vor.u32 %v12512_v1, %v11278_v24  ;;  %v11242_v4 = vld [vmem:[#allocation19 + $0x4d0] sm:$0xf]  ;;  %v12503_v46 = vld [vmem:[#allocation19 + $0x4d8] sm:$0xf0]  ;;  %v11422_v24 = vld [vmem:[#allocation19 + $0x638] sm:$0xf] }
 0x8ee   :  { %8119 = vmatpush.bf16.msra.mxu1 %v10859_v10  ;;  %8133 = vmatpush.bf16.msrb.mxu2 %v10955_v57  ;;  %v11578_v10 = vld [vmem:[#allocation19 + $0x770] sm:$0xf]  ;;  %v12548_v1 = vld [vmem:[#allocation19 + $0x640] sm:$0xf0] }
 0x8f0   :  { %8145 = vmatpush.bf16.msra.mxu3 %v11075_v30  ;;  %8159 = vmatpush.bf16.msrb.mxu0 %v11171_v5  ;;  %v11027_v30 = vor.u32 %v12449_v29, %v11026_v18  ;;  %v11483_v5 = vor.u32 %v12563_v32, %v11482_v27  ;;  %v12536_v18 = vld [vmem:[#allocation19 + $0x5e0] sm:$0xf0]  ;;  %v13914_v29 = vpop.f32.mrf.mxu0  ;;  %v11446_v32 = vld [vmem:[#allocation19 + $0x668] sm:$0xf] }
 0x8f1   :  { %v11375_v56 = vor.u32 %v12536_v18, %v11374_v34  ;;  %v11530_v34 = vld [vmem:[#allocation19 + $0x710] sm:$0xf]  ;;  %v12575_v18 = vld [vmem:[#allocation19 + $0x718] sm:$0xf0] }
 0x8f2   :  { %8120 = vmatpush.bf16.msra.mxu1 %v10847_v14  ;;  %8134 = vmatpush.bf16.msrb.mxu2 %v10943_v12  ;;  %v11458_v14 = vld [vmem:[#allocation19 + $0x680] sm:$0xf]  ;;  %v11566_v12 = vld [vmem:[#allocation19 + $0x758] sm:$0xf] }
 0x8f3   :  { %v11459_v28 = vor.u32 %v12557_v49, %v11458_v14  ;;  %v11230_v14 = vld [vmem:[#allocation19 + $0x4b8] sm:$0xf]  ;;  %v12500_v49 = vld [vmem:[#allocation19 + $0x4c0] sm:$0xf0] }
 0x8f4   :  { %8146 = vmatpush.bf16.msra.mxu3 %v11063_v22  ;;  %8160 = vmatpush.bf16.msrb.mxu0 %v11159_v11  ;;  %v12473_v22 = vld [vmem:[#allocation19 + $0x3e8] sm:$0xf0]  ;;  %v11291_v11 = vor.u32 %v12515_v43, %v11290_v3  ;;  %v7762_v3 = vpop.f32.mrf.mxu3 }
 0x8f5   :  { %v11123_v36 = vor.u32 %v12473_v22, %v11122_v20  ;;  %v11267_v20 = vor.u32 %v12509_v52, %v11266_v31  ;;  %v11554_v22 = vld [vmem:[#allocation19 + $0x740] sm:$0xf]  ;;  %v11531_v31 = vor.u32 %v12575_v18, %v11530_v34  ;;  %v11494_v34 = vld [vmem:[#allocation19 + $0x6c8] sm:$0xf]  ;;  %v12566_v18 = vld [vmem:[#allocation19 + $0x6d0] sm:$0xf0] }
 0x8f6   :  { %8121 = vmatpush.bf16.msra.mxu1 %v10835_v55  ;;  %8135 = vmatpush.bf16.msrb.mxu2 %v10931_v41  ;;  %v12554_v55 = vld [vmem:[#allocation19 + $0x670] sm:$0xf0]  ;;  %v11555_v43 = vor.u32 %v12581_v6, %v11554_v22  ;;  %v11410_v52 = vld [vmem:[#allocation19 + $0x620] sm:$0xf]  ;;  %v12497_v6 = vld [vmem:[#allocation19 + $0x4a8] sm:$0xf0] }
 0x8f7   :  { %v11447_v9 = vor.u32 %v12554_v55, %v11446_v32  ;;  %v11218_v22 = vld [vmem:[#allocation19 + $0x4a0] sm:$0xf] }
 0x8f8   :  { %8147 = vmatpush.bf16.msra.mxu3 %v11051_v47  ;;  %8161 = vmatpush.bf16.msrb.mxu0 %v11147_v51  ;;  %v12539_v47 = vld [vmem:[#allocation19 + $0x5f8] sm:$0xf0]  ;;  %v11579_v51 = vor.u32 %v12587_v53, %v11578_v10  ;;  %v11338_v10 = vld [vmem:[#allocation19 + $0x590] sm:$0xf] }
 0x8f9   :  { %v11387_v57 = vor.u32 %v12539_v47, %v11386_v8  ;;  %v11434_v8 = vld [vmem:[#allocation19 + $0x650] sm:$0xf]  ;;  %v12527_v53 = vld [vmem:[#allocation19 + $0x598] sm:$0xf0] }
 0x8fa   :  { %8122 = vmatpush.bf16.msra.mxu1 %v10823_v61  ;;  %8136 = vmatpush.bf16.msrb.mxu2 %v10919_v35 }
 0x8fc   :  { %8148 = vmatpush.bf16.msra.mxu3 %v11039_v62  ;;  %8162 = vmatpush.bf16.msrb.mxu0 %v11135_v44  ;;  %v11471_v62 = vor.u32 %v12560_v21, %v11470_v59  ;;  %v13920_v44 = vld [vmem:[#allocation20] sm:$0x7]  ;;  %v12578_v59 = vld [vmem:[#allocation19 + $0x730] sm:$0xf0]  ;;  %v13927_v21 = vpop.f32.mrf.mxu0 }
 0x8fd   :  { %8123 = vmatmul.bf16.vlgmr.msra.gmra.mxu1 %v13819_v60  ;;  %8137 = vmatmul.bf16.vlgmr.msrb.gmra.mxu2 %v13822_v2  ;;  %v11254_v60 = vld [vmem:[#allocation19 + $0x4e8] sm:$0xf]  ;;  %v6209_v33 = vperm.slane %v13920_v44, 0  ;;  %v12530_v2 = vld [vmem:[#allocation19 + $0x5b0] sm:$0xf0] }
 0x8fe   :  { %8171 = vmatpush.bf16.msrb.mxu1 %v11291_v11  ;;  %8185 = vmatpush.bf16.msra.mxu2 %v11387_v57  ;;  %v11351_v61 = vor.u32 %v12530_v2, %v11350_v42  ;;  %v13930_v57 = vpop.f32.mrf.mxu1 }
 0x8ff   :  { %v7761_v35 = vadd.f32 %v13912_v38, %v6209_v33 }
 0x900   :  { %8149 = vmatpush.bf16.msra.mxu3 %v11027_v30  ;;  %8163 = vmatpush.bf16.msrb.mxu0 %v11123_v36  ;;  %v12584_v30 = vld [vmem:[#allocation19 + $0x760] sm:$0xf0]  ;;  %v12551_v36 = vld [vmem:[#allocation19 + $0x658] sm:$0xf0] }
 0x901   :  { %v11567_v27 = vor.u32 %v12584_v30, %v11566_v12  ;;  %v11435_v11 = vor.u32 %v12551_v36, %v11434_v8  ;;  %v7775_v38 = vadd.f32 %v13914_v29, %v7761_v35  ;;  %v11326_v12 = vld [vmem:[#allocation19 + $0x578] sm:$0xf]  ;;  %v12524_v30 = vld [vmem:[#allocation19 + $0x580] sm:$0xf0]  ;;  %v12542_v8 = vld [vmem:[#allocation19 + $0x610] sm:$0xf0]  ;;  %v11219_v36 = vor.u32 %v12497_v6, %v11218_v22 }
 0x902   :  { %8172 = vmatpush.bf16.msrb.mxu1 %v11279_v37  ;;  %8186 = vmatpush.bf16.msra.mxu2 %v11375_v56  ;;  %v11423_v37 = vor.u32 %v12548_v1, %v11422_v24  ;;  %v7816_v56 = vpop.f32.mrf.mxu3  ;;  %v12518_v35 = vld [vmem:[#allocation19 + $0x550] sm:$0xf0]  ;;  %v12635_v24 = vld [vmem:[#allocation19 + $0x8f8] sm:$0xf0]  ;;  %v12605_v22 = vld [vmem:[#allocation19 + $0x808] sm:$0xf0] }
 0x903   :  { %v7789_v29 = vadd.f32 %v13917_v39, %v7775_v38 }
 0x904   :  { %8150 = vmatpush.bf16.msra.mxu3 %v11015_v50  ;;  %8164 = vmatpush.bf16.msrb.mxu0 %v11111_v13  ;;  %v12506_v50 = vld [vmem:[#allocation19 + $0x4f0] sm:$0xf0]  ;;  %v11243_v13 = vor.u32 %v12503_v46, %v11242_v4  ;;  %v7830_v55 = vpop.f32.mrf.mxu0  ;;  %v11302_v46 = vld [vmem:[#allocation19 + $0x548] sm:$0xf] }
 0x905   :  { %v11255_v47 = vor.u32 %v12506_v50, %v11254_v60  ;;  %v11314_v50 = vld [vmem:[#allocation19 + $0x560] sm:$0xf]  ;;  %v12494_v4 = vld [vmem:[#allocation19 + $0x490] sm:$0xf0] }
 0x906   :  { %8173 = vmatpush.bf16.msrb.mxu1 %v11267_v20  ;;  %v11327_v20 = vor.u32 %v12524_v30, %v11326_v12  ;;  %v7844_v42 = vpop.f32.mrf.mxu1  ;;  %v11495_v12 = vor.u32 %v12566_v18, %v11494_v34  ;;  %v11662_v30 = vld [vmem:[#allocation19 + $0x818] sm:$0xf]  ;;  %v12620_v18 = vld [vmem:[#allocation19 + $0x880] sm:$0xf0] }
 0x907   :  { %8151 = vmatmul.bf16.vlgmr.msra.gmra.mxu3 %v13862_v45  ;;  %v11362_v45 = vld [vmem:[#allocation19 + $0x5c0] sm:$0xf]  ;;  %8165 = vmatmul.bf16.vlgmr.msrb.gmra.mxu0 %v13868_v19  ;;  %v11542_v19 = vld [vmem:[#allocation19 + $0x728] sm:$0xf]  ;;  %v11710_v34 = vld [vmem:[#allocation19 + $0x878] sm:$0xf] }
 0x908   :  { %8199 = vmatpush.bf16.msrb.mxu3 %v11483_v5  ;;  %8213 = vmatpush.bf16.msra.mxu0 %v11579_v51  ;;  %v11363_v41 = vor.u32 %v12533_v26, %v11362_v45  ;;  %v13925_v5 = vpop.f32.mrf.mxu2  ;;  %v11339_v51 = vor.u32 %v12527_v53, %v11338_v10  ;;  %v11231_v45 = vor.u32 %v12500_v49, %v11230_v14  ;;  %v11518_v26 = vld [vmem:[#allocation19 + $0x6f8] sm:$0xf]  ;;  %v12611_v53 = vld [vmem:[#allocation19 + $0x838] sm:$0xf0] }
 0x909   :  { %v7803_v39 = vadd.f32 %v13925_v5, %v7789_v29  ;;  %v11303_v5 = vor.u32 %v12518_v35, %v11302_v46 }
 0x90a   :  { %8187 = vmatpush.bf16.msra.mxu2 %v11363_v41  ;;  %8174 = vmatpush.bf16.msrb.mxu1 %v11255_v47  ;;  %v7763_v41 = vadd.f32 %v7762_v3, %v6209_v33  ;;  %v11506_v47 = vld [vmem:[#allocation19 + $0x6e0] sm:$0xf]  ;;  %v7818_v14 = vpop.f32.mrf.mxu3 }
 0x90b   :  { %v7817_v1 = vadd.f32 %v7816_v56, %v7803_v39  ;;  %v11758_v56 = vld [vmem:[#allocation19 + $0x8d8] sm:$0xf] }
 0x90c   :  { %8200 = vmatpush.bf16.msrb.mxu3 %v11471_v62  ;;  %8214 = vmatpush.bf16.msra.mxu0 %v11567_v27  ;;  %v11543_v62 = vor.u32 %v12578_v59, %v11542_v19  ;;  %v12572_v27 = vld [vmem:[#allocation19 + $0x700] sm:$0xf0]  ;;  %v12569_v19 = vld [vmem:[#allocation19 + $0x6e8] sm:$0xf0]  ;;  %v7777_v33 = vadd.f32 %v13927_v21, %v7763_v41 }
 0x90d   :  { %v11519_v2 = vor.u32 %v12572_v27, %v11518_v26  ;;  %v11507_v10 = vor.u32 %v12569_v19, %v11506_v47  ;;  %v12629_v41 = vld [vmem:[#allocation19 + $0x8c8] sm:$0xf0] }
 0x90e   :  { %8188 = vmatpush.bf16.msra.mxu2 %v11351_v61  ;;  %8175 = vmatpush.bf16.msrb.mxu1 %v11243_v13  ;;  %v11206_v61 = vld [vmem:[#allocation19 + $0x488] sm:$0xf]  ;;  %v7791_v21 = vadd.f32 %v13930_v57, %v7777_v33  ;;  %v11722_v33 = vld [vmem:[#allocation19 + $0x890] sm:$0xf] }
 0x90f   :  { %v11207_v13 = vor.u32 %v12494_v4, %v11206_v61  ;;  %v11626_v61 = vld [vmem:[#allocation19 + $0x7d0] sm:$0xf] }
 0x910   :  { %8201 = vmatpush.bf16.msrb.mxu3 %v11459_v28  ;;  %8215 = vmatpush.bf16.msra.mxu0 %v11555_v43  ;;  %v12545_v28 = vld [vmem:[#allocation19 + $0x628] sm:$0xf0]  ;;  %v7804_v32 = vpop.f32.mrf.mxu2  ;;  %v11398_v43 = vld [vmem:[#allocation19 + $0x608] sm:$0xf] }
 0x911   :  { %v11411_v60 = vor.u32 %v12545_v28, %v11410_v52  ;;  %v11399_v3 = vor.u32 %v12542_v8, %v11398_v43  ;;  %v7831_v52 = vadd.f32 %v7830_v55, %v7817_v1  ;;  %v12632_v28 = vld [vmem:[#allocation19 + $0x8e0] sm:$0xf0]  ;;  %v7805_v26 = vadd.f32 %v7804_v32, %v7791_v21  ;;  %v11746_v55 = vld [vmem:[#allocation19 + $0x8c0] sm:$0xf] }
 0x912   :  { %8189 = vmatpush.bf16.msra.mxu2 %v11339_v51  ;;  %8176 = vmatpush.bf16.msrb.mxu1 %v11231_v45  ;;  %v7846_v45 = vpop.f32.mrf.mxu1  ;;  %v11759_v27 = vor.u32 %v12632_v28, %v11758_v56 }
 0x913   :  { %v7845_v6 = vadd.f32 %v7844_v42, %v7831_v52  ;;  %v7819_v29 = vadd.f32 %v7818_v14, %v7805_v26  ;;  %v12626_v42 = vld [vmem:[#allocation19 + $0x8b0] sm:$0xf0]  ;;  %v12617_v52 = vld [vmem:[#allocation19 + $0x868] sm:$0xf0] }
 0x914   :  { %8202 = vmatpush.bf16.msrb.mxu3 %v11447_v9  ;;  %8216 = vmatpush.bf16.msra.mxu0 %v11543_v62  ;;  %v12521_v9 = vld [vmem:[#allocation19 + $0x568] sm:$0xf0]  ;;  %v11770_v62 = vld [vmem:[#allocation19 + $0x8f0] sm:$0xf] }
 0x915   :  { %v11315_v59 = vor.u32 %v12521_v9, %v11314_v50  ;;  %v11771_v38 = vor.u32 %v12635_v24, %v11770_v62  ;;  %v11747_v9 = vor.u32 %v12629_v41, %v11746_v55  ;;  %v11614_v62 = vld [vmem:[#allocation19 + $0x7b8] sm:$0xf]  ;;  %v12596_v24 = vld [vmem:[#allocation19 + $0x7c0] sm:$0xf0] }
 0x916   :  { %8190 = vmatpush.bf16.msra.mxu2 %v11327_v20  ;;  %8177 = vmatpush.bf16.msrb.mxu1 %v11219_v36  ;;  %v11650_v20 = vld [vmem:[#allocation19 + $0x800] sm:$0xf]  ;;  %v11734_v36 = vld [vmem:[#allocation19 + $0x8a8] sm:$0xf]  ;;  %v11615_v21 = vor.u32 %v12596_v24, %v11614_v62 }
 0x918   :  { %8203 = vmatpush.bf16.msrb.mxu3 %v11435_v11  ;;  %8217 = vmatpush.bf16.msra.mxu0 %v11531_v31  ;;  %v11674_v11 = vld [vmem:[#allocation19 + $0x830] sm:$0xf]  ;;  %v7858_v51 = vpop.f32.mrf.mxu2  ;;  %v12608_v31 = vld [vmem:[#allocation19 + $0x820] sm:$0xf0] }
 0x919   :  { %v11675_v49 = vor.u32 %v12611_v53, %v11674_v11  ;;  %v11663_v57 = vor.u32 %v12608_v31, %v11662_v30  ;;  %v7859_v43 = vadd.f32 %v7858_v51, %v7845_v6  ;;  %v11698_v31 = vld [vmem:[#allocation19 + $0x860] sm:$0xf] }
 0x91a   :  { %8191 = vmatpush.bf16.msra.mxu2 %v11315_v59  ;;  %8178 = vmatpush.bf16.msrb.mxu1 %v11207_v13  ;;  %v7900_v47 = vpop.f32.mrf.mxu1  ;;  %v11735_v59 = vor.u32 %v12626_v42, %v11734_v36  ;;  %v11699_v26 = vor.u32 %v12617_v52, %v11698_v31 }
 0x91c   :  { %8204 = vmatpush.bf16.msrb.mxu3 %v11423_v37  ;;  %8218 = vmatpush.bf16.msra.mxu0 %v11519_v2  ;;  %v7832_v37 = vpop.f32.mrf.mxu0  ;;  %v11638_v2 = vld [vmem:[#allocation19 + $0x7e8] sm:$0xf] }
 0x91d   :  { %8179 = vmatmul.bf16.vlgmr.msrb.gmra.mxu1 %v13864_v54  ;;  %v12602_v54 = vld [vmem:[#allocation19 + $0x7f0] sm:$0xf0]  ;;  %v7833_v8 = vadd.f32 %v7832_v37, %v7819_v29  ;;  %v11602_v37 = vld [vmem:[#allocation19 + $0x7a0] sm:$0xf] }
 0x91e   :  { %8192 = vmatpush.bf16.msra.mxu2 %v11303_v5  ;;  %8227 = vmatpush.bf16.msra.mxu1 %v11675_v49 }
 0x91f   :  { %v7847_v4 = vadd.f32 %v7846_v45, %v7833_v8 }
 0x920   :  { %8205 = vmatpush.bf16.msrb.mxu3 %v11411_v60  ;;  %8219 = vmatpush.bf16.msra.mxu0 %v11507_v10  ;;  %v7872_v60 = vpop.f32.mrf.mxu3  ;;  %v7860_v32 = vpop.f32.mrf.mxu2 }
 0x921   :  { %8193 = vmatmul.bf16.vlgmr.msra.gmra.mxu2 %v13866_v7  ;;  %v7873_v19 = vadd.f32 %v7872_v60, %v7859_v43  ;;  %v11639_v7 = vor.u32 %v12602_v54, %v11638_v2  ;;  %v7861_v1 = vadd.f32 %v7860_v32, %v7847_v4 }
 0x922   :  { %8241 = vmatpush.bf16.msrb.mxu2 %v11771_v38  ;;  %8228 = vmatpush.bf16.msra.mxu1 %v11663_v57  ;;  %v7902_v49 = vpop.f32.mrf.mxu1  ;;  %v11711_v38 = vor.u32 %v12620_v18, %v11710_v34  ;;  %v11590_v57 = vld [vmem:[#allocation19 + $0x788] sm:$0xf] }
 0x924   :  { %8206 = vmatpush.bf16.msrb.mxu3 %v11399_v3  ;;  %8220 = vmatpush.bf16.msra.mxu0 %v11495_v12  ;;  %v7886_v50 = vpop.f32.mrf.mxu0  ;;  %v12623_v3 = vld [vmem:[#allocation19 + $0x898] sm:$0xf0]  ;;  %v12593_v12 = vld [vmem:[#allocation19 + $0x7a8] sm:$0xf0] }
 0x925   :  { %v7887_v39 = vadd.f32 %v7886_v50, %v7873_v19  ;;  %v11723_v53 = vor.u32 %v12623_v3, %v11722_v33  ;;  %v11603_v28 = vor.u32 %v12593_v12, %v11602_v37 }
 0x926   :  { %8242 = vmatpush.bf16.msrb.mxu2 %v11759_v27  ;;  %v12590_v27 = vld [vmem:[#allocation19 + $0x790] sm:$0xf0] }
 0x927   :  { %8207 = vmatmul.bf16.vlgmr.msrb.gmra.mxu3 %v13877_v48  ;;  %8221 = vmatmul.bf16.vlgmr.msra.gmra.mxu0 %v13885_v0  ;;  %v11651_v48 = vor.u32 %v12605_v22, %v11650_v20  ;;  %v12599_v0 = vld [vmem:[#allocation19 + $0x7d8] sm:$0xf0]  ;;  %v7901_v46 = vadd.f32 %v7900_v47, %v7887_v39  ;;  %v11686_v20 = vld [vmem:[#allocation19 + $0x848] sm:$0xf]  ;;  %v12614_v22 = vld [vmem:[#allocation19 + $0x850] sm:$0xf0]  ;;  %v11591_v29 = vor.u32 %v12590_v27, %v11590_v57 }
 0x928   :  { %v11627_v35 = vor.u32 %v12599_v0, %v11626_v61  ;;  %v7874_v11 = vpop.f32.mrf.mxu3  ;;  %v7914_v10 = vpop.f32.mrf.mxu2  ;;  %v11687_v55 = vor.u32 %v12614_v22, %v11686_v20 }
 0x929   :  { %8229 = vmatpush.bf16.msra.mxu1 %v11651_v48  ;;  %v7915_v13 = vadd.f32 %v7914_v10, %v7901_v46  ;;  %v7875_v14 = vadd.f32 %v7874_v11, %v7861_v1 }
 0x92a   :  { %8243 = vmatpush.bf16.msrb.mxu2 %v11747_v9  ;;  %v7956_v48 = vpop.f32.mrf.mxu1 }
 0x92b   :  { %v8255_v5 = vadd.f32 %v7915_v13, %v13593_v16 }
 0x92c   :  { %v7888_v51 = vpop.f32.mrf.mxu0 }
 0x92d   :  { %8230 = vmatpush.bf16.msra.mxu1 %v11639_v7  ;;  %v7889_v30 = vadd.f32 %v7888_v51, %v7875_v14  ;;  %8261 = vst [vmem:[#allocation22] sm:$0xff] %v8255_v5 }
 0x92e   :  { %8244 = vmatpush.bf16.msrb.mxu2 %v11735_v59 }
 0x92f   :  { %v7903_v56 = vadd.f32 %v7902_v49, %v7889_v30 }
 0x930   :  { %v7916_v45 = vpop.f32.mrf.mxu2  ;;  %v7928_v41 = vpop.f32.mrf.mxu3 }
 0x931   :  { %8231 = vmatpush.bf16.msra.mxu1 %v11627_v35  ;;  %v7917_v16 = vadd.f32 %v7916_v45, %v7903_v56 }
 0x932   :  { %8245 = vmatpush.bf16.msrb.mxu2 %v11723_v53  ;;  %v7958_v2 = vpop.f32.mrf.mxu1 }
 0x933   :  { %v8258_v6 = vadd.f32 %v7917_v16, %v13602_v17  ;;  %v6210_v17 = vperm.slane %v13920_v44, 1 }
 0x934   :  { %v7942_v60 = vpop.f32.mrf.mxu0 }
 0x935   :  { %8232 = vmatpush.bf16.msra.mxu1 %v11615_v21  ;;  %8264 = vst [vmem:[#allocation22 + $0x18] sm:$0xff] %v8258_v6  ;;  %v7929_v54 = vadd.f32 %v7928_v41, %v6210_v17  ;;  %v6211_v6 = vperm.slane %v13920_v44, 2 }
 0x936   :  { %8246 = vmatpush.bf16.msrb.mxu2 %v11711_v38 }
 0x937   :  { %v7943_v36 = vadd.f32 %v7942_v60, %v7929_v54 }
 0x938   :  { %v7970_v32 = vpop.f32.mrf.mxu2  ;;  %v7930_v50 = vpop.f32.mrf.mxu3 }
 0x939   :  { %8233 = vmatpush.bf16.msra.mxu1 %v11603_v28  ;;  %v7957_v42 = vadd.f32 %v7956_v48, %v7943_v36  ;;  %v7931_v59 = vadd.f32 %v7930_v50, %v6210_v17 }
 0x93a   :  { %8247 = vmatpush.bf16.msrb.mxu2 %v11699_v26  ;;  %v8012_v19 = vpop.f32.mrf.mxu1 }
 0x93b   :  { %v7971_v7 = vadd.f32 %v7970_v32, %v7957_v42 }
 0x93c   :  { %v7944_v9 = vpop.f32.mrf.mxu0 }
 0x93d   :  { %8234 = vmatpush.bf16.msra.mxu1 %v11591_v29  ;;  %v7945_v61 = vadd.f32 %v7944_v9, %v7931_v59 }
 0x93e   :  { %8248 = vmatpush.bf16.msrb.mxu2 %v11687_v55 }
 0x940   :  { %8235 = vmatmul.bf16.vlgmr.msra.gmra.mxu1 %v13894_v58  ;;  %v7984_v43 = vpop.f32.mrf.mxu3  ;;  %v7972_v8 = vpop.f32.mrf.mxu2 }
 0x941   :  { %8249 = vmatmul.bf16.vlgmr.msrb.gmra.mxu2 %v13896_v40  ;;  %v7985_v0 = vadd.f32 %v7984_v43, %v7971_v7  ;;  %v7959_v40 = vadd.f32 %v7958_v2, %v7945_v61 }
 0x942   :  { %v8014_v46 = vpop.f32.mrf.mxu1 }
 0x943   :  { %v7973_v39 = vadd.f32 %v7972_v8, %v7959_v40 }
 0x944   :  { %v7998_v47 = vpop.f32.mrf.mxu0 }
 0x945   :  { %v7999_v33 = vadd.f32 %v7998_v47, %v7985_v0 }
 0x947   :  { %v8013_v35 = vadd.f32 %v8012_v19, %v7999_v33 }
 0x948   :  { %v7986_v58 = vpop.f32.mrf.mxu3  ;;  %v8026_v4 = vpop.f32.mrf.mxu2 }
 0x949   :  { %v7987_v11 = vadd.f32 %v7986_v58, %v7973_v39  ;;  %v8027_v10 = vadd.f32 %v8026_v4, %v8013_v35 }
 0x94c   :  { %v8000_v3 = vpop.f32.mrf.mxu0 }
 0x94d   :  { %v8001_v1 = vadd.f32 %v8000_v3, %v7987_v11 }
 0x94f   :  { %v8015_v18 = vadd.f32 %v8014_v46, %v8001_v1 }
 0x950   :  { %v8040_v53 = vpop.f32.mrf.mxu3  ;;  %v8028_v62 = vpop.f32.mrf.mxu2 }
 0x951   :  { %v8041_v24 = vadd.f32 %v8040_v53, %v8027_v10  ;;  %v8029_v51 = vadd.f32 %v8028_v62, %v8015_v18 }
 0x954   :  { %v8054_v13 = vpop.f32.mrf.mxu0 }
 0x955   :  { %v8055_v14 = vadd.f32 %v8054_v13, %v8041_v24 }
 0x958   :  { %v8042_v21 = vpop.f32.mrf.mxu3 }
 0x959   :  { %v8043_v38 = vadd.f32 %v8042_v21, %v8029_v51 }
 0x95a   :  { %v8068_v34 = vpop.f32.mrf.mxu1 }
 0x95b   :  { %v8069_v5 = vadd.f32 %v8068_v34, %v8055_v14 }
 0x95c   :  { %v8056_v30 = vpop.f32.mrf.mxu0 }
 0x95d   :  { %v8057_v52 = vadd.f32 %v8056_v30, %v8043_v38 }
 0x960   :  { %v8082_v49 = vpop.f32.mrf.mxu2 }
 0x961   :  { %v8083_v37 = vadd.f32 %v8082_v49, %v8069_v5 }
 0x962   :  { %v8070_v31 = vpop.f32.mrf.mxu1 }
 0x963   :  { %v8256_v12 = vadd.f32 %v8083_v37, %v13591_v63  ;;  %v8071_v56 = vadd.f32 %v8070_v31, %v8057_v52 }
 0x964   :  { %v8110_v27 = vpop.f32.mrf.mxu0 }
 0x965   :  { %8262 = vst [vmem:[#allocation22 + $0x8] sm:$0xff] %v8256_v12 }
 0x968   :  { %v8084_v28 = vpop.f32.mrf.mxu2 }
 0x969   :  { %v8085_v45 = vadd.f32 %v8084_v28, %v8071_v56 }
 0x96a   :  { %v8096_v57 = vpop.f32.mrf.mxu3 }
 0x96b   :  { %v8259_v26 = vadd.f32 %v8085_v45, %v13600_v15  ;;  %v8097_v63 = vadd.f32 %v8096_v57, %v6211_v6 }
 0x96c   :  { %v8112_v29 = vpop.f32.mrf.mxu0 }
 0x96d   :  { %8265 = vst [vmem:[#allocation22 + $0x20] sm:$0xff] %v8259_v26  ;;  %v8111_v60 = vadd.f32 %v8110_v27, %v8097_v63 }
 0x972   :  { %v8098_v20 = vpop.f32.mrf.mxu3 }
 0x973   :  { %v8099_v2 = vadd.f32 %v8098_v20, %v6211_v6 }
 0x975   :  { %v8113_v54 = vadd.f32 %v8112_v29, %v8099_v2 }
 0x97a   :  { %v8124_v16 = vpop.f32.mrf.mxu1 }
 0x97b   :  { %v8125_v32 = vadd.f32 %v8124_v16, %v8111_v60 }
 0x980   :  { %v8138_v22 = vpop.f32.mrf.mxu2 }
 0x981   :  { %v8139_v17 = vadd.f32 %v8138_v22, %v8125_v32 }
 0x982   :  { %v8126_v55 = vpop.f32.mrf.mxu1 }
 0x983   :  { %v8127_v36 = vadd.f32 %v8126_v55, %v8113_v54 }
 0x984   :  { %v8166_v50 = vpop.f32.mrf.mxu0 }
 0x988   :  { %v8140_v48 = vpop.f32.mrf.mxu2 }
 0x989   :  { %v8141_v42 = vadd.f32 %v8140_v48, %v8127_v36 }
 0x98a   :  { %v8152_v41 = vpop.f32.mrf.mxu3 }
 0x98b   :  { %v8153_v15 = vadd.f32 %v8152_v41, %v8139_v17 }
 0x98c   :  { %v8168_v19 = vpop.f32.mrf.mxu0 }
 0x98d   :  { %v8167_v47 = vadd.f32 %v8166_v50, %v8153_v15 }
 0x992   :  { %v8154_v43 = vpop.f32.mrf.mxu3 }
 0x993   :  { %v8155_v59 = vadd.f32 %v8154_v43, %v8141_v42 }
 0x995   :  { %v8169_v40 = vadd.f32 %v8168_v19, %v8155_v59 }
 0x99a   :  { %v8180_v9 = vpop.f32.mrf.mxu1 }
 0x99b   :  { %v8181_v7 = vadd.f32 %v8180_v9, %v8167_v47 }
 0x9a2   :  { %v8182_v44 = vpop.f32.mrf.mxu1 }
 0x9a3   :  { %v8183_v3 = vadd.f32 %v8182_v44, %v8169_v40 }
 0x9a4   :  { %v8194_v8 = vpop.f32.mrf.mxu2  ;;  %v8222_v39 = vpop.f32.mrf.mxu0 }
 0x9a5   :  { %v8195_v61 = vadd.f32 %v8194_v8, %v8181_v7 }
 0x9aa   :  { %v8208_v0 = vpop.f32.mrf.mxu3 }
 0x9ab   :  { %v8209_v4 = vadd.f32 %v8208_v0, %v8195_v61 }
 0x9ac   :  { %v8196_v58 = vpop.f32.mrf.mxu2  ;;  %v8224_v13 = vpop.f32.mrf.mxu0 }
 0x9ad   :  { %v8197_v46 = vadd.f32 %v8196_v58, %v8183_v3  ;;  %v8223_v35 = vadd.f32 %v8222_v39, %v8209_v4 }
 0x9b2   :  { %v8210_v10 = vpop.f32.mrf.mxu3 }
 0x9b3   :  { %v8211_v62 = vadd.f32 %v8210_v10, %v8197_v46 }
 0x9b5   :  { %v8225_v18 = vadd.f32 %v8224_v13, %v8211_v62 }
 0x9bd   :  { %v8236_v33 = vpop.f32.mrf.mxu1 }
 0x9be   :  { %v8237_v11 = vadd.f32 %v8236_v33, %v8223_v35 }
 0x9c4   :  { %v8250_v53 = vpop.f32.mrf.mxu2 }
 0x9c5   :  { %v8251_v24 = vadd.f32 %v8250_v53, %v8237_v11  ;;  %v8238_v34 = vpop.f32.mrf.mxu1 }
 0x9c6   :  { %v8239_v51 = vadd.f32 %v8238_v34, %v8225_v18 }
 0x9c7   :  { %v8257_v1 = vadd.f32 %v8251_v24, %v13595_v23 }
 0x9c9   :  { %8263 = vst [vmem:[#allocation22 + $0x10] sm:$0xff] %v8257_v1 }
 0x9cc   :  { %v8252_v14 = vpop.f32.mrf.mxu2 }
 0x9cd   :  { %v8253_v5 = vadd.f32 %v8252_v14, %v8239_v51 }
 0x9cf   :  { %v8260_v21 = vadd.f32 %v8253_v5, %v13604_v25 }
 0x9d1   :  { %8266 = vst [vmem:[#allocation22 + $0x28] sm:$0xff] %v8260_v21 }
 0x9d2   :  { %8279 = dma.vmem_to_hbm [thread:$0]  %s8272_s20, 768, %s8274_s22, [#allocation4], %s13075_s13, %s13075_s13, %s13076_s14  }
 0x9d3   :  { %13065 = dma.done.wait [#allocation4], 768  }
 0x9d4   :  { %13066 = vsyncadd [#allocation4], 4294966528 }
 0x9d5   :  { %8284 = vsyncpa [#allocation3], 1 }
 0x9d6   :  { %8285 = vsyncpa [#allocation6], 1 }
 0x9d7   :  { %8286 = vsyncpa [#allocation9], 1 }
 0x9d8   :  { %8287 = vsyncpa [#allocation12], 1 }
 0x9d9   :  { %8288 = vsyncpa [#allocation15], 1 }
 0x9da   :  { %8289 = vsyncpa [#allocation18], 1 }
 0x9db   :  { %8290 = vsyncpa [#allocation21], 1 }
 0x9dc   :  { %8291 = vsyncpa [#allocation4], 1 }

</bundles_post_ra>
